<compile_context>
chip_gen: v7x
topology: tpu7x:2x2x1
jax: 0.10.0
libtpu: 0.0.40
codegen_flags: <defaults>
</compile_context>

<pallas_src>
import functools

import jax
import jax.numpy as jnp
from jax.experimental import pallas as pl
from jax.experimental.pallas import tpu as pltpu

EPS = 1e-5
LANE = 128


def _round_up(n, m):
    return (n + m - 1) // m * m


# ----------------------------- kernel helpers --------------------------------

def _bn_train(acc, gamma, beta):
    """Single-pass training-mode BatchNorm on an (rows, C) f32 matrix.

    Batch statistics over the row axis, biased variance (var = E[x^2] - mu^2).
    Padded (zero) channels have gamma = beta = 0, so they stay exactly zero.
    """
    m = acc.shape[0]
    s = jnp.sum(acc, axis=0, keepdims=True)
    ss = jnp.sum(acc * acc, axis=0, keepdims=True)
    mu = s * (1.0 / m)
    var = ss * (1.0 / m) - mu * mu
    inv = jax.lax.rsqrt(var + EPS)
    return (acc - mu) * (gamma * inv) + beta


def _im2col_3x3(xp, n, ho, wo, stride, dtype):
    """xp: (N, H+2, W+2, C) zero-padded input (value, f32).

    Returns the (N*Ho*Wo, 9*C) im2col patch matrix (tap-major, HW order) in
    `dtype`, ready for ONE MXU matmul against a (9*C, Cout) weight.  Each tap
    is cast before the lane-dim concat so the big patch matrix is only ever
    materialized once, already in the MXU operand dtype.
    """
    c = xp.shape[-1]
    span_h = (ho - 1) * stride + 1
    span_w = (wo - 1) * stride + 1
    taps = []
    for dy in range(3):
        for dx in range(3):
            taps.append(
                xp[:, dy:dy + span_h:stride, dx:dx + span_w:stride, :].astype(dtype))
    return jnp.concatenate(taps, axis=-1).reshape(n * ho * wo, 9 * c)


# --------------------------------- kernel -------------------------------------

def _residual_block_kernel(x_ref, w1_ref, g1_ref, b1_ref,
                           w2_ref, g2_ref, b2_ref, *rest,
                           stride, has_proj):
    """Fully fused ResidualBlock forward (NHWC, channels padded to 128 lanes).

    relu( bn2(conv2( relu(bn1(conv1(x))) )) + identity ),
    identity = bn_p(conv1x1(x)) when the projection exists, else x.
    Everything stays resident in VMEM; x is read from HBM exactly once.
    """
    if has_proj:
        wp_ref, gp_ref, bp_ref, o_ref, xp1_ref, xp2_ref = rest
    else:
        o_ref, xp1_ref, xp2_ref = rest

    n, h, w, _ = x_ref.shape
    _, ho, wo, cout = o_ref.shape

    x = x_ref[...]                                   # bf16, lane-dense

    # ---- conv1 (3x3, stride=s, pad=1) + BN1 + ReLU --------------------------
    # Build the 1px halo in a VMEM scratch: no host-side pad, no extra HBM copy.
    xp1_ref[...] = jnp.zeros_like(xp1_ref)
    xp1_ref[:, 1:h + 1, 1:w + 1, :] = x.astype(xp1_ref.dtype)
    p1 = _im2col_3x3(xp1_ref[...], n, ho, wo, stride, jnp.bfloat16)  # (M, 9*Cin)
    acc1 = jnp.dot(p1, w1_ref[...],
                   preferred_element_type=jnp.float32)               # one MXU matmul
    y1 = jnp.maximum(_bn_train(acc1, g1_ref[...], b1_ref[...]), 0.0)

    # ---- identity branch -----------------------------------------------------
    m = n * ho * wo
    if has_proj:
        # 1x1 conv (stride=s) + BN, reusing the already-resident x.
        xs = x[:, ::stride, ::stride, :].reshape(m, x.shape[-1])
        accp = jnp.dot(xs, wp_ref[...], preferred_element_type=jnp.float32)
        identity = _bn_train(accp, gp_ref[...], bp_ref[...])
    else:
        # Module semantics guarantee stride == 1 and Cin == Cout here.
        identity = x.astype(jnp.float32).reshape(m, cout)

    # ---- conv2 (3x3, stride=1, pad=1) + BN2 + residual add + ReLU -----------
    xp2_ref[...] = jnp.zeros_like(xp2_ref)
    xp2_ref[:, 1:ho + 1, 1:wo + 1, :] = y1.reshape(n, ho, wo, cout)
    p2 = _im2col_3x3(xp2_ref[...], n, ho, wo, 1, jnp.bfloat16)       # (M, 9*Cout)
    acc2 = jnp.dot(p2, w2_ref[...], preferred_element_type=jnp.float32)
    y2 = _bn_train(acc2, g2_ref[...], b2_ref[...]) + identity
    o_ref[...] = jnp.maximum(y2, 0.0).reshape(n, ho, wo, cout).astype(o_ref.dtype)


# -------------------------------- wrapper --------------------------------------

def _full_spec(shape):
    return pl.BlockSpec(shape, lambda i: (0,) * len(shape))


_COMPILER_PARAMS = pltpu.CompilerParams(
    # grid=(1,): single invocation, whole (small) problem resident in VMEM.
    dimension_semantics=("arbitrary",),
    # Raise the scoped VMEM limit above the conservative defaults, but keep it
    # below v7x's 64 MiB physical VMEM (v5e/v6e have 128 MiB).
    vmem_limit_bytes=48 * 1024 * 1024,
)


def _residual_block_call(x, w1, g1, b1, w2, g2, b2, proj, *, stride):
    n, h, w, cin_p = x.shape
    cout_p = g1.shape[-1]
    ho = (h - 1) // stride + 1
    wo = (w - 1) // stride + 1

    has_proj = proj is not None
    inputs = [x, w1, g1, b1, w2, g2, b2] + (list(proj) if has_proj else [])
    in_specs = [_full_spec(a.shape) for a in inputs]

    kernel = functools.partial(_residual_block_kernel,
                               stride=stride, has_proj=has_proj)

    # TODO(synk): for real ResNet shapes, tile the grid over Cout blocks (BN is
    # per-channel, so conv1+bn1+relu and the projection split cleanly) with a
    # second pass for conv2 (which couples all channels), and mark those axes
    # "parallel" for v7x megacore; at these test shapes the whole problem fits
    # comfortably in one VMEM block and a single grid step.
    return pl.pallas_call(
        kernel,
        out_shape=jax.ShapeDtypeStruct((n, ho, wo, cout_p), jnp.float32),
        grid=(1,),
        in_specs=in_specs,
        out_specs=_full_spec((n, ho, wo, cout_p)),
        scratch_shapes=[
            pltpu.VMEM((n, h + 2, w + 2, cin_p), jnp.float32),     # padded x
            pltpu.VMEM((n, ho + 2, wo + 2, cout_p), jnp.float32),  # padded out1
        ],
        compiler_params=_COMPILER_PARAMS,
    )(*inputs)


def residual_block_forward(x_nchw, params, *, stride=1):
    """Full ResidualBlock forward.  Input/output are NCHW (PyTorch layout)."""
    n, cin, h, w = x_nchw.shape
    cout = params["w1"].shape[-1]
    cin_p = _round_up(cin, LANE)
    cout_p = _round_up(cout, LANE)

    # Layout glue, done ONCE at the block boundary: NCHW -> NHWC, bf16
    # activations, channels zero-padded up to a multiple of 128 so every kernel
    # load/store is lane-dense (no masked vst on a Cout=8 last dim).
    x = jnp.transpose(x_nchw, (0, 2, 3, 1)).astype(jnp.bfloat16)
    x = jnp.pad(x, ((0, 0), (0, 0), (0, 0), (0, cin_p - cin)))

    def prep_w(wk, ci_p, co_p):                      # HWIO -> (KH*KW*Ci_p, Co_p)
        kh, kw, ci, co = wk.shape
        wk = jnp.pad(wk, ((0, 0), (0, 0), (0, ci_p - ci), (0, co_p - co)))
        return wk.reshape(kh * kw * ci_p, co_p).astype(jnp.bfloat16)

    def prep_v(v, co_p):                             # (Co,) -> (1, Co_p) f32
        return jnp.pad(v, (0, co_p - v.shape[0])).reshape(1, co_p).astype(jnp.float32)

    w1 = prep_w(params["w1"], cin_p, cout_p)
    g1, b1 = prep_v(params["g1"], cout_p), prep_v(params["b1"], cout_p)
    w2 = prep_w(params["w2"], cout_p, cout_p)
    g2, b2 = prep_v(params["g2"], cout_p), prep_v(params["b2"], cout_p)

    proj = None
    if params.get("w_proj") is not None:
        proj = (prep_w(params["w_proj"], cin_p, cout_p),
                prep_v(params["g_proj"], cout_p),
                prep_v(params["b_proj"], cout_p))

    out = _residual_block_call(x, w1, g1, b1, w2, g2, b2, proj, stride=stride)

    out = out[:, :, :, :cout]                        # drop channel padding
    return jnp.transpose(out, (0, 3, 1, 2)).astype(x_nchw.dtype)   # -> NCHW


# ------------------------- pure-JAX f32 reference -----------------------------

def _ref_conv(x, w, stride, padding):
    return jax.lax.conv_general_dilated(
        x, w, (stride, stride), [(padding, padding), (padding, padding)],
        dimension_numbers=("NHWC", "HWIO", "NHWC"))


def _ref_bn(x, g, b):
    mu = x.mean(axis=(0, 1, 2), keepdims=True)
    var = ((x - mu) ** 2).mean(axis=(0, 1, 2), keepdims=True)
    return (x - mu) * jax.lax.rsqrt(var + EPS) * g.reshape(1, 1, 1, -1) \
        + b.reshape(1, 1, 1, -1)


def residual_block_reference(x_nchw, params, *, stride=1):
    x = jnp.transpose(x_nchw, (0, 2, 3, 1))
    out = jax.nn.relu(_ref_bn(_ref_conv(x, params["w1"], stride, 1),
                              params["g1"], params["b1"]))
    if params.get("w_proj") is not None:
        identity = _ref_bn(_ref_conv(x, params["w_proj"], stride, 0),
                           params["g_proj"], params["b_proj"])
    else:
        identity = x
    out = jax.nn.relu(_ref_bn(_ref_conv(out, params["w2"], 1, 1),
                              params["g2"], params["b2"]) + identity)
    return jnp.transpose(out, (0, 3, 1, 2))


# ---------------------------------- main --------------------------------------

if __name__ == "__main__":
    key = jax.random.PRNGKey(0)
    k_x, k1, k2, k3, k4, k5, k6, k7, k8, k9 = jax.random.split(key, 10)

    N, Cin, Cout, H, W = 2, 4, 8, 16, 16
    stride = 1  # Cin != Cout -> projection path is exercised

    x = jax.random.normal(k_x, (N, Cin, H, W), dtype=jnp.float32)

    params = {
        # conv weights stored HWIO
        "w1": jax.random.normal(k1, (3, 3, Cin, Cout), jnp.float32) * 0.1,
        "g1": jax.random.uniform(k2, (Cout,), jnp.float32, 0.5, 1.5),
        "b1": jax.random.normal(k3, (Cout,), jnp.float32) * 0.1,
        "w2": jax.random.normal(k4, (3, 3, Cout, Cout), jnp.float32) * 0.1,
        "g2": jax.random.uniform(k5, (Cout,), jnp.float32, 0.5, 1.5),
        "b2": jax.random.normal(k6, (Cout,), jnp.float32) * 0.1,
        "w_proj": jax.random.normal(k7, (1, 1, Cin, Cout), jnp.float32) * 0.1,
        "g_proj": jax.random.uniform(k8, (Cout,), jnp.float32, 0.5, 1.5),
        "b_proj": jax.random.normal(k9, (Cout,), jnp.float32) * 0.1,
    }

    fwd = jax.jit(functools.partial(residual_block_forward, stride=stride))
    out = jax.block_until_ready(fwd(x, params))
    ref = jax.block_until_ready(residual_block_reference(x, params, stride=stride))

    assert out.shape == (N, Cout, H // stride, W // stride), out.shape
    # bf16 MXU operands (f32 accumulation + f32 BN) vs. a pure-f32 reference:
    # use a correspondingly looser tolerance than an all-f32 kernel would need.
    err = float(jnp.max(jnp.abs(out - ref)))
    assert err < 5e-2, err

    print("KERNEL_OK")
</pallas_src>

<mosaic_0001>
module attributes {stable_mosaic.version = 11 : i64} {
  func.func @_residual_block_kernel(%arg0: i32, %arg1: memref<2x16x16x128xbf16, #tpu.memory_space<vmem>>, %arg2: memref<1152x128xbf16, #tpu.memory_space<vmem>>, %arg3: memref<1x128xf32, #tpu.memory_space<vmem>>, %arg4: memref<1x128xf32, #tpu.memory_space<vmem>>, %arg5: memref<1152x128xbf16, #tpu.memory_space<vmem>>, %arg6: memref<1x128xf32, #tpu.memory_space<vmem>>, %arg7: memref<1x128xf32, #tpu.memory_space<vmem>>, %arg8: memref<128x128xbf16, #tpu.memory_space<vmem>>, %arg9: memref<1x128xf32, #tpu.memory_space<vmem>>, %arg10: memref<1x128xf32, #tpu.memory_space<vmem>>, %arg11: memref<2x16x16x128xf32, #tpu.memory_space<vmem>>, %arg12: memref<2x18x18x128xf32, #tpu.memory_space<vmem>>, %arg13: memref<2x18x18x128xf32, #tpu.memory_space<vmem>>) attributes {dimension_semantics = [#tpu.dimension_semantics<arbitrary>], iteration_bounds = array<i64: 1>, scalar_prefetch = 0 : i64, scratch_operands = 2 : i64, tpu.core_type = #tpu.core_type<tc>, window_params = [{pipeline_mode = #tpu.pipeline_mode<synchronous>, transform_indices = @transform_0, window_bounds = array<i64: 2, 16, 16, 128>}, {pipeline_mode = #tpu.pipeline_mode<synchronous>, transform_indices = @transform_1, window_bounds = array<i64: 1152, 128>}, {pipeline_mode = #tpu.pipeline_mode<synchronous>, transform_indices = @transform_2, window_bounds = array<i64: 1, 128>}, {pipeline_mode = #tpu.pipeline_mode<synchronous>, transform_indices = @transform_3, window_bounds = array<i64: 1, 128>}, {pipeline_mode = #tpu.pipeline_mode<synchronous>, transform_indices = @transform_4, window_bounds = array<i64: 1152, 128>}, {pipeline_mode = #tpu.pipeline_mode<synchronous>, transform_indices = @transform_5, window_bounds = array<i64: 1, 128>}, {pipeline_mode = #tpu.pipeline_mode<synchronous>, transform_indices = @transform_6, window_bounds = array<i64: 1, 128>}, {pipeline_mode = #tpu.pipeline_mode<synchronous>, transform_indices = @transform_7, window_bounds = array<i64: 128, 128>}, {pipeline_mode = #tpu.pipeline_mode<synchronous>, transform_indices = @transform_8, window_bounds = array<i64: 1, 128>}, {pipeline_mode = #tpu.pipeline_mode<synchronous>, transform_indices = @transform_9, window_bounds = array<i64: 1, 128>}, {pipeline_mode = #tpu.pipeline_mode<synchronous>, transform_indices = @transform_10, window_bounds = array<i64: 2, 16, 16, 128>}]} {
    %c0 = arith.constant 0 : index
    %c0_0 = arith.constant 0 : index
    %c0_1 = arith.constant 0 : index
    %c0_2 = arith.constant 0 : index
    %0 = vector.load %arg1[%c0, %c0_0, %c0_1, %c0_2] : memref<2x16x16x128xbf16, #tpu.memory_space<vmem>>, vector<2x16x16x128xbf16>
    %cst = arith.constant 0.000000e+00 : f32
    %1 = vector.broadcast %cst : f32 to vector<2x18x18x128xf32>
    %c0_3 = arith.constant 0 : index
    %c0_4 = arith.constant 0 : index
    %c0_5 = arith.constant 0 : index
    %c0_6 = arith.constant 0 : index
    %2 = vector.load %arg12[%c0_3, %c0_4, %c0_5, %c0_6] : memref<2x18x18x128xf32, #tpu.memory_space<vmem>>, vector<2x18x18x128xf32>
    tpu.vector_store %arg12[%c0_3, %c0_4, %c0_5, %c0_6], %1 {strides = array<i32>} : memref<2x18x18x128xf32, #tpu.memory_space<vmem>>, vector<2x18x18x128xf32>,
    %3 = arith.extf %0 : vector<2x16x16x128xbf16> to vector<2x16x16x128xf32>
    %c0_7 = arith.constant 0 : index
    %c1 = arith.constant 1 : index
    %c1_8 = arith.constant 1 : index
    %c0_9 = arith.constant 0 : index
    %4 = vector.load %arg12[%c0_7, %c1, %c1_8, %c0_9] : memref<2x18x18x128xf32, #tpu.memory_space<vmem>>, vector<2x16x16x128xf32>
    tpu.vector_store %arg12[%c0_7, %c1, %c1_8, %c0_9], %3 {strides = array<i32>} : memref<2x18x18x128xf32, #tpu.memory_space<vmem>>, vector<2x16x16x128xf32>,
    %c0_10 = arith.constant 0 : index
    %c0_11 = arith.constant 0 : index
    %c0_12 = arith.constant 0 : index
    %c0_13 = arith.constant 0 : index
    %5 = vector.load %arg12[%c0_10, %c0_11, %c0_12, %c0_13] : memref<2x18x18x128xf32, #tpu.memory_space<vmem>>, vector<2x18x18x128xf32>
    %6 = vector.extract_strided_slice %5 {offsets = [0, 0, 0, 0], sizes = [2, 16, 16, 128], strides = [1, 1, 1, 1]} : vector<2x18x18x128xf32> to vector<2x16x16x128xf32>
    %7 = arith.truncf %6 : vector<2x16x16x128xf32> to vector<2x16x16x128xbf16>
    %8 = vector.extract_strided_slice %5 {offsets = [0, 0, 1, 0], sizes = [2, 16, 16, 128], strides = [1, 1, 1, 1]} : vector<2x18x18x128xf32> to vector<2x16x16x128xf32>
    %9 = arith.truncf %8 : vector<2x16x16x128xf32> to vector<2x16x16x128xbf16>
    %10 = vector.extract_strided_slice %5 {offsets = [0, 0, 2, 0], sizes = [2, 16, 16, 128], strides = [1, 1, 1, 1]} : vector<2x18x18x128xf32> to vector<2x16x16x128xf32>
    %11 = arith.truncf %10 : vector<2x16x16x128xf32> to vector<2x16x16x128xbf16>
    %12 = vector.extract_strided_slice %5 {offsets = [0, 1, 0, 0], sizes = [2, 16, 16, 128], strides = [1, 1, 1, 1]} : vector<2x18x18x128xf32> to vector<2x16x16x128xf32>
    %13 = arith.truncf %12 : vector<2x16x16x128xf32> to vector<2x16x16x128xbf16>
    %14 = vector.extract_strided_slice %5 {offsets = [0, 1, 1, 0], sizes = [2, 16, 16, 128], strides = [1, 1, 1, 1]} : vector<2x18x18x128xf32> to vector<2x16x16x128xf32>
    %15 = arith.truncf %14 : vector<2x16x16x128xf32> to vector<2x16x16x128xbf16>
    %16 = vector.extract_strided_slice %5 {offsets = [0, 1, 2, 0], sizes = [2, 16, 16, 128], strides = [1, 1, 1, 1]} : vector<2x18x18x128xf32> to vector<2x16x16x128xf32>
    %17 = arith.truncf %16 : vector<2x16x16x128xf32> to vector<2x16x16x128xbf16>
    %18 = vector.extract_strided_slice %5 {offsets = [0, 2, 0, 0], sizes = [2, 16, 16, 128], strides = [1, 1, 1, 1]} : vector<2x18x18x128xf32> to vector<2x16x16x128xf32>
    %19 = arith.truncf %18 : vector<2x16x16x128xf32> to vector<2x16x16x128xbf16>
    %20 = vector.extract_strided_slice %5 {offsets = [0, 2, 1, 0], sizes = [2, 16, 16, 128], strides = [1, 1, 1, 1]} : vector<2x18x18x128xf32> to vector<2x16x16x128xf32>
    %21 = arith.truncf %20 : vector<2x16x16x128xf32> to vector<2x16x16x128xbf16>
    %22 = vector.extract_strided_slice %5 {offsets = [0, 2, 2, 0], sizes = [2, 16, 16, 128], strides = [1, 1, 1, 1]} : vector<2x18x18x128xf32> to vector<2x16x16x128xf32>
    %23 = arith.truncf %22 : vector<2x16x16x128xf32> to vector<2x16x16x128xbf16>
    %24 = tpu.concatenate %7, %9, %11, %13, %15, %17, %19, %21, %23 in 3 : vector<2x16x16x128xbf16>, vector<2x16x16x128xbf16>, vector<2x16x16x128xbf16>, vector<2x16x16x128xbf16>, vector<2x16x16x128xbf16>, vector<2x16x16x128xbf16>, vector<2x16x16x128xbf16>, vector<2x16x16x128xbf16>, vector<2x16x16x128xbf16> -> vector<2x16x16x1152xbf16>
    %25 = vector.shape_cast %24 : vector<2x16x16x1152xbf16> to vector<512x1152xbf16>
    %c0_14 = arith.constant 0 : index
    %c0_15 = arith.constant 0 : index
    %26 = vector.load %arg2[%c0_14, %c0_15] : memref<1152x128xbf16, #tpu.memory_space<vmem>>, vector<1152x128xbf16>
    %cst_16 = arith.constant dense<0.000000e+00> : vector<512x128xf32>
    %27 = tpu.matmul %25, %26, %cst_16 {dimension_numbers = #tpu.dot_dimension_numbers<[1], [0], [0], [1], [0, 0, 1, 1], [], []>} : vector<512x1152xbf16>, vector<1152x128xbf16>, vector<512x128xf32> -> vector<512x128xf32>
    %c0_17 = arith.constant 0 : index
    %c0_18 = arith.constant 0 : index
    %28 = vector.load %arg3[%c0_17, %c0_18] : memref<1x128xf32, #tpu.memory_space<vmem>>, vector<1x128xf32>
    %c0_19 = arith.constant 0 : index
    %c0_20 = arith.constant 0 : index
    %29 = vector.load %arg4[%c0_19, %c0_20] : memref<1x128xf32, #tpu.memory_space<vmem>>, vector<1x128xf32>
    %cst_21 = arith.constant dense<0.000000e+00> : vector<128xf32>
    %30 = vector.multi_reduction <add>, %27, %cst_21 [0] : vector<512x128xf32> to vector<128xf32>
    %31 = vector.shape_cast %30 : vector<128xf32> to vector<1x128xf32>
    %32 = arith.mulf %27, %27 : vector<512x128xf32>
    %cst_22 = arith.constant dense<0.000000e+00> : vector<128xf32>
    %33 = vector.multi_reduction <add>, %32, %cst_22 [0] : vector<512x128xf32> to vector<128xf32>
    %34 = vector.shape_cast %33 : vector<128xf32> to vector<1x128xf32>
    %cst_23 = arith.constant 0.001953125 : f32
    %35 = vector.broadcast %cst_23 : f32 to vector<1x128xf32>
    %36 = arith.mulf %31, %35 : vector<1x128xf32>
    %cst_24 = arith.constant 0.001953125 : f32
    %37 = vector.broadcast %cst_24 : f32 to vector<1x128xf32>
    %38 = arith.mulf %34, %37 : vector<1x128xf32>
    %39 = arith.mulf %36, %36 : vector<1x128xf32>
    %40 = arith.subf %38, %39 : vector<1x128xf32>
    %cst_25 = arith.constant 9.99999974E-6 : f32
    %41 = vector.broadcast %cst_25 : f32 to vector<1x128xf32>
    %42 = arith.addf %40, %41 : vector<1x128xf32>
    %43 = math.rsqrt %42 : vector<1x128xf32>
    %44 = vector.broadcast %36 : vector<1x128xf32> to vector<512x128xf32>
    %45 = arith.subf %27, %44 : vector<512x128xf32>
    %46 = arith.mulf %28, %43 : vector<1x128xf32>
    %47 = vector.broadcast %46 : vector<1x128xf32> to vector<512x128xf32>
    %48 = arith.mulf %45, %47 : vector<512x128xf32>
    %49 = vector.broadcast %29 : vector<1x128xf32> to vector<512x128xf32>
    %50 = arith.addf %48, %49 : vector<512x128xf32>
    %cst_26 = arith.constant 0.000000e+00 : f32
    %51 = vector.broadcast %cst_26 : f32 to vector<512x128xf32>
    %52 = arith.maximumf %50, %51 : vector<512x128xf32>
    %53 = vector.shape_cast %0 : vector<2x16x16x128xbf16> to vector<512x128xbf16>
    %c0_27 = arith.constant 0 : index
    %c0_28 = arith.constant 0 : index
    %54 = vector.load %arg8[%c0_27, %c0_28] : memref<128x128xbf16, #tpu.memory_space<vmem>>, vector<128x128xbf16>
    %cst_29 = arith.constant dense<0.000000e+00> : vector<512x128xf32>
    %55 = tpu.matmul %53, %54, %cst_29 {dimension_numbers = #tpu.dot_dimension_numbers<[1], [0], [0], [1], [0, 0, 1, 1], [], []>} : vector<512x128xbf16>, vector<128x128xbf16>, vector<512x128xf32> -> vector<512x128xf32>
    %c0_30 = arith.constant 0 : index
    %c0_31 = arith.constant 0 : index
    %56 = vector.load %arg9[%c0_30, %c0_31] : memref<1x128xf32, #tpu.memory_space<vmem>>, vector<1x128xf32>
    %c0_32 = arith.constant 0 : index
    %c0_33 = arith.constant 0 : index
    %57 = vector.load %arg10[%c0_32, %c0_33] : memref<1x128xf32, #tpu.memory_space<vmem>>, vector<1x128xf32>
    %cst_34 = arith.constant dense<0.000000e+00> : vector<128xf32>
    %58 = vector.multi_reduction <add>, %55, %cst_34 [0] : vector<512x128xf32> to vector<128xf32>
    %59 = vector.shape_cast %58 : vector<128xf32> to vector<1x128xf32>
    %60 = arith.mulf %55, %55 : vector<512x128xf32>
    %cst_35 = arith.constant dense<0.000000e+00> : vector<128xf32>
    %61 = vector.multi_reduction <add>, %60, %cst_35 [0] : vector<512x128xf32> to vector<128xf32>
    %62 = vector.shape_cast %61 : vector<128xf32> to vector<1x128xf32>
    %cst_36 = arith.constant 0.001953125 : f32
    %63 = vector.broadcast %cst_36 : f32 to vector<1x128xf32>
    %64 = arith.mulf %59, %63 : vector<1x128xf32>
    %cst_37 = arith.constant 0.001953125 : f32
    %65 = vector.broadcast %cst_37 : f32 to vector<1x128xf32>
    %66 = arith.mulf %62, %65 : vector<1x128xf32>
    %67 = arith.mulf %64, %64 : vector<1x128xf32>
    %68 = arith.subf %66, %67 : vector<1x128xf32>
    %cst_38 = arith.constant 9.99999974E-6 : f32
    %69 = vector.broadcast %cst_38 : f32 to vector<1x128xf32>
    %70 = arith.addf %68, %69 : vector<1x128xf32>
    %71 = math.rsqrt %70 : vector<1x128xf32>
    %72 = vector.broadcast %64 : vector<1x128xf32> to vector<512x128xf32>
    %73 = arith.subf %55, %72 : vector<512x128xf32>
    %74 = arith.mulf %56, %71 : vector<1x128xf32>
    %75 = vector.broadcast %74 : vector<1x128xf32> to vector<512x128xf32>
    %76 = arith.mulf %73, %75 : vector<512x128xf32>
    %77 = vector.broadcast %57 : vector<1x128xf32> to vector<512x128xf32>
    %78 = arith.addf %76, %77 : vector<512x128xf32>
    %cst_39 = arith.constant 0.000000e+00 : f32
    %79 = vector.broadcast %cst_39 : f32 to vector<2x18x18x128xf32>
    %c0_40 = arith.constant 0 : index
    %c0_41 = arith.constant 0 : index
    %c0_42 = arith.constant 0 : index
    %c0_43 = arith.constant 0 : index
    %80 = vector.load %arg13[%c0_40, %c0_41, %c0_42, %c0_43] : memref<2x18x18x128xf32, #tpu.memory_space<vmem>>, vector<2x18x18x128xf32>
    tpu.vector_store %arg13[%c0_40, %c0_41, %c0_42, %c0_43], %79 {strides = array<i32>} : memref<2x18x18x128xf32, #tpu.memory_space<vmem>>, vector<2x18x18x128xf32>,
    %81 = vector.shape_cast %52 : vector<512x128xf32> to vector<2x16x16x128xf32>
    %c0_44 = arith.constant 0 : index
    %c1_45 = arith.constant 1 : index
    %c1_46 = arith.constant 1 : index
    %c0_47 = arith.constant 0 : index
    %82 = vector.load %arg13[%c0_44, %c1_45, %c1_46, %c0_47] : memref<2x18x18x128xf32, #tpu.memory_space<vmem>>, vector<2x16x16x128xf32>
    tpu.vector_store %arg13[%c0_44, %c1_45, %c1_46, %c0_47], %81 {strides = array<i32>} : memref<2x18x18x128xf32, #tpu.memory_space<vmem>>, vector<2x16x16x128xf32>,
    %c0_48 = arith.constant 0 : index
    %c0_49 = arith.constant 0 : index
    %c0_50 = arith.constant 0 : index
    %c0_51 = arith.constant 0 : index
    %83 = vector.load %arg13[%c0_48, %c0_49, %c0_50, %c0_51] : memref<2x18x18x128xf32, #tpu.memory_space<vmem>>, vector<2x18x18x128xf32>
    %84 = vector.extract_strided_slice %83 {offsets = [0, 0, 0, 0], sizes = [2, 16, 16, 128], strides = [1, 1, 1, 1]} : vector<2x18x18x128xf32> to vector<2x16x16x128xf32>
    %85 = arith.truncf %84 : vector<2x16x16x128xf32> to vector<2x16x16x128xbf16>
    %86 = vector.extract_strided_slice %83 {offsets = [0, 0, 1, 0], sizes = [2, 16, 16, 128], strides = [1, 1, 1, 1]} : vector<2x18x18x128xf32> to vector<2x16x16x128xf32>
    %87 = arith.truncf %86 : vector<2x16x16x128xf32> to vector<2x16x16x128xbf16>
    %88 = vector.extract_strided_slice %83 {offsets = [0, 0, 2, 0], sizes = [2, 16, 16, 128], strides = [1, 1, 1, 1]} : vector<2x18x18x128xf32> to vector<2x16x16x128xf32>
    %89 = arith.truncf %88 : vector<2x16x16x128xf32> to vector<2x16x16x128xbf16>
    %90 = vector.extract_strided_slice %83 {offsets = [0, 1, 0, 0], sizes = [2, 16, 16, 128], strides = [1, 1, 1, 1]} : vector<2x18x18x128xf32> to vector<2x16x16x128xf32>
    %91 = arith.truncf %90 : vector<2x16x16x128xf32> to vector<2x16x16x128xbf16>
    %92 = vector.extract_strided_slice %83 {offsets = [0, 1, 1, 0], sizes = [2, 16, 16, 128], strides = [1, 1, 1, 1]} : vector<2x18x18x128xf32> to vector<2x16x16x128xf32>
    %93 = arith.truncf %92 : vector<2x16x16x128xf32> to vector<2x16x16x128xbf16>
    %94 = vector.extract_strided_slice %83 {offsets = [0, 1, 2, 0], sizes = [2, 16, 16, 128], strides = [1, 1, 1, 1]} : vector<2x18x18x128xf32> to vector<2x16x16x128xf32>
    %95 = arith.truncf %94 : vector<2x16x16x128xf32> to vector<2x16x16x128xbf16>
    %96 = vector.extract_strided_slice %83 {offsets = [0, 2, 0, 0], sizes = [2, 16, 16, 128], strides = [1, 1, 1, 1]} : vector<2x18x18x128xf32> to vector<2x16x16x128xf32>
    %97 = arith.truncf %96 : vector<2x16x16x128xf32> to vector<2x16x16x128xbf16>
    %98 = vector.extract_strided_slice %83 {offsets = [0, 2, 1, 0], sizes = [2, 16, 16, 128], strides = [1, 1, 1, 1]} : vector<2x18x18x128xf32> to vector<2x16x16x128xf32>
    %99 = arith.truncf %98 : vector<2x16x16x128xf32> to vector<2x16x16x128xbf16>
    %100 = vector.extract_strided_slice %83 {offsets = [0, 2, 2, 0], sizes = [2, 16, 16, 128], strides = [1, 1, 1, 1]} : vector<2x18x18x128xf32> to vector<2x16x16x128xf32>
    %101 = arith.truncf %100 : vector<2x16x16x128xf32> to vector<2x16x16x128xbf16>
    %102 = tpu.concatenate %85, %87, %89, %91, %93, %95, %97, %99, %101 in 3 : vector<2x16x16x128xbf16>, vector<2x16x16x128xbf16>, vector<2x16x16x128xbf16>, vector<2x16x16x128xbf16>, vector<2x16x16x128xbf16>, vector<2x16x16x128xbf16>, vector<2x16x16x128xbf16>, vector<2x16x16x128xbf16>, vector<2x16x16x128xbf16> -> vector<2x16x16x1152xbf16>
    %103 = vector.shape_cast %102 : vector<2x16x16x1152xbf16> to vector<512x1152xbf16>
    %c0_52 = arith.constant 0 : index
    %c0_53 = arith.constant 0 : index
    %104 = vector.load %arg5[%c0_52, %c0_53] : memref<1152x128xbf16, #tpu.memory_space<vmem>>, vector<1152x128xbf16>
    %cst_54 = arith.constant dense<0.000000e+00> : vector<512x128xf32>
    %105 = tpu.matmul %103, %104, %cst_54 {dimension_numbers = #tpu.dot_dimension_numbers<[1], [0], [0], [1], [0, 0, 1, 1], [], []>} : vector<512x1152xbf16>, vector<1152x128xbf16>, vector<512x128xf32> -> vector<512x128xf32>
    %c0_55 = arith.constant 0 : index
    %c0_56 = arith.constant 0 : index
    %106 = vector.load %arg6[%c0_55, %c0_56] : memref<1x128xf32, #tpu.memory_space<vmem>>, vector<1x128xf32>
    %c0_57 = arith.constant 0 : index
    %c0_58 = arith.constant 0 : index
    %107 = vector.load %arg7[%c0_57, %c0_58] : memref<1x128xf32, #tpu.memory_space<vmem>>, vector<1x128xf32>
    %cst_59 = arith.constant dense<0.000000e+00> : vector<128xf32>
    %108 = vector.multi_reduction <add>, %105, %cst_59 [0] : vector<512x128xf32> to vector<128xf32>
    %109 = vector.shape_cast %108 : vector<128xf32> to vector<1x128xf32>
    %110 = arith.mulf %105, %105 : vector<512x128xf32>
    %cst_60 = arith.constant dense<0.000000e+00> : vector<128xf32>
    %111 = vector.multi_reduction <add>, %110, %cst_60 [0] : vector<512x128xf32> to vector<128xf32>
    %112 = vector.shape_cast %111 : vector<128xf32> to vector<1x128xf32>
    %cst_61 = arith.constant 0.001953125 : f32
    %113 = vector.broadcast %cst_61 : f32 to vector<1x128xf32>
    %114 = arith.mulf %109, %113 : vector<1x128xf32>
    %cst_62 = arith.constant 0.001953125 : f32
    %115 = vector.broadcast %cst_62 : f32 to vector<1x128xf32>
    %116 = arith.mulf %112, %115 : vector<1x128xf32>
    %117 = arith.mulf %114, %114 : vector<1x128xf32>
    %118 = arith.subf %116, %117 : vector<1x128xf32>
    %cst_63 = arith.constant 9.99999974E-6 : f32
    %119 = vector.broadcast %cst_63 : f32 to vector<1x128xf32>
    %120 = arith.addf %118, %119 : vector<1x128xf32>
    %121 = math.rsqrt %120 : vector<1x128xf32>
    %122 = vector.broadcast %114 : vector<1x128xf32> to vector<512x128xf32>
    %123 = arith.subf %105, %122 : vector<512x128xf32>
    %124 = arith.mulf %106, %121 : vector<1x128xf32>
    %125 = vector.broadcast %124 : vector<1x128xf32> to vector<512x128xf32>
    %126 = arith.mulf %123, %125 : vector<512x128xf32>
    %127 = vector.broadcast %107 : vector<1x128xf32> to vector<512x128xf32>
    %128 = arith.addf %126, %127 : vector<512x128xf32>
    %129 = arith.addf %128, %78 : vector<512x128xf32>
    %cst_64 = arith.constant 0.000000e+00 : f32
    %130 = vector.broadcast %cst_64 : f32 to vector<512x128xf32>
    %131 = arith.maximumf %129, %130 : vector<512x128xf32>
    %132 = vector.shape_cast %131 : vector<512x128xf32> to vector<2x16x16x128xf32>
    %c0_65 = arith.constant 0 : index
    %c0_66 = arith.constant 0 : index
    %c0_67 = arith.constant 0 : index
    %c0_68 = arith.constant 0 : index
    %133 = vector.load %arg11[%c0_65, %c0_66, %c0_67, %c0_68] : memref<2x16x16x128xf32, #tpu.memory_space<vmem>>, vector<2x16x16x128xf32>
    tpu.vector_store %arg11[%c0_65, %c0_66, %c0_67, %c0_68], %132 {strides = array<i32>} : memref<2x16x16x128xf32, #tpu.memory_space<vmem>>, vector<2x16x16x128xf32>,
    return
  }
  func.func @transform_0(%arg0: i32) -> (i32, i32, i32, i32) {
    %c0_i32 = arith.constant 0 : i32
    %c0_i32_0 = arith.constant 0 : i32
    %c0_i32_1 = arith.constant 0 : i32
    %c0_i32_2 = arith.constant 0 : i32
    %c0_i32_3 = arith.constant 0 : i32
    return %c0_i32, %c0_i32_0, %c0_i32_1, %c0_i32_2 : i32, i32, i32, i32
  }
  func.func @transform_1(%arg0: i32) -> (i32, i32) {
    %c0_i32 = arith.constant 0 : i32
    %c0_i32_0 = arith.constant 0 : i32
    %c0_i32_1 = arith.constant 0 : i32
    return %c0_i32, %c0_i32_0 : i32, i32
  }
  func.func @transform_2(%arg0: i32) -> (i32, i32) {
    %c0_i32 = arith.constant 0 : i32
    %c0_i32_0 = arith.constant 0 : i32
    %c0_i32_1 = arith.constant 0 : i32
    return %c0_i32, %c0_i32_0 : i32, i32
  }
  func.func @transform_3(%arg0: i32) -> (i32, i32) {
    %c0_i32 = arith.constant 0 : i32
    %c0_i32_0 = arith.constant 0 : i32
    %c0_i32_1 = arith.constant 0 : i32
    return %c0_i32, %c0_i32_0 : i32, i32
  }
  func.func @transform_4(%arg0: i32) -> (i32, i32) {
    %c0_i32 = arith.constant 0 : i32
    %c0_i32_0 = arith.constant 0 : i32
    %c0_i32_1 = arith.constant 0 : i32
    return %c0_i32, %c0_i32_0 : i32, i32
  }
  func.func @transform_5(%arg0: i32) -> (i32, i32) {
    %c0_i32 = arith.constant 0 : i32
    %c0_i32_0 = arith.constant 0 : i32
    %c0_i32_1 = arith.constant 0 : i32
    return %c0_i32, %c0_i32_0 : i32, i32
  }
  func.func @transform_6(%arg0: i32) -> (i32, i32) {
    %c0_i32 = arith.constant 0 : i32
    %c0_i32_0 = arith.constant 0 : i32
    %c0_i32_1 = arith.constant 0 : i32
    return %c0_i32, %c0_i32_0 : i32, i32
  }
  func.func @transform_7(%arg0: i32) -> (i32, i32) {
    %c0_i32 = arith.constant 0 : i32
    %c0_i32_0 = arith.constant 0 : i32
    %c0_i32_1 = arith.constant 0 : i32
    return %c0_i32, %c0_i32_0 : i32, i32
  }
  func.func @transform_8(%arg0: i32) -> (i32, i32) {
    %c0_i32 = arith.constant 0 : i32
    %c0_i32_0 = arith.constant 0 : i32
    %c0_i32_1 = arith.constant 0 : i32
    return %c0_i32, %c0_i32_0 : i32, i32
  }
  func.func @transform_9(%arg0: i32) -> (i32, i32) {
    %c0_i32 = arith.constant 0 : i32
    %c0_i32_0 = arith.constant 0 : i32
    %c0_i32_1 = arith.constant 0 : i32
    return %c0_i32, %c0_i32_0 : i32, i32
  }
  func.func @transform_10(%arg0: i32) -> (i32, i32, i32, i32) {
    %c0_i32 = arith.constant 0 : i32
    %c0_i32_0 = arith.constant 0 : i32
    %c0_i32_1 = arith.constant 0 : i32
    %c0_i32_2 = arith.constant 0 : i32
    %c0_i32_3 = arith.constant 0 : i32
    return %c0_i32, %c0_i32_0, %c0_i32_1, %c0_i32_2 : i32, i32, i32, i32
  }
}

</mosaic_0001>

<bundles_post_ra>
// kernel: residual_block_forward.1
= control target key start
LH: loop header
LB: loop body
LE: loop exit
PB: predicated region body
PF: predicated region fallthrough
CT: control target
= control target key end

     0   :  { %v16870_v0 = vmov 0   ;;  %v9925_v2 = vmov 0.0   ;;  %vm517_vm0 = vsmask.f32 7424  ;;  %vm998_vm1 = vcmask 1046528   ;;  %s16854_s1 = inlined_call_operand.vmem [shape: bf16[1152,128], index: 1, kind: input, shape index: {}]   ;;  %s16855_s0 = inlined_call_operand.vmem [shape: bf16[2,16,16,128], index: 0, kind: input, shape index: {}]   ;;  %s16856_s7 = inlined_call_operand.vmem [shape: bf16[128,128], index: 7, kind: input, shape index: {}]   ;;  %s16857_s4 = inlined_call_operand.vmem [shape: bf16[1152,128], index: 4, kind: input, shape index: {}]   ;;  %s16858_s2 = inlined_call_operand.vmem [shape: f32[1,128], index: 2, kind: input, shape index: {}]   ;;  %s16859_s3 = inlined_call_operand.vmem [shape: f32[1,128], index: 3, kind: input, shape index: {}]   ;;  %s16860_s8 = inlined_call_operand.vmem [shape: f32[1,128], index: 8, kind: input, shape index: {}]   ;;  %s16861_s9 = inlined_call_operand.vmem [shape: f32[1,128], index: 9, kind: input, shape index: {}]   ;;  %s16862_s5 = inlined_call_operand.vmem [shape: f32[1,128], index: 5, kind: input, shape index: {}]   ;;  %s16863_s6 = inlined_call_operand.vmem [shape: f32[1,128], index: 6, kind: input, shape index: {}]   ;;  %s16864_s10 = inlined_call_operand.vmem [shape: f32[2,16,16,128], index: 10, kind: output, shape index: {}]  }
   0x1   :  { %1779 = vmatprep.subr.bf16.mxu0 %v16870_v0  ;;  %v9986_v1 = vld [vmem:[%s16854_s1] sm:$0xff]   ;;  %100 = vst [vmem:[#allocation2] sm:$0xff] %v9925_v2  ;;  %102 = vst [vmem:[#allocation2 + $0x10] sm:$0x3] %v9925_v2  ;;  %v9666_v3 = vld [vmem:[%s16854_s1 + $0x8] sm:$0xff]   ;;  %v523_v7 = vrot.slane %v16870_v0, 1 }
   0x2   :  { %103 = vst [vmem:[#allocation2 + $0x18] sm:$0xff] %v9925_v2  ;;  %104 = vst [vmem:[#allocation2 + $0x20] sm:$0xff] %v9925_v2  ;;  %1780 = vmatpush1.bf16.msra.mxu0 %v9986_v1  ;;  %v9667_v4 = vld [vmem:[%s16854_s1 + $0x10] sm:$0xff]   ;;  %v9668_v5 = vld [vmem:[%s16854_s1 + $0x18] sm:$0xff]  }
   0x3   :  { %105 = vst [vmem:[#allocation2 + $0x28] sm:$0x3] %v9925_v2  ;;  %106 = vst [vmem:[#allocation2 + $0x30] sm:$0xff] %v9925_v2  ;;  %1781 = vmatprep.subr.bf16.mxu0 %v16870_v0  ;;  %v9669_v6 = vld [vmem:[%s16854_s1 + $0x20] sm:$0xff]   ;;  %v38_v11 = vld [vmem:[%s16855_s0 + $0x8] sm:$0xff]  }
   0x4   :  { %107 = vst [vmem:[#allocation2 + $0x38] sm:$0xff] %v9925_v2  ;;  %108 = vst [vmem:[#allocation2 + $0x40] sm:$0x3] %v9925_v2  ;;  %v36_v10 = vld [vmem:[%s16855_s0] sm:$0xff]   ;;  %v9670_v12 = vld [vmem:[%s16854_s1 + $0x28] sm:$0xff]   ;;  %v210_v15 = vunpack.c.l.bf16 %v38_v11  ;;  %v211_v16 = vunpack.c.h.bf16 %v38_v11 }
   0x5   :  { %109 = vst [vmem:[#allocation2 + $0x48] sm:$0xff] %v9925_v2  ;;  %110 = vst [vmem:[#allocation2 + $0x50] sm:$0xff] %v9925_v2  ;;  %v208_v13 = vunpack.c.l.bf16 %v36_v10  ;;  %v209_v14 = vunpack.c.h.bf16 %v36_v10  ;;  %v40_v18 = vld [vmem:[%s16855_s0 + $0x10] sm:$0xff]   ;;  %v42_v19 = vld [vmem:[%s16855_s0 + $0x18] sm:$0xff]  }
   0x6   :  { %111 = vst [vmem:[#allocation2 + $0x58] sm:$0x3] %v9925_v2  ;;  %112 = vst [vmem:[#allocation2 + $0x60] sm:$0xff] %v9925_v2  ;;  %1782 = vmatpush1.bf16.msra.mxu0 %v9666_v3  ;;  %v212_v20 = vunpack.c.l.bf16 %v40_v18  ;;  %v213_v21 = vunpack.c.h.bf16 %v40_v18  ;;  %v214_v22 = vunpack.c.l.bf16 %v42_v19  ;;  %v215_v23 = vunpack.c.h.bf16 %v42_v19  ;;  %v44_v24 = vld [vmem:[%s16855_s0 + $0x20] sm:$0xff]   ;;  %v46_v28 = vld [vmem:[%s16855_s0 + $0x28] sm:$0xff]  }
   0x7   :  { %113 = vst [vmem:[#allocation2 + $0x68] sm:$0xff] %v9925_v2  ;;  %114 = vst [vmem:[#allocation2 + $0x70] sm:$0x3] %v9925_v2  ;;  %1783 = vmatprep.subr.bf16.mxu0 %v16870_v0  ;;  %v216_v26 = vunpack.c.l.bf16 %v44_v24  ;;  %v217_v27 = vunpack.c.h.bf16 %v44_v24  ;;  %v9671_v29 = vld [vmem:[%s16854_s1 + $0x30] sm:$0xff]   ;;  %v218_v30 = vunpack.c.l.bf16 %v46_v28  ;;  %v219_v31 = vunpack.c.h.bf16 %v46_v28  ;;  %v50_v33 = vld [vmem:[%s16855_s0 + $0x38] sm:$0xff]  }
   0x8   :  { %115 = vst [vmem:[#allocation2 + $0x78] sm:$0xff] %v9925_v2  ;;  %116 = vst [vmem:[#allocation2 + $0x80] sm:$0xff] %v9925_v2  ;;  %v339_v8 = vld [vmem:[#allocation2 + $0x10] sm:$0x3]  ;;  %v222_v37 = vunpack.c.l.bf16 %v50_v33  ;;  %v223_v38 = vunpack.c.h.bf16 %v50_v33  ;;  %v52_v39 = vld [vmem:[%s16855_s0 + $0x40] sm:$0xff]  }
   0x9   :  { %117 = vst [vmem:[#allocation2 + $0x88] sm:$0x3] %v9925_v2  ;;  %118 = vst [vmem:[#allocation2 + $0x90] sm:$0xff] %v9925_v2  ;;  %v10207_v9 = vpack.c.bf16 %v339_v8, %v339_v8  ;;  %v48_v32 = vld [vmem:[%s16855_s0 + $0x30] sm:$0xff]   ;;  %v54_v40 = vld [vmem:[%s16855_s0 + $0x48] sm:$0xff]   ;;  %v224_v42 = vunpack.c.l.bf16 %v52_v39  ;;  %v225_v43 = vunpack.c.h.bf16 %v52_v39  ;;  %v16865_v39 = vmov 0.0|0.0  }
   0xa   :  { %119 = vst [vmem:[#allocation2 + $0x98] sm:$0xff] %v9925_v2  ;;  %120 = vst [vmem:[#allocation2 + $0xa0] sm:$0x3] %v9925_v2  ;;  %1784 = vmatpush1.bf16.msra.mxu0 %v9667_v4  ;;  %v220_v35 = vunpack.c.l.bf16 %v48_v32  ;;  %v221_v36 = vunpack.c.h.bf16 %v48_v32  ;;  %v9672_v41 = vld [vmem:[%s16854_s1 + $0x38] sm:$0xff]   ;;  %v226_v44 = vunpack.c.l.bf16 %v54_v40  ;;  %v227_v45 = vunpack.c.h.bf16 %v54_v40  ;;  %v56_v46 = vld [vmem:[%s16855_s0 + $0x50] sm:$0xff]  }
   0xb   :  { %121 = vst [vmem:[#allocation2 + $0xa8] sm:$0xff] %v9925_v2  ;;  %122 = vst [vmem:[#allocation2 + $0xb0] sm:$0xff] %v9925_v2  ;;  %1785 = vmatprep.subr.bf16.mxu0 %v16870_v0  ;;  %v526_v17 = vshll.u32 %v10207_v9, 16  ;;  %v228_v47 = vunpack.c.l.bf16 %v56_v46  ;;  %v229_v48 = vunpack.c.h.bf16 %v56_v46  ;;  %v58_v49 = vld [vmem:[%s16855_s0 + $0x58] sm:$0xff]   ;;  %v9673_v52 = vld [vmem:[%s16854_s1 + $0x40] sm:$0xff]  }
   0xc   :  { %123 = vst [vmem:[#allocation2 + $0xb8] sm:$0x3] %v9925_v2  ;;  %124 = vst [vmem:[#allocation2 + $0xc0] sm:$0xff] %v9925_v2  ;;  %v230_v50 = vunpack.c.l.bf16 %v58_v49  ;;  %v231_v51 = vunpack.c.h.bf16 %v58_v49  ;;  %v9674_v53 = vld [vmem:[%s16854_s1 + $0x48] sm:$0xff]   ;;  %v9675_v54 = vld [vmem:[%s16854_s1 + $0x50] sm:$0xff]  }
   0xd   :  { %125 = vst [vmem:[#allocation2 + $0xc8] sm:$0xff] %v9925_v2  ;;  %126 = vst [vmem:[#allocation2 + $0xd0] sm:$0x3] %v9925_v2  ;;  %v528_v25 = vrot.slane %v526_v17, 1  ;;  %v9676_v55 = vld [vmem:[%s16854_s1 + $0x58] sm:$0xff]   ;;  %v9677_v58 = vld [vmem:[%s16854_s1 + $0x60] sm:$0xff]  }
   0xe   :  { %127 = vst [vmem:[#allocation2 + $0xd8] sm:$0xff] %v9925_v2  ;;  %128 = vst [vmem:[#allocation2 + $0xe0] sm:$0xff] %v9925_v2  ;;  %1786 = vmatpush1.bf16.msra.mxu0 %v9668_v5  ;;  %v9678_v61 = vld [vmem:[%s16854_s1 + $0x68] sm:$0xff]   ;;  %v60_v62 = vld [vmem:[%s16855_s0 + $0x60] sm:$0xff]  }
   0xf   :  { %129 = vst [vmem:[#allocation2 + $0xe8] sm:$0x3] %v9925_v2  ;;  %130 = vst [vmem:[#allocation2 + $0xf0] sm:$0xff] %v9925_v2  ;;  %1787 = vmatprep.subr.bf16.mxu0 %v16870_v0  ;;  %v529_v34 = vsel %vm517_vm0, %v523_v7, %v528_v25  ;;  %v62_v4 = vld [vmem:[%s16855_s0 + $0x68] sm:$0xff]   ;;  %v9679_v5 = vld [vmem:[%s16854_s1 + $0x70] sm:$0xff]   ;;  %v233_v11 = vunpack.c.h.bf16 %v60_v62 }
  0x10   :  { %131 = vst [vmem:[#allocation2 + $0xf8] sm:$0xff] %v9925_v2  ;;  %132 = vst [vmem:[#allocation2 + $0x100] sm:$0x3] %v9925_v2  ;;  %1811 = vmatprep.mubr.bf16.mxu0 %v529_v34  ;;  %v64_v7 = vld [vmem:[%s16855_s0 + $0x70] sm:$0xff]   ;;  %v9680_v17 = vld [vmem:[%s16854_s1 + $0x78] sm:$0xff]  }
  0x11   :  { %133 = vst [vmem:[#allocation2 + $0x108] sm:$0xff] %v9925_v2  ;;  %134 = vst [vmem:[#allocation2 + $0x110] sm:$0xff] %v9925_v2  ;;  %v236_v19 = vunpack.c.l.bf16 %v64_v7  ;;  %v9681_v32 = vld [vmem:[%s16854_s1 + $0x80] sm:$0xff]   ;;  %v9682_v40 = vld [vmem:[%s16854_s1 + $0x88] sm:$0xff]  }
  0x12   :  { %135 = vst [vmem:[#allocation2 + $0x118] sm:$0x3] %v9925_v2  ;;  %136 = vst [vmem:[#allocation2 + $0x120] sm:$0xff] %v9925_v2  ;;  %1788 = vmatpush1.bf16.msra.mxu0 %v9669_v6  ;;  %v232_v6 = vunpack.c.l.bf16 %v60_v62 }
  0x13   :  { %137 = vst [vmem:[#allocation2 + $0x128] sm:$0xff] %v9925_v2  ;;  %138 = vst [vmem:[#allocation2 + $0x130] sm:$0x3] %v9925_v2  ;;  %1789 = vmatprep.subr.bf16.mxu0 %v16870_v0 }
  0x14   :  { %139 = vst [vmem:[#allocation2 + $0x138] sm:$0xff] %v9925_v2  ;;  %140 = vst [vmem:[#allocation2 + $0x140] sm:$0xff] %v9925_v2 }
  0x15   :  { %141 = vst [vmem:[#allocation2 + $0x148] sm:$0x3] %v9925_v2  ;;  %142 = vst [vmem:[#allocation2 + $0x150] sm:$0xff] %v9925_v2 }
  0x16   :  { %143 = vst [vmem:[#allocation2 + $0x158] sm:$0xff] %v9925_v2  ;;  %144 = vst [vmem:[#allocation2 + $0x160] sm:$0x3] %v9925_v2  ;;  %1790 = vmatpush1.bf16.msra.mxu0 %v9670_v12  ;;  %v68_v12 = vld [vmem:[%s16855_s0 + $0x80] sm:$0xff]  }
  0x17   :  { %145 = vst [vmem:[#allocation2 + $0x168] sm:$0xff] %v9925_v2  ;;  %146 = vst [vmem:[#allocation2 + $0x170] sm:$0xff] %v9925_v2  ;;  %1791 = vmatprep.subr.bf16.mxu0 %v16870_v0  ;;  %v241_v24 = vunpack.c.h.bf16 %v68_v12 }
  0x18   :  { %147 = vst [vmem:[#allocation2 + $0x178] sm:$0x3] %v9925_v2  ;;  %148 = vst [vmem:[#allocation2 + $0x180] sm:$0xff] %v9925_v2 }
  0x19   :  { %149 = vst [vmem:[#allocation2 + $0x188] sm:$0xff] %v9925_v2  ;;  %150 = vst [vmem:[#allocation2 + $0x190] sm:$0x3] %v9925_v2 }
  0x1a   :  { %153 = vst [vmem:[#allocation2 + $0x1a8] sm:$0x3] %v9925_v2  ;;  %156 = vst [vmem:[#allocation2 + $0x1c0] sm:$0x3] %v9925_v2  ;;  %1792 = vmatpush1.bf16.msra.mxu0 %v9671_v29  ;;  %v70_v29 = vld [vmem:[%s16855_s0 + $0x88] sm:$0xff]  }
  0x1b   :  { %157 = vst [vmem:[#allocation2 + $0x1c8] sm:$0xff] %v9925_v2  ;;  %158 = vst [vmem:[#allocation2 + $0x1d0] sm:$0xff] %v9925_v2  ;;  %1793 = vmatprep.subr.bf16.mxu0 %v16870_v0 }
  0x1c   :  { %159 = vst [vmem:[#allocation2 + $0x1d8] sm:$0x3] %v9925_v2  ;;  %160 = vst [vmem:[#allocation2 + $0x1e0] sm:$0xff] %v9925_v2 }
  0x1d   :  { %161 = vst [vmem:[#allocation2 + $0x1e8] sm:$0xff] %v9925_v2  ;;  %162 = vst [vmem:[#allocation2 + $0x1f0] sm:$0x3] %v9925_v2 }
  0x1e   :  { %163 = vst [vmem:[#allocation2 + $0x1f8] sm:$0xff] %v9925_v2  ;;  %164 = vst [vmem:[#allocation2 + $0x200] sm:$0xff] %v9925_v2  ;;  %1794 = vmatpush1.bf16.msra.mxu0 %v9672_v41 }
  0x1f   :  { %165 = vst [vmem:[#allocation2 + $0x208] sm:$0x3] %v9925_v2  ;;  %166 = vst [vmem:[#allocation2 + $0x210] sm:$0xff] %v9925_v2  ;;  %1795 = vmatprep.subr.bf16.mxu0 %v16870_v0 }
  0x20   :  { %167 = vst [vmem:[#allocation2 + $0x218] sm:$0xff] %v9925_v2  ;;  %168 = vst [vmem:[#allocation2 + $0x220] sm:$0x3] %v9925_v2 }
  0x21   :  { %169 = vst [vmem:[#allocation2 + $0x228] sm:$0xff] %v9925_v2  ;;  %170 = vst [vmem:[#allocation2 + $0x230] sm:$0xff] %v9925_v2 }
  0x22   :  { %171 = vst [vmem:[#allocation2 + $0x238] sm:$0x3] %v9925_v2  ;;  %172 = vst [vmem:[#allocation2 + $0x240] sm:$0xff] %v9925_v2  ;;  %1796 = vmatpush1.bf16.msra.mxu0 %v9673_v52 }
  0x23   :  { %173 = vst [vmem:[#allocation2 + $0x248] sm:$0xff] %v9925_v2  ;;  %174 = vst [vmem:[#allocation2 + $0x250] sm:$0x3] %v9925_v2  ;;  %1797 = vmatprep.subr.bf16.mxu0 %v16870_v0 }
  0x24   :  { %175 = vst [vmem:[#allocation2 + $0x258] sm:$0xff] %v9925_v2  ;;  %176 = vst [vmem:[#allocation2 + $0x260] sm:$0xff] %v9925_v2 }
  0x25   :  { %177 = vst [vmem:[#allocation2 + $0x268] sm:$0x3] %v9925_v2  ;;  %178 = vst [vmem:[#allocation2 + $0x270] sm:$0xff] %v9925_v2 }
  0x26   :  { %179 = vst [vmem:[#allocation2 + $0x278] sm:$0xff] %v9925_v2  ;;  %180 = vst [vmem:[#allocation2 + $0x280] sm:$0x3] %v9925_v2  ;;  %1798 = vmatpush1.bf16.msra.mxu0 %v9674_v53 }
  0x27   :  { %181 = vst [vmem:[#allocation2 + $0x288] sm:$0xff] %v9925_v2  ;;  %182 = vst [vmem:[#allocation2 + $0x290] sm:$0xff] %v9925_v2  ;;  %1799 = vmatprep.subr.bf16.mxu0 %v16870_v0 }
  0x28   :  { %183 = vst [vmem:[#allocation2 + $0x298] sm:$0x3] %v9925_v2  ;;  %184 = vst [vmem:[#allocation2 + $0x2a0] sm:$0xff] %v9925_v2 }
  0x29   :  { %185 = vst [vmem:[#allocation2 + $0x2a8] sm:$0xff] %v9925_v2  ;;  %186 = vst [vmem:[#allocation2 + $0x2b0] sm:$0x3] %v9925_v2 }
  0x2a   :  { %187 = vst [vmem:[#allocation2 + $0x2b8] sm:$0xff] %v9925_v2  ;;  %188 = vst [vmem:[#allocation2 + $0x2c0] sm:$0xff] %v9925_v2  ;;  %1800 = vmatpush1.bf16.msra.mxu0 %v9675_v54 }
  0x2b   :  { %189 = vst [vmem:[#allocation2 + $0x2c8] sm:$0x3] %v9925_v2  ;;  %190 = vst [vmem:[#allocation2 + $0x2d0] sm:$0xff] %v9925_v2  ;;  %1801 = vmatprep.subr.bf16.mxu0 %v16870_v0 }
  0x2c   :  { %191 = vst [vmem:[#allocation2 + $0x2d8] sm:$0xff] %v9925_v2  ;;  %192 = vst [vmem:[#allocation2 + $0x2e0] sm:$0x3] %v9925_v2 }
  0x2d   :  { %193 = vst [vmem:[#allocation2 + $0x2e8] sm:$0xff] %v9925_v2  ;;  %194 = vst [vmem:[#allocation2 + $0x2f0] sm:$0xff] %v9925_v2 }
  0x2e   :  { %195 = vst [vmem:[#allocation2 + $0x2f8] sm:$0x3] %v9925_v2  ;;  %196 = vst [vmem:[#allocation2 + $0x300] sm:$0xff] %v9925_v2  ;;  %1802 = vmatpush1.bf16.msra.mxu0 %v9676_v55 }
  0x2f   :  { %197 = vst [vmem:[#allocation2 + $0x308] sm:$0xff] %v9925_v2  ;;  %198 = vst [vmem:[#allocation2 + $0x310] sm:$0x3] %v9925_v2  ;;  %1803 = vmatprep.subr.bf16.mxu0 %v16870_v0 }
  0x30   :  { %199 = vst [vmem:[#allocation2 + $0x318] sm:$0xff] %v9925_v2  ;;  %200 = vst [vmem:[#allocation2 + $0x320] sm:$0xff] %v9925_v2 }
  0x31   :  { %201 = vst [vmem:[#allocation2 + $0x328] sm:$0x3] %v9925_v2  ;;  %202 = vst [vmem:[#allocation2 + $0x330] sm:$0xff] %v9925_v2 }
  0x32   :  { %203 = vst [vmem:[#allocation2 + $0x338] sm:$0xff] %v9925_v2  ;;  %204 = vst [vmem:[#allocation2 + $0x340] sm:$0x3] %v9925_v2  ;;  %1804 = vmatpush1.bf16.msra.mxu0 %v9677_v58 }
  0x33   :  { %207 = vst [vmem:[#allocation2 + $0x358] sm:$0x3] %v9925_v2  ;;  %4665 = vst [vmem:[#allocation3 + $0x10] sm:$0x3] %v9925_v2  ;;  %1805 = vmatprep.subr.bf16.mxu0 %v16870_v0 }
  0x34   :  { %4666 = vst [vmem:[#allocation3 + $0x18] sm:$0xff] %v9925_v2  ;;  %4667 = vst [vmem:[#allocation3 + $0x20] sm:$0xff] %v9925_v2 }
  0x35   :  { %4668 = vst [vmem:[#allocation3 + $0x28] sm:$0x3] %v9925_v2  ;;  %4669 = vst [vmem:[#allocation3 + $0x30] sm:$0xff] %v9925_v2 }
  0x36   :  { %4670 = vst [vmem:[#allocation3 + $0x38] sm:$0xff] %v9925_v2  ;;  %4671 = vst [vmem:[#allocation3 + $0x40] sm:$0x3] %v9925_v2  ;;  %1806 = vmatpush1.bf16.msra.mxu0 %v9678_v61 }
  0x37   :  { %4672 = vst [vmem:[#allocation3 + $0x48] sm:$0xff] %v9925_v2  ;;  %4673 = vst [vmem:[#allocation3 + $0x50] sm:$0xff] %v9925_v2  ;;  %1807 = vmatprep.subr.bf16.mxu0 %v16870_v0 }
  0x38   :  { %4674 = vst [vmem:[#allocation3 + $0x58] sm:$0x3] %v9925_v2  ;;  %4675 = vst [vmem:[#allocation3 + $0x60] sm:$0xff] %v9925_v2 }
  0x39   :  { %4676 = vst [vmem:[#allocation3 + $0x68] sm:$0xff] %v9925_v2  ;;  %4677 = vst [vmem:[#allocation3 + $0x70] sm:$0x3] %v9925_v2 }
  0x3a   :  { %4678 = vst [vmem:[#allocation3 + $0x78] sm:$0xff] %v9925_v2  ;;  %4679 = vst [vmem:[#allocation3 + $0x80] sm:$0xff] %v9925_v2  ;;  %1808 = vmatpush1.bf16.msra.mxu0 %v9679_v5  ;;  %v9685_v5 = vld [vmem:[%s16854_s1 + $0xa0] sm:$0xff]  }
  0x3b   :  { %4680 = vst [vmem:[#allocation3 + $0x88] sm:$0x3] %v9925_v2  ;;  %4681 = vst [vmem:[#allocation3 + $0x90] sm:$0xff] %v9925_v2  ;;  %1809 = vmatprep.subr.bf16.mxu0 %v16870_v0 }
  0x3c   :  { %4682 = vst [vmem:[#allocation3 + $0x98] sm:$0xff] %v9925_v2  ;;  %4683 = vst [vmem:[#allocation3 + $0xa0] sm:$0x3] %v9925_v2 }
  0x3d   :  { %4684 = vst [vmem:[#allocation3 + $0xa8] sm:$0xff] %v9925_v2  ;;  %4685 = vst [vmem:[#allocation3 + $0xb0] sm:$0xff] %v9925_v2 }
  0x3e   :  { %4686 = vst [vmem:[#allocation3 + $0xb8] sm:$0x3] %v9925_v2  ;;  %4687 = vst [vmem:[#allocation3 + $0xc0] sm:$0xff] %v9925_v2  ;;  %1810 = vmatpush1.bf16.msra.mxu0 %v9680_v17 }
  0x3f   :  { %4688 = vst [vmem:[#allocation3 + $0xc8] sm:$0xff] %v9925_v2  ;;  %4689 = vst [vmem:[#allocation3 + $0xd0] sm:$0x3] %v9925_v2  ;;  %2068 = vmatprep.subr.bf16.mxu0 %v16870_v0 }
  0x40   :  { %4690 = vst [vmem:[#allocation3 + $0xd8] sm:$0xff] %v9925_v2  ;;  %4691 = vst [vmem:[#allocation3 + $0xe0] sm:$0xff] %v9925_v2 }
  0x41   :  { %4692 = vst [vmem:[#allocation3 + $0xe8] sm:$0x3] %v9925_v2  ;;  %4693 = vst [vmem:[#allocation3 + $0xf0] sm:$0xff] %v9925_v2  ;;  %1812 = vmatmul.mubr.bf16.vlgmr.msra.gmra.mrb[0].mxu0 %v16865_v39 }
  0x42   :  { %4694 = vst [vmem:[#allocation3 + $0xf8] sm:$0xff] %v9925_v2  ;;  %4695 = vst [vmem:[#allocation3 + $0x100] sm:$0x3] %v9925_v2  ;;  %2069 = vmatpush1.bf16.msra.mxu0 %v9681_v32 }
  0x43   :  { %4696 = vst [vmem:[#allocation3 + $0x108] sm:$0xff] %v9925_v2  ;;  %4697 = vst [vmem:[#allocation3 + $0x110] sm:$0xff] %v9925_v2  ;;  %2070 = vmatprep.subr.bf16.mxu0 %v16870_v0 }
  0x44   :  { %4698 = vst [vmem:[#allocation3 + $0x118] sm:$0x3] %v9925_v2  ;;  %4699 = vst [vmem:[#allocation3 + $0x120] sm:$0xff] %v9925_v2 }
  0x45   :  { %4700 = vst [vmem:[#allocation3 + $0x128] sm:$0xff] %v9925_v2  ;;  %4701 = vst [vmem:[#allocation3 + $0x130] sm:$0x3] %v9925_v2 }
  0x46   :  { %4702 = vst [vmem:[#allocation3 + $0x138] sm:$0xff] %v9925_v2  ;;  %4703 = vst [vmem:[#allocation3 + $0x140] sm:$0xff] %v9925_v2  ;;  %2071 = vmatpush1.bf16.msra.mxu0 %v9682_v40 }
  0x47   :  { %4704 = vst [vmem:[#allocation3 + $0x148] sm:$0x3] %v9925_v2  ;;  %4705 = vst [vmem:[#allocation3 + $0x150] sm:$0xff] %v9925_v2  ;;  %2072 = vmatprep.subr.bf16.mxu0 %v16870_v0 }
  0x48   :  { %4706 = vst [vmem:[#allocation3 + $0x158] sm:$0xff] %v9925_v2  ;;  %4707 = vst [vmem:[#allocation3 + $0x160] sm:$0x3] %v9925_v2 }
  0x49   :  { %4708 = vst [vmem:[#allocation3 + $0x168] sm:$0xff] %v9925_v2  ;;  %4709 = vst [vmem:[#allocation3 + $0x170] sm:$0xff] %v9925_v2 }
  0x4a   :  { %4710 = vst [vmem:[#allocation3 + $0x178] sm:$0x3] %v9925_v2  ;;  %4711 = vst [vmem:[#allocation3 + $0x180] sm:$0xff] %v9925_v2 }
  0x4b   :  { %4712 = vst [vmem:[#allocation3 + $0x188] sm:$0xff] %v9925_v2  ;;  %4713 = vst [vmem:[#allocation3 + $0x190] sm:$0x3] %v9925_v2 }
  0x4c   :  { %4716 = vst [vmem:[#allocation3 + $0x1a8] sm:$0x3] %v9925_v2  ;;  %4719 = vst [vmem:[#allocation3 + $0x1c0] sm:$0x3] %v9925_v2 }
  0x4d   :  { %4720 = vst [vmem:[#allocation3 + $0x1c8] sm:$0xff] %v9925_v2  ;;  %4721 = vst [vmem:[#allocation3 + $0x1d0] sm:$0xff] %v9925_v2 }
  0x4e   :  { %4722 = vst [vmem:[#allocation3 + $0x1d8] sm:$0x3] %v9925_v2  ;;  %4723 = vst [vmem:[#allocation3 + $0x1e0] sm:$0xff] %v9925_v2 }
  0x4f   :  { %4724 = vst [vmem:[#allocation3 + $0x1e8] sm:$0xff] %v9925_v2  ;;  %4725 = vst [vmem:[#allocation3 + $0x1f0] sm:$0x3] %v9925_v2 }
  0x50   :  { %4726 = vst [vmem:[#allocation3 + $0x1f8] sm:$0xff] %v9925_v2  ;;  %4727 = vst [vmem:[#allocation3 + $0x200] sm:$0xff] %v9925_v2 }
  0x51   :  { %4728 = vst [vmem:[#allocation3 + $0x208] sm:$0x3] %v9925_v2  ;;  %4729 = vst [vmem:[#allocation3 + $0x210] sm:$0xff] %v9925_v2 }
  0x52   :  { %4730 = vst [vmem:[#allocation3 + $0x218] sm:$0xff] %v9925_v2  ;;  %4731 = vst [vmem:[#allocation3 + $0x220] sm:$0x3] %v9925_v2 }
  0x53   :  { %4732 = vst [vmem:[#allocation3 + $0x228] sm:$0xff] %v9925_v2  ;;  %4733 = vst [vmem:[#allocation3 + $0x230] sm:$0xff] %v9925_v2 }
  0x54   :  { %4734 = vst [vmem:[#allocation3 + $0x238] sm:$0x3] %v9925_v2  ;;  %4735 = vst [vmem:[#allocation3 + $0x240] sm:$0xff] %v9925_v2 }
  0x55   :  { %4736 = vst [vmem:[#allocation3 + $0x248] sm:$0xff] %v9925_v2  ;;  %4737 = vst [vmem:[#allocation3 + $0x250] sm:$0x3] %v9925_v2 }
  0x56   :  { %4738 = vst [vmem:[#allocation3 + $0x258] sm:$0xff] %v9925_v2  ;;  %4739 = vst [vmem:[#allocation3 + $0x260] sm:$0xff] %v9925_v2 }
  0x57   :  { %4740 = vst [vmem:[#allocation3 + $0x268] sm:$0x3] %v9925_v2  ;;  %4741 = vst [vmem:[#allocation3 + $0x270] sm:$0xff] %v9925_v2 }
  0x58   :  { %4742 = vst [vmem:[#allocation3 + $0x278] sm:$0xff] %v9925_v2  ;;  %4743 = vst [vmem:[#allocation3 + $0x280] sm:$0x3] %v9925_v2 }
  0x59   :  { %4744 = vst [vmem:[#allocation3 + $0x288] sm:$0xff] %v9925_v2  ;;  %4745 = vst [vmem:[#allocation3 + $0x290] sm:$0xff] %v9925_v2 }
  0x5a   :  { %4746 = vst [vmem:[#allocation3 + $0x298] sm:$0x3] %v9925_v2  ;;  %4747 = vst [vmem:[#allocation3 + $0x2a0] sm:$0xff] %v9925_v2 }
  0x5b   :  { %4748 = vst [vmem:[#allocation3 + $0x2a8] sm:$0xff] %v9925_v2  ;;  %4749 = vst [vmem:[#allocation3 + $0x2b0] sm:$0x3] %v9925_v2 }
  0x5c   :  { %4750 = vst [vmem:[#allocation3 + $0x2b8] sm:$0xff] %v9925_v2  ;;  %4751 = vst [vmem:[#allocation3 + $0x2c0] sm:$0xff] %v9925_v2 }
  0x5d   :  { %4752 = vst [vmem:[#allocation3 + $0x2c8] sm:$0x3] %v9925_v2  ;;  %4753 = vst [vmem:[#allocation3 + $0x2d0] sm:$0xff] %v9925_v2 }
  0x5e   :  { %4754 = vst [vmem:[#allocation3 + $0x2d8] sm:$0xff] %v9925_v2  ;;  %4755 = vst [vmem:[#allocation3 + $0x2e0] sm:$0x3] %v9925_v2 }
  0x5f   :  { %4756 = vst [vmem:[#allocation3 + $0x2e8] sm:$0xff] %v9925_v2  ;;  %4757 = vst [vmem:[#allocation3 + $0x2f0] sm:$0xff] %v9925_v2 }
  0x60   :  { %4758 = vst [vmem:[#allocation3 + $0x2f8] sm:$0x3] %v9925_v2  ;;  %4759 = vst [vmem:[#allocation3 + $0x300] sm:$0xff] %v9925_v2 }
  0x61   :  { %4760 = vst [vmem:[#allocation3 + $0x308] sm:$0xff] %v9925_v2  ;;  %4761 = vst [vmem:[#allocation3 + $0x310] sm:$0x3] %v9925_v2 }
  0x62   :  { %4762 = vst [vmem:[#allocation3 + $0x318] sm:$0xff] %v9925_v2  ;;  %4763 = vst [vmem:[#allocation3 + $0x320] sm:$0xff] %v9925_v2 }
  0x63   :  { %4764 = vst [vmem:[#allocation3 + $0x328] sm:$0x3] %v9925_v2  ;;  %4765 = vst [vmem:[#allocation3 + $0x330] sm:$0xff] %v9925_v2 }
  0x64   :  { %4766 = vst [vmem:[#allocation3 + $0x338] sm:$0xff] %v9925_v2  ;;  %4767 = vst [vmem:[#allocation3 + $0x340] sm:$0x3] %v9925_v2 }
  0x65   :  { %4770 = vst [vmem:[#allocation3 + $0x358] sm:$0x3] %v9925_v2  ;;  %273 = vst [vmem:[#allocation2 + $0x19] sm:$0xff] %v208_v13 }
  0x66   :  { %274 = vst [vmem:[#allocation2 + $0x21] sm:$0xff] %v209_v14  ;;  %275 = vst [vmem:[#allocation2 + $0x31] sm:$0xff] %v210_v15  ;;  %v234_v15 = vunpack.c.l.bf16 %v62_v4 }
  0x67   :  { %276 = vst [vmem:[#allocation2 + $0x39] sm:$0xff] %v211_v16  ;;  %277 = vst [vmem:[#allocation2 + $0x49] sm:$0xff] %v212_v20  ;;  %v235_v16 = vunpack.c.h.bf16 %v62_v4  ;;  %v237_v20 = vunpack.c.h.bf16 %v64_v7 }
  0x68   :  { %278 = vst [vmem:[#allocation2 + $0x51] sm:$0xff] %v213_v21  ;;  %279 = vst [vmem:[#allocation2 + $0x61] sm:$0xff] %v214_v22  ;;  %v240_v22 = vunpack.c.l.bf16 %v68_v12 }
  0x69   :  { %280 = vst [vmem:[#allocation2 + $0x69] sm:$0xff] %v215_v23  ;;  %281 = vst [vmem:[#allocation2 + $0x79] sm:$0xff] %v216_v26 }
  0x6a   :  { %282 = vst [vmem:[#allocation2 + $0x81] sm:$0xff] %v217_v27  ;;  %283 = vst [vmem:[#allocation2 + $0x91] sm:$0xff] %v218_v30  ;;  %v242_v30 = vunpack.c.l.bf16 %v70_v29 }
  0x6b   :  { %284 = vst [vmem:[#allocation2 + $0x99] sm:$0xff] %v219_v31  ;;  %285 = vst [vmem:[#allocation2 + $0xa9] sm:$0xff] %v220_v35  ;;  %v243_v31 = vunpack.c.h.bf16 %v70_v29 }
  0x6c   :  { %286 = vst [vmem:[#allocation2 + $0xb1] sm:$0xff] %v221_v36  ;;  %287 = vst [vmem:[#allocation2 + $0xc1] sm:$0xff] %v222_v37  ;;  %v340_v56 = vld [vmem:[#allocation2 + $0x18] sm:$0xff] }
  0x6d   :  { %288 = vst [vmem:[#allocation2 + $0xc9] sm:$0xff] %v223_v38  ;;  %289 = vst [vmem:[#allocation2 + $0xd9] sm:$0xff] %v224_v42  ;;  %v341_v57 = vld [vmem:[#allocation2 + $0x20] sm:$0xff]  ;;  %v342_v60 = vld [vmem:[#allocation2 + $0x28] sm:$0x3] }
  0x6e   :  { %290 = vst [vmem:[#allocation2 + $0xe1] sm:$0xff] %v225_v43  ;;  %291 = vst [vmem:[#allocation2 + $0xf1] sm:$0xff] %v226_v44  ;;  %v10279_v59 = vpack.c.bf16 %v341_v57, %v340_v56  ;;  %v10288_v63 = vpack.c.bf16 %v342_v60, %v342_v60  ;;  %v343_v2 = vld [vmem:[#allocation2 + $0x30] sm:$0xff]  ;;  %v344_v3 = vld [vmem:[#allocation2 + $0x38] sm:$0xff] }
  0x6f   :  { %292 = vst [vmem:[#allocation2 + $0xf9] sm:$0xff] %v227_v45  ;;  %293 = vst [vmem:[#allocation2 + $0x109] sm:$0xff] %v228_v47  ;;  %v10301_v10 = vpack.c.bf16 %v344_v3, %v343_v2  ;;  %v345_v18 = vld [vmem:[#allocation2 + $0x40] sm:$0x3]  ;;  %v346_v21 = vld [vmem:[#allocation2 + $0x48] sm:$0xff] }
  0x70   :  { %294 = vst [vmem:[#allocation2 + $0x111] sm:$0xff] %v229_v48  ;;  %295 = vst [vmem:[#allocation2 + $0x121] sm:$0xff] %v230_v50  ;;  %v533_v1 = vshll.u32 %v10279_v59, 16  ;;  %v531_v8 = vshrl.u32 %v10279_v59, 16  ;;  %v538_v14 = vshll.u32 %v10288_v63, 16  ;;  %v347_v23 = vld [vmem:[#allocation2 + $0x50] sm:$0xff]  ;;  %v10312_v27 = vpack.c.bf16 %v345_v18, %v345_v18 }
  0x71   :  { %296 = vst [vmem:[#allocation2 + $0x129] sm:$0xff] %v231_v51  ;;  %297 = vst [vmem:[#allocation2 + $0x139] sm:$0xff] %v232_v6  ;;  %v545_v28 = vshll.u32 %v10301_v10, 16  ;;  %v10321_v33 = vpack.c.bf16 %v347_v23, %v346_v21  ;;  %v543_v35 = vshrl.u32 %v10301_v10, 16  ;;  %v348_v38 = vld [vmem:[#allocation2 + $0x58] sm:$0x3] }
  0x72   :  { %v535_v13 = vrot.slane %v533_v1, 1  ;;  %298 = vst [vmem:[#allocation2 + $0x141] sm:$0xff] %v233_v11  ;;  %299 = vst [vmem:[#allocation2 + $0x151] sm:$0xff] %v234_v15  ;;  %v540_v26 = vrot.slane %v538_v14, 1  ;;  %v550_v37 = vshll.u32 %v10312_v27, 16  ;;  %v10335_v43 = vpack.c.bf16 %v348_v38, %v348_v38  ;;  %v349_v45 = vld [vmem:[#allocation2 + $0x60] sm:$0xff] }
  0x73   :  { %300 = vst [vmem:[#allocation2 + $0x159] sm:$0xff] %v235_v16  ;;  %301 = vst [vmem:[#allocation2 + $0x169] sm:$0xff] %v236_v19  ;;  %v547_v36 = vrot.slane %v545_v28, 1  ;;  %v557_v44 = vshll.u32 %v10321_v33, 16  ;;  %v350_v46 = vld [vmem:[#allocation2 + $0x68] sm:$0xff]  ;;  %v72_v47 = vld [vmem:[%s16855_s0 + $0x90] sm:$0xff]  }
  0x74   :  { %302 = vst [vmem:[#allocation2 + $0x171] sm:$0xff] %v237_v20  ;;  %v536_v25 = vor.u32 %v535_v13, %v531_v8  ;;  %305 = vst [vmem:[#allocation2 + $0x1c9] sm:$0xff] %v240_v22  ;;  %v552_v42 = vrot.slane %v550_v37, 1  ;;  %v555_v48 = vshrl.u32 %v10321_v33, 16  ;;  %v351_v49 = vld [vmem:[#allocation2 + $0x70] sm:$0x3]  ;;  %v244_v51 = vunpack.c.l.bf16 %v72_v47 }
  0x75   :  { %306 = vst [vmem:[#allocation2 + $0x1d1] sm:$0xff] %v241_v24  ;;  %307 = vst [vmem:[#allocation2 + $0x1e1] sm:$0xff] %v242_v30  ;;  %v548_v41 = vor.u32 %v547_v36, %v543_v35  ;;  %v9683_v50 = vld [vmem:[%s16854_s1 + $0x90] sm:$0xff]   ;;  %v559_v53 = vrot.slane %v557_v44, 1  ;;  %v562_v54 = vshll.u32 %v10335_v43, 16  ;;  %v10349_v55 = vpack.c.bf16 %v350_v46, %v349_v45  ;;  %v9684_v57 = vld [vmem:[%s16854_s1 + $0x98] sm:$0xff]  }
  0x76   :  { %v10325_v34 = vsel %vm517_vm0, %v536_v25, %v540_v26  ;;  %308 = vst [vmem:[#allocation2 + $0x1e9] sm:$0xff] %v243_v31  ;;  %309 = vst [vmem:[#allocation2 + $0x1f9] sm:$0xff] %v244_v51  ;;  %v10353_v56 = vpack.c.bf16 %v351_v49, %v351_v49  ;;  %v245_v58 = vunpack.c.h.bf16 %v72_v47  ;;  %2073 = vmatpush1.bf16.msra.mxu0 %v9683_v50  ;;  %v352_v60 = vld [vmem:[#allocation2 + $0x78] sm:$0xff]  ;;  %v353_v61 = vld [vmem:[#allocation2 + $0x80] sm:$0xff] }
  0x77   :  { %17344 = vst [vmem:[#allocation4_spill] sm:$0xff] %v10325_v34  ;;  %1819 = vmatprep.mubr.bf16.mxu0 %v10325_v34  ;;  %v10346_v52 = vsel %vm517_vm0, %v548_v41, %v552_v42  ;;  %v560_v62 = vor.u32 %v559_v53, %v555_v48  ;;  %v564_v1 = vrot.slane %v562_v54, 1  ;;  %v569_v2 = vshll.u32 %v10349_v55, 16  ;;  %2074 = vmatprep.subr.bf16.mxu0 %v16870_v0  ;;  %v74_v3 = vld [vmem:[%s16855_s0 + $0x98] sm:$0xff]   ;;  %v354_v8 = vld [vmem:[#allocation2 + $0x88] sm:$0x3] }
  0x78   :  { %17345 = vst [vmem:[#allocation5_spill] sm:$0xff] %v10346_v52  ;;  %1820 = vmatmul.mubr.bf16.gmra.mrb[4].mxu0 %v10279_v59  ;;  %310 = vst [vmem:[#allocation2 + $0x201] sm:$0xff] %v245_v58  ;;  %v574_v4 = vshll.u32 %v10353_v56, 16  ;;  %v246_v6 = vunpack.c.l.bf16 %v74_v3  ;;  %v247_v7 = vunpack.c.h.bf16 %v74_v3  ;;  %v10368_v11 = vpack.c.bf16 %v353_v61, %v352_v60  ;;  %v9686_v15 = vld [vmem:[%s16854_s1 + $0xa8] sm:$0xff]   ;;  %v355_v18 = vld [vmem:[#allocation2 + $0x90] sm:$0xff] }
  0x79   :  { %1827 = vmatprep.mubr.bf16.mxu0 %v10346_v52  ;;  %v10371_v12 = vsel %vm517_vm0, %v560_v62, %v564_v1  ;;  %v567_v13 = vshrl.u32 %v10349_v55, 16  ;;  %v571_v14 = vrot.slane %v569_v2, 1  ;;  %v356_v19 = vld [vmem:[#allocation2 + $0x98] sm:$0xff]  ;;  %v10381_v21 = vpack.c.bf16 %v354_v8, %v354_v8  ;;  %v76_v22 = vld [vmem:[%s16855_s0 + $0xa0] sm:$0xff]   ;;  %v9687_v25 = vld [vmem:[%s16854_s1 + $0xb0] sm:$0xff]  }
  0x7a   :  { %2075 = vmatpush1.bf16.msra.mxu0 %v9684_v57  ;;  %17346 = vst [vmem:[#allocation6_spill] sm:$0xff] %v10371_v12  ;;  %311 = vst [vmem:[#allocation2 + $0x211] sm:$0xff] %v246_v6  ;;  %v576_v16 = vrot.slane %v574_v4, 1  ;;  %v581_v17 = vshll.u32 %v10368_v11, 16  ;;  %v248_v23 = vunpack.c.l.bf16 %v76_v22  ;;  %v579_v24 = vshrl.u32 %v10368_v11, 16  ;;  %v9688_v35 = vld [vmem:[%s16854_s1 + $0xb8] sm:$0xff]  }
  0x7b   :  { %2076 = vmatprep.subr.bf16.mxu0 %v16870_v0  ;;  %312 = vst [vmem:[#allocation2 + $0x219] sm:$0xff] %v247_v7  ;;  %v572_v20 = vor.u32 %v571_v14, %v567_v13  ;;  %v249_v26 = vunpack.c.h.bf16 %v76_v22  ;;  %v586_v30 = vshll.u32 %v10381_v21, 16  ;;  %v10395_v31 = vpack.c.bf16 %v356_v19, %v355_v18  ;;  %v357_v32 = vld [vmem:[#allocation2 + $0xa0] sm:$0x3]  ;;  %v358_v36 = vld [vmem:[#allocation2 + $0xa8] sm:$0xff]  ;;  %v359_v37 = vld [vmem:[#allocation2 + $0xb0] sm:$0xff] }
  0x7c   :  { %v583_v29 = vrot.slane %v581_v17, 1  ;;  %313 = vst [vmem:[#allocation2 + $0x229] sm:$0xff] %v248_v23  ;;  %v10403_v41 = vpack.c.bf16 %v357_v32, %v357_v32  ;;  %v78_v44 = vld [vmem:[%s16855_s0 + $0xa8] sm:$0xff]   ;;  %v9689_v48 = vld [vmem:[%s16854_s1 + $0xc0] sm:$0xff]   ;;  %v10418_v53 = vpack.c.bf16 %v359_v37, %v358_v36  ;;  %v360_v54 = vld [vmem:[#allocation2 + $0xb8] sm:$0x3] }
  0x7d   :  { %v10392_v28 = vsel %vm517_vm0, %v572_v20, %v576_v16  ;;  %314 = vst [vmem:[#allocation2 + $0x231] sm:$0xff] %v249_v26  ;;  %v588_v40 = vrot.slane %v586_v30, 1  ;;  %v593_v42 = vshll.u32 %v10395_v31, 16  ;;  %v250_v45 = vunpack.c.l.bf16 %v78_v44  ;;  %v361_v57 = vld [vmem:[#allocation2 + $0xc0] sm:$0xff]  ;;  %v362_v58 = vld [vmem:[#allocation2 + $0xc8] sm:$0xff]  ;;  %v80_v3 = vld [vmem:[%s16855_s0 + $0xb0] sm:$0xff]  }
  0x7e   :  { %2077 = vmatpush1.bf16.msra.mxu0 %v9685_v5  ;;  %17347 = vst [vmem:[#allocation7_spill] sm:$0xff] %v10392_v28  ;;  %v584_v38 = vor.u32 %v583_v29, %v579_v24  ;;  %v251_v46 = vunpack.c.h.bf16 %v78_v44  ;;  %v591_v47 = vshrl.u32 %v10395_v31, 16  ;;  %v598_v51 = vshll.u32 %v10403_v41, 16  ;;  %v9690_v60 = vld [vmem:[%s16854_s1 + $0xc8] sm:$0xff]   ;;  %v9691_v7 = vld [vmem:[%s16854_s1 + $0xd0] sm:$0xff]   ;;  %v364_v22 = vld [vmem:[#allocation2 + $0xd8] sm:$0xff] }
  0x7f   :  { %2078 = vmatprep.subr.bf16.mxu0 %v16870_v0  ;;  %v595_v50 = vrot.slane %v593_v42, 1  ;;  %315 = vst [vmem:[#allocation2 + $0x241] sm:$0xff] %v250_v45  ;;  %v10426_v1 = vpack.c.bf16 %v360_v54, %v360_v54  ;;  %v605_v2 = vshll.u32 %v10418_v53, 16  ;;  %v252_v4 = vunpack.c.l.bf16 %v80_v3  ;;  %v363_v16 = vld [vmem:[#allocation2 + $0xd0] sm:$0x3]  ;;  %v365_v23 = vld [vmem:[#allocation2 + $0xe0] sm:$0xff] }
  0x80   :  { %1828 = vmatmul.mubr.bf16.gmra.mrb[8].mxu0 %v10301_v10  ;;  %v10415_v49 = vsel %vm517_vm0, %v584_v38, %v588_v40  ;;  %316 = vst [vmem:[#allocation2 + $0x249] sm:$0xff] %v251_v46  ;;  %v600_v62 = vrot.slane %v598_v51, 1  ;;  %v253_v5 = vunpack.c.h.bf16 %v80_v3  ;;  %v603_v6 = vshrl.u32 %v10418_v53, 16  ;;  %v82_v24 = vld [vmem:[%s16855_s0 + $0xb8] sm:$0xff]   ;;  %v366_v37 = vld [vmem:[#allocation2 + $0xe8] sm:$0x3] }
  0x81   :  { %1835 = vmatprep.mubr.bf16.mxu0 %v10371_v12  ;;  %17348 = vst [vmem:[#allocation8_spill] sm:$0xff] %v10415_v49  ;;  %v596_v61 = vor.u32 %v595_v50, %v591_v47  ;;  %v607_v13 = vrot.slane %v605_v2, 1  ;;  %v610_v14 = vshll.u32 %v10426_v1, 16  ;;  %317 = vst [vmem:[#allocation2 + $0x259] sm:$0xff] %v252_v4  ;;  %v10446_v19 = vpack.c.bf16 %v363_v16, %v363_v16  ;;  %v9692_v38 = vld [vmem:[%s16854_s1 + $0xd8] sm:$0xff]   ;;  %v367_v46 = vld [vmem:[#allocation2 + $0xf0] sm:$0xff] }
  0x82   :  { %2079 = vmatpush1.bf16.msra.mxu0 %v9686_v15  ;;  %v10441_v15 = vpack.c.bf16 %v362_v58, %v361_v57  ;;  %318 = vst [vmem:[#allocation2 + $0x261] sm:$0xff] %v253_v5  ;;  %v255_v26 = vunpack.c.h.bf16 %v82_v24  ;;  %v10453_v29 = vpack.c.bf16 %v365_v23, %v364_v22  ;;  %v10465_v44 = vpack.c.bf16 %v366_v37, %v366_v37  ;;  %v368_v47 = vld [vmem:[#allocation2 + $0xf8] sm:$0xff]  ;;  %v373_v37 = vld [vmem:[#allocation2 + $0x120] sm:$0xff] }
  0x83   :  { %2080 = vmatprep.subr.bf16.mxu0 %v16870_v0  ;;  %v10438_v8 = vsel %vm517_vm0, %v596_v61, %v600_v62  ;;  %v608_v17 = vor.u32 %v607_v13, %v603_v6  ;;  %v612_v18 = vrot.slane %v610_v14, 1  ;;  %v622_v36 = vshll.u32 %v10446_v19, 16  ;;  %v369_v62 = vld [vmem:[#allocation2 + $0x100] sm:$0x3]  ;;  %v370_v6 = vld [vmem:[#allocation2 + $0x108] sm:$0xff] }
  0x84   :  { %17349 = vst [vmem:[#allocation9_spill] sm:$0xff] %v10438_v8  ;;  %v617_v20 = vshll.u32 %v10441_v15, 16  ;;  %v615_v32 = vshrl.u32 %v10441_v15, 16  ;;  %320 = vst [vmem:[#allocation2 + $0x279] sm:$0xff] %v255_v26  ;;  %v629_v45 = vshll.u32 %v10453_v29, 16  ;;  %v627_v54 = vshrl.u32 %v10453_v29, 16 }
  0x85   :  { %v10456_v30 = vsel %vm517_vm0, %v608_v17, %v612_v18  ;;  %v624_v42 = vrot.slane %v622_v36, 1  ;;  %v10477_v61 = vpack.c.bf16 %v368_v47, %v367_v46  ;;  %v10481_v4 = vpack.c.bf16 %v369_v62, %v369_v62  ;;  %v86_v13 = vld [vmem:[%s16855_s0 + $0xc8] sm:$0xff]  }
  0x86   :  { %2081 = vmatpush1.bf16.msra.mxu0 %v9687_v25  ;;  %v254_v25 = vunpack.c.l.bf16 %v82_v24  ;;  %17350 = vst [vmem:[#allocation10_spill] sm:$0xff] %v10456_v30  ;;  %v631_v58 = vrot.slane %v629_v45, 1  ;;  %v258_v14 = vunpack.c.l.bf16 %v86_v13  ;;  %v259_v16 = vunpack.c.h.bf16 %v86_v13  ;;  %v372_v24 = vld [vmem:[#allocation2 + $0x118] sm:$0x3] }
  0x87   :  { %2082 = vmatprep.subr.bf16.mxu0 %v16870_v0  ;;  %v641_v5 = vshll.u32 %v10477_v61, 16  ;;  %v639_v17 = vshrl.u32 %v10477_v61, 16  ;;  %v646_v22 = vshll.u32 %v10481_v4, 16 }
  0x88   :  { %1836 = vmatmul.mubr.bf16.gmra.mrb[12].mxu0 %v10321_v33  ;;  %319 = vst [vmem:[#allocation2 + $0x271] sm:$0xff] %v254_v25  ;;  %v632_v2 = vor.u32 %v631_v58, %v627_v54  ;;  %323 = vst [vmem:[#allocation2 + $0x2a1] sm:$0xff] %v258_v14  ;;  %v9693_v25 = vld [vmem:[%s16854_s1 + $0xe0] sm:$0xff]   ;;  %v375_v54 = vld [vmem:[#allocation2 + $0x130] sm:$0x3] }
  0x89   :  { %1843 = vmatprep.mubr.bf16.mxu0 %v10392_v28  ;;  %324 = vst [vmem:[#allocation2 + $0x2a9] sm:$0xff] %v259_v16  ;;  %v10515_v58 = vpack.c.bf16 %v375_v54, %v375_v54  ;;  %v414_v28 = vld [vmem:[#allocation2 + $0x268] sm:$0x3] }
  0x8a   :  { %2083 = vmatpush1.bf16.msra.mxu0 %v9688_v35  ;;  %v619_v35 = vrot.slane %v617_v20, 1  ;;  %v643_v20 = vrot.slane %v641_v5, 1  ;;  %v377_v5 = vld [vmem:[#allocation2 + $0x140] sm:$0xff] }
  0x8b   :  { %2084 = vmatprep.subr.bf16.mxu0 %v16870_v0  ;;  %v417_v52 = vld [vmem:[#allocation2 + $0x280] sm:$0x3] }
  0x8c   :  { %v620_v40 = vor.u32 %v619_v35, %v615_v32  ;;  %v644_v26 = vor.u32 %v643_v20, %v639_v17  ;;  %v648_v32 = vrot.slane %v646_v22, 1  ;;  %v10499_v35 = vpack.c.bf16 %v372_v24, %v372_v24  ;;  %v378_v24 = vld [vmem:[#allocation2 + $0x148] sm:$0x3] }
  0x8d   :  { %v670_v17 = vshll.u32 %v10515_v58, 16 }
  0x8e   :  { %2085 = vmatpush1.bf16.msra.mxu0 %v9689_v48  ;;  %v84_v48 = vld [vmem:[%s16855_s0 + $0xc0] sm:$0xff]   ;;  %v10474_v57 = vsel %vm517_vm0, %v620_v40, %v624_v42  ;;  %v88_v40 = vld [vmem:[%s16855_s0 + $0xd0] sm:$0xff]   ;;  %v10509_v47 = vsel %vm517_vm0, %v644_v26, %v648_v32 }
  0x8f   :  { %2086 = vmatprep.subr.bf16.mxu0 %v16870_v0  ;;  %v256_v50 = vunpack.c.l.bf16 %v84_v48  ;;  %v257_v51 = vunpack.c.h.bf16 %v84_v48  ;;  %17351 = vst [vmem:[#allocation11_spill] sm:$0xff] %v10474_v57  ;;  %v260_v42 = vunpack.c.l.bf16 %v88_v40  ;;  %v261_v45 = vunpack.c.h.bf16 %v88_v40  ;;  %17353 = vst [vmem:[#allocation13_spill] sm:$0xff] %v10509_v47  ;;  %v380_v40 = vld [vmem:[#allocation2 + $0x158] sm:$0xff] }
  0x90   :  { %1844 = vmatmul.mubr.bf16.gmra.mrb[16].mxu0 %v10349_v55  ;;  %v672_v32 = vrot.slane %v670_v17, 1 }
  0x91   :  { %1851 = vmatprep.mubr.bf16.mxu0 %v10415_v49  ;;  %321 = vst [vmem:[#allocation2 + $0x289] sm:$0xff] %v256_v50  ;;  %322 = vst [vmem:[#allocation2 + $0x291] sm:$0xff] %v257_v51  ;;  %v658_v51 = vshll.u32 %v10499_v35, 16 }
  0x92   :  { %2087 = vmatpush1.bf16.msra.mxu0 %v9690_v60  ;;  %v634_v60 = vshll.u32 %v10465_v44, 16  ;;  %325 = vst [vmem:[#allocation2 + $0x2b9] sm:$0xff] %v260_v42  ;;  %326 = vst [vmem:[#allocation2 + $0x2c1] sm:$0xff] %v261_v45  ;;  %v92_v42 = vld [vmem:[%s16855_s0 + $0xe0] sm:$0xff]  }
  0x93   :  { %2088 = vmatprep.subr.bf16.mxu0 %v16870_v0  ;;  %v264_v45 = vunpack.c.l.bf16 %v92_v42 }
  0x94   :  { %v636_v3 = vrot.slane %v634_v60, 1 }
  0x95   :  { %329 = vst [vmem:[#allocation2 + $0x2e9] sm:$0xff] %v264_v45 }
  0x96   :  { %2089 = vmatpush1.bf16.msra.mxu0 %v9691_v7  ;;  %v371_v7 = vld [vmem:[#allocation2 + $0x110] sm:$0xff]  ;;  %v10489_v18 = vsel %vm517_vm0, %v632_v2, %v636_v3  ;;  %v660_v2 = vrot.slane %v658_v51, 1  ;;  %v376_v3 = vld [vmem:[#allocation2 + $0x138] sm:$0xff] }
  0x97   :  { %2090 = vmatprep.subr.bf16.mxu0 %v16870_v0  ;;  %17352 = vst [vmem:[#allocation12_spill] sm:$0xff] %v10489_v18  ;;  %v10492_v23 = vpack.c.bf16 %v371_v7, %v370_v6  ;;  %v90_v6 = vld [vmem:[%s16855_s0 + $0xd8] sm:$0xff]   ;;  %v10526_v22 = vpack.c.bf16 %v377_v5, %v376_v3 }
  0x98   :  { %1852 = vmatmul.mubr.bf16.gmra.mrb[20].mxu0 %v10368_v11  ;;  %v262_v7 = vunpack.c.l.bf16 %v90_v6  ;;  %v263_v13 = vunpack.c.h.bf16 %v90_v6 }
  0x99   :  { %1859 = vmatprep.mubr.bf16.mxu0 %v10438_v8  ;;  %v653_v36 = vshll.u32 %v10492_v23, 16  ;;  %v651_v48 = vshrl.u32 %v10492_v23, 16  ;;  %v675_v51 = vshrl.u32 %v10526_v22, 16  ;;  %v411_v8 = vld [vmem:[#allocation2 + $0x250] sm:$0x3] }
  0x9a   :  { %2091 = vmatpush1.bf16.msra.mxu0 %v9692_v38  ;;  %v374_v38 = vld [vmem:[#allocation2 + $0x128] sm:$0xff]  ;;  %327 = vst [vmem:[#allocation2 + $0x2d1] sm:$0xff] %v262_v7  ;;  %328 = vst [vmem:[#allocation2 + $0x2d9] sm:$0xff] %v263_v13 }
  0x9b   :  { %2092 = vmatprep.subr.bf16.mxu0 %v16870_v0  ;;  %v10506_v46 = vpack.c.bf16 %v374_v38, %v373_v37  ;;  %v655_v50 = vrot.slane %v653_v36, 1  ;;  %v10533_v36 = vpack.c.bf16 %v378_v24, %v378_v24  ;;  %v677_v37 = vshll.u32 %v10526_v22, 16  ;;  %v379_v38 = vld [vmem:[#allocation2 + $0x150] sm:$0xff]  ;;  %v382_v13 = vld [vmem:[#allocation2 + $0x168] sm:$0xff] }
  0x9d   :  { %v665_v60 = vshll.u32 %v10506_v46, 16  ;;  %v656_v62 = vor.u32 %v655_v50, %v651_v48  ;;  %v663_v14 = vshrl.u32 %v10506_v46, 16  ;;  %v265_v48 = vunpack.c.h.bf16 %v92_v42  ;;  %v9695_v42 = vld [vmem:[%s16854_s1 + $0xf0] sm:$0xff]  }
  0x9e   :  { %2093 = vmatpush1.bf16.msra.mxu0 %v9693_v25  ;;  %v9694_v25 = vld [vmem:[%s16854_s1 + $0xe8] sm:$0xff]   ;;  %v679_v54 = vrot.slane %v677_v37, 1 }
  0x9f   :  { %2094 = vmatprep.subr.bf16.mxu0 %v16870_v0  ;;  %v667_v16 = vrot.slane %v665_v60, 1  ;;  %v10524_v20 = vsel %vm517_vm0, %v656_v62, %v660_v2  ;;  %v682_v60 = vshll.u32 %v10533_v36, 16  ;;  %v10545_v62 = vpack.c.bf16 %v380_v40, %v379_v38  ;;  %330 = vst [vmem:[#allocation2 + $0x2f1] sm:$0xff] %v265_v48  ;;  %v381_v2 = vld [vmem:[#allocation2 + $0x160] sm:$0x3] }
  0xa0   :  { %1860 = vmatmul.mubr.bf16.gmra.mrb[24].mxu0 %v10395_v31  ;;  %17354 = vst [vmem:[#allocation14_spill] sm:$0xff] %v10524_v20  ;;  %v680_v3 = vor.u32 %v679_v54, %v675_v51  ;;  %v10549_v6 = vpack.c.bf16 %v381_v2, %v381_v2  ;;  %v384_v40 = vld [vmem:[#allocation2 + $0x178] sm:$0x3] }
  0xa1   :  { %1867 = vmatprep.mubr.bf16.mxu0 %v10456_v30  ;;  %v668_v26 = vor.u32 %v667_v16, %v663_v14  ;;  %17356 = vst [vmem:[#allocation16_spill] sm:$0xff] %v10545_v62  ;;  %v684_v5 = vrot.slane %v682_v60, 1  ;;  %v689_v7 = vshll.u32 %v10545_v62, 16  ;;  %v383_v14 = vld [vmem:[#allocation2 + $0x170] sm:$0xff]  ;;  %v94_v16 = vld [vmem:[%s16855_s0 + $0xe8] sm:$0xff]   ;;  %v10567_v51 = vpack.c.bf16 %v384_v40, %v384_v40 }
  0xa2   :  { %2095 = vmatpush1.bf16.msra.mxu0 %v9694_v25  ;;  %v266_v17 = vunpack.c.l.bf16 %v94_v16  ;;  %v267_v24 = vunpack.c.h.bf16 %v94_v16  ;;  %v10555_v25 = vpack.c.bf16 %v383_v14, %v382_v13  ;;  %v694_v38 = vshll.u32 %v10549_v6, 16  ;;  %v96_v60 = vld [vmem:[%s16855_s0 + $0xf0] sm:$0xff]  }
  0xa3   :  { %2096 = vmatprep.subr.bf16.mxu0 %v16870_v0  ;;  %v10541_v50 = vsel %vm517_vm0, %v668_v26, %v672_v32  ;;  %v10558_v26 = vsel %vm517_vm0, %v680_v3, %v684_v5  ;;  %v687_v32 = vshrl.u32 %v10545_v62, 16  ;;  %v691_v37 = vrot.slane %v689_v7, 1  ;;  %v9887_v5 = vld [vmem:[#allocation2] sm:$0xff] }
  0xa4   :  { %17355 = vst [vmem:[#allocation15_spill] sm:$0xff] %v10541_v50  ;;  %17357 = vst [vmem:[#allocation17_spill] sm:$0xff] %v10555_v25  ;;  %v696_v48 = vrot.slane %v694_v38, 1  ;;  %v701_v54 = vshll.u32 %v10555_v25, 16  ;;  %v268_v2 = vunpack.c.l.bf16 %v96_v60  ;;  %v269_v3 = vunpack.c.h.bf16 %v96_v60 }
  0xa5   :  { %17358 = vst [vmem:[#allocation18_spill] sm:$0xff] %v10558_v26  ;;  %331 = vst [vmem:[#allocation2 + $0x301] sm:$0xff] %v266_v17  ;;  %v692_v45 = vor.u32 %v691_v37, %v687_v32  ;;  %v10574_v7 = vpack.c.bf16 %v9887_v5, %v9887_v5  ;;  %v699_v14 = vshrl.u32 %v10555_v25, 16  ;;  %v706_v17 = vshll.u32 %v10567_v51, 16  ;;  %v396_v5 = vld [vmem:[#allocation2 + $0x1d8] sm:$0x3] }
  0xa6   :  { %332 = vst [vmem:[#allocation2 + $0x309] sm:$0xff] %v267_v24  ;;  %2097 = vmatpush1.bf16.msra.mxu0 %v9695_v42  ;;  %v703_v16 = vrot.slane %v701_v54, 1  ;;  %v393_v24 = vld [vmem:[#allocation2 + $0x1c0] sm:$0x3]  ;;  %333 = vst [vmem:[#allocation2 + $0x319] sm:$0xff] %v268_v2  ;;  %v394_v42 = vld [vmem:[#allocation2 + $0x1c8] sm:$0xff] }
  0xa7   :  { %2098 = vmatprep.subr.bf16.mxu0 %v16870_v0  ;;  %v10577_v13 = vsel %vm517_vm0, %v692_v45, %v696_v48  ;;  %334 = vst [vmem:[#allocation2 + $0x321] sm:$0xff] %v269_v3  ;;  %v10583_v32 = vpack.c.bf16 %v393_v24, %v393_v24  ;;  %v713_v37 = vshll.u32 %v10574_v7, 16  ;;  %v708_v40 = vrot.slane %v706_v17, 1  ;;  %v395_v45 = vld [vmem:[#allocation2 + $0x1d0] sm:$0xff] }
  0xa8   :  { %1868 = vmatmul.mubr.bf16.gmra.mrb[28].mxu0 %v10418_v53  ;;  %17359 = vst [vmem:[#allocation19_spill] sm:$0xff] %v10577_v13  ;;  %v704_v38 = vor.u32 %v703_v16, %v699_v14  ;;  %v711_v48 = vshrl.u32 %v10574_v7, 16  ;;  %v10591_v3 = vpack.c.bf16 %v395_v45, %v394_v42  ;;  %v9696_v14 = vld [vmem:[%s16854_s1 + $0xf8] sm:$0xff]   ;;  %v10598_v24 = vpack.c.bf16 %v396_v5, %v396_v5 }
  0xa9   :  { %1875 = vmatprep.mubr.bf16.mxu0 %v10474_v57  ;;  %v715_v54 = vrot.slane %v713_v37, 1  ;;  %v718_v60 = vshll.u32 %v10583_v32, 16  ;;  %v408_v57 = vld [vmem:[#allocation2 + $0x238] sm:$0x3] }
  0xaa   :  { %v10589_v2 = vsel %vm517_vm0, %v704_v38, %v708_v40  ;;  %v725_v37 = vshll.u32 %v10591_v3, 16  ;;  %2099 = vmatpush1.bf16.msra.mxu0 %v9696_v14  ;;  %v397_v38 = vld [vmem:[#allocation2 + $0x1e0] sm:$0xff]  ;;  %v398_v40 = vld [vmem:[#allocation2 + $0x1e8] sm:$0xff]  ;;  %v723_v45 = vshrl.u32 %v10591_v3, 16 }
  0xab   :  { %17360 = vst [vmem:[#allocation20_spill] sm:$0xff] %v10589_v2  ;;  %v716_v16 = vor.u32 %v715_v54, %v711_v48  ;;  %v720_v17 = vrot.slane %v718_v60, 1  ;;  %2357 = vmatprep.subr.bf16.mxu0 %v16870_v0  ;;  %v399_v48 = vld [vmem:[#allocation2 + $0x1f0] sm:$0x3]  ;;  %v400_v0 = vld [vmem:[#allocation2 + $0x1f8] sm:$0xff] }
  0xac   :  { %v727_v39 = vrot.slane %v725_v37, 1  ;;  %v10608_v5 = vpack.c.bf16 %v399_v48, %v399_v48  ;;  %v403_v48 = vld [vmem:[#allocation2 + $0x210] sm:$0xff] }
  0xad   :  { %v721_v42 = vsel %vm517_vm0, %v716_v16, %v720_v17 }
  0xae   :  { %v728_v54 = vor.u32 %v727_v39, %v723_v45 }
  0xb0   :  { %1876 = vmatmul.mubr.bf16.gmra.mrb[32].mxu0 %v10441_v15 }
  0xb1   :  { %1883 = vmatprep.mubr.bf16.mxu0 %v10489_v18 }
  0xb8   :  { %1884 = vmatmul.mubr.bf16.gmra.mrb[36].mxu0 %v10453_v29 }
  0xb9   :  { %1891 = vmatprep.mubr.bf16.mxu0 %v10509_v47  ;;  %v405_v47 = vld [vmem:[#allocation2 + $0x220] sm:$0x3] }
  0xc0   :  { %1892 = vmatmul.mubr.bf16.gmra.mrb[40].mxu0 %v10477_v61 }
  0xc1   :  { %1899 = vmatprep.mubr.bf16.mxu0 %v10524_v20  ;;  %v404_v20 = vld [vmem:[#allocation2 + $0x218] sm:$0xff] }
  0xc8   :  { %1900 = vmatmul.mubr.bf16.gmra.mrb[44].mxu0 %v10492_v23 }
  0xc9   :  { %1907 = vmatprep.mubr.bf16.mxu0 %v10541_v50  ;;  %v402_v50 = vld [vmem:[#allocation2 + $0x208] sm:$0x3] }
  0xd0   :  { %1908 = vmatmul.mubr.bf16.gmra.mrb[48].mxu0 %v10506_v46 }
  0xd1   :  { %1915 = vmatprep.mubr.bf16.mxu0 %v10558_v26  ;;  %v10605_v26 = vpack.c.bf16 %v398_v40, %v397_v38  ;;  %v742_v38 = vshll.u32 %v10608_v5, 16 }
  0xd3   :  { %17361 = vst [vmem:[#allocation21_spill] sm:$0xff] %v10605_v26  ;;  %v737_v14 = vshll.u32 %v10605_v26, 16  ;;  %v735_v16 = vshrl.u32 %v10605_v26, 16 }
  0xd5   :  { %v739_v37 = vrot.slane %v737_v14, 1 }
  0xd7   :  { %v740_v39 = vor.u32 %v739_v37, %v735_v16 }
  0xd8   :  { %1916 = vmatmul.mubr.bf16.gmra.mrb[52].mxu0 %v10526_v22 }
  0xd9   :  { %1923 = vmatprep.mubr.bf16.mxu0 %v10577_v13  ;;  %v730_v13 = vshll.u32 %v10598_v24, 16 }
  0xdb   :  { %v732_v60 = vrot.slane %v730_v13, 1  ;;  %v744_v13 = vrot.slane %v742_v38, 1  ;;  %v406_v38 = vld [vmem:[#allocation2 + $0x228] sm:$0xff] }
  0xdd   :  { %v10613_v17 = vsel %vm517_vm0, %v728_v54, %v732_v60  ;;  %v10623_v54 = vpack.c.bf16 %v404_v20, %v403_v48  ;;  %v10626_v60 = vsel %vm517_vm0, %v740_v39, %v744_v13  ;;  %v407_v48 = vld [vmem:[#allocation2 + $0x230] sm:$0xff] }
  0xde   :  { %17362 = vst [vmem:[#allocation22_spill] sm:$0xff] %v10613_v17  ;;  %17365 = vst [vmem:[#allocation25_spill] sm:$0xff] %v10626_v60  ;;  %v10640_v18 = vpack.c.bf16 %v407_v48, %v406_v38 }
  0xdf   :  { %17364 = vst [vmem:[#allocation24_spill] sm:$0xff] %v10623_v54  ;;  %v761_v16 = vshll.u32 %v10623_v54, 16  ;;  %v759_v39 = vshrl.u32 %v10623_v54, 16 }
  0xe0   :  { %1924 = vmatmul.mubr.bf16.gmra.mrb[56].mxu0 %v10545_v62  ;;  %17367 = vst [vmem:[#allocation27_spill] sm:$0xff] %v10640_v18 }
  0xe1   :  { %1931 = vmatprep.mubr.bf16.mxu0 %v10589_v2  ;;  %v401_v2 = vld [vmem:[#allocation2 + $0x200] sm:$0xff]  ;;  %v763_v13 = vrot.slane %v761_v16, 1  ;;  %v410_v16 = vld [vmem:[#allocation2 + $0x248] sm:$0xff] }
  0xe2   :  { %v10616_v40 = vpack.c.bf16 %v401_v2, %v400_v0 }
  0xe4   :  { %17363 = vst [vmem:[#allocation23_spill] sm:$0xff] %v10616_v40  ;;  %v749_v45 = vshll.u32 %v10616_v40, 16  ;;  %v747_v0 = vshrl.u32 %v10616_v40, 16 }
  0xe6   :  { %v751_v2 = vrot.slane %v749_v45, 1 }
  0xe8   :  { %1932 = vmatmul.mubr.bf16.gmra.mrb[60].mxu0 %v10555_v25  ;;  %v752_v37 = vor.u32 %v751_v2, %v747_v0  ;;  %v10644_v2 = vpack.c.bf16 %v408_v57, %v408_v57 }
  0xe9   :  { %1939 = vmatprep.mubr.bf16.mxu0 %v721_v42  ;;  %v10620_v42 = vpack.c.bf16 %v402_v50, %v402_v50  ;;  %v10632_v50 = vpack.c.bf16 %v405_v47, %v405_v47  ;;  %v764_v47 = vor.u32 %v763_v13, %v759_v39  ;;  %v10656_v13 = vpack.c.bf16 %v411_v8, %v411_v8 }
  0xea   :  { %v778_v38 = vshll.u32 %v10644_v2, 16  ;;  %v10668_v8 = vpack.c.bf16 %v414_v28, %v414_v28 }
  0xeb   :  { %v754_v14 = vshll.u32 %v10620_v42, 16  ;;  %v766_v45 = vshll.u32 %v10632_v50, 16  ;;  %17370 = vst [vmem:[#allocation30_spill] sm:$0xff] %v10656_v13  ;;  %v790_v49 = vshll.u32 %v10656_v13, 16  ;;  %v423_v13 = vld [vmem:[#allocation2 + $0x2b0] sm:$0x3] }
  0xec   :  { %v780_v39 = vrot.slane %v778_v38, 1  ;;  %17373 = vst [vmem:[#allocation33_spill] sm:$0xff] %v10668_v8 }
  0xed   :  { %v756_v20 = vrot.slane %v754_v14, 1  ;;  %v768_v0 = vrot.slane %v766_v45, 1  ;;  %v773_v14 = vshll.u32 %v10640_v18, 16  ;;  %v792_v38 = vrot.slane %v790_v49, 1 }
  0xee   :  { %v10680_v49 = vpack.c.bf16 %v417_v52, %v417_v52 }
  0xef   :  { %v10648_v30 = vsel %vm517_vm0, %v764_v47, %v768_v0  ;;  %v412_v47 = vld [vmem:[#allocation2 + $0x258] sm:$0xff]  ;;  %v413_v0 = vld [vmem:[#allocation2 + $0x260] sm:$0xff] }
  0xf0   :  { %1940 = vmatmul.mubr.bf16.gmra.mrb[64].mxu0 %v10574_v7  ;;  %17368 = vst [vmem:[#allocation28_spill] sm:$0xff] %v10648_v30  ;;  %17376 = vst [vmem:[#allocation36_spill] sm:$0xff] %v10680_v49 }
  0xf1   :  { %1947 = vmatprep.mubr.bf16.mxu0 %v10613_v17  ;;  %v10638_v17 = vsel %vm517_vm0, %v752_v37, %v756_v20  ;;  %v771_v37 = vshrl.u32 %v10640_v18, 16  ;;  %v775_v20 = vrot.slane %v773_v14, 1 }
  0xf2   :  { %17366 = vst [vmem:[#allocation26_spill] sm:$0xff] %v10638_v17 }
  0xf3   :  { %v776_v57 = vor.u32 %v775_v20, %v771_v37 }
  0xf5   :  { %v10662_v14 = vsel %vm517_vm0, %v776_v57, %v780_v39 }
  0xf6   :  { %17372 = vst [vmem:[#allocation32_spill] sm:$0xff] %v10662_v14 }
  0xf8   :  { %1948 = vmatmul.mubr.bf16.gmra.mrb[68].mxu0 %v10591_v3 }
  0xf9   :  { %1955 = vmatprep.mubr.bf16.mxu0 %v10626_v60  ;;  %v409_v60 = vld [vmem:[#allocation2 + $0x240] sm:$0xff] }
  0xfa   :  { %v10652_v48 = vpack.c.bf16 %v410_v16, %v409_v60 }
  0xfc   :  { %17369 = vst [vmem:[#allocation29_spill] sm:$0xff] %v10652_v48  ;;  %v785_v45 = vshll.u32 %v10652_v48, 16  ;;  %v783_v60 = vshrl.u32 %v10652_v48, 16 }
  0xfe   :  { %v787_v16 = vrot.slane %v785_v45, 1  ;;  %v802_v45 = vshll.u32 %v10668_v8, 16  ;;  %v420_v8 = vld [vmem:[#allocation2 + $0x298] sm:$0x3] }
 0x100   :  { %1956 = vmatmul.mubr.bf16.gmra.mrb[72].mxu0 %v10605_v26  ;;  %v788_v20 = vor.u32 %v787_v16, %v783_v60  ;;  %v804_v60 = vrot.slane %v802_v45, 1 }
 0x101   :  { %1963 = vmatprep.mubr.bf16.mxu0 %v10638_v17  ;;  %v10659_v17 = vpack.c.bf16 %v413_v0, %v412_v47  ;;  %v415_v47 = vld [vmem:[#allocation2 + $0x270] sm:$0xff]  ;;  %v416_v0 = vld [vmem:[#allocation2 + $0x278] sm:$0xff] }
 0x102   :  { %v10676_v12 = vpack.c.bf16 %v416_v0, %v415_v47  ;;  %v814_v47 = vshll.u32 %v10680_v49, 16 }
 0x103   :  { %17371 = vst [vmem:[#allocation31_spill] sm:$0xff] %v10659_v17  ;;  %v797_v37 = vshll.u32 %v10659_v17, 16  ;;  %v795_v57 = vshrl.u32 %v10659_v17, 16 }
 0x104   :  { %17375 = vst [vmem:[#allocation35_spill] sm:$0xff] %v10676_v12  ;;  %v809_v16 = vshll.u32 %v10676_v12, 16 }
 0x105   :  { %v799_v39 = vrot.slane %v797_v37, 1  ;;  %v419_v37 = vld [vmem:[#allocation2 + $0x290] sm:$0xff] }
 0x107   :  { %v800_v28 = vor.u32 %v799_v39, %v795_v57  ;;  %v816_v57 = vrot.slane %v814_v47, 1  ;;  %v10692_v39 = vpack.c.bf16 %v420_v8, %v420_v8  ;;  %v10704_v8 = vpack.c.bf16 %v423_v13, %v423_v13 }
 0x108   :  { %1964 = vmatmul.mubr.bf16.gmra.mrb[76].mxu0 %v10616_v40 }
 0x109   :  { %1971 = vmatprep.mubr.bf16.mxu0 %v10648_v30  ;;  %v10674_v30 = vsel %vm517_vm0, %v788_v20, %v792_v38  ;;  %v10684_v34 = vsel %vm517_vm0, %v800_v28, %v804_v60  ;;  %v807_v20 = vshrl.u32 %v10676_v12, 16  ;;  %v811_v38 = vrot.slane %v809_v16, 1  ;;  %17379 = vst [vmem:[#allocation39_spill] sm:$0xff] %v10692_v39  ;;  %v421_v28 = vld [vmem:[#allocation2 + $0x2a0] sm:$0xff]  ;;  %v422_v60 = vld [vmem:[#allocation2 + $0x2a8] sm:$0xff]  ;;  %17382 = vst [vmem:[#allocation42_spill] sm:$0xff] %v10704_v8 }
 0x10a   :  { %17374 = vst [vmem:[#allocation34_spill] sm:$0xff] %v10674_v30  ;;  %17377 = vst [vmem:[#allocation37_spill] sm:$0xff] %v10684_v34  ;;  %v826_v49 = vshll.u32 %v10692_v39, 16 }
 0x10b   :  { %v812_v52 = vor.u32 %v811_v38, %v807_v20 }
 0x10c   :  { %v828_v47 = vrot.slane %v826_v49, 1 }
 0x10d   :  { %v10698_v16 = vsel %vm517_vm0, %v812_v52, %v816_v57 }
 0x10e   :  { %17381 = vst [vmem:[#allocation41_spill] sm:$0xff] %v10698_v16 }
 0x110   :  { %1972 = vmatmul.mubr.bf16.gmra.mrb[80].mxu0 %v10623_v54 }
 0x111   :  { %1979 = vmatprep.mubr.bf16.mxu0 %v10662_v14  ;;  %v418_v14 = vld [vmem:[#allocation2 + $0x288] sm:$0xff] }
 0x112   :  { %v10688_v0 = vpack.c.bf16 %v419_v37, %v418_v14 }
 0x114   :  { %17378 = vst [vmem:[#allocation38_spill] sm:$0xff] %v10688_v0  ;;  %v821_v45 = vshll.u32 %v10688_v0, 16  ;;  %v819_v14 = vshrl.u32 %v10688_v0, 16 }
 0x116   :  { %v823_v37 = vrot.slane %v821_v45, 1  ;;  %v838_v45 = vshll.u32 %v10704_v8, 16 }
 0x118   :  { %1980 = vmatmul.mubr.bf16.gmra.mrb[84].mxu0 %v10640_v18  ;;  %v824_v38 = vor.u32 %v823_v37, %v819_v14  ;;  %v840_v14 = vrot.slane %v838_v45, 1 }
 0x119   :  { %1987 = vmatprep.mubr.bf16.mxu0 %v10674_v30  ;;  %v10695_v30 = vpack.c.bf16 %v422_v60, %v421_v28  ;;  %v424_v28 = vld [vmem:[#allocation2 + $0x2b8] sm:$0xff]  ;;  %v425_v60 = vld [vmem:[#allocation2 + $0x2c0] sm:$0xff] }
 0x11a   :  { %v10712_v39 = vpack.c.bf16 %v425_v60, %v424_v28 }
 0x11b   :  { %17380 = vst [vmem:[#allocation40_spill] sm:$0xff] %v10695_v30  ;;  %v833_v20 = vshll.u32 %v10695_v30, 16  ;;  %v831_v52 = vshrl.u32 %v10695_v30, 16 }
 0x11c   :  { %17384 = vst [vmem:[#allocation44_spill] sm:$0xff] %v10712_v39  ;;  %v845_v37 = vshll.u32 %v10712_v39, 16 }
 0x11d   :  { %v835_v57 = vrot.slane %v833_v20, 1  ;;  %v428_v20 = vld [vmem:[#allocation2 + $0x2d8] sm:$0xff] }
 0x11f   :  { %v836_v13 = vor.u32 %v835_v57, %v831_v52 }
 0x120   :  { %1988 = vmatmul.mubr.bf16.gmra.mrb[88].mxu0 %v10652_v48 }
 0x121   :  { %1995 = vmatprep.mubr.bf16.mxu0 %v10684_v34  ;;  %v10710_v34 = vsel %vm517_vm0, %v824_v38, %v828_v47  ;;  %v10720_v8 = vsel %vm517_vm0, %v836_v13, %v840_v14  ;;  %v843_v38 = vshrl.u32 %v10712_v39, 16  ;;  %v847_v47 = vrot.slane %v845_v37, 1  ;;  %v430_v13 = vld [vmem:[#allocation2 + $0x2e8] sm:$0xff]  ;;  %v431_v14 = vld [vmem:[#allocation2 + $0x2f0] sm:$0xff] }
 0x122   :  { %17383 = vst [vmem:[#allocation43_spill] sm:$0xff] %v10710_v34  ;;  %17386 = vst [vmem:[#allocation46_spill] sm:$0xff] %v10720_v8 }
 0x128   :  { %1996 = vmatmul.mubr.bf16.gmra.mrb[92].mxu0 %v10659_v17  ;;  %v426_v17 = vld [vmem:[#allocation2 + $0x2c8] sm:$0x3] }
 0x129   :  { %2003 = vmatprep.mubr.bf16.mxu0 %v10698_v16  ;;  %v10716_v49 = vpack.c.bf16 %v426_v17, %v426_v17  ;;  %v427_v16 = vld [vmem:[#allocation2 + $0x2d0] sm:$0xff]  ;;  %v848_v17 = vor.u32 %v847_v47, %v843_v38 }
 0x12a   :  { %v10724_v60 = vpack.c.bf16 %v428_v20, %v427_v16 }
 0x12b   :  { %17385 = vst [vmem:[#allocation45_spill] sm:$0xff] %v10716_v49  ;;  %v850_v28 = vshll.u32 %v10716_v49, 16 }
 0x12c   :  { %17387 = vst [vmem:[#allocation47_spill] sm:$0xff] %v10724_v60  ;;  %v857_v45 = vshll.u32 %v10724_v60, 16  ;;  %v855_v16 = vshrl.u32 %v10724_v60, 16 }
 0x12d   :  { %v852_v52 = vrot.slane %v850_v28, 1 }
 0x12e   :  { %v859_v20 = vrot.slane %v857_v45, 1 }
 0x12f   :  { %v10734_v37 = vsel %vm517_vm0, %v848_v17, %v852_v52 }
 0x130   :  { %2004 = vmatmul.mubr.bf16.gmra.mrb[96].mxu0 %v10676_v12  ;;  %v429_v12 = vld [vmem:[#allocation2 + $0x2e0] sm:$0x3]  ;;  %17390 = vst [vmem:[#allocation50_spill] sm:$0xff] %v10734_v37  ;;  %v860_v47 = vor.u32 %v859_v20, %v855_v16 }
 0x131   :  { %2011 = vmatprep.mubr.bf16.mxu0 %v10710_v34  ;;  %v10728_v57 = vpack.c.bf16 %v429_v12, %v429_v12  ;;  %v10731_v34 = vpack.c.bf16 %v431_v14, %v430_v13  ;;  %v433_v13 = vld [vmem:[#allocation2 + $0x300] sm:$0xff]  ;;  %v434_v14 = vld [vmem:[#allocation2 + $0x308] sm:$0xff] }
 0x133   :  { %17388 = vst [vmem:[#allocation48_spill] sm:$0xff] %v10728_v57  ;;  %17389 = vst [vmem:[#allocation49_spill] sm:$0xff] %v10731_v34  ;;  %v862_v49 = vshll.u32 %v10728_v57, 16  ;;  %v869_v38 = vshll.u32 %v10731_v34, 16  ;;  %v867_v17 = vshrl.u32 %v10731_v34, 16  ;;  %v10748_v57 = vpack.c.bf16 %v434_v14, %v433_v13 }
 0x135   :  { %v864_v28 = vrot.slane %v862_v49, 1  ;;  %v871_v52 = vrot.slane %v869_v38, 1  ;;  %17393 = vst [vmem:[#allocation53_spill] sm:$0xff] %v10748_v57  ;;  %v881_v20 = vshll.u32 %v10748_v57, 16  ;;  %v437_v38 = vld [vmem:[#allocation2 + $0x320] sm:$0xff] }
 0x138   :  { %2012 = vmatmul.mubr.bf16.gmra.mrb[100].mxu0 %v10688_v0  ;;  %v432_v0 = vld [vmem:[#allocation2 + $0x2f8] sm:$0x3] }
 0x139   :  { %2019 = vmatprep.mubr.bf16.mxu0 %v10720_v8  ;;  %v10740_v12 = vpack.c.bf16 %v432_v0, %v432_v0  ;;  %v10746_v8 = vsel %vm517_vm0, %v860_v47, %v864_v28  ;;  %v872_v0 = vor.u32 %v871_v52, %v867_v17  ;;  %v879_v47 = vshrl.u32 %v10748_v57, 16 }
 0x13a   :  { %17392 = vst [vmem:[#allocation52_spill] sm:$0xff] %v10746_v8  ;;  %v883_v28 = vrot.slane %v881_v20, 1 }
 0x13b   :  { %17391 = vst [vmem:[#allocation51_spill] sm:$0xff] %v10740_v12  ;;  %v874_v45 = vshll.u32 %v10740_v12, 16 }
 0x13d   :  { %v876_v16 = vrot.slane %v874_v45, 1 }
 0x13f   :  { %v10756_v12 = vsel %vm517_vm0, %v872_v0, %v876_v16 }
 0x140   :  { %2020 = vmatmul.mubr.bf16.gmra.mrb[104].mxu0 %v10695_v30  ;;  %v435_v30 = vld [vmem:[#allocation2 + $0x310] sm:$0x3]  ;;  %17394 = vst [vmem:[#allocation54_spill] sm:$0xff] %v10756_v12 }
 0x141   :  { %2027 = vmatprep.mubr.bf16.mxu0 %v10734_v37  ;;  %v10752_v49 = vpack.c.bf16 %v435_v30, %v435_v30  ;;  %v436_v37 = vld [vmem:[#allocation2 + $0x318] sm:$0xff]  ;;  %v884_v30 = vor.u32 %v883_v28, %v879_v47  ;;  %v1042_v47 = vrot.slane %v10549_v6, 1  ;;  %v1000_v6 = vrot.slane %v10207_v9, 1  ;;  %v9698_v9 = vld [vmem:[%s16854_s1 + $0x108] sm:$0xff]  }
 0x142   :  { %v10760_v14 = vpack.c.bf16 %v437_v38, %v436_v37  ;;  %v1041_v38 = vrot.slane %v10545_v62, 1 }
 0x143   :  { %v886_v13 = vshll.u32 %v10752_v49, 16 }
 0x144   :  { %17395 = vst [vmem:[#allocation55_spill] sm:$0xff] %v10760_v14  ;;  %v893_v45 = vshll.u32 %v10760_v14, 16  ;;  %v891_v16 = vshrl.u32 %v10760_v14, 16 }
 0x145   :  { %v888_v17 = vrot.slane %v886_v13, 1  ;;  %v66_v13 = vld [vmem:[%s16855_s0 + $0x78] sm:$0xff]  }
 0x146   :  { %v895_v20 = vrot.slane %v893_v45, 1  ;;  %v239_v45 = vunpack.c.h.bf16 %v66_v13 }
 0x147   :  { %v10768_v0 = vsel %vm517_vm0, %v884_v30, %v888_v17  ;;  %v10780_v30 = vsel %vm998_vm1, %v1041_v38, %v1042_v47  ;;  %v238_v17 = vunpack.c.l.bf16 %v66_v13  ;;  %v9697_v38 = vld [vmem:[%s16854_s1 + $0x100] sm:$0xff]   ;;  %v1002_v47 = vrot.slane %v10279_v59, 1 }
 0x148   :  { %2028 = vmatmul.mubr.bf16.gmra.mrb[108].mxu0 %v10712_v39  ;;  %v438_v39 = vld [vmem:[#allocation2 + $0x328] sm:$0x3]  ;;  %17396 = vst [vmem:[#allocation56_spill] sm:$0xff] %v10768_v0  ;;  %8679 = vmatprep.mubr.bf16.mxu1 %v10780_v30  ;;  %304 = vst [vmem:[#allocation2 + $0x189] sm:$0xff] %v239_v45  ;;  %v9700_v45 = vld [vmem:[%s16854_s1 + $0x118] sm:$0xff]  }
 0x149   :  { %2035 = vmatprep.mubr.bf16.mxu0 %v10746_v8  ;;  %v10764_v52 = vpack.c.bf16 %v438_v39, %v438_v39  ;;  %v896_v39 = vor.u32 %v895_v20, %v891_v16  ;;  %303 = vst [vmem:[#allocation2 + $0x181] sm:$0xff] %v238_v17  ;;  %v17397_v16 = vmov 0.0|0.0   ;;  %v9699_v17 = vld [vmem:[%s16854_s1 + $0x110] sm:$0xff]  }
 0x14a   :  { %v999_v20 = vrot.slane %v17397_v16, 1  ;;  %v9701_v16 = vld [vmem:[%s16854_s1 + $0x120] sm:$0xff]  }
 0x14b   :  { %v898_v37 = vshll.u32 %v10764_v52, 16 }
 0x14d   :  { %v900_v28 = vrot.slane %v898_v37, 1  ;;  %v1001_v37 = vsel %vm998_vm1, %v999_v20, %v1000_v6  ;;  %v1009_v20 = vrot.slane %v10335_v43, 1  ;;  %v1011_v43 = vrot.slane %v10349_v55, 1 }
 0x150   :  { %2036 = vmatmul.mubr.bf16.gmra.mrb[112].mxu0 %v10724_v60 }
 0x151   :  { %2043 = vmatprep.mubr.bf16.mxu0 %v10756_v12 }
 0x158   :  { %2044 = vmatmul.mubr.bf16.gmra.mrb[116].mxu0 %v10731_v34 }
 0x159   :  { %2051 = vmatprep.mubr.bf16.mxu0 %v10768_v0  ;;  %v10784_v0 = vsel %vm517_vm0, %v896_v39, %v900_v28  ;;  %v1003_v39 = vrot.slane %v10288_v63, 1  ;;  %v17398_v28 = vmov 0   ;;  %v1006_v63 = vrot.slane %v10312_v27, 1 }
 0x15a   :  { %v1008_v27 = vrot.slane %v10321_v33, 1 }
 0x15b   :  { %v10804_v13 = vsel %vm998_vm1, %v1002_v47, %v1003_v39  ;;  %v9703_v47 = vld [vmem:[%s16854_s1 + $0x130] sm:$0xff]   ;;  %v1012_v39 = vrot.slane %v10353_v56, 1  ;;  %v1014_v56 = vrot.slane %v10368_v11, 1 }
 0x160   :  { %2052 = vmatmul.mubr.bf16.gmra.mrb[120].mxu0 %v10748_v57 }
 0x161   :  { %2059 = vmatprep.mubr.bf16.mxu0 %v10784_v0 }
 0x168   :  { %2060 = vmatmul.mubr.bf16.gmra.mrb[124].mxu0 %v10760_v14 }
 0x169   :  { %2100 = vmatprep.mubr.bf16.mxu0 %v10279_v59  ;;  %v1005_v59 = vrot.slane %v10301_v10, 1 }
 0x16b   :  { %v10819_v6 = vsel %vm998_vm1, %v1005_v59, %v1006_v63  ;;  %v9705_v59 = vld [vmem:[%s16854_s1 + $0x140] sm:$0xff]   ;;  %v1015_v63 = vrot.slane %v10381_v21, 1  ;;  %v1017_v21 = vrot.slane %v10395_v31, 1 }
 0x16c   :  { %17399 = vst [vmem:[#allocation57_spill] sm:$0xff] %v10819_v6 }
 0x170   :  { %2101 = vmatmul.mubr.bf16.vlgmr.msra.gmra.mrb[0].mxu0 %v1001_v37  ;;  %v9702_v37 = vld [vmem:[%s16854_s1 + $0x128] sm:$0xff]  }
 0x171   :  { %2358 = vmatpush1.bf16.msra.mxu0 %v9697_v38  ;;  %2108 = vmatprep.mubr.bf16.mxu0 %v10301_v10  ;;  %v10834_v38 = vsel %vm998_vm1, %v1008_v27, %v1009_v20  ;;  %v9707_v27 = vld [vmem:[%s16854_s1 + $0x150] sm:$0xff]   ;;  %v1018_v20 = vrot.slane %v10403_v41, 1 }
 0x172   :  { %2359 = vmatprep.subr.bf16.mxu0 %v17398_v28  ;;  %17400 = vst [vmem:[#allocation58_spill] sm:$0xff] %v10834_v38 }
 0x175   :  { %2360 = vmatpush1.bf16.msra.mxu0 %v9698_v9  ;;  %v9704_v9 = vld [vmem:[%s16854_s1 + $0x138] sm:$0xff]  }
 0x176   :  { %2361 = vmatprep.subr.bf16.mxu0 %v17398_v28 }
 0x178   :  { %2109 = vmatmul.mubr.bf16.gmra.mrb[4].mxu0 %v10804_v13 }
 0x179   :  { %2116 = vmatprep.mubr.bf16.mxu0 %v10321_v33  ;;  %2362 = vmatpush1.bf16.msra.mxu0 %v9699_v17  ;;  %v10849_v17 = vsel %vm998_vm1, %v1011_v43, %v1012_v39  ;;  %v1020_v43 = vrot.slane %v10418_v53, 1  ;;  %v1021_v39 = vrot.slane %v10426_v1, 1  ;;  %v9709_v1 = vld [vmem:[%s16854_s1 + $0x160] sm:$0xff]  }
 0x17a   :  { %2363 = vmatprep.subr.bf16.mxu0 %v17398_v28  ;;  %17401 = vst [vmem:[#allocation59_spill] sm:$0xff] %v10849_v17 }
 0x17b   :  { %v10887_v41 = vsel %vm998_vm1, %v1020_v43, %v1021_v39  ;;  %v1033_v43 = vrot.slane %v10499_v35, 1  ;;  %v1035_v39 = vrot.slane %v10506_v46, 1  ;;  %v9711_v35 = vld [vmem:[%s16854_s1 + $0x170] sm:$0xff]  }
 0x17c   :  { %17404 = vst [vmem:[#allocation62_spill] sm:$0xff] %v10887_v41 }
 0x17d   :  { %2364 = vmatpush1.bf16.msra.mxu0 %v9700_v45  ;;  %v9706_v45 = vld [vmem:[%s16854_s1 + $0x148] sm:$0xff]  }
 0x17e   :  { %2365 = vmatprep.subr.bf16.mxu0 %v17398_v28 }
 0x180   :  { %2117 = vmatmul.mubr.bf16.gmra.mrb[8].mxu0 %v10819_v6 }
 0x181   :  { %2124 = vmatprep.mubr.bf16.mxu0 %v10349_v55  ;;  %2366 = vmatpush1.bf16.msra.mxu0 %v9701_v16  ;;  %v10864_v16 = vsel %vm998_vm1, %v1014_v56, %v1015_v63  ;;  %v1026_v63 = vrot.slane %v10453_v29, 1 }
 0x182   :  { %2367 = vmatprep.subr.bf16.mxu0 %v17398_v28  ;;  %17402 = vst [vmem:[#allocation60_spill] sm:$0xff] %v10864_v16 }
 0x185   :  { %2368 = vmatpush1.bf16.msra.mxu0 %v9702_v37  ;;  %v10876_v37 = vsel %vm998_vm1, %v1017_v21, %v1018_v20  ;;  %v1030_v21 = vrot.slane %v10481_v4, 1 }
 0x186   :  { %2369 = vmatprep.subr.bf16.mxu0 %v17398_v28  ;;  %17403 = vst [vmem:[#allocation61_spill] sm:$0xff] %v10876_v37 }
 0x188   :  { %2125 = vmatmul.mubr.bf16.gmra.mrb[12].mxu0 %v10834_v38 }
 0x189   :  { %2132 = vmatprep.mubr.bf16.mxu0 %v10368_v11  ;;  %2370 = vmatpush1.bf16.msra.mxu0 %v9703_v47  ;;  %v9708_v47 = vld [vmem:[%s16854_s1 + $0x158] sm:$0xff]  }
 0x18a   :  { %2371 = vmatprep.subr.bf16.mxu0 %v17398_v28 }
 0x18d   :  { %2372 = vmatpush1.bf16.msra.mxu0 %v9704_v9  ;;  %v1023_v9 = vrot.slane %v10441_v15, 1 }
 0x18e   :  { %2373 = vmatprep.subr.bf16.mxu0 %v17398_v28 }
 0x190   :  { %2133 = vmatmul.mubr.bf16.gmra.mrb[16].mxu0 %v10849_v17 }
 0x191   :  { %2140 = vmatprep.mubr.bf16.mxu0 %v10395_v31  ;;  %2374 = vmatpush1.bf16.msra.mxu0 %v9705_v59  ;;  %v1024_v59 = vrot.slane %v10446_v19, 1 }
 0x192   :  { %2375 = vmatprep.subr.bf16.mxu0 %v17398_v28 }
 0x193   :  { %v10894_v56 = vsel %vm998_vm1, %v1023_v9, %v1024_v59  ;;  %v1036_v9 = vrot.slane %v10515_v58, 1 }
 0x194   :  { %17405 = vst [vmem:[#allocation63_spill] sm:$0xff] %v10894_v56 }
 0x195   :  { %2376 = vmatpush1.bf16.msra.mxu0 %v9706_v45  ;;  %v1027_v45 = vrot.slane %v10465_v44, 1  ;;  %v9710_v44 = vld [vmem:[%s16854_s1 + $0x168] sm:$0xff]   ;;  %v10930_v59 = vsel %vm998_vm1, %v1035_v39, %v1036_v9  ;;  %v1044_v39 = vrot.slane %v10555_v25, 1  ;;  %v1045_v9 = vrot.slane %v10567_v51, 1 }
 0x196   :  { %2377 = vmatprep.subr.bf16.mxu0 %v17398_v28  ;;  %17409 = vst [vmem:[#allocation67_spill] sm:$0xff] %v10930_v59  ;;  %v1050_v51 = vrot.slane %v10591_v3, 1 }
 0x197   :  { %v10905_v19 = vsel %vm998_vm1, %v1026_v63, %v1027_v45  ;;  %v1039_v63 = vrot.slane %v10533_v36, 1  ;;  %v385_v45 = vld [vmem:[#allocation2 + $0x180] sm:$0xff]  ;;  %v9712_v36 = vld [vmem:[%s16854_s1 + $0x178] sm:$0xff]  }
 0x198   :  { %2141 = vmatmul.mubr.bf16.gmra.mrb[20].mxu0 %v10864_v16  ;;  %17406 = vst [vmem:[#allocation64_spill] sm:$0xff] %v10905_v19 }
 0x199   :  { %2148 = vmatprep.mubr.bf16.mxu0 %v10418_v53  ;;  %2378 = vmatpush1.bf16.msra.mxu0 %v9707_v27  ;;  %v1029_v27 = vrot.slane %v10477_v61, 1 }
 0x19a   :  { %2379 = vmatprep.subr.bf16.mxu0 %v17398_v28 }
 0x19b   :  { %v10912_v20 = vsel %vm998_vm1, %v1029_v27, %v1030_v21  ;;  %v386_v27 = vld [vmem:[#allocation2 + $0x188] sm:$0xff]  ;;  %v98_v21 = vld [vmem:[%s16855_s0 + $0xf8] sm:$0xff]  }
 0x19c   :  { %17407 = vst [vmem:[#allocation65_spill] sm:$0xff] %v10912_v20 }
 0x19d   :  { %2380 = vmatpush1.bf16.msra.mxu0 %v9708_v47  ;;  %v1032_v47 = vrot.slane %v10492_v23, 1 }
 0x19e   :  { %2381 = vmatprep.subr.bf16.mxu0 %v17398_v28 }
 0x19f   :  { %v10923_v4 = vsel %vm998_vm1, %v1032_v47, %v1033_v43  ;;  %v271_v47 = vunpack.c.h.bf16 %v98_v21  ;;  %v10948_v43 = vpack.c.bf16 %v386_v27, %v385_v45  ;;  %v1051_v27 = vrot.slane %v10598_v24, 1 }
 0x1a0   :  { %2149 = vmatmul.mubr.bf16.gmra.mrb[24].mxu0 %v10876_v37  ;;  %17408 = vst [vmem:[#allocation66_spill] sm:$0xff] %v10923_v4  ;;  %v1057_v24 = vrot.slane %v10620_v42, 1  ;;  %v1062_v42 = vrot.slane %v10640_v18, 1 }
 0x1a1   :  { %2156 = vmatprep.mubr.bf16.mxu0 %v10441_v15  ;;  %2382 = vmatpush1.bf16.msra.mxu0 %v9709_v1  ;;  %v1038_v1 = vrot.slane %v10526_v22, 1  ;;  %17411 = vst [vmem:[#allocation69_spill] sm:$0xff] %v10948_v43  ;;  %336 = vst [vmem:[#allocation2 + $0x339] sm:$0xff] %v271_v47 }
 0x1a2   :  { %2383 = vmatprep.subr.bf16.mxu0 %v17398_v28 }
 0x1a3   :  { %v10941_v58 = vsel %vm998_vm1, %v1038_v1, %v1039_v63  ;;  %v1047_v1 = vrot.slane %v10574_v7, 1  ;;  %v1048_v63 = vrot.slane %v10583_v32, 1  ;;  %v1053_v7 = vrot.slane %v10605_v26, 1 }
 0x1a4   :  { %17410 = vst [vmem:[#allocation68_spill] sm:$0xff] %v10941_v58  ;;  %v1054_v32 = vrot.slane %v10608_v5, 1  ;;  %v1059_v5 = vrot.slane %v10623_v54, 1 }
 0x1a5   :  { %2384 = vmatpush1.bf16.msra.mxu0 %v9710_v44  ;;  %v270_v44 = vunpack.c.l.bf16 %v98_v21  ;;  %v1049_v45 = vsel %vm998_vm1, %v1047_v1, %v1048_v63  ;;  %v10970_v21 = vsel %vm998_vm1, %v1050_v51, %v1051_v27  ;;  %v17412_v63 = vld [vmem:[#allocation31_spill] sm:$0xff] }
 0x1a6   :  { %2385 = vmatprep.subr.bf16.mxu0 %v17398_v28 }
 0x1a7   :  { %335 = vst [vmem:[#allocation2 + $0x331] sm:$0xff] %v270_v44  ;;  %v10977_v44 = vsel %vm998_vm1, %v1053_v7, %v1054_v32  ;;  %v17414_v7 = vld [vmem:[#allocation35_spill] sm:$0xff]  ;;  %v17415_v32 = vld [vmem:[#allocation33_spill] sm:$0xff] }
 0x1a8   :  { %2157 = vmatmul.mubr.bf16.gmra.mrb[28].mxu0 %v10887_v41 }
 0x1a9   :  { %2164 = vmatprep.mubr.bf16.mxu0 %v10453_v29  ;;  %2386 = vmatpush1.bf16.msra.mxu0 %v9711_v35  ;;  %v10959_v35 = vsel %vm998_vm1, %v1044_v39, %v1045_v9  ;;  %v1063_v9 = vrot.slane %v10644_v2, 1  ;;  %v1068_v2 = vrot.slane %v17412_v63, 1 }
 0x1aa   :  { %2387 = vmatprep.subr.bf16.mxu0 %v17398_v28 }
 0x1ab   :  { %v10998_v1 = vsel %vm998_vm1, %v1062_v42, %v1063_v9  ;;  %v17417_v42 = vld [vmem:[#allocation36_spill] sm:$0xff] }
 0x1ac   :  { %v1072_v9 = vrot.slane %v17417_v42, 1 }
 0x1ad   :  { %2388 = vmatpush1.bf16.msra.mxu0 %v9712_v36  ;;  %v1060_v36 = vrot.slane %v10632_v50, 1  ;;  %v1065_v50 = vrot.slane %v10652_v48, 1 }
 0x1ae   :  { %2646 = vmatprep.subr.bf16.mxu0 %v17398_v28 }
 0x1af   :  { %v10991_v39 = vsel %vm998_vm1, %v1059_v5, %v1060_v36  ;;  %v17416_v5 = vld [vmem:[#allocation38_spill] sm:$0xff]  ;;  %v1071_v36 = vrot.slane %v17414_v7, 1 }
 0x1b0   :  { %2165 = vmatmul.mubr.bf16.gmra.mrb[32].mxu0 %v10894_v56 }
 0x1b1   :  { %2172 = vmatprep.mubr.bf16.mxu0 %v10477_v61 }
 0x1b8   :  { %2173 = vmatmul.mubr.bf16.gmra.mrb[36].mxu0 %v10905_v19 }
 0x1b9   :  { %2180 = vmatprep.mubr.bf16.mxu0 %v10492_v23 }
 0x1c0   :  { %2181 = vmatmul.mubr.bf16.gmra.mrb[40].mxu0 %v10912_v20 }
 0x1c1   :  { %2188 = vmatprep.mubr.bf16.mxu0 %v10506_v46 }
 0x1c8   :  { %2189 = vmatmul.mubr.bf16.gmra.mrb[44].mxu0 %v10923_v4 }
 0x1c9   :  { %2196 = vmatprep.mubr.bf16.mxu0 %v10526_v22 }
 0x1d0   :  { %2197 = vmatmul.mubr.bf16.gmra.mrb[48].mxu0 %v10930_v59 }
 0x1d1   :  { %2204 = vmatprep.mubr.bf16.mxu0 %v10545_v62 }
 0x1d8   :  { %2205 = vmatmul.mubr.bf16.gmra.mrb[52].mxu0 %v10941_v58 }
 0x1d9   :  { %2212 = vmatprep.mubr.bf16.mxu0 %v10555_v25 }
 0x1e0   :  { %2213 = vmatmul.mubr.bf16.gmra.mrb[56].mxu0 %v10780_v30 }
 0x1e1   :  { %2220 = vmatprep.mubr.bf16.mxu0 %v10948_v43 }
 0x1e8   :  { %2221 = vmatmul.mubr.bf16.gmra.mrb[60].mxu0 %v10959_v35 }
 0x1e9   :  { %2228 = vmatprep.mubr.bf16.mxu0 %v10591_v3  ;;  %v1056_v3 = vrot.slane %v10616_v40, 1 }
 0x1eb   :  { %v10984_v47 = vsel %vm998_vm1, %v1056_v3, %v1057_v24  ;;  %v1069_v3 = vrot.slane %v17415_v32, 1  ;;  %v17419_v32 = vld [vmem:[#allocation39_spill] sm:$0xff] }
 0x1ed   :  { %v11012_v24 = vsel %vm998_vm1, %v1068_v2, %v1069_v3  ;;  %v1075_v2 = vrot.slane %v17419_v32, 1 }
 0x1f0   :  { %2229 = vmatmul.mubr.bf16.gmra.mrb[64].mxu0 %v1049_v45  ;;  %v17413_v45 = vld [vmem:[#allocation30_spill] sm:$0xff] }
 0x1f1   :  { %2236 = vmatprep.mubr.bf16.mxu0 %v10605_v26  ;;  %v1066_v51 = vrot.slane %v17413_v45, 1  ;;  %v17418_v45 = vld [vmem:[#allocation40_spill] sm:$0xff] }
 0x1f2   :  { %v1077_v42 = vrot.slane %v17418_v45, 1  ;;  %v9888_v26 = vld [vmem:[#allocation2] sm:$0xff] }
 0x1f3   :  { %v11005_v27 = vsel %vm998_vm1, %v1065_v50, %v1066_v51  ;;  %v11019_v50 = vsel %vm998_vm1, %v1071_v36, %v1072_v9  ;;  %v1074_v51 = vrot.slane %v17416_v5, 1 }
 0x1f5   :  { %v11026_v3 = vsel %vm998_vm1, %v1074_v51, %v1075_v2 }
 0x1f8   :  { %2237 = vmatmul.mubr.bf16.gmra.mrb[68].mxu0 %v10970_v21 }
 0x1f9   :  { %2244 = vmatprep.mubr.bf16.mxu0 %v10616_v40 }
 0x200   :  { %2245 = vmatmul.mubr.bf16.gmra.mrb[72].mxu0 %v10977_v44 }
 0x201   :  { %2252 = vmatprep.mubr.bf16.mxu0 %v10623_v54  ;;  %v441_v54 = vld [vmem:[#allocation2 + $0x340] sm:$0x3] }
 0x208   :  { %2253 = vmatmul.mubr.bf16.gmra.mrb[76].mxu0 %v10984_v47 }
 0x209   :  { %2260 = vmatprep.mubr.bf16.mxu0 %v10640_v18 }
 0x210   :  { %2261 = vmatmul.mubr.bf16.gmra.mrb[80].mxu0 %v10991_v39 }
 0x211   :  { %2268 = vmatprep.mubr.bf16.mxu0 %v10652_v48 }
 0x218   :  { %2269 = vmatmul.mubr.bf16.gmra.mrb[84].mxu0 %v10998_v1 }
 0x219   :  { %2276 = vmatprep.mubr.bf16.mxu0 %v17412_v63  ;;  %v17420_v63 = vld [vmem:[#allocation44_spill] sm:$0xff] }
 0x21a   :  { %v1080_v32 = vrot.slane %v17420_v63, 1 }
 0x220   :  { %2277 = vmatmul.mubr.bf16.gmra.mrb[88].mxu0 %v11005_v27 }
 0x221   :  { %2284 = vmatprep.mubr.bf16.mxu0 %v17414_v7  ;;  %v17421_v7 = vld [vmem:[#allocation42_spill] sm:$0xff] }
 0x222   :  { %v1078_v36 = vrot.slane %v17421_v7, 1  ;;  %v1083_v7 = vrot.slane %v10724_v60, 1 }
 0x224   :  { %v11033_v9 = vsel %vm998_vm1, %v1077_v42, %v1078_v36 }
 0x228   :  { %2285 = vmatmul.mubr.bf16.gmra.mrb[92].mxu0 %v11012_v24 }
 0x229   :  { %2292 = vmatprep.mubr.bf16.mxu0 %v17416_v5  ;;  %v17422_v5 = vld [vmem:[#allocation45_spill] sm:$0xff] }
 0x22a   :  { %v1081_v51 = vrot.slane %v17422_v5, 1  ;;  %v1086_v5 = vrot.slane %v10731_v34, 1 }
 0x22c   :  { %v11040_v2 = vsel %vm998_vm1, %v1080_v32, %v1081_v51 }
 0x230   :  { %2293 = vmatmul.mubr.bf16.gmra.mrb[96].mxu0 %v11019_v50 }
 0x231   :  { %2300 = vmatprep.mubr.bf16.mxu0 %v17418_v45  ;;  %v17423_v45 = vld [vmem:[#allocation48_spill] sm:$0xff] }
 0x232   :  { %v1084_v42 = vrot.slane %v17423_v45, 1  ;;  %v1089_v45 = vrot.slane %v10748_v57, 1 }
 0x234   :  { %v11047_v36 = vsel %vm998_vm1, %v1083_v7, %v1084_v42  ;;  %v1090_v7 = vrot.slane %v10752_v49, 1  ;;  %v439_v42 = vld [vmem:[#allocation2 + $0x330] sm:$0xff]  ;;  %v17425_v49 = vld [vmem:[#allocation4_spill] sm:$0xff] }
 0x236   :  { %v11061_v48 = vsel %vm998_vm1, %v1089_v45, %v1090_v7  ;;  %v17426_v45 = vld [vmem:[#allocation5_spill] sm:$0xff]  ;;  %v9716_v7 = vld [vmem:[%s16854_s1 + $0x198] sm:$0xff]  }
 0x238   :  { %2301 = vmatmul.mubr.bf16.gmra.mrb[100].mxu0 %v11026_v3 }
 0x239   :  { %2308 = vmatprep.mubr.bf16.mxu0 %v17420_v63  ;;  %v17424_v63 = vld [vmem:[#allocation51_spill] sm:$0xff] }
 0x23a   :  { %v1087_v32 = vrot.slane %v17424_v63, 1  ;;  %v1092_v63 = vrot.slane %v10760_v14, 1 }
 0x23c   :  { %v11054_v51 = vsel %vm998_vm1, %v1086_v5, %v1087_v32  ;;  %v1093_v5 = vrot.slane %v10764_v52, 1  ;;  %v9714_v52 = vld [vmem:[%s16854_s1 + $0x188] sm:$0xff]  }
 0x23e   :  { %v11070_v32 = vsel %vm998_vm1, %v1092_v63, %v1093_v5  ;;  %v17427_v63 = vld [vmem:[#allocation6_spill] sm:$0xff]  ;;  %v9718_v5 = vld [vmem:[%s16854_s1 + $0x1a8] sm:$0xff]  }
 0x240   :  { %2309 = vmatmul.mubr.bf16.gmra.mrb[104].mxu0 %v11033_v9 }
 0x241   :  { %2316 = vmatprep.mubr.bf16.mxu0 %v10724_v60  ;;  %v440_v60 = vld [vmem:[#allocation2 + $0x338] sm:$0xff] }
 0x242   :  { %v11063_v18 = vpack.c.bf16 %v440_v60, %v439_v42  ;;  %v9713_v60 = vld [vmem:[%s16854_s1 + $0x180] sm:$0xff]  }
 0x243   :  { %v9717_v42 = vld [vmem:[%s16854_s1 + $0x1a0] sm:$0xff]  }
 0x244   :  { %v1142_v40 = vshll.u32 %v11063_v18, 16 }
 0x248   :  { %2317 = vmatmul.mubr.bf16.gmra.mrb[108].mxu0 %v11040_v2 }
 0x249   :  { %2324 = vmatprep.mubr.bf16.mxu0 %v10731_v34 }
 0x250   :  { %2325 = vmatmul.mubr.bf16.gmra.mrb[112].mxu0 %v11047_v36 }
 0x251   :  { %2332 = vmatprep.mubr.bf16.mxu0 %v10748_v57 }
 0x258   :  { %2333 = vmatmul.mubr.bf16.gmra.mrb[116].mxu0 %v11054_v51 }
 0x259   :  { %2340 = vmatprep.mubr.bf16.mxu0 %v10760_v14 }
 0x260   :  { %2341 = vmatmul.mubr.bf16.gmra.mrb[120].mxu0 %v11061_v48 }
 0x261   :  { %2348 = vmatprep.mubr.bf16.mxu0 %v11063_v18 }
 0x268   :  { %2349 = vmatmul.mubr.bf16.gmra.mrb[124].mxu0 %v11070_v32 }
 0x269   :  { %2389 = vmatprep.mubr.bf16.mxu0 %v10804_v13  ;;  %v9715_v13 = vld [vmem:[%s16854_s1 + $0x190] sm:$0xff]  }
 0x270   :  { %2390 = vmatmul.mubr.bf16.vlgmr.msra.gmra.mrb[0].mxu0 %v17425_v49  ;;  %v17428_v49 = vld [vmem:[#allocation7_spill] sm:$0xff] }
 0x271   :  { %2647 = vmatpush1.bf16.msra.mxu0 %v9713_v60  ;;  %2397 = vmatprep.mubr.bf16.mxu0 %v10819_v6  ;;  %v9719_v60 = vld [vmem:[%s16854_s1 + $0x1b0] sm:$0xff]  }
 0x272   :  { %2648 = vmatprep.subr.bf16.mxu0 %v17398_v28 }
 0x275   :  { %2649 = vmatpush1.bf16.msra.mxu0 %v9714_v52  ;;  %v9720_v52 = vld [vmem:[%s16854_s1 + $0x1b8] sm:$0xff]  }
 0x276   :  { %2650 = vmatprep.subr.bf16.mxu0 %v17398_v28 }
 0x278   :  { %2398 = vmatmul.mubr.bf16.gmra.mrb[4].mxu0 %v17426_v45 }
 0x279   :  { %2405 = vmatprep.mubr.bf16.mxu0 %v10834_v38  ;;  %2651 = vmatpush1.bf16.msra.mxu0 %v9715_v13  ;;  %v9721_v13 = vld [vmem:[%s16854_s1 + $0x1c0] sm:$0xff]   ;;  %v1128_v38 = vshrl.u32 %v10948_v43, 16 }
 0x27a   :  { %2652 = vmatprep.subr.bf16.mxu0 %v17398_v28 }
 0x27d   :  { %2653 = vmatpush1.bf16.msra.mxu0 %v9716_v7  ;;  %v17429_v7 = vld [vmem:[#allocation8_spill] sm:$0xff] }
 0x27e   :  { %2654 = vmatprep.subr.bf16.mxu0 %v17398_v28 }
 0x280   :  { %2406 = vmatmul.mubr.bf16.gmra.mrb[8].mxu0 %v17427_v63 }
 0x281   :  { %2413 = vmatprep.mubr.bf16.mxu0 %v10849_v17  ;;  %2655 = vmatpush1.bf16.msra.mxu0 %v9717_v42  ;;  %v9722_v42 = vld [vmem:[%s16854_s1 + $0x1c8] sm:$0xff]  }
 0x282   :  { %2656 = vmatprep.subr.bf16.mxu0 %v17398_v28 }
 0x285   :  { %2657 = vmatpush1.bf16.msra.mxu0 %v9718_v5  ;;  %v9723_v5 = vld [vmem:[%s16854_s1 + $0x1d0] sm:$0xff]  }
 0x286   :  { %2658 = vmatprep.subr.bf16.mxu0 %v17398_v28 }
 0x288   :  { %2414 = vmatmul.mubr.bf16.gmra.mrb[12].mxu0 %v17428_v49 }
 0x289   :  { %2421 = vmatprep.mubr.bf16.mxu0 %v10864_v16  ;;  %2659 = vmatpush1.bf16.msra.mxu0 %v9719_v60  ;;  %v17430_v60 = vld [vmem:[#allocation9_spill] sm:$0xff]  ;;  %v1130_v16 = vshll.u32 %v10948_v43, 16 }
 0x28a   :  { %2660 = vmatprep.subr.bf16.mxu0 %v17398_v28 }
 0x28b   :  { %v1132_v6 = vrot.slane %v1130_v16, 1  ;;  %v17441_v16 = vld [vmem:[#allocation22_spill] sm:$0xff] }
 0x28d   :  { %2661 = vmatpush1.bf16.msra.mxu0 %v9720_v52  ;;  %v17431_v52 = vld [vmem:[#allocation10_spill] sm:$0xff] }
 0x28e   :  { %2662 = vmatprep.subr.bf16.mxu0 %v17398_v28 }
 0x290   :  { %2422 = vmatmul.mubr.bf16.gmra.mrb[16].mxu0 %v17429_v7 }
 0x291   :  { %2429 = vmatprep.mubr.bf16.mxu0 %v10876_v37  ;;  %2663 = vmatpush1.bf16.msra.mxu0 %v9721_v13  ;;  %v9724_v13 = vld [vmem:[%s16854_s1 + $0x1d8] sm:$0xff]   ;;  %v17433_v37 = vld [vmem:[#allocation12_spill] sm:$0xff] }
 0x292   :  { %2664 = vmatprep.subr.bf16.mxu0 %v17398_v28 }
 0x295   :  { %2665 = vmatpush1.bf16.msra.mxu0 %v9722_v42  ;;  %v17432_v42 = vld [vmem:[#allocation11_spill] sm:$0xff] }
 0x296   :  { %2666 = vmatprep.subr.bf16.mxu0 %v17398_v28 }
 0x298   :  { %2430 = vmatmul.mubr.bf16.gmra.mrb[20].mxu0 %v17430_v60 }
 0x299   :  { %2437 = vmatprep.mubr.bf16.mxu0 %v10887_v41  ;;  %2667 = vmatpush1.bf16.msra.mxu0 %v9723_v5  ;;  %v9725_v5 = vld [vmem:[%s16854_s1 + $0x1e0] sm:$0xff]   ;;  %v17434_v41 = vld [vmem:[#allocation13_spill] sm:$0xff] }
 0x29a   :  { %2668 = vmatprep.subr.bf16.mxu0 %v17398_v28 }
 0x29d   :  { %2669 = vmatpush1.bf16.msra.mxu0 %v9724_v13  ;;  %v17435_v13 = vld [vmem:[#allocation14_spill] sm:$0xff] }
 0x29e   :  { %2670 = vmatprep.subr.bf16.mxu0 %v17398_v28 }
 0x2a0   :  { %2438 = vmatmul.mubr.bf16.gmra.mrb[24].mxu0 %v17431_v52 }
 0x2a1   :  { %2445 = vmatprep.mubr.bf16.mxu0 %v10894_v56  ;;  %2671 = vmatpush1.bf16.msra.mxu0 %v9725_v5  ;;  %v17436_v56 = vld [vmem:[#allocation15_spill] sm:$0xff]  ;;  %v17437_v5 = vld [vmem:[#allocation18_spill] sm:$0xff] }
 0x2a2   :  { %2672 = vmatprep.subr.bf16.mxu0 %v17398_v28 }
 0x2a8   :  { %2446 = vmatmul.mubr.bf16.gmra.mrb[28].mxu0 %v17432_v42 }
 0x2a9   :  { %2453 = vmatprep.mubr.bf16.mxu0 %v10905_v19  ;;  %v9726_v19 = vld [vmem:[%s16854_s1 + $0x1e8] sm:$0xff]  }
 0x2aa   :  { %2673 = vmatpush1.bf16.msra.mxu0 %v9726_v19  ;;  %v17438_v19 = vld [vmem:[#allocation19_spill] sm:$0xff] }
 0x2ab   :  { %2674 = vmatprep.subr.bf16.mxu0 %v17398_v28 }
 0x2b0   :  { %2454 = vmatmul.mubr.bf16.gmra.mrb[32].mxu0 %v17433_v37 }
 0x2b1   :  { %2461 = vmatprep.mubr.bf16.mxu0 %v10912_v20  ;;  %v387_v20 = vld [vmem:[#allocation2 + $0x190] sm:$0x3] }
 0x2b8   :  { %2462 = vmatmul.mubr.bf16.gmra.mrb[36].mxu0 %v17434_v41 }
 0x2b9   :  { %2469 = vmatprep.mubr.bf16.mxu0 %v10923_v4  ;;  %v9727_v4 = vld [vmem:[%s16854_s1 + $0x1f0] sm:$0xff]  }
 0x2ba   :  { %2675 = vmatpush1.bf16.msra.mxu0 %v9727_v4  ;;  %v17439_v4 = vld [vmem:[#allocation20_spill] sm:$0xff] }
 0x2bb   :  { %2676 = vmatprep.subr.bf16.mxu0 %v17398_v28  ;;  %v1133_v28 = vor.u32 %v1132_v6, %v1128_v38  ;;  %v17445_v6 = vld [vmem:[#allocation32_spill] sm:$0xff]  ;;  %v11195_v38 = vld [vmem:[%s16854_s1 + $0x208] sm:$0xff]  }
 0x2c0   :  { %2470 = vmatmul.mubr.bf16.gmra.mrb[40].mxu0 %v17435_v13 }
 0x2c1   :  { %2477 = vmatprep.mubr.bf16.mxu0 %v10930_v59  ;;  %v511_v59 = vpack.c.bf16 %v387_v20, %v387_v20  ;;  %v9728_v20 = vld [vmem:[%s16854_s1 + $0x1f8] sm:$0xff]  }
 0x2c2   :  { %2677 = vmatpush1.bf16.msra.mxu0 %v9728_v20  ;;  %v17449_v20 = vld [vmem:[#allocation43_spill] sm:$0xff] }
 0x2c3   :  { %v1158_v17 = vrot.slane %v511_v59, 1  ;;  %v1135_v14 = vshll.u32 %v511_v59, 16  ;;  %v17446_v59 = vld [vmem:[#allocation34_spill] sm:$0xff] }
 0x2c5   :  { %v1137_v57 = vrot.slane %v1135_v14, 1  ;;  %v17443_v14 = vld [vmem:[#allocation26_spill] sm:$0xff] }
 0x2c7   :  { %v11171_v34 = vsel %vm517_vm0, %v1133_v28, %v1137_v57  ;;  %v17442_v57 = vld [vmem:[#allocation25_spill] sm:$0xff]  ;;  %v17444_v28 = vld [vmem:[#allocation28_spill] sm:$0xff] }
 0x2c8   :  { %2478 = vmatmul.mubr.bf16.gmra.mrb[44].mxu0 %v17436_v56  ;;  %17440 = vst [vmem:[#allocation30_spill] sm:$0xff] %v11171_v34 }
 0x2c9   :  { %2485 = vmatprep.mubr.bf16.mxu0 %v10941_v58  ;;  %v1157_v58 = vrot.slane %v10948_v43, 1  ;;  %v1160_v43 = vrot.slane %v11063_v18, 1 }
 0x2d0   :  { %2486 = vmatmul.mubr.bf16.gmra.mrb[48].mxu0 %v17437_v5 }
 0x2d1   :  { %2493 = vmatprep.mubr.bf16.mxu0 %v10780_v30  ;;  %v1159_v30 = vsel %vm998_vm1, %v1157_v58, %v1158_v17  ;;  %v11179_v17 = vld [vmem:[%s16854_s1 + $0x200] sm:$0xff]   ;;  %v17447_v58 = vld [vmem:[#allocation37_spill] sm:$0xff] }
 0x2d2   :  { %8639 = vmatprep.subr.bf16.mxu0 %v11179_v17  ;;  %8879 = vmatprep.subr.bf16.mxu1 %v11179_v17 }
 0x2d3   :  { %8887 = vmatpush3.bf16.msra.mxu1 %v11179_v17 }
 0x2d4   :  { %8880 = vmatprep.subr.bf16.mxu1 %v11195_v38 }
 0x2d7   :  { %8888 = vmatpush3.bf16.msra.mxu1 %v11195_v38 }
 0x2d8   :  { %2494 = vmatmul.mubr.bf16.gmra.mrb[52].mxu0 %v17438_v19 }
 0x2d9   :  { %2501 = vmatprep.mubr.bf16.mxu0 %v10959_v35 }
 0x2e0   :  { %2502 = vmatmul.mubr.bf16.gmra.mrb[56].mxu0 %v17439_v4 }
 0x2e1   :  { %2509 = vmatprep.mubr.bf16.mxu0 %v1159_v30 }
 0x2e8   :  { %2510 = vmatmul.mubr.bf16.gmra.mrb[60].mxu0 %v11171_v34 }
 0x2e9   :  { %2517 = vmatprep.mubr.bf16.mxu0 %v10970_v21  ;;  %v17448_v21 = vld [vmem:[#allocation41_spill] sm:$0xff] }
 0x2f0   :  { %2518 = vmatmul.mubr.bf16.gmra.mrb[64].mxu0 %v17441_v16  ;;  %v11210_v16 = vld [vmem:[%s16854_s1 + $0x210] sm:$0xff]  }
 0x2f1   :  { %2525 = vmatprep.mubr.bf16.mxu0 %v10977_v44  ;;  %8881 = vmatprep.subr.bf16.mxu1 %v11210_v16 }
 0x2f2   :  { %8889 = vmatpush3.bf16.msra.mxu1 %v11210_v16 }
 0x2f8   :  { %2526 = vmatmul.mubr.bf16.gmra.mrb[68].mxu0 %v17442_v57  ;;  %v11262_v57 = vpack.c.bf16 %v9888_v26, %v9888_v26 }
 0x2f9   :  { %2533 = vmatprep.mubr.bf16.mxu0 %v10984_v47 }
 0x300   :  { %2534 = vmatmul.mubr.bf16.gmra.mrb[72].mxu0 %v17443_v14  ;;  %v390_v14 = vld [vmem:[#allocation2 + $0x1a8] sm:$0x3] }
 0x301   :  { %2541 = vmatprep.mubr.bf16.mxu0 %v10991_v39 }
 0x308   :  { %2542 = vmatmul.mubr.bf16.gmra.mrb[76].mxu0 %v17444_v28  ;;  %v17452_v28 = vld [vmem:[#allocation56_spill] sm:$0xff] }
 0x309   :  { %2549 = vmatprep.mubr.bf16.mxu0 %v10998_v1 }
 0x310   :  { %2550 = vmatmul.mubr.bf16.gmra.mrb[80].mxu0 %v17445_v6  ;;  %v11241_v6 = vld [vmem:[%s16854_s1 + $0x230] sm:$0xff]  }
 0x311   :  { %2557 = vmatprep.mubr.bf16.mxu0 %v11005_v27 }
 0x318   :  { %2558 = vmatmul.mubr.bf16.gmra.mrb[84].mxu0 %v17446_v59  ;;  %v11235_v59 = vld [vmem:[%s16854_s1 + $0x228] sm:$0xff]  }
 0x319   :  { %2565 = vmatprep.mubr.bf16.mxu0 %v11012_v24 }
 0x320   :  { %2566 = vmatmul.mubr.bf16.gmra.mrb[88].mxu0 %v17447_v58  ;;  %v17450_v58 = vld [vmem:[#allocation46_spill] sm:$0xff] }
 0x321   :  { %2573 = vmatprep.mubr.bf16.mxu0 %v11019_v50 }
 0x328   :  { %2574 = vmatmul.mubr.bf16.gmra.mrb[92].mxu0 %v17448_v21  ;;  %v11219_v21 = vld [vmem:[%s16854_s1 + $0x218] sm:$0xff]  }
 0x329   :  { %2581 = vmatprep.mubr.bf16.mxu0 %v11026_v3  ;;  %8882 = vmatprep.subr.bf16.mxu1 %v11219_v21 }
 0x32a   :  { %8890 = vmatpush3.bf16.msra.mxu1 %v11219_v21 }
 0x330   :  { %2582 = vmatmul.mubr.bf16.gmra.mrb[96].mxu0 %v17449_v20  ;;  %v11225_v20 = vld [vmem:[%s16854_s1 + $0x220] sm:$0xff]  }
 0x331   :  { %2589 = vmatprep.mubr.bf16.mxu0 %v11033_v9  ;;  %8883 = vmatprep.subr.bf16.mxu1 %v11225_v20 }
 0x332   :  { %8891 = vmatpush3.bf16.msra.mxu1 %v11225_v20 }
 0x333   :  { %8884 = vmatprep.subr.bf16.mxu1 %v11235_v59 }
 0x336   :  { %8892 = vmatpush3.bf16.msra.mxu1 %v11235_v59 }
 0x337   :  { %8885 = vmatprep.subr.bf16.mxu1 %v11241_v6 }
 0x338   :  { %2590 = vmatmul.mubr.bf16.gmra.mrb[100].mxu0 %v17450_v58  ;;  %v17451_v58 = vld [vmem:[#allocation50_spill] sm:$0xff] }
 0x339   :  { %2597 = vmatprep.mubr.bf16.mxu0 %v11040_v2 }
 0x33a   :  { %8893 = vmatpush3.bf16.msra.mxu1 %v11241_v6 }
 0x340   :  { %2598 = vmatmul.mubr.bf16.gmra.mrb[104].mxu0 %v17451_v58  ;;  %v11251_v58 = vld [vmem:[%s16854_s1 + $0x238] sm:$0xff]  }
 0x341   :  { %2605 = vmatprep.mubr.bf16.mxu0 %v11047_v36  ;;  %8886 = vmatprep.subr.bf16.mxu1 %v11251_v58 }
 0x342   :  { %8894 = vmatpush3.bf16.msra.mxu1 %v11251_v58 }
 0x345   :  { %8680 = vmatmul.mubr.bf16.vlgmr.msra.gmra.mrb[0].mxu1 %v10959_v35 }
 0x346   :  { %8683 = vmatprep.mubr.bf16.mxu1 %v1159_v30  ;;  %v11265_v30 = vpack.c.bf16 %v390_v14, %v390_v14 }
 0x348   :  { %2606 = vmatmul.mubr.bf16.gmra.mrb[108].mxu0 %v10746_v8  ;;  %v512_v8 = vpack.c.bf16 %v441_v54, %v441_v54  ;;  %17453 = vst [vmem:[#allocation33_spill] sm:$0xff] %v11265_v30  ;;  %v1196_v34 = vrot.slane %v11265_v30, 1  ;;  %v1140_v54 = vshrl.u32 %v11063_v18, 16 }
 0x349   :  { %2613 = vmatprep.mubr.bf16.mxu0 %v11054_v51 }
 0x34a   :  { %v1161_v35 = vrot.slane %v512_v8, 1  ;;  %v1147_v25 = vshll.u32 %v512_v8, 16  ;;  %v17460_v8 = vld [vmem:[#allocation25_spill] sm:$0xff] }
 0x34c   :  { %v1162_v4 = vsel %vm998_vm1, %v1160_v43, %v1161_v35  ;;  %v1149_v62 = vrot.slane %v1147_v25, 1  ;;  %v17464_v43 = vld [vmem:[#allocation28_spill] sm:$0xff] }
 0x350   :  { %2614 = vmatmul.mubr.bf16.gmra.mrb[112].mxu0 %v10756_v12  ;;  %v1195_v12 = vrot.slane %v11262_v57, 1 }
 0x351   :  { %2621 = vmatprep.mubr.bf16.mxu0 %v11061_v48 }
 0x352   :  { %v1197_v26 = vsel %vm998_vm1, %v1195_v12, %v1196_v34  ;;  %v1168_v34 = vshll.u32 %v11262_v57, 16 }
 0x353   :  { %8684 = vmatmul.mubr.bf16.gmra.mrb[4].mxu1 %v1197_v26 }
 0x354   :  { %8687 = vmatprep.mubr.bf16.mxu1 %v10977_v44  ;;  %v17465_v44 = vld [vmem:[#allocation24_spill] sm:$0xff] }
 0x358   :  { %2622 = vmatmul.mubr.bf16.gmra.mrb[116].mxu0 %v17452_v28  ;;  %v1144_v28 = vrot.slane %v1142_v40, 1 }
 0x359   :  { %2629 = vmatprep.mubr.bf16.mxu0 %v11070_v32 }
 0x35a   :  { %v1145_v14 = vor.u32 %v1144_v28, %v1140_v54  ;;  %v9739_v28 = vld [vmem:[%s16856_s7 + $0x10] sm:$0xff]  }
 0x35b   :  { %8688 = vmatmul.mubr.bf16.gmra.mrb[8].mxu1 %v10984_v47  ;;  %v17466_v47 = vld [vmem:[#allocation32_spill] sm:$0xff] }
 0x35c   :  { %v11277_v30 = vsel %vm517_vm0, %v1145_v14, %v1149_v62  ;;  %8691 = vmatprep.mubr.bf16.mxu1 %v10991_v39  ;;  %v17468_v39 = vld [vmem:[#allocation34_spill] sm:$0xff] }
 0x360   :  { %2630 = vmatmul.mubr.bf16.gmra.mrb[120].mxu0 %v10784_v0 }
 0x361   :  { %2637 = vmatprep.mubr.bf16.mxu0 %v1162_v4 }
 0x363   :  { %8692 = vmatmul.mubr.bf16.gmra.mrb[12].mxu1 %v10998_v1  ;;  %v17469_v1 = vld [vmem:[#allocation29_spill] sm:$0xff] }
 0x364   :  { %8695 = vmatprep.mubr.bf16.mxu1 %v11005_v27  ;;  %v17470_v27 = vld [vmem:[#allocation37_spill] sm:$0xff] }
 0x368   :  { %2638 = vmatmul.mubr.bf16.gmra.mrb[124].mxu0 %v11277_v30 }
 0x369   :  { %2678 = vmatprep.mubr.bf16.mxu0 %v17426_v45  ;;  %v17475_v45 = vld [vmem:[#allocation38_spill] sm:$0xff] }
 0x36b   :  { %8696 = vmatmul.mubr.bf16.gmra.mrb[16].mxu1 %v11012_v24  ;;  %v17471_v24 = vld [vmem:[#allocation31_spill] sm:$0xff] }
 0x36c   :  { %8699 = vmatprep.mubr.bf16.mxu1 %v11019_v50  ;;  %v17472_v50 = vld [vmem:[#allocation41_spill] sm:$0xff] }
 0x370   :  { %2679 = vmatmul.mubr.bf16.vlgmr.msra.gmra.mrb[0].mxu0 %v10301_v10  ;;  %v17454_v10 = vld [vmem:[#allocation16_spill] sm:$0xff] }
 0x371   :  { %8640 = vmatpush3.bf16.msra.mxu0 %v11179_v17  ;;  %2686 = vmatprep.mubr.bf16.mxu0 %v17427_v63  ;;  %v17476_v63 = vld [vmem:[#allocation46_spill] sm:$0xff]  ;;  %v9738_v17 = vld [vmem:[%s16856_s7 + $0x8] sm:$0xff]  }
 0x372   :  { %8641 = vmatprep.subr.bf16.mxu0 %v11195_v38 }
 0x373   :  { %8700 = vmatmul.mubr.bf16.gmra.mrb[20].mxu1 %v11026_v3  ;;  %v17473_v3 = vld [vmem:[#allocation35_spill] sm:$0xff] }
 0x374   :  { %8703 = vmatprep.mubr.bf16.mxu1 %v11033_v9  ;;  %v17474_v9 = vld [vmem:[#allocation43_spill] sm:$0xff] }
 0x375   :  { %8642 = vmatpush3.bf16.msra.mxu0 %v11195_v38 }
 0x376   :  { %8643 = vmatprep.subr.bf16.mxu0 %v11210_v16 }
 0x378   :  { %2687 = vmatmul.mubr.bf16.gmra.mrb[4].mxu0 %v10321_v33  ;;  %v17455_v33 = vld [vmem:[#allocation20_spill] sm:$0xff] }
 0x379   :  { %2694 = vmatprep.mubr.bf16.mxu0 %v17428_v49  ;;  %8644 = vmatpush3.bf16.msra.mxu0 %v11210_v16  ;;  %v17477_v49 = vld [vmem:[#allocation40_spill] sm:$0xff] }
 0x37a   :  { %8645 = vmatprep.subr.bf16.mxu0 %v11219_v21 }
 0x37b   :  { %8704 = vmatmul.mubr.bf16.gmra.mrb[24].mxu1 %v11040_v2 }
 0x37c   :  { %8707 = vmatprep.mubr.bf16.mxu1 %v11047_v36 }
 0x37d   :  { %8646 = vmatpush3.bf16.msra.mxu0 %v11219_v21 }
 0x37e   :  { %8647 = vmatprep.subr.bf16.mxu0 %v11225_v20 }
 0x380   :  { %2695 = vmatmul.mubr.bf16.gmra.mrb[8].mxu0 %v10349_v55  ;;  %v1166_v55 = vshrl.u32 %v11262_v57, 16 }
 0x381   :  { %2702 = vmatprep.mubr.bf16.mxu0 %v17429_v7  ;;  %8648 = vmatpush3.bf16.msra.mxu0 %v11225_v20  ;;  %v17478_v7 = vld [vmem:[#allocation50_spill] sm:$0xff] }
 0x382   :  { %8649 = vmatprep.subr.bf16.mxu0 %v11235_v59 }
 0x383   :  { %8708 = vmatmul.mubr.bf16.gmra.mrb[28].mxu1 %v11054_v51 }
 0x384   :  { %8711 = vmatprep.mubr.bf16.mxu1 %v11061_v48  ;;  %v17459_v48 = vld [vmem:[#allocation69_spill] sm:$0xff] }
 0x385   :  { %8650 = vmatpush3.bf16.msra.mxu0 %v11235_v59  ;;  %v17482_v59 = vld [vmem:[#allocation54_spill] sm:$0xff] }
 0x386   :  { %8651 = vmatprep.subr.bf16.mxu0 %v11241_v6 }
 0x388   :  { %2703 = vmatmul.mubr.bf16.gmra.mrb[12].mxu0 %v10368_v11  ;;  %v1170_v11 = vrot.slane %v1168_v34, 1  ;;  %v17484_v34 = vld [vmem:[#allocation56_spill] sm:$0xff] }
 0x389   :  { %2710 = vmatprep.mubr.bf16.mxu0 %v17430_v60  ;;  %8652 = vmatpush3.bf16.msra.mxu0 %v11241_v6  ;;  %v17481_v6 = vld [vmem:[#allocation47_spill] sm:$0xff] }
 0x38a   :  { %8653 = vmatprep.subr.bf16.mxu0 %v11251_v58 }
 0x38b   :  { %8712 = vmatmul.mubr.bf16.gmra.mrb[32].mxu1 %v11070_v32 }
 0x38c   :  { %8715 = vmatprep.mubr.bf16.mxu1 %v1162_v4  ;;  %v17480_v4 = vld [vmem:[#allocation52_spill] sm:$0xff] }
 0x38d   :  { %8654 = vmatpush3.bf16.msra.mxu0 %v11251_v58  ;;  %v9740_v58 = vld [vmem:[%s16856_s7 + $0x18] sm:$0xff]  }
 0x390   :  { %2711 = vmatmul.mubr.bf16.gmra.mrb[16].mxu0 %v10395_v31  ;;  %v17456_v31 = vld [vmem:[#allocation33_spill] sm:$0xff] }
 0x391   :  { %2718 = vmatprep.mubr.bf16.mxu0 %v17431_v52 }
 0x398   :  { %2719 = vmatmul.mubr.bf16.gmra.mrb[20].mxu0 %v10418_v53  ;;  %v1173_v53 = vshll.u32 %v17456_v31, 16 }
 0x399   :  { %2726 = vmatprep.mubr.bf16.mxu0 %v17432_v42 }
 0x3a0   :  { %2727 = vmatmul.mubr.bf16.gmra.mrb[24].mxu0 %v10441_v15  ;;  %v17457_v15 = vld [vmem:[#allocation17_spill] sm:$0xff] }
 0x3a1   :  { %2734 = vmatprep.mubr.bf16.mxu0 %v17433_v37  ;;  %v17461_v37 = vld [vmem:[#allocation21_spill] sm:$0xff] }
 0x3a8   :  { %2735 = vmatmul.mubr.bf16.gmra.mrb[28].mxu0 %v10453_v29  ;;  %v17458_v29 = vld [vmem:[#allocation30_spill] sm:$0xff] }
 0x3a9   :  { %2742 = vmatprep.mubr.bf16.mxu0 %v17434_v41  ;;  %v17462_v41 = vld [vmem:[#allocation26_spill] sm:$0xff] }
 0x3b0   :  { %2743 = vmatmul.mubr.bf16.gmra.mrb[32].mxu0 %v10477_v61  ;;  %v444_v61 = vld [vmem:[#allocation2 + $0x358] sm:$0x3] }
 0x3b1   :  { %2750 = vmatprep.mubr.bf16.mxu0 %v17435_v13 }
 0x3b8   :  { %2751 = vmatmul.mubr.bf16.gmra.mrb[36].mxu0 %v10492_v23  ;;  %v11340_v23 = vor.u32 %v1170_v11, %v1166_v55  ;;  %v9742_v55 = vld [vmem:[%s16856_s7 + $0x28] sm:$0xff]  }
 0x3b9   :  { %2758 = vmatprep.mubr.bf16.mxu0 %v17436_v56  ;;  %v17463_v56 = vld [vmem:[#allocation23_spill] sm:$0xff] }
 0x3c0   :  { %2759 = vmatmul.mubr.bf16.gmra.mrb[40].mxu0 %v10506_v46  ;;  %v1175_v46 = vrot.slane %v1173_v53, 1 }
 0x3c1   :  { %2766 = vmatprep.mubr.bf16.mxu0 %v17437_v5  ;;  %v9737_v5 = vld [vmem:[%s16856_s7] sm:$0xff]  }
 0x3c2   :  { %v1176_v25 = vsel %vm517_vm0, %v11340_v23, %v1175_v46  ;;  %8719 = vmatprep.subr.bf16.mxu1 %v9737_v5 }
 0x3c3   :  { %8720 = vmatpush3.bf16.msra.mxu1 %v9737_v5 }
 0x3c4   :  { %8721 = vmatprep.subr.bf16.mxu1 %v9738_v17 }
 0x3c7   :  { %8722 = vmatpush3.bf16.msra.mxu1 %v9738_v17  ;;  %v17488_v17 = vld [vmem:[#allocation57_spill] sm:$0xff] }
 0x3c8   :  { %2767 = vmatmul.mubr.bf16.gmra.mrb[44].mxu0 %v10526_v22  ;;  %v11342_v22 = vpack.c.bf16 %v444_v61, %v444_v61  ;;  %8723 = vmatprep.subr.bf16.mxu1 %v9739_v28  ;;  %v17485_v61 = vld [vmem:[#allocation53_spill] sm:$0xff] }
 0x3c9   :  { %2774 = vmatprep.mubr.bf16.mxu0 %v17438_v19  ;;  %v17479_v19 = vld [vmem:[#allocation44_spill] sm:$0xff] }
 0x3ca   :  { %v1199_v62 = vrot.slane %v11342_v22, 1 }
 0x3cb   :  { %8724 = vmatpush3.bf16.msra.mxu1 %v9739_v28 }
 0x3cc   :  { %v1200_v40 = vsel %vm998_vm1, %v1195_v12, %v1199_v62  ;;  %v17467_v12 = vld [vmem:[#allocation27_spill] sm:$0xff]  ;;  %8725 = vmatprep.subr.bf16.mxu1 %v9740_v58 }
 0x3cd   :  { %8716 = vmatmul.mubr.bf16.gmra.mrb[36].mxu1 %v1200_v40  ;;  %v9744_v62 = vld [vmem:[%s16856_s7 + $0x38] sm:$0xff]  }
 0x3cf   :  { %8726 = vmatpush3.bf16.msra.mxu1 %v9740_v58  ;;  %v9895_v58 = vld [vmem:[%s16855_s0 + $0x30] sm:$0xff]  }
 0x3d0   :  { %2775 = vmatmul.mubr.bf16.gmra.mrb[48].mxu0 %v17454_v10  ;;  %v9741_v10 = vld [vmem:[%s16856_s7 + $0x20] sm:$0xff]  }
 0x3d1   :  { %2782 = vmatprep.mubr.bf16.mxu0 %v17455_v33  ;;  %v17483_v33 = vld [vmem:[#allocation49_spill] sm:$0xff]  ;;  %8727 = vmatprep.subr.bf16.mxu1 %v9741_v10 }
 0x3d3   :  { %8728 = vmatpush3.bf16.msra.mxu1 %v9741_v10  ;;  %v17489_v10 = vld [vmem:[#allocation58_spill] sm:$0xff] }
 0x3d4   :  { %8729 = vmatprep.subr.bf16.mxu1 %v9742_v55 }
 0x3d7   :  { %8730 = vmatpush3.bf16.msra.mxu1 %v9742_v55 }
 0x3d8   :  { %2783 = vmatmul.mubr.bf16.gmra.mrb[52].mxu0 %v17457_v15 }
 0x3d9   :  { %2790 = vmatprep.mubr.bf16.mxu0 %v17458_v29  ;;  %v9743_v29 = vld [vmem:[%s16856_s7 + $0x30] sm:$0xff]  }
 0x3da   :  { %8731 = vmatprep.subr.bf16.mxu1 %v9743_v29 }
 0x3db   :  { %8732 = vmatpush3.bf16.msra.mxu1 %v9743_v29 }
 0x3dc   :  { %8733 = vmatprep.subr.bf16.mxu1 %v9744_v62 }
 0x3df   :  { %8734 = vmatpush3.bf16.msra.mxu1 %v9744_v62  ;;  %v9897_v62 = vld [vmem:[%s16855_s0 + $0x40] sm:$0xff]  }
 0x3e0   :  { %2791 = vmatmul.mubr.bf16.gmra.mrb[56].mxu0 %v17459_v48 }
 0x3e1   :  { %2798 = vmatprep.mubr.bf16.mxu0 %v1176_v25 }
 0x3e8   :  { %2799 = vmatmul.mubr.bf16.gmra.mrb[60].mxu0 %v11262_v57 }
 0x3e9   :  { %2806 = vmatprep.mubr.bf16.mxu0 %v17460_v8 }
 0x3f0   :  { %2807 = vmatmul.mubr.bf16.gmra.mrb[64].mxu0 %v17461_v37 }
 0x3f1   :  { %2814 = vmatprep.mubr.bf16.mxu0 %v17462_v41 }
 0x3f8   :  { %2815 = vmatmul.mubr.bf16.gmra.mrb[68].mxu0 %v17463_v56 }
 0x3f9   :  { %2822 = vmatprep.mubr.bf16.mxu0 %v17464_v43  ;;  %v1185_v43 = vshll.u32 %v11342_v22, 16  ;;  %v9891_v22 = vld [vmem:[%s16855_s0 + $0x10] sm:$0xff]  }
 0x400   :  { %2823 = vmatmul.mubr.bf16.gmra.mrb[72].mxu0 %v17465_v44  ;;  %v9890_v44 = vld [vmem:[%s16855_s0 + $0x8] sm:$0xff]  }
 0x401   :  { %2830 = vmatprep.mubr.bf16.mxu0 %v17466_v47  ;;  %v17486_v47 = vmov 0  }
 0x402   :  { %6276 = vmatprep.subr.bf16.mxu1 %v17486_v47 }
 0x408   :  { %2831 = vmatmul.mubr.bf16.gmra.mrb[76].mxu0 %v17467_v12  ;;  %v17487_v12 = vld [vmem:[#allocation55_spill] sm:$0xff] }
 0x409   :  { %2838 = vmatprep.mubr.bf16.mxu0 %v17468_v39  ;;  %v1187_v39 = vrot.slane %v1185_v43, 1  ;;  %v17492_v43 = vld [vmem:[#allocation61_spill] sm:$0xff] }
 0x410   :  { %2839 = vmatmul.mubr.bf16.gmra.mrb[80].mxu0 %v17469_v1 }
 0x411   :  { %2846 = vmatprep.mubr.bf16.mxu0 %v17470_v27 }
 0x418   :  { %2847 = vmatmul.mubr.bf16.gmra.mrb[84].mxu0 %v17471_v24  ;;  %v11367_v2 = vpop.f32.mrb[0].mxu1 }
 0x419   :  { %2854 = vmatprep.mubr.bf16.mxu0 %v17472_v50  ;;  %v11369_v36 = vpop.f32.mrb[1].mxu1 }
 0x41a   :  { %v11371_v51 = vpop.f32.mrb[2].mxu1 }
 0x41b   :  { %v11373_v32 = vpop.f32.mrb[3].mxu1 }
 0x420   :  { %2855 = vmatmul.mubr.bf16.gmra.mrb[88].mxu0 %v17473_v3  ;;  %v1188_v3 = vsel %vm517_vm0, %v11340_v23, %v1187_v39 }
 0x421   :  { %2862 = vmatprep.mubr.bf16.mxu0 %v17474_v9  ;;  %v9892_v9 = vld [vmem:[%s16855_s0 + $0x18] sm:$0xff]  }
 0x426   :  { %v11379_v60 = vpop.f32.mrb[4].mxu1 }
 0x427   :  { %v11381_v52 = vpop.f32.mrb[5].mxu1 }
 0x428   :  { %2863 = vmatmul.mubr.bf16.gmra.mrb[92].mxu0 %v17475_v45  ;;  %v11383_v42 = vpop.f32.mrb[6].mxu1 }
 0x429   :  { %2870 = vmatprep.mubr.bf16.mxu0 %v17476_v63  ;;  %v11385_v13 = vpop.f32.mrb[7].mxu1 }
 0x42e   :  { %v11399_v38 = vpop.f32.mrb[8].mxu1 }
 0x42f   :  { %v11407_v20 = vpop.f32.mrb[9].mxu1 }
 0x430   :  { %2871 = vmatmul.mubr.bf16.gmra.mrb[96].mxu0 %v17477_v49  ;;  %v11409_v35 = vpop.f32.mrb[10].mxu1 }
 0x431   :  { %2878 = vmatprep.mubr.bf16.mxu0 %v17478_v7  ;;  %v11413_v26 = vpop.f32.mrb[11].mxu1 }
 0x436   :  { %v11431_v46 = vpop.f32.mrb[12].mxu1 }
 0x437   :  { %v11439_v40 = vpop.f32.mrb[13].mxu1 }
 0x438   :  { %2879 = vmatmul.mubr.bf16.gmra.mrb[100].mxu0 %v17479_v19  ;;  %v11441_v8 = vpop.f32.mrb[14].mxu1  ;;  %v9893_v19 = vld [vmem:[%s16855_s0 + $0x20] sm:$0xff]  }
 0x439   :  { %2886 = vmatprep.mubr.bf16.mxu0 %v17480_v4  ;;  %v11445_v41 = vpop.f32.mrb[15].mxu1  ;;  %v9894_v4 = vld [vmem:[%s16855_s0 + $0x28] sm:$0xff]  }
 0x440   :  { %2887 = vmatmul.mubr.bf16.gmra.mrb[104].mxu0 %v17481_v6 }
 0x441   :  { %2894 = vmatprep.mubr.bf16.mxu0 %v17482_v59 }
 0x443   :  { %v11405_v21 = vpop.f32.mrb[0].mxu0 }
 0x444   :  { %v2682_v16 = vpop.f32.mrb[1].mxu0 }
 0x445   :  { %v11411_v54 = vpop.f32.mrb[2].mxu0 }
 0x446   :  { %v2685_v14 = vpop.f32.mrb[3].mxu0 }
 0x447   :  { %v9896_v14 = vld [vmem:[%s16855_s0 + $0x38] sm:$0xff]  }
 0x448   :  { %2895 = vmatmul.mubr.bf16.gmra.mrb[108].mxu0 %v17483_v33  ;;  %v17490_v33 = vld [vmem:[#allocation59_spill] sm:$0xff] }
 0x449   :  { %2902 = vmatprep.mubr.bf16.mxu0 %v17484_v34 }
 0x44b   :  { %v11423_v11 = vpop.f32.mrb[4].mxu0 }
 0x44c   :  { %v2690_v31 = vpop.f32.mrb[5].mxu0 }
 0x44d   :  { %v11425_v53 = vpop.f32.mrb[6].mxu0 }
 0x44e   :  { %v2693_v15 = vpop.f32.mrb[7].mxu0 }
 0x450   :  { %2903 = vmatmul.mubr.bf16.gmra.mrb[112].mxu0 %v17485_v61 }
 0x451   :  { %2910 = vmatprep.mubr.bf16.mxu0 %v10784_v0  ;;  %v9889_v0 = vld [vmem:[%s16855_s0] sm:$0xff]  }
 0x452   :  { %8735 = vmatprep.mubr.bf16.mxu1 %v9889_v0  ;;  %v9898_v0 = vld [vmem:[%s16855_s0 + $0x48] sm:$0xff]  }
 0x453   :  { %v11437_v25 = vpop.f32.mrb[8].mxu0  ;;  %8736 = vmatmul.mubr.bf16.vlgmr.msra.gmra.mrb[40].mxu1 %v9890_v44 }
 0x454   :  { %v2698_v48 = vpop.f32.mrb[9].mxu0  ;;  %8739 = vmatprep.mubr.bf16.mxu1 %v9891_v22 }
 0x455   :  { %v11443_v37 = vpop.f32.mrb[10].mxu0 }
 0x456   :  { %v2701_v56 = vpop.f32.mrb[11].mxu0 }
 0x457   :  { %v17491_v56 = vld [vmem:[#allocation60_spill] sm:$0xff] }
 0x458   :  { %2911 = vmatmul.mubr.bf16.gmra.mrb[116].mxu0 %v17487_v12 }
 0x459   :  { %2918 = vmatprep.mubr.bf16.mxu0 %v11277_v30  ;;  %v11470_v30 = vpop.f32.mrb[16].mxu1 }
 0x45a   :  { %v11474_v63 = vpop.f32.mrb[17].mxu1 }
 0x45b   :  { %v11457_v1 = vpop.f32.mrb[12].mxu0  ;;  %8740 = vmatmul.mubr.bf16.gmra.mrb[44].mxu1 %v9892_v9  ;;  %v11476_v7 = vpop.f32.mrb[18].mxu1 }
 0x45c   :  { %v2706_v27 = vpop.f32.mrb[13].mxu0  ;;  %v11480_v23 = vpop.f32.mrb[19].mxu1  ;;  %8743 = vmatprep.mubr.bf16.mxu1 %v9893_v19 }
 0x45d   :  { %v11459_v24 = vpop.f32.mrb[14].mxu0  ;;  %v9899_v27 = vld [vmem:[%s16855_s0 + $0x50] sm:$0xff]  }
 0x45e   :  { %v2709_v50 = vpop.f32.mrb[15].mxu0 }
 0x45f   :  { %v9900_v50 = vld [vmem:[%s16855_s0 + $0x58] sm:$0xff]  }
 0x460   :  { %2919 = vmatmul.mubr.bf16.gmra.mrb[120].mxu0 %v11063_v18 }
 0x461   :  { %2926 = vmatprep.mubr.bf16.mxu0 %v1188_v3  ;;  %v17493_v3 = vld [vmem:[#allocation62_spill] sm:$0xff] }
 0x463   :  { %v11472_v45 = vpop.f32.mrb[16].mxu0  ;;  %8744 = vmatmul.mubr.bf16.gmra.mrb[48].mxu1 %v9894_v4 }
 0x464   :  { %v2714_v49 = vpop.f32.mrb[17].mxu0  ;;  %8747 = vmatprep.mubr.bf16.mxu1 %v9895_v58 }
 0x465   :  { %v11478_v5 = vpop.f32.mrb[18].mxu0  ;;  %v17494_v49 = vld [vmem:[#allocation63_spill] sm:$0xff] }
 0x466   :  { %v2717_v18 = vpop.f32.mrb[19].mxu0 }
 0x468   :  { %2927 = vmatmul.mubr.bf16.gmra.mrb[124].mxu0 %v11262_v57  ;;  %v11501_v57 = vpop.f32.mrb[20].mxu1 }
 0x469   :  { %8655 = vmatprep.mubr.bf16.mxu0 %v17488_v17  ;;  %v11506_v55 = vpop.f32.mrb[21].mxu1 }
 0x46a   :  { %v11508_v15 = vpop.f32.mrb[22].mxu1 }
 0x46b   :  { %v11490_v28 = vpop.f32.mrb[20].mxu0  ;;  %8748 = vmatmul.mubr.bf16.gmra.mrb[52].mxu1 %v9896_v14  ;;  %v11512_v61 = vpop.f32.mrb[23].mxu1 }
 0x46c   :  { %v2722_v6 = vpop.f32.mrb[21].mxu0  ;;  %8751 = vmatprep.mubr.bf16.mxu1 %v9897_v62  ;;  %v11533_v9 = vpop.f32.mrb[24].mxu1 }
 0x46d   :  { %v11492_v59 = vpop.f32.mrb[22].mxu0  ;;  %v11538_v18 = vpop.f32.mrb[25].mxu1 }
 0x46e   :  { %v2725_v16 = vpop.f32.mrb[23].mxu0  ;;  %v11540_v17 = vpop.f32.mrb[26].mxu1 }
 0x46f   :  { %v11544_v58 = vpop.f32.mrb[27].mxu1  ;;  %v9901_v16 = vld [vmem:[%s16855_s0 + $0x60] sm:$0xff]  }
 0x470   :  { %8656 = vmatmul.mubr.bf16.vlgmr.msra.gmra.mrb[128].mxu0 %v17489_v10  ;;  %v9902_v10 = vld [vmem:[%s16855_s0 + $0x68] sm:$0xff]  }
 0x471   :  { %8659 = vmatprep.mubr.bf16.mxu0 %v17490_v33  ;;  %v17496_v33 = vld [vmem:[#allocation64_spill] sm:$0xff] }
 0x473   :  { %v11504_v34 = vpop.f32.mrb[24].mxu0  ;;  %8752 = vmatmul.mubr.bf16.gmra.mrb[56].mxu1 %v9898_v0 }
 0x474   :  { %v2730_v31 = vpop.f32.mrb[25].mxu0  ;;  %8755 = vmatprep.mubr.bf16.mxu1 %v9899_v27  ;;  %v17499_v27 = vld [vmem:[#allocation66_spill] sm:$0xff] }
 0x475   :  { %v11510_v29 = vpop.f32.mrb[26].mxu0  ;;  %v17497_v31 = vld [vmem:[#allocation65_spill] sm:$0xff] }
 0x476   :  { %v2733_v48 = vpop.f32.mrb[27].mxu0 }
 0x478   :  { %8660 = vmatmul.mubr.bf16.gmra.mrb[132].mxu0 %v17491_v56  ;;  %v9903_v56 = vld [vmem:[%s16855_s0 + $0x70] sm:$0xff]  }
 0x479   :  { %8663 = vmatprep.mubr.bf16.mxu0 %v17492_v43 }
 0x47b   :  { %v11522_v44 = vpop.f32.mrb[28].mxu0  ;;  %8756 = vmatmul.mubr.bf16.gmra.mrb[60].mxu1 %v9900_v50  ;;  %v17500_v50 = vld [vmem:[#allocation67_spill] sm:$0xff] }
 0x47c   :  { %v2738_v12 = vpop.f32.mrb[29].mxu0  ;;  %8759 = vmatprep.mubr.bf16.mxu1 %v9901_v16 }
 0x47d   :  { %v11524_v39 = vpop.f32.mrb[30].mxu0  ;;  %v9904_v12 = vld [vmem:[%s16855_s0 + $0x78] sm:$0xff]  }
 0x47e   :  { %v2741_v22 = vpop.f32.mrb[31].mxu0 }
 0x47f   :  { %v11565_v22 = vpop.f32.mrb[28].mxu1 }
 0x480   :  { %8664 = vmatmul.mubr.bf16.gmra.mrb[136].mxu0 %v17493_v3 }
 0x481   :  { %8667 = vmatprep.mubr.bf16.mxu0 %v17494_v49  ;;  %v11570_v49 = vpop.f32.mrb[29].mxu1 }
 0x482   :  { %v11572_v16 = vpop.f32.mrb[30].mxu1 }
 0x483   :  { %v11536_v19 = vpop.f32.mrb[32].mxu0  ;;  %8760 = vmatmul.mubr.bf16.gmra.mrb[64].mxu1 %v9902_v10  ;;  %v11576_v10 = vpop.f32.mrb[31].mxu1 }
 0x484   :  { %v2746_v4 = vpop.f32.mrb[33].mxu0  ;;  %8763 = vmatprep.mubr.bf16.mxu1 %v9903_v56  ;;  %v17503_v56 = vld [vmem:[#allocation68_spill] sm:$0xff] }
 0x485   :  { %v11542_v6 = vpop.f32.mrb[34].mxu0 }
 0x486   :  { %17495 = vst [vmem:[#allocation36_spill] sm:$0xff] %v11542_v6  ;;  %v2749_v14 = vpop.f32.mrb[35].mxu0  ;;  %v9910_v6 = vld [vmem:[%s16855_s0 + $0xa8] sm:$0xff]  }
 0x488   :  { %8668 = vmatmul.mubr.bf16.gmra.mrb[140].mxu0 %v17496_v33  ;;  %v9905_v33 = vld [vmem:[%s16855_s0 + $0x80] sm:$0xff]  }
 0x489   :  { %8671 = vmatprep.mubr.bf16.mxu0 %v17497_v31 }
 0x48b   :  { %v11554_v62 = vpop.f32.mrb[36].mxu0  ;;  %8764 = vmatmul.mubr.bf16.gmra.mrb[68].mxu1 %v9904_v12 }
 0x48c   :  { %v2754_v48 = vpop.f32.mrb[37].mxu0  ;;  %8767 = vmatprep.mubr.bf16.mxu1 %v9905_v33  ;;  %v11595_v33 = vpop.f32.mrb[32].mxu1 }
 0x48d   :  { %v11556_v0 = vpop.f32.mrb[38].mxu0  ;;  %v9906_v48 = vld [vmem:[%s16855_s0 + $0x88] sm:$0xff]  }
 0x48e   :  { %17498 = vst [vmem:[#allocation39_spill] sm:$0xff] %v11556_v0  ;;  %v2757_v43 = vpop.f32.mrb[39].mxu0  ;;  %v9911_v0 = vld [vmem:[%s16855_s0 + $0xb0] sm:$0xff]  }
 0x490   :  { %8672 = vmatmul.mubr.bf16.gmra.mrb[144].mxu0 %v17499_v27 }
 0x491   :  { %8675 = vmatprep.mubr.bf16.mxu0 %v17500_v50  ;;  %v9907_v50 = vld [vmem:[%s16855_s0 + $0x90] sm:$0xff]  }
 0x493   :  { %v11568_v3 = vpop.f32.mrb[40].mxu0  ;;  %8768 = vmatmul.mubr.bf16.gmra.mrb[72].mxu1 %v9906_v48  ;;  %v11597_v48 = vpop.f32.mrb[33].mxu1 }
 0x494   :  { %17501 = vst [vmem:[#allocation42_spill] sm:$0xff] %v11568_v3  ;;  %v2762_v4 = vpop.f32.mrb[41].mxu0  ;;  %8771 = vmatprep.mubr.bf16.mxu1 %v9907_v50 }
 0x495   :  { %v11574_v14 = vpop.f32.mrb[42].mxu0 }
 0x496   :  { %17502 = vst [vmem:[#allocation45_spill] sm:$0xff] %v11574_v14  ;;  %v2765_v31 = vpop.f32.mrb[43].mxu0 }
 0x497   :  { %v9908_v31 = vld [vmem:[%s16855_s0 + $0x98] sm:$0xff]  }
 0x498   :  { %8676 = vmatmul.mubr.bf16.gmra.mrb[148].mxu0 %v17503_v56 }
 0x49b   :  { %v11585_v43 = vpop.f32.mrb[44].mxu0  ;;  %8772 = vmatmul.mubr.bf16.gmra.mrb[76].mxu1 %v9908_v31 }
 0x49c   :  { %17504 = vst [vmem:[#allocation48_spill] sm:$0xff] %v11585_v43  ;;  %v2770_v12 = vpop.f32.mrb[45].mxu0 }
 0x49d   :  { %v11587_v27 = vpop.f32.mrb[46].mxu0 }
 0x49e   :  { %17505 = vst [vmem:[#allocation51_spill] sm:$0xff] %v11587_v27  ;;  %v2773_v4 = vpop.f32.mrb[47].mxu0  ;;  %v11602_v27 = vpop.f32.mrb[34].mxu1 }
 0x49f   :  { %v11604_v43 = vpop.f32.mrb[35].mxu1  ;;  %v9909_v4 = vld [vmem:[%s16855_s0 + $0xa0] sm:$0xff]  }
 0x4a0   :  { %8775 = vmatprep.mubr.bf16.mxu1 %v9909_v4 }
 0x4a3   :  { %v2776_v56 = vpop.f32.mrb[48].mxu0  ;;  %8776 = vmatmul.mubr.bf16.gmra.mrb[80].mxu1 %v9910_v6  ;;  %v11627_v6 = vpop.f32.mrb[36].mxu1 }
 0x4a4   :  { %v11600_v12 = vadd.f32 %v11369_v36, %v2776_v56  ;;  %v2778_v14 = vpop.f32.mrb[49].mxu0  ;;  %8779 = vmatprep.mubr.bf16.mxu1 %v9911_v0  ;;  %v11629_v4 = vpop.f32.mrb[37].mxu1 }
 0x4a5   :  { %v2779_v3 = vpop.f32.mrb[50].mxu0 }
 0x4a6   :  { %17506 = vst [vmem:[#allocation4_spill] sm:$0xff] %v11600_v12  ;;  %v11610_v50 = vadd.f32 %v11373_v32, %v2779_v3  ;;  %v2781_v31 = vpop.f32.mrb[51].mxu0 }
 0x4a7   :  { %v9912_v31 = vld [vmem:[%s16855_s0 + $0xb8] sm:$0xff]  }
 0x4a8   :  { %17507 = vst [vmem:[#allocation5_spill] sm:$0xff] %v11610_v50  ;;  %v9915_v50 = vld [vmem:[%s16855_s0 + $0xd0] sm:$0xff]  }
 0x4ab   :  { %v2784_v36 = vpop.f32.mrb[52].mxu0  ;;  %8780 = vmatmul.mubr.bf16.gmra.mrb[84].mxu1 %v9912_v31 }
 0x4ac   :  { %v11616_v14 = vadd.f32 %v11367_v2, %v2784_v36  ;;  %v2786_v56 = vpop.f32.mrb[53].mxu0 }
 0x4ad   :  { %v2787_v12 = vpop.f32.mrb[54].mxu0 }
 0x4ae   :  { %17508 = vst [vmem:[#allocation6_spill] sm:$0xff] %v11616_v14  ;;  %v11622_v32 = vadd.f32 %v11371_v51, %v2787_v12  ;;  %v2789_v3 = vpop.f32.mrb[55].mxu0  ;;  %v11634_v14 = vpop.f32.mrb[38].mxu1 }
 0x4af   :  { %v11636_v12 = vpop.f32.mrb[39].mxu1  ;;  %v9913_v3 = vld [vmem:[%s16855_s0 + $0xc0] sm:$0xff]  }
 0x4b0   :  { %17509 = vst [vmem:[#allocation7_spill] sm:$0xff] %v11622_v32  ;;  %v9914_v32 = vld [vmem:[%s16855_s0 + $0xc8] sm:$0xff]   ;;  %8783 = vmatprep.mubr.bf16.mxu1 %v9913_v3 }
 0x4b3   :  { %v2792_v2 = vpop.f32.mrb[56].mxu0  ;;  %8784 = vmatmul.mubr.bf16.gmra.mrb[88].mxu1 %v9914_v32 }
 0x4b4   :  { %v11632_v36 = vadd.f32 %v11381_v52, %v2792_v2  ;;  %v2794_v56 = vpop.f32.mrb[57].mxu0  ;;  %8787 = vmatprep.mubr.bf16.mxu1 %v9915_v50 }
 0x4b5   :  { %v2795_v51 = vpop.f32.mrb[58].mxu0 }
 0x4b6   :  { %17510 = vst [vmem:[#allocation8_spill] sm:$0xff] %v11632_v36  ;;  %v11642_v0 = vadd.f32 %v11385_v13, %v2795_v51  ;;  %v2797_v31 = vpop.f32.mrb[59].mxu0 }
 0x4b7   :  { %v9916_v31 = vld [vmem:[%s16855_s0 + $0xd8] sm:$0xff]  }
 0x4b8   :  { %17511 = vst [vmem:[#allocation9_spill] sm:$0xff] %v11642_v0 }
 0x4bb   :  { %v2800_v52 = vpop.f32.mrb[60].mxu0  ;;  %8788 = vmatmul.mubr.bf16.gmra.mrb[92].mxu1 %v9916_v31 }
 0x4bc   :  { %v11648_v2 = vadd.f32 %v11379_v60, %v2800_v52  ;;  %v2802_v56 = vpop.f32.mrb[61].mxu0 }
 0x4bd   :  { %v2803_v36 = vpop.f32.mrb[62].mxu0  ;;  %v9917_v56 = vld [vmem:[%s16855_s0 + $0xe0] sm:$0xff]  }
 0x4be   :  { %17512 = vst [vmem:[#allocation10_spill] sm:$0xff] %v11648_v2  ;;  %v11654_v13 = vadd.f32 %v11383_v42, %v2803_v36  ;;  %v2805_v51 = vpop.f32.mrb[63].mxu0  ;;  %8791 = vmatprep.mubr.bf16.mxu1 %v9917_v56 }
 0x4bf   :  { %v9918_v51 = vld [vmem:[%s16855_s0 + $0xe8] sm:$0xff]  }
 0x4c0   :  { %17513 = vst [vmem:[#allocation11_spill] sm:$0xff] %v11654_v13 }
 0x4c3   :  { %v2808_v32 = vpop.f32.mrb[64].mxu0  ;;  %8792 = vmatmul.mubr.bf16.gmra.mrb[96].mxu1 %v9918_v51 }
 0x4c4   :  { %v11660_v60 = vadd.f32 %v11407_v20, %v2808_v32  ;;  %v2810_v3 = vpop.f32.mrb[65].mxu0 }
 0x4c5   :  { %v2811_v52 = vpop.f32.mrb[66].mxu0  ;;  %v9919_v3 = vld [vmem:[%s16855_s0 + $0xf0] sm:$0xff]  }
 0x4c6   :  { %17514 = vst [vmem:[#allocation12_spill] sm:$0xff] %v11660_v60  ;;  %v11666_v42 = vadd.f32 %v11413_v26, %v2811_v52  ;;  %v2813_v36 = vpop.f32.mrb[67].mxu0  ;;  %8795 = vmatprep.mubr.bf16.mxu1 %v9919_v3 }
 0x4c7   :  { %v9920_v36 = vld [vmem:[%s16855_s0 + $0xf8] sm:$0xff]  }
 0x4c8   :  { %17515 = vst [vmem:[#allocation13_spill] sm:$0xff] %v11666_v42 }
 0x4cb   :  { %v2816_v50 = vpop.f32.mrb[68].mxu0  ;;  %8796 = vmatmul.mubr.bf16.gmra.mrb[100].mxu1 %v9920_v36 }
 0x4cc   :  { %v11672_v20 = vadd.f32 %v11399_v38, %v2816_v50  ;;  %v2818_v31 = vpop.f32.mrb[69].mxu0 }
 0x4cd   :  { %v2819_v32 = vpop.f32.mrb[70].mxu0 }
 0x4ce   :  { %17516 = vst [vmem:[#allocation14_spill] sm:$0xff] %v11672_v20  ;;  %v11678_v26 = vadd.f32 %v11409_v35, %v2819_v32  ;;  %v2821_v52 = vpop.f32.mrb[71].mxu0 }
 0x4d0   :  { %17517 = vst [vmem:[#allocation15_spill] sm:$0xff] %v11678_v26 }
 0x4d3   :  { %v2824_v56 = vpop.f32.mrb[72].mxu0 }
 0x4d4   :  { %v11684_v38 = vadd.f32 %v11439_v40, %v2824_v56  ;;  %v2826_v51 = vpop.f32.mrb[73].mxu0 }
 0x4d5   :  { %v2827_v50 = vpop.f32.mrb[74].mxu0 }
 0x4d6   :  { %17518 = vst [vmem:[#allocation18_spill] sm:$0xff] %v11684_v38  ;;  %v11687_v31 = vadd.f32 %v11445_v41, %v2827_v50  ;;  %v2829_v20 = vpop.f32.mrb[75].mxu0 }
 0x4d8   :  { %17519 = vst [vmem:[#allocation19_spill] sm:$0xff] %v11687_v31 }
 0x4db   :  { %v2832_v42 = vpop.f32.mrb[76].mxu0 }
 0x4dc   :  { %v11690_v35 = vadd.f32 %v11431_v46, %v2832_v42  ;;  %v2834_v32 = vpop.f32.mrb[77].mxu0 }
 0x4dd   :  { %v2835_v52 = vpop.f32.mrb[78].mxu0 }
 0x4de   :  { %17520 = vst [vmem:[#allocation22_spill] sm:$0xff] %v11690_v35  ;;  %v11693_v26 = vadd.f32 %v11441_v8, %v2835_v52  ;;  %v2837_v3 = vpop.f32.mrb[79].mxu0 }
 0x4e0   :  { %17521 = vst [vmem:[#allocation16_spill] sm:$0xff] %v11693_v26 }
 0x4e3   :  { %v2840_v36 = vpop.f32.mrb[80].mxu0 }
 0x4e4   :  { %v11696_v40 = vadd.f32 %v11474_v63, %v2840_v36  ;;  %v2842_v56 = vpop.f32.mrb[81].mxu0 }
 0x4e5   :  { %v2843_v51 = vpop.f32.mrb[82].mxu0 }
 0x4e6   :  { %17522 = vst [vmem:[#allocation20_spill] sm:$0xff] %v11696_v40  ;;  %v11699_v41 = vadd.f32 %v11480_v23, %v2843_v51  ;;  %v2845_v20 = vpop.f32.mrb[83].mxu0 }
 0x4e8   :  { %17523 = vst [vmem:[#allocation33_spill] sm:$0xff] %v11699_v41 }
 0x4eb   :  { %v2848_v50 = vpop.f32.mrb[84].mxu0 }
 0x4ec   :  { %v11702_v46 = vadd.f32 %v11470_v30, %v2848_v50  ;;  %v2850_v42 = vpop.f32.mrb[85].mxu0 }
 0x4ed   :  { %v2851_v32 = vpop.f32.mrb[86].mxu0 }
 0x4ee   :  { %17524 = vst [vmem:[#allocation17_spill] sm:$0xff] %v11702_v46  ;;  %v11705_v8 = vadd.f32 %v11476_v7, %v2851_v32  ;;  %v2853_v52 = vpop.f32.mrb[87].mxu0 }
 0x4f0   :  { %17525 = vst [vmem:[#allocation30_spill] sm:$0xff] %v11705_v8 }
 0x4f3   :  { %v2856_v3 = vpop.f32.mrb[88].mxu0 }
 0x4f4   :  { %v11708_v63 = vadd.f32 %v11506_v55, %v2856_v3  ;;  %v2858_v36 = vpop.f32.mrb[89].mxu0 }
 0x4f5   :  { %v2859_v56 = vpop.f32.mrb[90].mxu0 }
 0x4f6   :  { %17526 = vst [vmem:[#allocation69_spill] sm:$0xff] %v11708_v63  ;;  %v11711_v23 = vadd.f32 %v11512_v61, %v2859_v56  ;;  %v2861_v51 = vpop.f32.mrb[91].mxu0 }
 0x4fb   :  { %v2864_v20 = vpop.f32.mrb[92].mxu0 }
 0x4fc   :  { %v11714_v30 = vadd.f32 %v11501_v57, %v2864_v20  ;;  %v2866_v50 = vpop.f32.mrb[93].mxu0 }
 0x4fd   :  { %v2867_v42 = vpop.f32.mrb[94].mxu0 }
 0x4fe   :  { %v11717_v7 = vadd.f32 %v11508_v15, %v2867_v42  ;;  %v2869_v32 = vpop.f32.mrb[95].mxu0 }
 0x503   :  { %v2872_v52 = vpop.f32.mrb[96].mxu0 }
 0x504   :  { %v11720_v55 = vadd.f32 %v11538_v18, %v2872_v52  ;;  %v2874_v3 = vpop.f32.mrb[97].mxu0 }
 0x505   :  { %v2875_v36 = vpop.f32.mrb[98].mxu0 }
 0x506   :  { %v11723_v61 = vadd.f32 %v11544_v58, %v2875_v36  ;;  %v2877_v56 = vpop.f32.mrb[99].mxu0 }
 0x508   :  { %17527 = vst [vmem:[#allocation25_spill] sm:$0xff] %v11723_v61 }
 0x50b   :  { %v2880_v51 = vpop.f32.mrb[100].mxu0 }
 0x50c   :  { %v11726_v57 = vadd.f32 %v11533_v9, %v2880_v51  ;;  %v2882_v20 = vpop.f32.mrb[101].mxu0 }
 0x50d   :  { %v2883_v50 = vpop.f32.mrb[102].mxu0 }
 0x50e   :  { %v11729_v15 = vadd.f32 %v11540_v17, %v2883_v50  ;;  %v2885_v42 = vpop.f32.mrb[103].mxu0 }
 0x513   :  { %v2888_v32 = vpop.f32.mrb[104].mxu0 }
 0x514   :  { %v11732_v18 = vadd.f32 %v11570_v49, %v2888_v32  ;;  %v2890_v52 = vpop.f32.mrb[105].mxu0 }
 0x515   :  { %v2891_v3 = vpop.f32.mrb[106].mxu0 }
 0x516   :  { %v11735_v58 = vadd.f32 %v11576_v10, %v2891_v3  ;;  %v2893_v36 = vpop.f32.mrb[107].mxu0 }
 0x51b   :  { %v2896_v56 = vpop.f32.mrb[108].mxu0 }
 0x51c   :  { %v11738_v9 = vadd.f32 %v11565_v22, %v2896_v56  ;;  %v2898_v51 = vpop.f32.mrb[109].mxu0 }
 0x51d   :  { %v2899_v20 = vpop.f32.mrb[110].mxu0 }
 0x51e   :  { %v11741_v17 = vadd.f32 %v11572_v16, %v2899_v20  ;;  %v2901_v50 = vpop.f32.mrb[111].mxu0 }
 0x523   :  { %v2904_v42 = vpop.f32.mrb[112].mxu0 }
 0x524   :  { %v11744_v49 = vadd.f32 %v11597_v48, %v2904_v42  ;;  %v2906_v32 = vpop.f32.mrb[113].mxu0 }
 0x525   :  { %v2907_v52 = vpop.f32.mrb[114].mxu0 }
 0x526   :  { %v11747_v10 = vadd.f32 %v11604_v43, %v2907_v52  ;;  %v2909_v3 = vpop.f32.mrb[115].mxu0 }
 0x52b   :  { %v2912_v36 = vpop.f32.mrb[116].mxu0 }
 0x52c   :  { %v11750_v22 = vadd.f32 %v11595_v33, %v2912_v36  ;;  %v2914_v56 = vpop.f32.mrb[117].mxu0 }
 0x52d   :  { %v2915_v51 = vpop.f32.mrb[118].mxu0 }
 0x52e   :  { %v11753_v16 = vadd.f32 %v11602_v27, %v2915_v51  ;;  %v2917_v20 = vpop.f32.mrb[119].mxu0 }
 0x533   :  { %v2920_v50 = vpop.f32.mrb[120].mxu0 }
 0x534   :  { %v11756_v48 = vadd.f32 %v11629_v4, %v2920_v50  ;;  %v2922_v42 = vpop.f32.mrb[121].mxu0 }
 0x535   :  { %v2923_v32 = vpop.f32.mrb[122].mxu0 }
 0x536   :  { %v11759_v43 = vadd.f32 %v11636_v12, %v2923_v32  ;;  %v2925_v52 = vpop.f32.mrb[123].mxu0 }
 0x53b   :  { %v2928_v3 = vpop.f32.mrb[124].mxu0 }
 0x53c   :  { %v11762_v33 = vadd.f32 %v11627_v6, %v2928_v3  ;;  %v2930_v36 = vpop.f32.mrb[125].mxu0 }
 0x53d   :  { %v2931_v56 = vpop.f32.mrb[126].mxu0 }
 0x53e   :  { %v11765_v27 = vadd.f32 %v11634_v14, %v2931_v56  ;;  %v2933_v51 = vpop.f32.mrb[127].mxu0 }
 0x543   :  { %v8657_v20 = vpop.f32.mrb[128].mxu0 }
 0x544   :  { %v11768_v4 = vadd.f32 %v8657_v20, %v11423_v11  ;;  %v2969_v50 = vpop.f32.mrb[129].mxu0 }
 0x545   :  { %v11771_v42 = vadd.f32 %v2969_v50, %v11405_v21  ;;  %v8658_v12 = vpop.f32.mrb[130].mxu0  ;;  %v9777_v21 = vld [vmem:[%s16857_s4] sm:$0xff]  }
 0x546   :  { %v11774_v32 = vadd.f32 %v8658_v12, %v11425_v53  ;;  %v2972_v6 = vpop.f32.mrb[131].mxu0  ;;  %v3297_v53 = vmul.f32 %v11768_v4, %v11768_v4  ;;  %6277 = vmatpush1.bf16.msra.mxu1 %v9777_v21 }
 0x547   :  { %17528 = vst [vmem:[#allocation21_spill] sm:$0xff] %v11771_v42  ;;  %v11777_v52 = vadd.f32 %v2972_v6, %v11411_v54  ;;  %v3295_v14 = vmul.f32 %v11771_v42, %v11771_v42  ;;  %6278 = vmatprep.subr.bf16.mxu1 %v17486_v47 }
 0x548   :  { %v3298_v50 = vmul.f32 %v11774_v32, %v11774_v32 }
 0x549   :  { %17529 = vst [vmem:[#allocation26_spill] sm:$0xff] %v11777_v52  ;;  %v3226_v3 = vadd.f32 %v11777_v52, %v11771_v42  ;;  %v3296_v11 = vmul.f32 %v11777_v52, %v11777_v52 }
 0x54b   :  { %v3227_v36 = vadd.f32 %v3226_v3, %v11768_v4  ;;  %v3359_v54 = vadd.f32 %v3296_v11, %v3295_v14  ;;  %v8661_v56 = vpop.f32.mrb[132].mxu0 }
 0x54c   :  { %v11792_v51 = vadd.f32 %v8661_v56, %v11457_v1  ;;  %v2985_v20 = vpop.f32.mrb[133].mxu0 }
 0x54d   :  { %v3360_v12 = vadd.f32 %v3359_v54, %v3297_v53  ;;  %v11797_v6 = vadd.f32 %v2985_v20, %v11437_v25  ;;  %v3228_v52 = vadd.f32 %v3227_v36, %v11774_v32  ;;  %v8662_v42 = vpop.f32.mrb[134].mxu0 }
 0x54e   :  { %17530 = vst [vmem:[#allocation23_spill] sm:$0xff] %v11792_v51  ;;  %v11802_v14 = vadd.f32 %v8662_v42, %v11459_v24  ;;  %v2988_v3 = vpop.f32.mrb[135].mxu0  ;;  %v3301_v24 = vmul.f32 %v11792_v51, %v11792_v51 }
 0x54f   :  { %v3229_v1 = vadd.f32 %v3228_v52, %v11797_v6  ;;  %v3299_v11 = vmul.f32 %v11797_v6, %v11797_v6  ;;  %v3361_v21 = vadd.f32 %v3360_v12, %v3298_v50  ;;  %v11808_v53 = vadd.f32 %v2988_v3, %v11443_v37 }
 0x550   :  { %17531 = vst [vmem:[#allocation28_spill] sm:$0xff] %v11802_v14  ;;  %v3302_v37 = vmul.f32 %v11802_v14, %v11802_v14 }
 0x551   :  { %17532 = vst [vmem:[#allocation24_spill] sm:$0xff] %v11808_v53  ;;  %v3362_v25 = vadd.f32 %v3361_v21, %v3299_v11  ;;  %v3230_v54 = vadd.f32 %v3229_v1, %v11808_v53  ;;  %v3300_v36 = vmul.f32 %v11808_v53, %v11808_v53 }
 0x553   :  { %v3231_v42 = vadd.f32 %v3230_v54, %v11792_v51  ;;  %v3363_v56 = vadd.f32 %v3362_v25, %v3300_v36  ;;  %v8665_v52 = vpop.f32.mrb[136].mxu0  ;;  %v11828_v25 = vpop.f32.mrb[40].mxu1 }
 0x554   :  { %v11817_v20 = vadd.f32 %v8665_v52, %v11490_v28  ;;  %v3001_v50 = vpop.f32.mrb[137].mxu0  ;;  %17535 = vst [vmem:[#allocation34_spill] sm:$0xff] %v11828_v25 }
 0x555   :  { %v3364_v12 = vadd.f32 %v3363_v56, %v3301_v24  ;;  %v11822_v3 = vadd.f32 %v3001_v50, %v11472_v45  ;;  %v3232_v1 = vadd.f32 %v3231_v42, %v11802_v14  ;;  %v8666_v11 = vpop.f32.mrb[138].mxu0  ;;  %v11836_v45 = vpop.f32.mrb[41].mxu1 }
 0x556   :  { %17533 = vst [vmem:[#allocation32_spill] sm:$0xff] %v11817_v20  ;;  %v11826_v21 = vadd.f32 %v8666_v11, %v11492_v59  ;;  %v3004_v54 = vpop.f32.mrb[139].mxu0  ;;  %17537 = vst [vmem:[#allocation37_spill] sm:$0xff] %v11836_v45  ;;  %v11838_v56 = vpop.f32.mrb[42].mxu1 }
 0x557   :  { %17534 = vst [vmem:[#allocation27_spill] sm:$0xff] %v11822_v3  ;;  %v3233_v28 = vadd.f32 %v3232_v1, %v11822_v3  ;;  %v3303_v36 = vmul.f32 %v11822_v3, %v11822_v3  ;;  %v3365_v52 = vadd.f32 %v3364_v12, %v3302_v37  ;;  %v11834_v24 = vadd.f32 %v3004_v54, %v11478_v5  ;;  %v11843_v11 = vpop.f32.mrb[43].mxu1 }
 0x558   :  { %17538 = vst [vmem:[#allocation31_spill] sm:$0xff] %v11838_v56  ;;  %17539 = vst [vmem:[#allocation41_spill] sm:$0xff] %v11843_v11  ;;  %v4319_v1 = vmul.f32 %v11836_v45, %v11836_v45  ;;  %v4250_v37 = vadd.f32 %v11843_v11, %v11836_v45  ;;  %v4320_v5 = vmul.f32 %v11843_v11, %v11843_v11 }
 0x559   :  { %17536 = vst [vmem:[#allocation29_spill] sm:$0xff] %v11834_v24  ;;  %v3366_v42 = vadd.f32 %v3365_v52, %v3303_v36  ;;  %v3234_v59 = vadd.f32 %v3233_v28, %v11834_v24  ;;  %v3304_v50 = vmul.f32 %v11834_v24, %v11834_v24  ;;  %v3305_v12 = vmul.f32 %v11817_v20, %v11817_v20 }
 0x55a   :  { %v4321_v3 = vmul.f32 %v11828_v25, %v11828_v25  ;;  %v4251_v14 = vadd.f32 %v11828_v25, %v4250_v37  ;;  %v4383_v45 = vadd.f32 %v4320_v5, %v4319_v1  ;;  %v3306_v11 = vmul.f32 %v11826_v21, %v11826_v21  ;;  %v11871_v37 = vpop.f32.mrb[44].mxu1  ;;  %v17549_v25 = vld [vmem:[#allocation39_spill] sm:$0xff] }
 0x55b   :  { %v3235_v54 = vadd.f32 %v3234_v59, %v11817_v20  ;;  %v3367_v28 = vadd.f32 %v3366_v42, %v3304_v50  ;;  %v8669_v36 = vpop.f32.mrb[140].mxu0  ;;  %17542 = vst [vmem:[#allocation38_spill] sm:$0xff] %v11871_v37 }
 0x55c   :  { %v11855_v52 = vadd.f32 %v8669_v36, %v11522_v44  ;;  %v3017_v24 = vpop.f32.mrb[141].mxu0  ;;  %v4322_v36 = vmul.f32 %v11838_v56, %v11838_v56  ;;  %v4384_v20 = vadd.f32 %v4383_v45, %v4321_v3 }
 0x55d   :  { %v3368_v51 = vadd.f32 %v3367_v28, %v3305_v12  ;;  %v11863_v53 = vadd.f32 %v3017_v24, %v11504_v34  ;;  %v3236_v42 = vadd.f32 %v3235_v54, %v11826_v21  ;;  %v8670_v59 = vpop.f32.mrb[142].mxu0  ;;  %v11879_v12 = vpop.f32.mrb[45].mxu1 }
 0x55e   :  { %17540 = vst [vmem:[#allocation35_spill] sm:$0xff] %v11855_v52  ;;  %v11867_v44 = vadd.f32 %v8670_v59, %v11524_v39  ;;  %v3020_v50 = vpop.f32.mrb[143].mxu0  ;;  %17544 = vst [vmem:[#allocation40_spill] sm:$0xff] %v11879_v12  ;;  %v4252_v39 = vadd.f32 %v11838_v56, %v4251_v14  ;;  %v4323_v54 = vmul.f32 %v11879_v12, %v11879_v12  ;;  %v11884_v3 = vpop.f32.mrb[46].mxu1 }
 0x55f   :  { %17541 = vst [vmem:[#allocation43_spill] sm:$0xff] %v11863_v53  ;;  %v3237_v1 = vadd.f32 %v3236_v42, %v11863_v53  ;;  %v3307_v5 = vmul.f32 %v11863_v53, %v11863_v53  ;;  %v3369_v34 = vadd.f32 %v3368_v51, %v3306_v11  ;;  %v11877_v24 = vadd.f32 %v3020_v50, %v11510_v29  ;;  %v11889_v51 = vpop.f32.mrb[47].mxu1 }
 0x560   :  { %v4385_v28 = vadd.f32 %v4384_v20, %v4322_v36  ;;  %17545 = vst [vmem:[#allocation50_spill] sm:$0xff] %v11884_v3  ;;  %17546 = vst [vmem:[#allocation44_spill] sm:$0xff] %v11889_v51  ;;  %v4253_v29 = vadd.f32 %v4252_v39, %v11879_v12  ;;  %v4324_v14 = vmul.f32 %v11889_v51, %v11889_v51 }
 0x561   :  { %17543 = vst [vmem:[#allocation46_spill] sm:$0xff] %v11877_v24  ;;  %v3370_v45 = vadd.f32 %v3369_v34, %v3307_v5  ;;  %v3238_v42 = vadd.f32 %v3237_v1, %v11877_v24  ;;  %v3308_v59 = vmul.f32 %v11877_v24, %v11877_v24  ;;  %v3309_v50 = vmul.f32 %v11855_v52, %v11855_v52 }
 0x562   :  { %v4386_v11 = vadd.f32 %v4385_v28, %v4323_v54  ;;  %v3310_v1 = vmul.f32 %v11867_v44, %v11867_v44  ;;  %v4325_v39 = vmul.f32 %v11871_v37, %v11871_v37  ;;  %v4254_v54 = vadd.f32 %v4253_v29, %v11889_v51 }
 0x563   :  { %v3239_v20 = vadd.f32 %v3238_v42, %v11855_v52  ;;  %v3371_v36 = vadd.f32 %v3370_v45, %v3308_v59  ;;  %v8673_v5 = vpop.f32.mrb[144].mxu0 }
 0x564   :  { %v11900_v34 = vadd.f32 %v8673_v5, %v11554_v62  ;;  %v3033_v56 = vpop.f32.mrb[145].mxu0  ;;  %v4387_v59 = vadd.f32 %v4386_v11, %v4324_v14  ;;  %v4326_v62 = vmul.f32 %v11884_v3, %v11884_v3  ;;  %v11914_v5 = vpop.f32.mrb[48].mxu1  ;;  %v4255_v11 = vadd.f32 %v11871_v37, %v4254_v54 }
 0x565   :  { %v3372_v28 = vadd.f32 %v3371_v36, %v3309_v50  ;;  %v11906_v12 = vadd.f32 %v3033_v56, %v11536_v19  ;;  %v3240_v42 = vadd.f32 %v3239_v20, %v11867_v44  ;;  %v8674_v45 = vpop.f32.mrb[146].mxu0  ;;  %17551 = vst [vmem:[#allocation49_spill] sm:$0xff] %v11914_v5  ;;  %v17552_v56 = vld [vmem:[#allocation36_spill] sm:$0xff]  ;;  %v11922_v20 = vpop.f32.mrb[49].mxu1 }
 0x566   :  { %17547 = vst [vmem:[#allocation52_spill] sm:$0xff] %v11900_v34  ;;  %v11910_v52 = vadd.f32 %v8674_v45, %v17549_v25  ;;  %v3036_v24 = vpop.f32.mrb[147].mxu0  ;;  %17554 = vst [vmem:[#allocation53_spill] sm:$0xff] %v11922_v20  ;;  %v9778_v25 = vld [vmem:[%s16857_s4 + $0x8] sm:$0xff]   ;;  %v4388_v14 = vadd.f32 %v4387_v59, %v4325_v39  ;;  %v4327_v36 = vmul.f32 %v11922_v20, %v11922_v20 }
 0x567   :  { %17548 = vst [vmem:[#allocation47_spill] sm:$0xff] %v11906_v12  ;;  %v3241_v53 = vadd.f32 %v3240_v42, %v11906_v12  ;;  %v3311_v29 = vmul.f32 %v11906_v12, %v11906_v12  ;;  %v3373_v19 = vadd.f32 %v3372_v28, %v3310_v1  ;;  %v11920_v50 = vadd.f32 %v3036_v24, %v17552_v56  ;;  %v11930_v42 = vpop.f32.mrb[50].mxu1 }
 0x568   :  { %17550 = vst [vmem:[#allocation54_spill] sm:$0xff] %v11910_v52  ;;  %17555 = vst [vmem:[#allocation55_spill] sm:$0xff] %v11930_v42  ;;  %v11935_v28 = vpop.f32.mrb[51].mxu1  ;;  %6279 = vmatpush1.bf16.msra.mxu1 %v9778_v25  ;;  %v4256_v56 = vadd.f32 %v11884_v3, %v4255_v11  ;;  %v4389_v51 = vadd.f32 %v4388_v14, %v4326_v62  ;;  %v3313_v39 = vmul.f32 %v11900_v34, %v11900_v34  ;;  %v9779_v25 = vld [vmem:[%s16857_s4 + $0x10] sm:$0xff]  }
 0x569   :  { %17553 = vst [vmem:[#allocation56_spill] sm:$0xff] %v11920_v50  ;;  %v3374_v45 = vadd.f32 %v3373_v19, %v3311_v29  ;;  %v3242_v1 = vadd.f32 %v3241_v53, %v11920_v50  ;;  %v3312_v24 = vmul.f32 %v11920_v50, %v11920_v50  ;;  %17556 = vst [vmem:[#allocation57_spill] sm:$0xff] %v11935_v28  ;;  %6280 = vmatprep.subr.bf16.mxu1 %v17486_v47  ;;  %v17557_v29 = vld [vmem:[#allocation48_spill] sm:$0xff] }
 0x56a   :  { %v4257_v11 = vadd.f32 %v4256_v56, %v11922_v20  ;;  %v4390_v62 = vadd.f32 %v4389_v51, %v4327_v36  ;;  %v4328_v14 = vmul.f32 %v11935_v28, %v11935_v28  ;;  %v4329_v51 = vmul.f32 %v11914_v5, %v11914_v5  ;;  %v11963_v56 = vpop.f32.mrb[52].mxu1 }
 0x56b   :  { %v3243_v54 = vadd.f32 %v3242_v1, %v11900_v34  ;;  %v3375_v59 = vadd.f32 %v3374_v45, %v3312_v24  ;;  %v8677_v37 = vpop.f32.mrb[148].mxu0  ;;  %v3314_v45 = vmul.f32 %v11910_v52, %v11910_v52  ;;  %v17559_v24 = vld [vmem:[#allocation42_spill] sm:$0xff]  ;;  %v17561_v34 = vld [vmem:[#allocation51_spill] sm:$0xff]  ;;  %17563 = vst [vmem:[#allocation61_spill] sm:$0xff] %v11963_v56 }
 0x56c   :  { %v11943_v53 = vadd.f32 %v8677_v37, %v17557_v29  ;;  %v3049_v19 = vpop.f32.mrb[149].mxu0  ;;  %6281 = vmatpush1.bf16.msra.mxu1 %v9779_v25  ;;  %v4258_v36 = vadd.f32 %v4257_v11, %v11935_v28  ;;  %v9780_v25 = vld [vmem:[%s16857_s4 + $0x18] sm:$0xff]   ;;  %v4330_v11 = vmul.f32 %v11930_v42, %v11930_v42 }
 0x56d   :  { %v3376_v1 = vadd.f32 %v3375_v59, %v3313_v39  ;;  %v11954_v3 = vadd.f32 %v3049_v19, %v17559_v24  ;;  %v3244_v37 = vadd.f32 %v3243_v54, %v11910_v52  ;;  %v8678_v29 = vpop.f32.mrb[150].mxu0  ;;  %v17564_v54 = vld [vmem:[#allocation45_spill] sm:$0xff]  ;;  %6282 = vmatprep.subr.bf16.mxu1 %v17486_v47 }
 0x56e   :  { %17558 = vst [vmem:[#allocation58_spill] sm:$0xff] %v11943_v53  ;;  %v11958_v50 = vadd.f32 %v8678_v29, %v17561_v34  ;;  %v3052_v12 = vpop.f32.mrb[151].mxu0  ;;  %v11972_v34 = vpop.f32.mrb[53].mxu1  ;;  %v4391_v29 = vadd.f32 %v4390_v62, %v4328_v14  ;;  %v3317_v62 = vmul.f32 %v11943_v53, %v11943_v53 }
 0x56f   :  { %17560 = vst [vmem:[#allocation59_spill] sm:$0xff] %v11954_v3  ;;  %v3245_v39 = vadd.f32 %v3244_v37, %v11954_v3  ;;  %v3315_v59 = vmul.f32 %v11954_v3, %v11954_v3  ;;  %v3377_v19 = vadd.f32 %v3376_v1, %v3314_v45  ;;  %v11969_v24 = vadd.f32 %v3052_v12, %v17564_v54  ;;  %v11980_v28 = vpop.f32.mrb[54].mxu1 }
 0x570   :  { %17562 = vst [vmem:[#allocation60_spill] sm:$0xff] %v11958_v50  ;;  %17565 = vst [vmem:[#allocation62_spill] sm:$0xff] %v11972_v34  ;;  %v4259_v37 = vadd.f32 %v11914_v5, %v4258_v36  ;;  %v11985_v54 = vpop.f32.mrb[55].mxu1  ;;  %6283 = vmatpush1.bf16.msra.mxu1 %v9780_v25  ;;  %v4392_v20 = vadd.f32 %v4391_v29, %v4329_v51  ;;  %v4331_v52 = vmul.f32 %v11972_v34, %v11972_v34 }
 0x571   :  { %17566 = vst [vmem:[#allocation63_spill] sm:$0xff] %v11980_v28  ;;  %v3378_v45 = vadd.f32 %v3377_v19, %v3315_v59  ;;  %v3246_v12 = vadd.f32 %v3245_v39, %v11969_v24  ;;  %v3316_v1 = vmul.f32 %v11969_v24, %v11969_v24  ;;  %17567 = vst [vmem:[#allocation64_spill] sm:$0xff] %v11985_v54  ;;  %6284 = vmatprep.subr.bf16.mxu1 %v17486_v47  ;;  %v9781_v39 = vld [vmem:[%s16857_s4 + $0x20] sm:$0xff]  }
 0x572   :  { %v4260_v3 = vadd.f32 %v11930_v42, %v4259_v37  ;;  %v4393_v51 = vadd.f32 %v4392_v20, %v4330_v11  ;;  %v4332_v19 = vmul.f32 %v11985_v54, %v11985_v54  ;;  %v3318_v25 = vmul.f32 %v11958_v50, %v11958_v50  ;;  %v12006_v42 = vpop.f32.mrb[56].mxu1 }
 0x573   :  { %v3247_v14 = vadd.f32 %v3246_v12, %v11943_v53  ;;  %v3379_v36 = vadd.f32 %v3378_v45, %v3316_v1  ;;  %v4333_v45 = vmul.f32 %v11963_v56, %v11963_v56  ;;  %17568 = vst [vmem:[#allocation65_spill] sm:$0xff] %v12006_v42  ;;  %v12012_v5 = vpop.f32.mrb[57].mxu1  ;;  %v17574_v53 = vld [vmem:[#allocation6_spill] sm:$0xff] }
 0x574   :  { %v4261_v59 = vadd.f32 %v4260_v3, %v11972_v34  ;;  %6285 = vmatpush1.bf16.msra.mxu1 %v9781_v39  ;;  %v4394_v12 = vadd.f32 %v4393_v51, %v4331_v52  ;;  %v17569_v3 = vld [vmem:[#allocation4_spill] sm:$0xff]  ;;  %17570 = vst [vmem:[#allocation66_spill] sm:$0xff] %v12012_v5  ;;  %v4334_v52 = vmul.f32 %v11980_v28, %v11980_v28  ;;  %v12020_v39 = vpop.f32.mrb[58].mxu1 }
 0x575   :  { %v3248_v37 = vadd.f32 %v3247_v14, %v11958_v50  ;;  %v3380_v29 = vadd.f32 %v3379_v36, %v3317_v62  ;;  %v3319_v20 = vmul.f32 %v17569_v3, %v17569_v3  ;;  %6286 = vmatprep.subr.bf16.mxu1 %v17486_v47  ;;  %v9782_v62 = vld [vmem:[%s16857_s4 + $0x28] sm:$0xff]   ;;  %17571 = vst [vmem:[#allocation67_spill] sm:$0xff] %v12020_v39 }
 0x576   :  { %v4262_v1 = vadd.f32 %v4261_v59, %v11985_v54  ;;  %v4395_v36 = vadd.f32 %v4394_v12, %v4332_v19  ;;  %v17572_v59 = vld [vmem:[#allocation5_spill] sm:$0xff]  ;;  %v4335_v50 = vmul.f32 %v12012_v5, %v12012_v5  ;;  %v3321_v19 = vmul.f32 %v17574_v53, %v17574_v53 }
 0x577   :  { %v3249_v11 = vadd.f32 %v3248_v37, %v17569_v3  ;;  %v3381_v34 = vadd.f32 %v3380_v29, %v3318_v25  ;;  %v3320_v51 = vmul.f32 %v17572_v59, %v17572_v59  ;;  %v12025_v29 = vpop.f32.mrb[59].mxu1 }
 0x578   :  { %v4263_v14 = vadd.f32 %v11963_v56, %v4262_v1  ;;  %17573 = vst [vmem:[#allocation68_spill] sm:$0xff] %v12025_v29  ;;  %6287 = vmatpush1.bf16.msra.mxu1 %v9782_v62  ;;  %v4396_v54 = vadd.f32 %v4395_v36, %v4333_v45  ;;  %v17575_v62 = vld [vmem:[#allocation7_spill] sm:$0xff]  ;;  %v12046_v56 = vpop.f32.mrb[60].mxu1 }
 0x579   :  { %v3250_v25 = vadd.f32 %v3249_v11, %v17572_v59  ;;  %v3382_v37 = vadd.f32 %v3381_v34, %v3319_v20  ;;  %6288 = vmatprep.subr.bf16.mxu1 %v17486_v47  ;;  %v9783_v34 = vld [vmem:[%s16857_s4 + $0x30] sm:$0xff]   ;;  %v4336_v11 = vmul.f32 %v12025_v29, %v12025_v29  ;;  %17576 = vst [vmem:[#allocation39_spill] sm:$0xff] %v12046_v56  ;;  %v17659_v59 = vld [vmem:[#allocation16_spill] sm:$0xff] }
 0x57a   :  { %v4264_v3 = vadd.f32 %v11980_v28, %v4263_v14  ;;  %v4397_v45 = vadd.f32 %v4396_v54, %v4334_v52  ;;  %v3322_v14 = vmul.f32 %v17575_v62, %v17575_v62 }
 0x57b   :  { %v3251_v12 = vadd.f32 %v3250_v25, %v17574_v53  ;;  %v3383_v1 = vadd.f32 %v3382_v37, %v3320_v51  ;;  %v4337_v51 = vmul.f32 %v12006_v42, %v12006_v42  ;;  %v12052_v53 = vpop.f32.mrb[61].mxu1 }
 0x57c   :  { %v4265_v20 = vadd.f32 %v4264_v3, %v12012_v5  ;;  %6289 = vmatpush1.bf16.msra.mxu1 %v9783_v34  ;;  %v4398_v25 = vadd.f32 %v4397_v45, %v4335_v50  ;;  %v17577_v3 = vld [vmem:[#allocation8_spill] sm:$0xff]  ;;  %17578 = vst [vmem:[#allocation36_spill] sm:$0xff] %v12052_v53  ;;  %v4338_v50 = vmul.f32 %v12020_v39, %v12020_v39  ;;  %v12060_v34 = vpop.f32.mrb[62].mxu1 }
 0x57d   :  { %v3252_v36 = vadd.f32 %v3251_v12, %v17575_v62  ;;  %v3384_v28 = vadd.f32 %v3383_v1, %v3321_v19  ;;  %v3323_v54 = vmul.f32 %v17577_v3, %v17577_v3  ;;  %6290 = vmatprep.subr.bf16.mxu1 %v17486_v47  ;;  %v9784_v19 = vld [vmem:[%s16857_s4 + $0x38] sm:$0xff]   ;;  %17579 = vst [vmem:[#allocation48_spill] sm:$0xff] %v12060_v34 }
 0x57e   :  { %v4266_v37 = vadd.f32 %v4265_v20, %v12025_v29  ;;  %v4399_v1 = vadd.f32 %v4398_v25, %v4336_v11  ;;  %v3324_v20 = vmul.f32 %v11642_v0, %v11642_v0  ;;  %v3325_v11 = vmul.f32 %v11648_v2, %v11648_v2 }
 0x57f   :  { %v3253_v52 = vadd.f32 %v3252_v36, %v17577_v3  ;;  %v3385_v5 = vadd.f32 %v3384_v28, %v3322_v14  ;;  %v12065_v14 = vpop.f32.mrb[63].mxu1  ;;  %v4339_v3 = vmul.f32 %v12052_v53, %v12052_v53 }
 0x580   :  { %v4267_v12 = vadd.f32 %v12006_v42, %v4266_v37  ;;  %17580 = vst [vmem:[#allocation42_spill] sm:$0xff] %v12065_v14  ;;  %6291 = vmatpush1.bf16.msra.mxu1 %v9784_v19  ;;  %v4400_v36 = vadd.f32 %v4399_v1, %v4337_v51  ;;  %v3326_v19 = vmul.f32 %v11654_v13, %v11654_v13 }
 0x581   :  { %v3254_v28 = vadd.f32 %v3253_v52, %v11642_v0  ;;  %v3386_v45 = vadd.f32 %v3385_v5, %v3323_v54  ;;  %6292 = vmatprep.subr.bf16.mxu1 %v17486_v47  ;;  %v9785_v5 = vld [vmem:[%s16857_s4 + $0x40] sm:$0xff]   ;;  %v4340_v52 = vmul.f32 %v12065_v14, %v12065_v14 }
 0x582   :  { %v4268_v29 = vadd.f32 %v12020_v39, %v4267_v12  ;;  %v4401_v51 = vadd.f32 %v4400_v36, %v4338_v50  ;;  %v12086_v39 = vpop.f32.mrb[64].mxu1 }
 0x583   :  { %v3255_v25 = vadd.f32 %v3254_v28, %v11648_v2  ;;  %v3387_v37 = vadd.f32 %v3386_v45, %v3324_v20  ;;  %v4341_v20 = vmul.f32 %v12046_v56, %v12046_v56  ;;  %17581 = vst [vmem:[#allocation51_spill] sm:$0xff] %v12086_v39 }
 0x584   :  { %v4269_v54 = vadd.f32 %v4268_v29, %v12052_v53  ;;  %6293 = vmatpush1.bf16.msra.mxu1 %v9785_v5  ;;  %v4402_v28 = vadd.f32 %v4401_v51, %v4339_v3  ;;  %v3327_v29 = vmul.f32 %v11660_v60, %v11660_v60  ;;  %v12092_v53 = vpop.f32.mrb[65].mxu1  ;;  %v9786_v3 = vld [vmem:[%s16857_s4 + $0x48] sm:$0xff]  }
 0x585   :  { %v3256_v12 = vadd.f32 %v3255_v25, %v11654_v13  ;;  %v3388_v1 = vadd.f32 %v3387_v37, %v3325_v11  ;;  %6294 = vmatprep.subr.bf16.mxu1 %v17486_v47  ;;  %17582 = vst [vmem:[#allocation45_spill] sm:$0xff] %v12092_v53  ;;  %v9790_v11 = vld [vmem:[%s16857_s4 + $0x200] sm:$0xff]   ;;  %v4342_v25 = vmul.f32 %v12060_v34, %v12060_v34  ;;  %v17584_v51 = vld [vmem:[#allocation13_spill] sm:$0xff] }
 0x586   :  { %v4270_v45 = vadd.f32 %v4269_v54, %v12065_v14  ;;  %v4403_v5 = vadd.f32 %v4402_v28, %v4340_v52  ;;  %v12103_v54 = vpop.f32.mrb[66].mxu1  ;;  %8799 = vmatprep.subr.bf16.mxu0 %v9790_v11  ;;  %v4343_v13 = vmul.f32 %v12092_v53, %v12092_v53  ;;  %v17586_v52 = vld [vmem:[#allocation14_spill] sm:$0xff] }
 0x587   :  { %v3257_v50 = vadd.f32 %v3256_v12, %v11660_v60  ;;  %v3389_v36 = vadd.f32 %v3388_v1, %v3326_v19  ;;  %17583 = vst [vmem:[#allocation70_spill] sm:$0xff] %v12103_v54  ;;  %v3328_v19 = vmul.f32 %v17584_v51, %v17584_v51  ;;  %v12108_v14 = vpop.f32.mrb[67].mxu1  ;;  %8800 = vmatpush3.bf16.msra.mxu0 %v9790_v11 }
 0x588   :  { %v4271_v37 = vadd.f32 %v12046_v56, %v4270_v45  ;;  %17585 = vst [vmem:[#allocation71_spill] sm:$0xff] %v12108_v14  ;;  %6295 = vmatpush1.bf16.msra.mxu1 %v9786_v3  ;;  %v4404_v42 = vadd.f32 %v4403_v5, %v4341_v20  ;;  %v3329_v28 = vmul.f32 %v17586_v52, %v17586_v52  ;;  %v9787_v20 = vld [vmem:[%s16857_s4 + $0x50] sm:$0xff]   ;;  %v17587_v3 = vld [vmem:[#allocation15_spill] sm:$0xff] }
 0x589   :  { %v3258_v12 = vadd.f32 %v3257_v50, %v17584_v51  ;;  %v3390_v1 = vadd.f32 %v3389_v36, %v3327_v29  ;;  %6296 = vmatprep.subr.bf16.mxu1 %v17486_v47  ;;  %v9791_v29 = vld [vmem:[%s16857_s4 + $0x208] sm:$0xff]   ;;  %v4344_v11 = vmul.f32 %v12108_v14, %v12108_v14 }
 0x58a   :  { %v4272_v60 = vadd.f32 %v12060_v34, %v4271_v37  ;;  %v4405_v36 = vadd.f32 %v4404_v42, %v4342_v25  ;;  %v3330_v37 = vmul.f32 %v17587_v3, %v17587_v3  ;;  %8801 = vmatprep.subr.bf16.mxu0 %v9791_v29  ;;  %v3331_v42 = vmul.f32 %v11684_v38, %v11684_v38 }
 0x58b   :  { %v3259_v45 = vadd.f32 %v3258_v12, %v17586_v52  ;;  %v3391_v56 = vadd.f32 %v3390_v1, %v3328_v19  ;;  %v4345_v12 = vmul.f32 %v12086_v39, %v12086_v39  ;;  %8802 = vmatpush3.bf16.msra.mxu0 %v9791_v29 }
 0x58c   :  { %v4273_v50 = vadd.f32 %v4272_v60, %v12092_v53  ;;  %6297 = vmatpush1.bf16.msra.mxu1 %v9787_v20  ;;  %v4406_v1 = vadd.f32 %v4405_v36, %v4343_v13  ;;  %v12132_v60 = vpop.f32.mrb[68].mxu1  ;;  %v9788_v13 = vld [vmem:[%s16857_s4 + $0x58] sm:$0xff]   ;;  %v3332_v36 = vmul.f32 %v11687_v31, %v11687_v31 }
 0x58d   :  { %v3260_v5 = vadd.f32 %v3259_v45, %v17587_v3  ;;  %v3392_v19 = vadd.f32 %v3391_v56, %v3329_v28  ;;  %17588 = vst [vmem:[#allocation72_spill] sm:$0xff] %v12132_v60  ;;  %6298 = vmatprep.subr.bf16.mxu1 %v17486_v47  ;;  %v12138_v56 = vpop.f32.mrb[69].mxu1  ;;  %v9793_v28 = vld [vmem:[%s16857_s4 + $0x210] sm:$0xff]   ;;  %v4346_v45 = vmul.f32 %v12103_v54, %v12103_v54 }
 0x58e   :  { %v4274_v34 = vadd.f32 %v4273_v50, %v12108_v14  ;;  %17589 = vst [vmem:[#allocation73_spill] sm:$0xff] %v12138_v56  ;;  %v4407_v20 = vadd.f32 %v4406_v1, %v4344_v11  ;;  %v12149_v50 = vpop.f32.mrb[70].mxu1  ;;  %8803 = vmatprep.subr.bf16.mxu0 %v9793_v28  ;;  %v4347_v3 = vmul.f32 %v12138_v56, %v12138_v56 }
 0x58f   :  { %v3261_v25 = vadd.f32 %v3260_v5, %v11684_v38  ;;  %v3393_v53 = vadd.f32 %v3392_v19, %v3330_v37  ;;  %17590 = vst [vmem:[#allocation74_spill] sm:$0xff] %v12149_v50  ;;  %v12154_v19 = vpop.f32.mrb[71].mxu1  ;;  %8804 = vmatpush3.bf16.msra.mxu0 %v9793_v28 }
 0x590   :  { %v4275_v29 = vadd.f32 %v12086_v39, %v4274_v34  ;;  %17591 = vst [vmem:[#allocation75_spill] sm:$0xff] %v12154_v19  ;;  %6299 = vmatpush1.bf16.msra.mxu1 %v9788_v13  ;;  %v4408_v14 = vadd.f32 %v4407_v20, %v4345_v12  ;;  %v3333_v34 = vmul.f32 %v11690_v35, %v11690_v35  ;;  %v9789_v12 = vld [vmem:[%s16857_s4 + $0x60] sm:$0xff]  }
 0x591   :  { %v3262_v37 = vadd.f32 %v3261_v25, %v11687_v31  ;;  %v3394_v5 = vadd.f32 %v3393_v53, %v3331_v42  ;;  %6300 = vmatprep.subr.bf16.mxu1 %v17486_v47  ;;  %v9794_v53 = vld [vmem:[%s16857_s4 + $0x218] sm:$0xff]   ;;  %v4348_v28 = vmul.f32 %v12154_v19, %v12154_v19  ;;  %v3334_v13 = vmul.f32 %v11693_v26, %v11693_v26 }
 0x592   :  { %v4276_v38 = vadd.f32 %v12103_v54, %v4275_v29  ;;  %v4409_v25 = vadd.f32 %v4408_v14, %v4346_v45  ;;  %8805 = vmatprep.subr.bf16.mxu0 %v9794_v53  ;;  %v3335_v14 = vmul.f32 %v11696_v40, %v11696_v40 }
 0x593   :  { %v3263_v11 = vadd.f32 %v3262_v37, %v11690_v35  ;;  %v3395_v1 = vadd.f32 %v3394_v5, %v3332_v36  ;;  %v4349_v36 = vmul.f32 %v12132_v60, %v12132_v60  ;;  %8806 = vmatpush3.bf16.msra.mxu0 %v9794_v53 }
 0x594   :  { %v4277_v42 = vadd.f32 %v4276_v38, %v12138_v56  ;;  %6301 = vmatpush1.bf16.msra.mxu1 %v9789_v12  ;;  %v4410_v37 = vadd.f32 %v4409_v25, %v4347_v3  ;;  %v12178_v38 = vpop.f32.mrb[72].mxu1  ;;  %v9792_v3 = vld [vmem:[%s16857_s4 + $0x68] sm:$0xff]   ;;  %v3336_v25 = vmul.f32 %v11699_v41, %v11699_v41 }
 0x595   :  { %v3264_v29 = vadd.f32 %v3263_v11, %v11693_v26  ;;  %v3396_v20 = vadd.f32 %v3395_v1, %v3333_v34  ;;  %17592 = vst [vmem:[#allocation76_spill] sm:$0xff] %v12178_v38  ;;  %6302 = vmatprep.subr.bf16.mxu1 %v17486_v47  ;;  %v12184_v34 = vpop.f32.mrb[73].mxu1  ;;  %v9796_v11 = vld [vmem:[%s16857_s4 + $0x220] sm:$0xff]   ;;  %v4350_v1 = vmul.f32 %v12149_v50, %v12149_v50 }
 0x596   :  { %v4278_v5 = vadd.f32 %v4277_v42, %v12154_v19  ;;  %17593 = vst [vmem:[#allocation77_spill] sm:$0xff] %v12184_v34  ;;  %v4411_v12 = vadd.f32 %v4410_v37, %v4348_v28  ;;  %v12195_v42 = vpop.f32.mrb[74].mxu1  ;;  %8807 = vmatprep.subr.bf16.mxu0 %v9796_v11  ;;  %v4351_v28 = vmul.f32 %v12184_v34, %v12184_v34 }
 0x597   :  { %v3265_v45 = vadd.f32 %v3264_v29, %v11696_v40  ;;  %v3397_v56 = vadd.f32 %v3396_v20, %v3334_v13  ;;  %17594 = vst [vmem:[#allocation78_spill] sm:$0xff] %v12195_v42  ;;  %v3337_v13 = vmul.f32 %v11702_v46, %v11702_v46  ;;  %v12202_v19 = vpop.f32.mrb[75].mxu1  ;;  %8808 = vmatpush3.bf16.msra.mxu0 %v9796_v11 }
 0x598   :  { %v4279_v53 = vadd.f32 %v12132_v60, %v4278_v5  ;;  %17595 = vst [vmem:[#allocation79_spill] sm:$0xff] %v12202_v19  ;;  %6303 = vmatpush1.bf16.msra.mxu1 %v9792_v3  ;;  %v4412_v54 = vadd.f32 %v4411_v12, %v4349_v36  ;;  %v3338_v37 = vmul.f32 %v11705_v8, %v11705_v8  ;;  %v9795_v36 = vld [vmem:[%s16857_s4 + $0x70] sm:$0xff]   ;;  %v12219_v11 = vpop.f32.mrb[76].mxu1 }
 0x599   :  { %v3266_v29 = vadd.f32 %v3265_v45, %v11699_v41  ;;  %v3398_v20 = vadd.f32 %v3397_v56, %v3335_v14  ;;  %v3339_v5 = vmul.f32 %v11708_v63, %v11708_v63  ;;  %6304 = vmatprep.subr.bf16.mxu1 %v17486_v47  ;;  %v9797_v14 = vld [vmem:[%s16857_s4 + $0x228] sm:$0xff]   ;;  %17596 = vst [vmem:[#allocation80_spill] sm:$0xff] %v12219_v11 }
 0x59a   :  { %v4280_v39 = vadd.f32 %v12149_v50, %v4279_v53  ;;  %v4413_v53 = vadd.f32 %v4412_v54, %v4350_v1  ;;  %v4352_v12 = vmul.f32 %v12202_v19, %v12202_v19  ;;  %v9921_v50 = vld [vmem:[#allocation2] sm:$0xff]  ;;  %8809 = vmatprep.subr.bf16.mxu0 %v9797_v14 }
 0x59b   :  { %v3267_v45 = vadd.f32 %v3266_v29, %v11702_v46  ;;  %v3399_v56 = vadd.f32 %v3398_v20, %v3336_v25  ;;  %v12224_v29 = vpop.f32.mrb[77].mxu1  ;;  %v9799_v25 = vld [vmem:[%s16857_s4 + $0x230] sm:$0xff]   ;;  %v12229_v60 = vpack.c.bf16 %v9921_v50, %v9921_v50  ;;  %v3340_v46 = vmul.f32 %v11711_v23, %v11711_v23  ;;  %v9798_v50 = vld [vmem:[%s16857_s4 + $0x78] sm:$0xff]   ;;  %8810 = vmatpush3.bf16.msra.mxu0 %v9797_v14 }
 0x59c   :  { %v4281_v3 = vadd.f32 %v4280_v39, %v12184_v34  ;;  %17597 = vst [vmem:[#allocation81_spill] sm:$0xff] %v12224_v29  ;;  %v4838_v20 = vld [vmem:[#allocation3 + $0x10] sm:$0x3]  ;;  %v12234_v54 = vpop.f32.mrb[78].mxu1  ;;  %6305 = vmatpush1.bf16.msra.mxu1 %v9795_v36  ;;  %v4353_v34 = vmul.f32 %v12178_v38, %v12178_v38  ;;  %v4414_v40 = vadd.f32 %v4413_v53, %v4351_v28  ;;  %v9800_v28 = vld [vmem:[%s16857_s4 + $0x238] sm:$0xff]  }
 0x59d   :  { %17598 = vst [vmem:[#allocation82_spill] sm:$0xff] %v12229_v60  ;;  %v3268_v41 = vadd.f32 %v3267_v45, %v11705_v8  ;;  %v3400_v39 = vadd.f32 %v3399_v56, %v3337_v13  ;;  %17599 = vst [vmem:[#allocation83_spill] sm:$0xff] %v12234_v54  ;;  %v12236_v1 = vpack.c.bf16 %v4838_v20, %v4838_v20  ;;  %v12244_v35 = vpop.f32.mrb[79].mxu1  ;;  %6306 = vmatprep.subr.bf16.mxu1 %v17486_v47 }
 0x59e   :  { %v4282_v26 = vadd.f32 %v4281_v3, %v12202_v19  ;;  %17601 = vst [vmem:[#allocation85_spill] sm:$0xff] %v12244_v35  ;;  %8811 = vmatprep.subr.bf16.mxu0 %v9799_v25  ;;  %v5017_v56 = vshrl.u32 %v12229_v60, 16  ;;  %v5019_v36 = vshll.u32 %v12229_v60, 16  ;;  %v12253_v3 = vpop.f32.mrb[80].mxu1  ;;  %v4354_v14 = vmul.f32 %v12195_v42, %v12195_v42 }
 0x59f   :  { %17600 = vst [vmem:[#allocation84_spill] sm:$0xff] %v12236_v1  ;;  %v3269_v13 = vadd.f32 %v3268_v41, %v11708_v63  ;;  %v3401_v45 = vadd.f32 %v3400_v39, %v3338_v37  ;;  %17602 = vst [vmem:[#allocation86_spill] sm:$0xff] %v12253_v3  ;;  %v4415_v41 = vadd.f32 %v4414_v40, %v4352_v12  ;;  %v5024_v37 = vshll.u32 %v12236_v1, 16  ;;  %v12259_v20 = vpop.f32.mrb[81].mxu1 }
 0x5a0   :  { %v4283_v53 = vadd.f32 %v12178_v38, %v4282_v26  ;;  %17603 = vst [vmem:[#allocation87_spill] sm:$0xff] %v12259_v20  ;;  %v3341_v39 = vmul.f32 %v11714_v30, %v11714_v30  ;;  %v5021_v8 = vrot.slane %v5019_v36, 1  ;;  %v12264_v31 = vpop.f32.mrb[82].mxu1  ;;  %6307 = vmatpush1.bf16.msra.mxu1 %v9798_v50  ;;  %v4355_v26 = vmul.f32 %v12224_v29, %v12224_v29 }
 0x5a1   :  { %v3270_v19 = vadd.f32 %v3269_v13, %v11711_v23  ;;  %v3402_v63 = vadd.f32 %v3401_v45, %v3339_v5  ;;  %17604 = vst [vmem:[#allocation88_spill] sm:$0xff] %v12264_v31  ;;  %v4416_v52 = vadd.f32 %v4415_v41, %v4353_v34  ;;  %8812 = vmatpush3.bf16.msra.mxu0 %v9799_v25  ;;  %v5026_v40 = vrot.slane %v5024_v37, 1  ;;  %v12269_v12 = vpop.f32.mrb[83].mxu1  ;;  %v9801_v25 = vld [vmem:[%s16857_s4 + $0x80] sm:$0xff]  }
 0x5a2   :  { %v4284_v51 = vadd.f32 %v12195_v42, %v4283_v53  ;;  %17605 = vst [vmem:[#allocation89_spill] sm:$0xff] %v12269_v12  ;;  %v5022_v2 = vor.u32 %v5021_v8, %v5017_v56  ;;  %6565 = vmatprep.subr.bf16.mxu1 %v17486_v47  ;;  %8813 = vmatprep.subr.bf16.mxu0 %v9800_v28  ;;  %v12286_v45 = vpop.f32.mrb[84].mxu1 }
 0x5a3   :  { %v3271_v1 = vadd.f32 %v3270_v19, %v11714_v30  ;;  %v3403_v38 = vadd.f32 %v3402_v63, %v3340_v46  ;;  %v4417_v34 = vadd.f32 %v4416_v52, %v4354_v14  ;;  %v4356_v50 = vmul.f32 %v12244_v35, %v12244_v35  ;;  %17606 = vst [vmem:[#allocation90_spill] sm:$0xff] %v12286_v45 }
 0x5a4   :  { %v4285_v5 = vadd.f32 %v4284_v51, %v12224_v29  ;;  %v3342_v13 = vmul.f32 %v11717_v7, %v11717_v7  ;;  %v5027_v8 = vsel %vm517_vm0, %v5022_v2, %v5026_v40  ;;  %v4357_v63 = vmul.f32 %v12219_v11, %v12219_v11  ;;  %v3224_v29 = vld [vmem:[%s16858_s2] sm:$0x1] }
 0x5a5   :  { %v3272_v19 = vadd.f32 %v3271_v1, %v11717_v7  ;;  %v3404_v46 = vadd.f32 %v3403_v38, %v3341_v39  ;;  %v4418_v51 = vadd.f32 %v4417_v34, %v4355_v26  ;;  %6308 = vmatprep.mubr.bf16.mxu1 %v5027_v8  ;;  %8814 = vmatpush3.bf16.msra.mxu0 %v9800_v28  ;;  %v12292_v38 = vpop.f32.mrb[85].mxu1 }
 0x5a6   :  { %v4286_v52 = vadd.f32 %v4285_v5, %v12244_v35  ;;  %v3343_v56 = vmul.f32 %v11720_v55, %v11720_v55  ;;  %6309 = vmatmul.mubr.bf16.vlgmr.msra.gmra.mrb[104].mxu1 %v12229_v60  ;;  %17607 = vst [vmem:[#allocation91_spill] sm:$0xff] %v12292_v38  ;;  %v4358_v2 = vmul.f32 %v12234_v54, %v12234_v54  ;;  %v12297_v28 = vpop.f32.mrb[86].mxu1 }
 0x5a7   :  { %v3273_v36 = vadd.f32 %v3272_v19, %v11720_v55  ;;  %v3405_v14 = vadd.f32 %v3404_v46, %v3342_v13  ;;  %v4419_v53 = vadd.f32 %v4418_v51, %v4356_v50  ;;  %6566 = vmatpush1.bf16.msra.mxu1 %v9801_v25  ;;  %17608 = vst [vmem:[#allocation92_spill] sm:$0xff] %v12297_v28  ;;  %v12302_v26 = vpop.f32.mrb[87].mxu1 }
 0x5a8   :  { %v4287_v1 = vadd.f32 %v12219_v11, %v4286_v52  ;;  %v3344_v41 = vmul.f32 %v11723_v61, %v11723_v61  ;;  %17609 = vst [vmem:[#allocation93_spill] sm:$0xff] %v12302_v26  ;;  %6567 = vmatprep.subr.bf16.mxu1 %v17486_v47  ;;  %v4359_v34 = vmul.f32 %v12259_v20, %v12259_v20  ;;  %v17660_v11 = vld [vmem:[#allocation20_spill] sm:$0xff] }
 0x5a9   :  { %v3274_v37 = vadd.f32 %v3273_v36, %v11723_v61  ;;  %v3406_v39 = vadd.f32 %v3405_v14, %v3343_v56  ;;  %v4420_v40 = vadd.f32 %v4419_v53, %v4357_v63  ;;  %v3345_v50 = vmul.f32 %v11726_v57, %v11726_v57 }
 0x5aa   :  { %v4288_v5 = vadd.f32 %v12234_v54, %v4287_v1  ;;  %v4360_v8 = vmul.f32 %v12269_v12, %v12269_v12  ;;  %v3346_v63 = vmul.f32 %v11729_v15, %v11729_v15  ;;  %v4361_v56 = vmul.f32 %v12253_v3, %v12253_v3  ;;  %v9802_v1 = vld [vmem:[%s16857_s4 + $0x88] sm:$0xff]  }
 0x5ab   :  { %v3275_v25 = vadd.f32 %v3274_v37, %v11726_v57  ;;  %v3407_v13 = vadd.f32 %v3406_v39, %v3344_v41  ;;  %v4421_v46 = vadd.f32 %v4420_v40, %v4358_v2  ;;  %v12323_v2 = vpop.f32.mrb[88].mxu1  ;;  %v3347_v53 = vmul.f32 %v11732_v18, %v11732_v18  ;;  %6568 = vmatpush1.bf16.msra.mxu1 %v9802_v1 }
 0x5ac   :  { %v4289_v19 = vadd.f32 %v4288_v5, %v12259_v20  ;;  %17610 = vst [vmem:[#allocation94_spill] sm:$0xff] %v12323_v2  ;;  %v12328_v39 = vpop.f32.mrb[89].mxu1  ;;  %v4362_v40 = vmul.f32 %v12264_v31, %v12264_v31  ;;  %6569 = vmatprep.subr.bf16.mxu1 %v17486_v47 }
 0x5ad   :  { %v3276_v51 = vadd.f32 %v3275_v25, %v11729_v15  ;;  %v3408_v52 = vadd.f32 %v3407_v13, %v3345_v50  ;;  %v4422_v36 = vadd.f32 %v4421_v46, %v4359_v34  ;;  %17611 = vst [vmem:[#allocation95_spill] sm:$0xff] %v12328_v39  ;;  %v12333_v50 = vpop.f32.mrb[90].mxu1  ;;  %v3348_v25 = vmul.f32 %v11735_v58, %v11735_v58 }
 0x5ae   :  { %v4290_v14 = vadd.f32 %v4289_v19, %v12269_v12  ;;  %17612 = vst [vmem:[#allocation96_spill] sm:$0xff] %v12333_v50  ;;  %v12338_v46 = vpop.f32.mrb[91].mxu1 }
 0x5af   :  { %v3277_v41 = vadd.f32 %v3276_v51, %v11732_v18  ;;  %v3409_v37 = vadd.f32 %v3408_v52, %v3346_v63  ;;  %v4423_v34 = vadd.f32 %v4422_v36, %v4360_v8  ;;  %17613 = vst [vmem:[#allocation97_spill] sm:$0xff] %v12338_v46  ;;  %v4363_v52 = vmul.f32 %v12292_v38, %v12292_v38 }
 0x5b0   :  { %v4291_v5 = vadd.f32 %v12253_v3, %v4290_v14  ;;  %v3349_v8 = vmul.f32 %v11738_v9, %v11738_v9 }
 0x5b1   :  { %v3278_v13 = vadd.f32 %v3277_v41, %v11735_v58  ;;  %v3410_v19 = vadd.f32 %v3409_v37, %v3347_v53  ;;  %v4424_v63 = vadd.f32 %v4423_v34, %v4361_v56  ;;  %v4364_v53 = vmul.f32 %v12302_v26, %v12302_v26 }
 0x5b2   :  { %v4292_v51 = vadd.f32 %v12264_v31, %v4291_v5  ;;  %v3350_v56 = vmul.f32 %v11741_v17, %v11741_v17  ;;  %v4365_v34 = vmul.f32 %v12286_v45, %v12286_v45 }
 0x5b3   :  { %v3279_v36 = vadd.f32 %v3278_v13, %v11738_v9  ;;  %v3411_v14 = vadd.f32 %v3410_v19, %v3348_v25  ;;  %v4425_v41 = vadd.f32 %v4424_v63, %v4362_v40  ;;  %v12356_v13 = vpop.f32.mrb[92].mxu1  ;;  %v3351_v40 = vmul.f32 %v11744_v49, %v11744_v49 }
 0x5b4   :  { %v4293_v1 = vadd.f32 %v4292_v51, %v12292_v38  ;;  %17614 = vst [vmem:[#allocation98_spill] sm:$0xff] %v12356_v13  ;;  %v12361_v63 = vpop.f32.mrb[93].mxu1  ;;  %v4366_v51 = vmul.f32 %v12297_v28, %v12297_v28 }
 0x5b5   :  { %v3280_v37 = vadd.f32 %v3279_v36, %v11741_v17  ;;  %v3412_v5 = vadd.f32 %v3411_v14, %v3349_v8  ;;  %v4426_v60 = vadd.f32 %v4425_v41, %v4363_v52  ;;  %17615 = vst [vmem:[#allocation99_spill] sm:$0xff] %v12361_v63  ;;  %v12366_v14 = vpop.f32.mrb[94].mxu1  ;;  %v3352_v52 = vmul.f32 %v11747_v10, %v11747_v10 }
 0x5b6   :  { %v4294_v31 = vadd.f32 %v4293_v1, %v12302_v26  ;;  %17616 = vst [vmem:[#allocation100_spill] sm:$0xff] %v12366_v14  ;;  %v12371_v26 = vpop.f32.mrb[95].mxu1 }
 0x5b7   :  { %v3281_v25 = vadd.f32 %v3280_v37, %v11744_v49  ;;  %v3413_v19 = vadd.f32 %v3412_v5, %v3350_v56  ;;  %v4427_v36 = vadd.f32 %v4426_v60, %v4364_v53  ;;  %17617 = vst [vmem:[#allocation101_spill] sm:$0xff] %v12371_v26  ;;  %v4367_v5 = vmul.f32 %v12328_v39, %v12328_v39 }
 0x5b8   :  { %v4295_v8 = vadd.f32 %v12286_v45, %v4294_v31  ;;  %v3353_v31 = vmul.f32 %v11750_v22, %v11750_v22 }
 0x5b9   :  { %v3282_v1 = vadd.f32 %v3281_v25, %v11747_v10  ;;  %v3414_v41 = vadd.f32 %v3413_v19, %v3351_v40  ;;  %v4428_v37 = vadd.f32 %v4427_v36, %v4365_v34  ;;  %v4368_v40 = vmul.f32 %v12338_v46, %v12338_v46 }
 0x5ba   :  { %v4296_v56 = vadd.f32 %v12297_v28, %v4295_v8  ;;  %v3354_v34 = vmul.f32 %v11753_v16, %v11753_v16  ;;  %v4369_v8 = vmul.f32 %v12323_v2, %v12323_v2 }
 0x5bb   :  { %v3283_v60 = vadd.f32 %v3282_v1, %v11750_v22  ;;  %v3415_v53 = vadd.f32 %v3414_v41, %v3352_v52  ;;  %v4429_v38 = vadd.f32 %v4428_v37, %v4366_v51  ;;  %v9803_v52 = vld [vmem:[%s16857_s4 + $0x90] sm:$0xff]   ;;  %v12391_v51 = vpop.f32.mrb[96].mxu1  ;;  %v3355_v1 = vmul.f32 %v11756_v48, %v11756_v48 }
 0x5bc   :  { %v4297_v45 = vadd.f32 %v4296_v56, %v12328_v39  ;;  %17618 = vst [vmem:[#allocation102_spill] sm:$0xff] %v12391_v51  ;;  %v12396_v56 = vpop.f32.mrb[97].mxu1  ;;  %6570 = vmatpush1.bf16.msra.mxu1 %v9803_v52 }
 0x5bd   :  { %v3284_v25 = vadd.f32 %v3283_v60, %v11753_v16  ;;  %v3416_v19 = vadd.f32 %v3415_v53, %v3353_v31  ;;  %v4430_v36 = vadd.f32 %v4429_v38, %v4367_v5  ;;  %17619 = vst [vmem:[#allocation103_spill] sm:$0xff] %v12396_v56  ;;  %v4370_v31 = vmul.f32 %v12333_v50, %v12333_v50  ;;  %v12401_v5 = vpop.f32.mrb[98].mxu1 }
 0x5be   :  { %v4298_v28 = vadd.f32 %v4297_v45, %v12338_v46  ;;  %17620 = vst [vmem:[#allocation104_spill] sm:$0xff] %v12401_v5  ;;  %v3356_v60 = vmul.f32 %v11759_v43, %v11759_v43  ;;  %v12406_v39 = vpop.f32.mrb[99].mxu1  ;;  %6571 = vmatprep.subr.bf16.mxu1 %v17486_v47  ;;  %v17655_v47 = vld [vmem:[#allocation15_spill] sm:$0xff] }
 0x5bf   :  { %v3285_v41 = vadd.f32 %v3284_v25, %v11756_v48  ;;  %v3417_v37 = vadd.f32 %v3416_v19, %v3354_v34  ;;  %v4431_v45 = vadd.f32 %v4430_v36, %v4368_v40  ;;  %17621 = vst [vmem:[#allocation105_spill] sm:$0xff] %v12406_v39  ;;  %v3357_v40 = vmul.f32 %v11762_v33, %v11762_v33 }
 0x5c0   :  { %v4299_v38 = vadd.f32 %v12323_v2, %v4298_v28  ;;  %v4371_v28 = vmul.f32 %v12361_v63, %v12361_v63 }
 0x5c1   :  { %v3286_v53 = vadd.f32 %v3285_v41, %v11759_v43  ;;  %v3418_v46 = vadd.f32 %v3417_v37, %v3355_v1  ;;  %v4432_v34 = vadd.f32 %v4431_v45, %v4369_v8  ;;  %v4372_v1 = vmul.f32 %v12371_v26, %v12371_v26 }
 0x5c2   :  { %v4300_v25 = vadd.f32 %v12333_v50, %v4299_v38  ;;  %v3358_v8 = vmul.f32 %v11765_v27, %v11765_v27  ;;  %v4373_v45 = vmul.f32 %v12356_v13, %v12356_v13 }
 0x5c3   :  { %v3287_v19 = vadd.f32 %v3286_v53, %v11762_v33  ;;  %v3419_v36 = vadd.f32 %v3418_v46, %v3356_v60  ;;  %v4433_v41 = vadd.f32 %v4432_v34, %v4370_v31  ;;  %v12424_v53 = vpop.f32.mrb[100].mxu1  ;;  %v4374_v34 = vmul.f32 %v12366_v14, %v12366_v14 }
 0x5c4   :  { %v4301_v52 = vadd.f32 %v4300_v25, %v12361_v63  ;;  %17622 = vst [vmem:[#allocation106_spill] sm:$0xff] %v12424_v53  ;;  %v12426_v31 = vpop.f32.mrb[101].mxu1 }
 0x5c5   :  { %v3288_v37 = vadd.f32 %v3287_v19, %v11765_v27  ;;  %v3420_v38 = vadd.f32 %v3419_v36, %v3357_v40  ;;  %v4434_v50 = vadd.f32 %v4433_v41, %v4371_v28  ;;  %17623 = vst [vmem:[#allocation107_spill] sm:$0xff] %v12426_v31  ;;  %v12431_v19 = vpop.f32.mrb[102].mxu1  ;;  %v4375_v41 = vmul.f32 %v12396_v56, %v12396_v56 }
 0x5c6   :  { %v4302_v2 = vadd.f32 %v4301_v52, %v12371_v26  ;;  %17624 = vst [vmem:[#allocation108_spill] sm:$0xff] %v12431_v19  ;;  %v12433_v3 = vpop.f32.mrb[103].mxu1 }
 0x5c7   :  { %v3289_v46 = vrot.slane %v3288_v37, 4  ;;  %v3421_v60 = vadd.f32 %v3420_v38, %v3358_v8  ;;  %v4435_v63 = vadd.f32 %v4434_v50, %v4372_v1  ;;  %17625 = vst [vmem:[#allocation109_spill] sm:$0xff] %v12433_v3 }
 0x5c8   :  { %v4303_v25 = vadd.f32 %v12356_v13, %v4302_v2  ;;  %v4376_v2 = vmul.f32 %v12406_v39, %v12406_v39 }
 0x5c9   :  { %v3290_v40 = vadd.f32 %v3289_v46, %v3288_v37  ;;  %v3422_v36 = vrot.slane %v3421_v60, 4  ;;  %v4436_v28 = vadd.f32 %v4435_v63, %v4373_v45  ;;  %v3500_v37 = vlaneseq }
 0x5ca   :  { %v4304_v52 = vadd.f32 %v12366_v14, %v4303_v25  ;;  %v4377_v46 = vmul.f32 %v12391_v51, %v12391_v51 }
 0x5cb   :  { %v3291_v8 = vrot.slane %v3290_v40, 2  ;;  %v3423_v38 = vadd.f32 %v3422_v36, %v3421_v60  ;;  %v4437_v12 = vadd.f32 %v4436_v28, %v4374_v34  ;;  %v4378_v60 = vmul.f32 %v12401_v5, %v12401_v5 }
 0x5cc   :  { %v4305_v26 = vadd.f32 %v4304_v52, %v12396_v56  ;;  %v3501_v56 = vshrl.u32 %v3500_v37, 7  ;;  %v12469_v37 = vmul.f32 %v12431_v19, %v12431_v19 }
 0x5cd   :  { %v3292_v50 = vadd.f32 %v3291_v8, %v3290_v40  ;;  %v3424_v1 = vrot.slane %v3423_v38, 2  ;;  %v4438_v63 = vadd.f32 %v4437_v12, %v4375_v41 }
 0x5ce   :  { %v4306_v45 = vadd.f32 %v4305_v26, %v12406_v39  ;;  %17628 = vst [vmem:[#allocation112_spill] sm:$0xff] %v12469_v37  ;;  %v17645_v39 = vld [vmem:[#allocation58_spill] sm:$0xff] }
 0x5cf   :  { %v3293_v25 = vrot.slane %v3292_v50, 1  ;;  %v3425_v14 = vadd.f32 %v3424_v1, %v3423_v38  ;;  %v4439_v34 = vadd.f32 %v4438_v63, %v4376_v2  ;;  %v12457_v1 = vsub.s32 0, %v3501_v56  ;;  %v17639_v63 = vld [vmem:[#allocation35_spill] sm:$0xff]  ;;  %v17663_v37 = vld [vmem:[#allocation30_spill] sm:$0xff] }
 0x5d0   :  { %v4307_v36 = vadd.f32 %v12391_v51, %v4306_v45  ;;  %v12461_v2 = vmul.f32 %v12424_v53, %v12424_v53  ;;  %v17630_v45 = vld [vmem:[#allocation26_spill] sm:$0xff]  ;;  %v17644_v51 = vld [vmem:[#allocation59_spill] sm:$0xff] }
 0x5d1   :  { %v3294_v28 = vadd.f32 %v3293_v25, %v3292_v50  ;;  %v3426_v52 = vrot.slane %v3425_v14, 1  ;;  %v4440_v40 = vadd.f32 %v4439_v34, %v4377_v46  ;;  %17626 = vst [vmem:[#allocation110_spill] sm:$0xff] %v12457_v1  ;;  %v17629_v46 = vld [vmem:[#allocation21_spill] sm:$0xff]  ;;  %v17634_v25 = vld [vmem:[#allocation27_spill] sm:$0xff]  ;;  %v17636_v34 = vld [vmem:[#allocation32_spill] sm:$0xff] }
 0x5d2   :  { %v4308_v8 = vadd.f32 %v12401_v5, %v4307_v36  ;;  %17627 = vst [vmem:[#allocation111_spill] sm:$0xff] %v12461_v2  ;;  %v17643_v5 = vld [vmem:[#allocation54_spill] sm:$0xff]  ;;  %v17664_v2 = vld [vmem:[#allocation69_spill] sm:$0xff] }
 0x5d3   :  { %v3427_v13 = vadd.f32 %v3426_v52, %v3425_v14  ;;  %v12448_v20 = vmul.f32 0.001953125, %v3294_v28  ;;  %v12453_v26 = vadd.f32 %v4440_v40, %v4378_v60  ;;  %v12465_v14 = vmul.f32 %v12426_v31, %v12426_v31  ;;  %v17631_v52 = vld [vmem:[#allocation24_spill] sm:$0xff]  ;;  %v17637_v40 = vld [vmem:[#allocation43_spill] sm:$0xff] }
 0x5d4   :  { %v12451_v12 = vadd.f32 %v4308_v8, %v12426_v31  ;;  %v17632_v8 = vld [vmem:[#allocation23_spill] sm:$0xff]  ;;  %v17641_v31 = vld [vmem:[#allocation56_spill] sm:$0xff] }
 0x5d5   :  { %v3429_v41 = vmul.f32 0.001953125, %v3427_v13  ;;  %v3430_v38 = vmul.f32 %v12448_v20, %v12448_v20  ;;  %v12473_v13 = vmul.f32 %v12433_v3, %v12433_v3  ;;  %v17642_v28 = vld [vmem:[#allocation52_spill] sm:$0xff]  ;;  %v4442_v42 = vadd.f32 %v12453_v26, %v12465_v14 }
 0x5d6   :  { %v4310_v61 = vadd.f32 %v12451_v12, %v12433_v3  ;;  %v12614_v60 = vld [vmem:[%s16859_s3] ss:$0 sm:$0xff]  ;;  %v17668_v54 = vsub.f32 %v17629_v46, %v12448_v20 }
 0x5d7   :  { %v3431_v50 = vsub.f32 %v3429_v41, %v3430_v38  ;;  %v17633_v38 = vld [vmem:[#allocation28_spill] sm:$0xff]  ;;  %v17638_v41 = vld [vmem:[#allocation46_spill] sm:$0xff]  ;;  %v12609_v14 = vadd.f32 %v4442_v42, %v12473_v13  ;;  %v17667_v42 = vsub.f32 %v11969_v24, %v12448_v20  ;;  %v17671_v24 = vsub.f32 %v11774_v32, %v12448_v20 }
 0x5d8   :  { %v12606_v12 = vadd.f32 %v12424_v53, %v4310_v61  ;;  %v17670_v61 = vsub.f32 %v11768_v4, %v12448_v20 }
 0x5d9   :  { %v3432_v36 = vadd.f32 1e-05, %v3431_v50  ;;  %v17635_v50 = vld [vmem:[#allocation29_spill] sm:$0xff]  ;;  %17666 = vst [vmem:[#allocation26_spill] sm:$0xff] %v12609_v14 }
 0x5da   :  { %17665 = vst [vmem:[#allocation21_spill] sm:$0xff] %v12606_v12 }
 0x5db   :  { %9881 = vrsqrt.f32 %v3432_v36  ;;  %v17640_v36 = vld [vmem:[#allocation47_spill] sm:$0xff] }
 0x5e5   :  { %v9882_v0 = vpop.eup %9881 }
 0x5e6   :  { %v3498_v35 = vmul.f32 %v9882_v0, %v3224_v29 }
 0x5e8   :  { %v12601_v29 = vrot.slane %v3498_v35, %v12457_v1  ;;  %v17669_v35 = vsub.f32 %v17630_v45, %v12448_v20 }
 0x5ea   :  { %v3526_v13 = vmul.f32 %v12601_v29, %v17667_v42  ;;  %v12632_v56 = vmul.f32 %v12601_v29, %v17668_v54  ;;  %v12638_v0 = vmul.f32 %v12601_v29, %v17669_v35  ;;  %v12644_v26 = vmul.f32 %v12601_v29, %v17670_v61 }
 0x5eb   :  { %v12650_v46 = vmul.f32 %v12601_v29, %v17671_v24  ;;  %v17672_v54 = vsub.f32 %v11797_v6, %v12448_v20  ;;  %v17673_v35 = vsub.f32 %v17631_v52, %v12448_v20  ;;  %v17674_v61 = vsub.f32 %v17632_v8, %v12448_v20 }
 0x5ec   :  { %v3596_v42 = vadd.f32 %v12614_v60, %v3526_v13  ;;  %v17675_v6 = vsub.f32 %v17633_v38, %v12448_v20  ;;  %v17676_v52 = vsub.f32 %v17634_v25, %v12448_v20  ;;  %v17677_v8 = vsub.f32 %v17635_v50, %v12448_v20 }
 0x5ed   :  { %v12656_v45 = vmul.f32 %v12601_v29, %v17672_v54  ;;  %v12662_v4 = vmul.f32 %v12601_v29, %v17673_v35  ;;  %v12668_v32 = vmul.f32 %v12601_v29, %v17674_v61  ;;  %v17678_v13 = vsub.f32 %v17636_v34, %v12448_v20 }
 0x5ee   :  { %v12675_v24 = vmul.f32 %v12601_v29, %v17675_v6  ;;  %v12681_v54 = vmul.f32 %v12601_v29, %v17676_v52  ;;  %v12687_v35 = vmul.f32 %v12601_v29, %v17677_v8  ;;  %v17679_v61 = vsub.f32 %v11826_v21, %v12448_v20 }
 0x5ef   :  { %v12693_v38 = vmul.f32 %v12601_v29, %v17678_v13  ;;  %v17680_v6 = vsub.f32 %v17637_v40, %v12448_v20  ;;  %v17681_v52 = vsub.f32 %v17638_v41, %v12448_v20  ;;  %v3660_v8 = vmax.f32 %v3596_v42, 0.0 }
 0x5f0   :  { %v12699_v25 = vmul.f32 %v12601_v29, %v17679_v61  ;;  %v17682_v13 = vsub.f32 %v17639_v63, %v12448_v20  ;;  %v17683_v61 = vsub.f32 %v11867_v44, %v12448_v20  ;;  %v17685_v42 = vsub.f32 %v17641_v31, %v12448_v20 }
 0x5f1   :  { %v12705_v50 = vmul.f32 %v12601_v29, %v17680_v6  ;;  %v12711_v34 = vmul.f32 %v12601_v29, %v17681_v52  ;;  %v17684_v6 = vsub.f32 %v17640_v36, %v12448_v20  ;;  %v17686_v52 = vsub.f32 %v17642_v28, %v12448_v20  ;;  %4793 = vst [vmem:[#allocation3 + $0x111] sm:$0xff] %v3660_v8 }
 0x5f2   :  { %v12717_v21 = vmul.f32 %v12601_v29, %v17682_v13  ;;  %v12723_v40 = vmul.f32 %v12601_v29, %v17683_v61  ;;  %v12735_v63 = vmul.f32 %v12601_v29, %v17685_v42  ;;  %v17687_v13 = vsub.f32 %v17643_v5, %v12448_v20  ;;  %v17690_v42 = vld [vmem:[#allocation60_spill] sm:$0xff] }
 0x5f3   :  { %v12729_v41 = vmul.f32 %v12601_v29, %v17684_v6  ;;  %v12741_v44 = vmul.f32 %v12601_v29, %v17686_v52  ;;  %v17688_v61 = vsub.f32 %v17644_v51, %v12448_v20  ;;  %v17689_v6 = vsub.f32 %v17645_v39, %v12448_v20 }
 0x5f4   :  { %v12747_v36 = vmul.f32 %v12601_v29, %v17687_v13  ;;  %v17691_v52 = vsub.f32 %v17690_v42, %v12448_v20  ;;  %v17692_v13 = vld [vmem:[#allocation4_spill] sm:$0xff] }
 0x5f5   :  { %v12753_v31 = vmul.f32 %v12601_v29, %v17688_v61  ;;  %v12759_v28 = vmul.f32 %v12601_v29, %v17689_v6  ;;  %v17693_v62 = vsub.f32 %v17692_v13, %v12448_v20  ;;  %v17694_v61 = vld [vmem:[#allocation5_spill] sm:$0xff]  ;;  %v17696_v6 = vld [vmem:[#allocation6_spill] sm:$0xff] }
 0x5f6   :  { %v12765_v5 = vmul.f32 %v12601_v29, %v17691_v52  ;;  %v17695_v8 = vsub.f32 %v17694_v61, %v12448_v20  ;;  %v17697_v19 = vsub.f32 %v17696_v6, %v12448_v20  ;;  %v17698_v52 = vld [vmem:[#allocation7_spill] sm:$0xff] }
 0x5f7   :  { %v12771_v51 = vmul.f32 %v12601_v29, %v17693_v62  ;;  %v17699_v1 = vsub.f32 %v17698_v52, %v12448_v20  ;;  %v17700_v62 = vld [vmem:[#allocation8_spill] sm:$0xff] }
 0x5f8   :  { %v12777_v39 = vmul.f32 %v12601_v29, %v17695_v8  ;;  %v12783_v42 = vmul.f32 %v12601_v29, %v17697_v19  ;;  %v17701_v53 = vsub.f32 %v17700_v62, %v12448_v20  ;;  %v17703_v8 = vld [vmem:[#allocation9_spill] sm:$0xff]  ;;  %v17706_v19 = vld [vmem:[#allocation10_spill] sm:$0xff] }
 0x5f9   :  { %v12789_v13 = vmul.f32 %v12601_v29, %v17699_v1  ;;  %v17704_v3 = vsub.f32 %v17703_v8, %v12448_v20  ;;  %v17707_v14 = vsub.f32 %v17706_v19, %v12448_v20  ;;  %v17709_v1 = vld [vmem:[#allocation11_spill] sm:$0xff] }
 0x5fa   :  { %v12795_v61 = vmul.f32 %v12601_v29, %v17701_v53  ;;  %v17710_v12 = vsub.f32 %v17709_v1, %v12448_v20  ;;  %v17711_v53 = vld [vmem:[#allocation12_spill] sm:$0xff] }
 0x5fb   :  { %v12801_v6 = vmul.f32 %v12601_v29, %v17704_v3  ;;  %v12807_v52 = vmul.f32 %v12601_v29, %v17707_v14  ;;  %v17714_v3 = vld [vmem:[#allocation13_spill] sm:$0xff]  ;;  %v17717_v14 = vld [vmem:[#allocation14_spill] sm:$0xff] }
 0x5fc   :  { %17702 = vst [vmem:[#allocation24_spill] sm:$0xff] %v12795_v61  ;;  %v12813_v62 = vmul.f32 %v12601_v29, %v17710_v12  ;;  %v17712_v61 = vsub.f32 %v17711_v53, %v12448_v20  ;;  %v17720_v12 = vsub.f32 %v17655_v47, %v12448_v20 }
 0x5fd   :  { %17705 = vst [vmem:[#allocation23_spill] sm:$0xff] %v12801_v6  ;;  %17708 = vst [vmem:[#allocation28_spill] sm:$0xff] %v12807_v52  ;;  %v17715_v6 = vsub.f32 %v17714_v3, %v12448_v20  ;;  %v17718_v52 = vsub.f32 %v17717_v14, %v12448_v20 }
 0x5fe   :  { %v12819_v8 = vmul.f32 %v12601_v29, %v17712_v61  ;;  %v12837_v53 = vmul.f32 %v12601_v29, %v17720_v12  ;;  %v17721_v61 = vld [vmem:[#allocation18_spill] sm:$0xff]  ;;  %v17729_v12 = vsub.f32 %v17659_v59, %v12448_v20 }
 0x5ff   :  { %v12825_v19 = vmul.f32 %v12601_v29, %v17715_v6  ;;  %v12831_v1 = vmul.f32 %v12601_v29, %v17718_v52  ;;  %v17723_v6 = vld [vmem:[#allocation19_spill] sm:$0xff]  ;;  %v17726_v52 = vld [vmem:[#allocation22_spill] sm:$0xff] }
 0x600   :  { %17713 = vst [vmem:[#allocation27_spill] sm:$0xff] %v12819_v8  ;;  %v17722_v8 = vsub.f32 %v17721_v61, %v12448_v20  ;;  %v12861_v61 = vmul.f32 %v12601_v29, %v17729_v12  ;;  %v17735_v12 = vsub.f32 %v17663_v37, %v12448_v20 }
 0x601   :  { %17716 = vst [vmem:[#allocation29_spill] sm:$0xff] %v12825_v19  ;;  %17719 = vst [vmem:[#allocation32_spill] sm:$0xff] %v12831_v1  ;;  %v17724_v19 = vsub.f32 %v17723_v6, %v12448_v20  ;;  %v17727_v1 = vsub.f32 %v17726_v52, %v12448_v20 }
 0x602   :  { %v12843_v3 = vmul.f32 %v12601_v29, %v17722_v8  ;;  %v17730_v8 = vsub.f32 %v17660_v11, %v12448_v20  ;;  %v12885_v11 = vmul.f32 %v12601_v29, %v17735_v12  ;;  %v17740_v12 = vsub.f32 %v11717_v7, %v12448_v20 }
 0x603   :  { %v12849_v14 = vmul.f32 %v12601_v29, %v17724_v19  ;;  %v12855_v47 = vmul.f32 %v12601_v29, %v17727_v1  ;;  %v17731_v19 = vld [vmem:[#allocation33_spill] sm:$0xff] }
 0x604   :  { %v12867_v6 = vmul.f32 %v12601_v29, %v17730_v8  ;;  %v17733_v1 = vld [vmem:[#allocation17_spill] sm:$0xff]  ;;  %v17736_v8 = vsub.f32 %v17664_v2, %v12448_v20  ;;  %v12909_v2 = vmul.f32 %v12601_v29, %v17740_v12  ;;  %v17745_v12 = vsub.f32 %v11729_v15, %v12448_v20 }
 0x605   :  { %17725 = vst [vmem:[#allocation43_spill] sm:$0xff] %v12849_v14  ;;  %17728 = vst [vmem:[#allocation46_spill] sm:$0xff] %v12855_v47  ;;  %v17732_v14 = vsub.f32 %v17731_v19, %v12448_v20  ;;  %v17734_v47 = vsub.f32 %v17733_v1, %v12448_v20  ;;  %v17749_v15 = vsub.f32 %v11738_v9, %v12448_v20 }
 0x606   :  { %v12891_v19 = vmul.f32 %v12601_v29, %v17736_v8  ;;  %v17741_v8 = vsub.f32 %v11720_v55, %v12448_v20  ;;  %v12933_v55 = vmul.f32 %v12601_v29, %v17745_v12 }
 0x607   :  { %v12873_v52 = vmul.f32 %v12601_v29, %v17732_v14  ;;  %v12879_v59 = vmul.f32 %v12601_v29, %v17734_v47  ;;  %v17737_v14 = vsub.f32 %v11711_v23, %v12448_v20  ;;  %v17739_v47 = vsub.f32 %v11714_v30, %v12448_v20 }
 0x608   :  { %v12915_v23 = vmul.f32 %v12601_v29, %v17741_v8  ;;  %v17746_v8 = vsub.f32 %v11732_v18, %v12448_v20  ;;  %v12954_v12 = vmul.f32 %v12601_v29, %v17749_v15  ;;  %v17750_v18 = vsub.f32 %v11741_v17, %v12448_v20 }
 0x609   :  { %v12897_v1 = vmul.f32 %v12601_v29, %v17737_v14  ;;  %v12903_v37 = vmul.f32 %v12601_v29, %v17739_v47  ;;  %v17742_v14 = vld [vmem:[#allocation25_spill] sm:$0xff]  ;;  %v17744_v47 = vsub.f32 %v11726_v57, %v12448_v20  ;;  %v17753_v15 = vsub.f32 %v11750_v22, %v12448_v20 }
 0x60b   :  { %17738 = vst [vmem:[#allocation35_spill] sm:$0xff] %v12897_v1  ;;  %v17743_v1 = vsub.f32 %v17742_v14, %v12448_v20  ;;  %v12927_v7 = vmul.f32 %v12601_v29, %v17744_v47  ;;  %v12939_v14 = vmul.f32 %v12601_v29, %v17746_v8  ;;  %v9804_v47 = vld [vmem:[%s16857_s4 + $0x98] sm:$0xff]   ;;  %v12960_v8 = vmul.f32 %v12601_v29, %v17750_v18 }
 0x60c   :  { %v12978_v17 = vmul.f32 %v12601_v29, %v17753_v15  ;;  %v17754_v18 = vsub.f32 %v11753_v16, %v12448_v20  ;;  %6572 = vmatpush1.bf16.msra.mxu1 %v9804_v47  ;;  %v9805_v16 = vld [vmem:[%s16857_s4 + $0xa0] sm:$0xff]   ;;  %v17757_v15 = vsub.f32 %v11762_v33, %v12448_v20  ;;  %v13019_v47 = vadd.f32 %v12614_v60, %v12638_v0 }
 0x60d   :  { %v12921_v30 = vmul.f32 %v12601_v29, %v17743_v1  ;;  %v17747_v1 = vsub.f32 %v11735_v58, %v12448_v20  ;;  %v17751_v58 = vsub.f32 %v11744_v49, %v12448_v20  ;;  %v13024_v33 = vadd.f32 %v12614_v60, %v12644_v26 }
 0x60e   :  { %v12984_v49 = vmul.f32 %v12601_v29, %v17754_v18  ;;  %v13005_v18 = vmul.f32 %v12601_v29, %v17757_v15  ;;  %v13040_v0 = vadd.f32 %v12614_v60, %v12668_v32  ;;  %v13048_v26 = vadd.f32 %v12614_v60, %v12681_v54  ;;  %v17765_v15 = vld [vmem:[#allocation28_spill] sm:$0xff] }
 0x60f   :  { %v12945_v57 = vmul.f32 %v12601_v29, %v17747_v1  ;;  %v12966_v1 = vmul.f32 %v12601_v29, %v17751_v58  ;;  %v17755_v58 = vsub.f32 %v11756_v48, %v12448_v20  ;;  %v17758_v48 = vsub.f32 %v11765_v27, %v12448_v20 }
 0x610   :  { %v13028_v27 = vadd.f32 %v12614_v60, %v12650_v46  ;;  %v13052_v46 = vadd.f32 %v12614_v60, %v12687_v35  ;;  %v13064_v32 = vadd.f32 %v12614_v60, %v12705_v50  ;;  %v13072_v54 = vadd.f32 %v12614_v60, %v12717_v21 }
 0x611   :  { %17748 = vst [vmem:[#allocation47_spill] sm:$0xff] %v12945_v57  ;;  %v17752_v57 = vsub.f32 %v11747_v10, %v12448_v20  ;;  %v12990_v10 = vmul.f32 %v12601_v29, %v17755_v58  ;;  %v13011_v58 = vmul.f32 %v12601_v29, %v17758_v48  ;;  %v13076_v35 = vadd.f32 %v12614_v60, %v12723_v40 }
 0x612   :  { %v13089_v50 = vadd.f32 %v12614_v60, %v12741_v44  ;;  %v13097_v21 = vadd.f32 %v12614_v60, %v12753_v31  ;;  %v13101_v40 = vadd.f32 %v12614_v60, %v12759_v28  ;;  %v13113_v44 = vadd.f32 %v12614_v60, %v12777_v39  ;;  %v9806_v31 = vld [vmem:[%s16857_s4 + $0xa8] sm:$0xff]  }
 0x613   :  { %v12972_v9 = vmul.f32 %v12601_v29, %v17752_v57  ;;  %v17756_v57 = vsub.f32 %v11759_v43, %v12448_v20  ;;  %v13015_v43 = vadd.f32 %v12614_v60, %v12632_v56  ;;  %v13032_v20 = vadd.f32 %v12614_v60, %v12656_v45 }
 0x614   :  { %v13036_v56 = vadd.f32 %v12614_v60, %v12662_v4  ;;  %v13056_v45 = vadd.f32 %v12614_v60, %v12693_v38  ;;  %v13060_v4 = vadd.f32 %v12614_v60, %v12699_v25  ;;  %v13080_v38 = vadd.f32 %v12614_v60, %v12729_v41 }
 0x615   :  { %v12996_v22 = vmul.f32 %v12601_v29, %v17756_v57  ;;  %v17759_v57 = vmov 0   ;;  %v13044_v29 = vadd.f32 %v12614_v60, %v12675_v24  ;;  %v13068_v24 = vadd.f32 %v12614_v60, %v12711_v34 }
 0x616   :  { %6573 = vmatprep.subr.bf16.mxu1 %v17759_v57  ;;  %v13084_v25 = vadd.f32 %v12614_v60, %v12735_v63  ;;  %v13093_v34 = vadd.f32 %v12614_v60, %v12747_v36  ;;  %v13105_v41 = vadd.f32 %v12614_v60, %v12765_v5  ;;  %v13109_v63 = vadd.f32 %v12614_v60, %v12771_v51  ;;  %v17762_v5 = vld [vmem:[#allocation24_spill] sm:$0xff] }
 0x617   :  { %6574 = vmatpush1.bf16.msra.mxu1 %v9805_v16  ;;  %v13117_v36 = vadd.f32 %v12614_v60, %v12783_v42  ;;  %v13124_v28 = vadd.f32 %v12614_v60, %v12789_v13  ;;  %v13128_v51 = vadd.f32 %v12614_v60, %v17762_v5  ;;  %v17764_v16 = vld [vmem:[#allocation23_spill] sm:$0xff]  ;;  %v13136_v42 = vadd.f32 %v12614_v60, %v17765_v15 }
 0x618   :  { %6575 = vmatprep.subr.bf16.mxu1 %v17759_v57  ;;  %v13132_v39 = vadd.f32 %v12614_v60, %v17764_v16  ;;  %v13140_v48 = vadd.f32 %v12614_v60, %v12813_v62  ;;  %v13156_v15 = vadd.f32 %v12614_v60, %v12837_v53  ;;  %v13160_v62 = vadd.f32 %v12614_v60, %v12843_v3 }
 0x619   :  { %17760 = vst [vmem:[#allocation56_spill] sm:$0xff] %v13117_v36  ;;  %17761 = vst [vmem:[#allocation52_spill] sm:$0xff] %v13124_v28  ;;  %v17767_v36 = vld [vmem:[#allocation27_spill] sm:$0xff]  ;;  %v17769_v28 = vld [vmem:[#allocation29_spill] sm:$0xff]  ;;  %v13177_v53 = vadd.f32 %v12614_v60, %v12867_v6  ;;  %v13181_v3 = vadd.f32 %v12614_v60, %v12873_v52  ;;  %v13201_v52 = vadd.f32 %v12614_v60, %v12903_v37 }
 0x61a   :  { %17763 = vst [vmem:[#allocation54_spill] sm:$0xff] %v13128_v51  ;;  %17766 = vst [vmem:[#allocation59_spill] sm:$0xff] %v13140_v48  ;;  %v13144_v13 = vadd.f32 %v12614_v60, %v17767_v36  ;;  %v13148_v5 = vadd.f32 %v12614_v60, %v17769_v28  ;;  %v17770_v51 = vld [vmem:[#allocation32_spill] sm:$0xff]  ;;  %v17771_v48 = vld [vmem:[#allocation43_spill] sm:$0xff]  ;;  %v13221_v37 = vadd.f32 %v12614_v60, %v12933_v55 }
 0x61b   :  { %v13152_v16 = vadd.f32 %v12614_v60, %v17770_v51  ;;  %6576 = vmatpush1.bf16.msra.mxu1 %v9806_v31  ;;  %v13164_v36 = vadd.f32 %v12614_v60, %v17771_v48  ;;  %v13173_v31 = vadd.f32 %v12614_v60, %v12861_v61  ;;  %v13185_v51 = vadd.f32 %v12614_v60, %v12879_v59 }
 0x61c   :  { %17768 = vst [vmem:[#allocation58_spill] sm:$0xff] %v13144_v13  ;;  %v17772_v13 = vld [vmem:[#allocation46_spill] sm:$0xff]  ;;  %6577 = vmatprep.subr.bf16.mxu1 %v17759_v57  ;;  %v13189_v48 = vadd.f32 %v12614_v60, %v12885_v11  ;;  %v13193_v61 = vadd.f32 %v12614_v60, %v12891_v19  ;;  %v13205_v59 = vadd.f32 %v12614_v60, %v12909_v2 }
 0x61d   :  { %v13168_v28 = vadd.f32 %v12614_v60, %v17772_v13  ;;  %v17773_v13 = vld [vmem:[#allocation35_spill] sm:$0xff]  ;;  %v13209_v11 = vadd.f32 %v12614_v60, %v12915_v23  ;;  %v13213_v19 = vadd.f32 %v12614_v60, %v12921_v30  ;;  %v13225_v2 = vadd.f32 %v12614_v60, %v12939_v14 }
 0x61e   :  { %v13197_v6 = vadd.f32 %v12614_v60, %v17773_v13  ;;  %17774 = vst [vmem:[#allocation15_spill] sm:$0xff] %v13205_v59  ;;  %v13217_v13 = vadd.f32 %v12614_v60, %v12927_v7  ;;  %v17775_v59 = vld [vmem:[#allocation47_spill] sm:$0xff]  ;;  %v13233_v30 = vadd.f32 %v12614_v60, %v12954_v12  ;;  %v13237_v7 = vadd.f32 %v12614_v60, %v12960_v8 }
 0x61f   :  { %v13229_v23 = vadd.f32 %v12614_v60, %v17775_v59  ;;  %v13241_v55 = vadd.f32 %v12614_v60, %v12966_v1  ;;  %v13245_v14 = vadd.f32 %v12614_v60, %v12972_v9  ;;  %v13249_v59 = vadd.f32 %v12614_v60, %v12978_v17 }
 0x620   :  { %v13253_v12 = vadd.f32 %v12614_v60, %v12984_v49  ;;  %v13257_v8 = vadd.f32 %v12614_v60, %v12990_v10  ;;  %v13261_v1 = vadd.f32 %v12614_v60, %v12996_v22  ;;  %v13265_v9 = vadd.f32 %v12614_v60, %v13005_v18 }
 0x621   :  { %17776 = vst [vmem:[#allocation16_spill] sm:$0xff] %v13249_v59  ;;  %v13269_v17 = vadd.f32 %v12614_v60, %v13011_v58  ;;  %v3639_v59 = vmax.f32 %v13015_v43, 0.0  ;;  %v3640_v49 = vmax.f32 %v13019_v47, 0.0  ;;  %v3642_v10 = vmax.f32 %v13028_v27, 0.0 }
 0x622   :  { %17777 = vst [vmem:[#allocation20_spill] sm:$0xff] %v13253_v12  ;;  %17778 = vst [vmem:[#allocation30_spill] sm:$0xff] %v13257_v8  ;;  %v3641_v12 = vmax.f32 %v13024_v33, 0.0  ;;  %v3643_v8 = vmax.f32 %v13032_v20, 0.0  ;;  %v3644_v22 = vmax.f32 %v13036_v56, 0.0  ;;  %v3646_v18 = vmax.f32 %v13044_v29, 0.0 }
 0x623   :  { %17779 = vst [vmem:[#allocation69_spill] sm:$0xff] %v13261_v1  ;;  %17780 = vst [vmem:[#allocation60_spill] sm:$0xff] %v13265_v9  ;;  %v3645_v1 = vmax.f32 %v13040_v0, 0.0  ;;  %v3647_v9 = vmax.f32 %v13048_v26, 0.0  ;;  %v3648_v60 = vmax.f32 %v13052_v46, 0.0  ;;  %v3649_v58 = vmax.f32 %v13056_v45, 0.0 }
 0x624   :  { %4772 = vst [vmem:[#allocation3 + $0x19] sm:$0xff] %v3639_v59  ;;  %4773 = vst [vmem:[#allocation3 + $0x21] sm:$0xff] %v3640_v49  ;;  %v3650_v43 = vmax.f32 %v13060_v4, 0.0  ;;  %v3651_v47 = vmax.f32 %v13064_v32, 0.0  ;;  %v3652_v33 = vmax.f32 %v13068_v24, 0.0  ;;  %v3653_v27 = vmax.f32 %v13072_v54, 0.0 }
 0x625   :  { %4774 = vst [vmem:[#allocation3 + $0x31] sm:$0xff] %v3641_v12  ;;  %4775 = vst [vmem:[#allocation3 + $0x39] sm:$0xff] %v3642_v10  ;;  %v3654_v20 = vmax.f32 %v13076_v35, 0.0  ;;  %v3655_v56 = vmax.f32 %v13080_v38, 0.0  ;;  %v3656_v0 = vmax.f32 %v13084_v25, 0.0  ;;  %v3657_v29 = vmax.f32 %v13089_v50, 0.0 }
 0x626   :  { %4776 = vst [vmem:[#allocation3 + $0x49] sm:$0xff] %v3643_v8  ;;  %4777 = vst [vmem:[#allocation3 + $0x51] sm:$0xff] %v3644_v22  ;;  %v9807_v26 = vld [vmem:[%s16857_s4 + $0xb0] sm:$0xff]   ;;  %v3658_v46 = vmax.f32 %v13093_v34, 0.0  ;;  %v3659_v45 = vmax.f32 %v13097_v21, 0.0  ;;  %v3661_v4 = vmax.f32 %v13101_v40, 0.0 }
 0x627   :  { %4778 = vst [vmem:[#allocation3 + $0x61] sm:$0xff] %v3645_v1  ;;  %4779 = vst [vmem:[#allocation3 + $0x69] sm:$0xff] %v3646_v18  ;;  %v3662_v32 = vmax.f32 %v13105_v41, 0.0  ;;  %v3663_v24 = vmax.f32 %v13109_v63, 0.0  ;;  %v3664_v54 = vmax.f32 %v13113_v44, 0.0  ;;  %v17781_v35 = vld [vmem:[#allocation56_spill] sm:$0xff]  ;;  %6578 = vmatpush1.bf16.msra.mxu1 %v9807_v26 }
 0x628   :  { %4780 = vst [vmem:[#allocation3 + $0x79] sm:$0xff] %v3647_v9  ;;  %4781 = vst [vmem:[#allocation3 + $0x81] sm:$0xff] %v3648_v60  ;;  %v3665_v38 = vmax.f32 %v17781_v35, 0.0  ;;  %v17782_v25 = vld [vmem:[#allocation52_spill] sm:$0xff]  ;;  %v17783_v34 = vld [vmem:[#allocation54_spill] sm:$0xff]  ;;  %v3668_v40 = vmax.f32 %v13132_v39, 0.0  ;;  %6579 = vmatprep.subr.bf16.mxu1 %v17759_v57 }
 0x629   :  { %4782 = vst [vmem:[#allocation3 + $0x91] sm:$0xff] %v3649_v58  ;;  %4783 = vst [vmem:[#allocation3 + $0x99] sm:$0xff] %v3650_v43  ;;  %v3666_v50 = vmax.f32 %v17782_v25, 0.0  ;;  %v3667_v21 = vmax.f32 %v17783_v34, 0.0  ;;  %v3669_v41 = vmax.f32 %v13136_v42, 0.0  ;;  %v17784_v59 = vld [vmem:[#allocation59_spill] sm:$0xff] }
 0x62a   :  { %4784 = vst [vmem:[#allocation3 + $0xa9] sm:$0xff] %v3651_v47  ;;  %4785 = vst [vmem:[#allocation3 + $0xb1] sm:$0xff] %v3652_v33  ;;  %v3670_v12 = vmax.f32 %v17784_v59, 0.0  ;;  %v17785_v63 = vld [vmem:[#allocation58_spill] sm:$0xff]  ;;  %v3672_v8 = vmax.f32 %v13148_v5, 0.0  ;;  %v3673_v1 = vmax.f32 %v13152_v16, 0.0 }
 0x62b   :  { %4786 = vst [vmem:[#allocation3 + $0xc1] sm:$0xff] %v3653_v27  ;;  %4787 = vst [vmem:[#allocation3 + $0xc9] sm:$0xff] %v3654_v20  ;;  %v3671_v44 = vmax.f32 %v17785_v63, 0.0  ;;  %v3674_v9 = vmax.f32 %v13156_v15, 0.0  ;;  %v3675_v39 = vmax.f32 %v13160_v62, 0.0  ;;  %v3676_v42 = vmax.f32 %v13164_v36, 0.0 }
 0x62c   :  { %4788 = vst [vmem:[#allocation3 + $0xd9] sm:$0xff] %v3655_v56  ;;  %4789 = vst [vmem:[#allocation3 + $0xe1] sm:$0xff] %v3656_v0  ;;  %v3677_v49 = vmax.f32 %v13168_v28, 0.0  ;;  %v3678_v10 = vmax.f32 %v13173_v31, 0.0  ;;  %v3679_v5 = vmax.f32 %v13177_v53, 0.0  ;;  %v3680_v16 = vmax.f32 %v13181_v3, 0.0 }
 0x62d   :  { %4790 = vst [vmem:[#allocation3 + $0xf1] sm:$0xff] %v3657_v29  ;;  %4791 = vst [vmem:[#allocation3 + $0xf9] sm:$0xff] %v3658_v46  ;;  %v3681_v15 = vmax.f32 %v13185_v51, 0.0  ;;  %v3682_v22 = vmax.f32 %v13189_v48, 0.0  ;;  %v3683_v62 = vmax.f32 %v13193_v61, 0.0  ;;  %v3684_v36 = vmax.f32 %v13197_v6, 0.0 }
 0x62e   :  { %4792 = vst [vmem:[#allocation3 + $0x109] sm:$0xff] %v3659_v45  ;;  %4794 = vst [vmem:[#allocation3 + $0x121] sm:$0xff] %v3661_v4  ;;  %v3685_v28 = vmax.f32 %v13201_v52, 0.0  ;;  %v17786_v31 = vld [vmem:[#allocation15_spill] sm:$0xff]  ;;  %v4842_v53 = vld [vmem:[#allocation3 + $0x30] sm:$0xff]  ;;  %v3687_v60 = vmax.f32 %v13209_v11, 0.0 }
 0x62f   :  { %4795 = vst [vmem:[#allocation3 + $0x129] sm:$0xff] %v3662_v32  ;;  %4796 = vst [vmem:[#allocation3 + $0x139] sm:$0xff] %v3663_v24  ;;  %v3686_v18 = vmax.f32 %v17786_v31, 0.0  ;;  %v4843_v3 = vld [vmem:[#allocation3 + $0x38] sm:$0xff]  ;;  %v4844_v51 = vld [vmem:[#allocation3 + $0x40] sm:$0x3] }
 0x630   :  { %4797 = vst [vmem:[#allocation3 + $0x141] sm:$0xff] %v3664_v54  ;;  %4798 = vst [vmem:[#allocation3 + $0x151] sm:$0xff] %v3665_v38  ;;  %v4845_v48 = vld [vmem:[#allocation3 + $0x48] sm:$0xff]  ;;  %v3688_v58 = vmax.f32 %v13213_v19, 0.0  ;;  %v3689_v61 = vmax.f32 %v13217_v13, 0.0  ;;  %v3690_v6 = vmax.f32 %v13221_v37, 0.0  ;;  %v13338_v24 = vpack.c.bf16 %v4843_v3, %v4842_v53 }
 0x631   :  { %4799 = vst [vmem:[#allocation3 + $0x159] sm:$0xff] %v3666_v50  ;;  %4800 = vst [vmem:[#allocation3 + $0x169] sm:$0xff] %v3667_v21  ;;  %v4846_v52 = vld [vmem:[#allocation3 + $0x50] sm:$0xff]  ;;  %v4848_v43 = vld [vmem:[#allocation3 + $0x60] sm:$0xff]  ;;  %v3691_v33 = vmax.f32 %v13225_v2, 0.0  ;;  %v3692_v27 = vmax.f32 %v13229_v23, 0.0  ;;  %v4978_v54 = vpack.c.bf16 %v4844_v51, %v4844_v51 }
 0x632   :  { %4801 = vst [vmem:[#allocation3 + $0x171] sm:$0xff] %v3668_v40  ;;  %4802 = vst [vmem:[#allocation3 + $0x181] sm:$0xff] %v3669_v41  ;;  %v4839_v47 = vld [vmem:[#allocation3 + $0x18] sm:$0xff]  ;;  %v3693_v20 = vmax.f32 %v13233_v30, 0.0  ;;  %v3694_v11 = vmax.f32 %v13237_v7, 0.0  ;;  %v3695_v13 = vmax.f32 %v13241_v55, 0.0  ;;  %v13340_v35 = vpack.c.bf16 %v4846_v52, %v4845_v48 }
 0x633   :  { %4803 = vst [vmem:[#allocation3 + $0x189] sm:$0xff] %v3670_v12  ;;  %4804 = vst [vmem:[#allocation3 + $0x1c9] sm:$0xff] %v3671_v44  ;;  %v4847_v19 = vld [vmem:[#allocation3 + $0x58] sm:$0x3]  ;;  %v3696_v37 = vmax.f32 %v13245_v14, 0.0  ;;  %v17787_v56 = vld [vmem:[#allocation16_spill] sm:$0xff] }
 0x634   :  { %4805 = vst [vmem:[#allocation3 + $0x1d1] sm:$0xff] %v3672_v8  ;;  %4806 = vst [vmem:[#allocation3 + $0x1e1] sm:$0xff] %v3673_v1  ;;  %v3697_v0 = vmax.f32 %v17787_v56, 0.0  ;;  %v17788_v29 = vld [vmem:[#allocation20_spill] sm:$0xff]  ;;  %v4849_v2 = vld [vmem:[#allocation3 + $0x68] sm:$0xff]  ;;  %v3702_v55 = vmax.f32 %v13269_v17, 0.0  ;;  %v13342_v38 = vpack.c.bf16 %v4847_v19, %v4847_v19 }
 0x635   :  { %4807 = vst [vmem:[#allocation3 + $0x1e9] sm:$0xff] %v3674_v9  ;;  %4808 = vst [vmem:[#allocation3 + $0x1f9] sm:$0xff] %v3675_v39  ;;  %v3698_v26 = vmax.f32 %v17788_v29, 0.0  ;;  %v4840_v23 = vld [vmem:[#allocation3 + $0x20] sm:$0xff]  ;;  %v17789_v30 = vld [vmem:[#allocation30_spill] sm:$0xff]  ;;  %v13344_v17 = vpack.c.bf16 %v4849_v2, %v4848_v43  ;;  %v5502_v59 = vrot.slane %v13338_v24, 1 }
 0x636   :  { %4809 = vst [vmem:[#allocation3 + $0x201] sm:$0xff] %v3676_v42  ;;  %4810 = vst [vmem:[#allocation3 + $0x211] sm:$0xff] %v3677_v49  ;;  %v3699_v7 = vmax.f32 %v17789_v30, 0.0  ;;  %v17790_v46 = vld [vmem:[#allocation69_spill] sm:$0xff]  ;;  %v17791_v4 = vld [vmem:[#allocation60_spill] sm:$0xff]  ;;  %v13348_v34 = vpack.c.bf16 %v4840_v23, %v4839_v47  ;;  %v5503_v12 = vrot.slane %v4978_v54, 1 }
 0x637   :  { %4811 = vst [vmem:[#allocation3 + $0x219] sm:$0xff] %v3678_v10  ;;  %4812 = vst [vmem:[#allocation3 + $0x229] sm:$0xff] %v3679_v5  ;;  %v3700_v45 = vmax.f32 %v17790_v46, 0.0  ;;  %v3701_v32 = vmax.f32 %v17791_v4, 0.0  ;;  %v4850_v14 = vld [vmem:[#allocation3 + $0x70] sm:$0x3] }
 0x638   :  { %4813 = vst [vmem:[#allocation3 + $0x231] sm:$0xff] %v3680_v16  ;;  %4814 = vst [vmem:[#allocation3 + $0x241] sm:$0xff] %v3681_v15  ;;  %v4841_v25 = vld [vmem:[#allocation3 + $0x28] sm:$0x3]  ;;  %v13346_v50 = vpack.c.bf16 %v4850_v14, %v4850_v14  ;;  %v4851_v40 = vld [vmem:[#allocation3 + $0x78] sm:$0xff]  ;;  %v5505_v63 = vrot.slane %v13340_v35, 1  ;;  %v13360_v5 = vsel %vm998_vm1, %v5502_v59, %v5503_v12 }
 0x639   :  { %4815 = vst [vmem:[#allocation3 + $0x249] sm:$0xff] %v3682_v22  ;;  %4816 = vst [vmem:[#allocation3 + $0x259] sm:$0xff] %v3683_v62  ;;  %v13350_v21 = vpack.c.bf16 %v4841_v25, %v4841_v25  ;;  %v4852_v41 = vld [vmem:[#allocation3 + $0x80] sm:$0xff]  ;;  %v5506_v44 = vrot.slane %v13342_v38, 1  ;;  %v4853_v8 = vld [vmem:[#allocation3 + $0x88] sm:$0x3]  ;;  %8815 = vmatprep.mubr.bf16.mxu0 %v13360_v5 }
 0x63a   :  { %4817 = vst [vmem:[#allocation3 + $0x261] sm:$0xff] %v3684_v36  ;;  %4818 = vst [vmem:[#allocation3 + $0x271] sm:$0xff] %v3685_v28  ;;  %v5508_v1 = vrot.slane %v13344_v17, 1  ;;  %v5509_v9 = vrot.slane %v13346_v50, 1  ;;  %v5029_v39 = vshrl.u32 %v13348_v34, 16  ;;  %v5031_v42 = vshll.u32 %v13348_v34, 16 }
 0x63b   :  { %4819 = vst [vmem:[#allocation3 + $0x279] sm:$0xff] %v3686_v18  ;;  %4820 = vst [vmem:[#allocation3 + $0x289] sm:$0xff] %v3687_v60  ;;  %v4854_v49 = vld [vmem:[#allocation3 + $0x90] sm:$0xff]  ;;  %v4855_v10 = vld [vmem:[#allocation3 + $0x98] sm:$0xff]  ;;  %v13363_v16 = vsel %vm998_vm1, %v5505_v63, %v5506_v44  ;;  %v5036_v15 = vshll.u32 %v13350_v21, 16  ;;  %v5041_v22 = vshrl.u32 %v13338_v24, 16  ;;  %v13373_v3 = vpack.c.bf16 %v4852_v41, %v4851_v40 }
 0x63c   :  { %4821 = vst [vmem:[#allocation3 + $0x291] sm:$0xff] %v3688_v58  ;;  %4822 = vst [vmem:[#allocation3 + $0x2a1] sm:$0xff] %v3689_v61  ;;  %v4856_v62 = vld [vmem:[#allocation3 + $0xa0] sm:$0x3]  ;;  %v13369_v36 = vsel %vm998_vm1, %v5508_v1, %v5509_v9  ;;  %v5033_v28 = vrot.slane %v5031_v42, 1  ;;  %v5043_v31 = vshll.u32 %v13338_v24, 16  ;;  %8816 = vmatmul.mubr.bf16.vlgmr.msra.gmra.mrb[152].mxu0 %v13363_v16  ;;  %v13375_v51 = vpack.c.bf16 %v4853_v8, %v4853_v8 }
 0x63d   :  { %4823 = vst [vmem:[#allocation3 + $0x2a9] sm:$0xff] %v3690_v6  ;;  %4824 = vst [vmem:[#allocation3 + $0x2b9] sm:$0xff] %v3691_v33  ;;  %v5048_v18 = vshll.u32 %v4978_v54, 16  ;;  %v5038_v53 = vrot.slane %v5036_v15, 1  ;;  %v13377_v48 = vpack.c.bf16 %v4855_v10, %v4854_v49  ;;  %8819 = vmatprep.mubr.bf16.mxu0 %v13369_v36  ;;  %v13380_v6 = vpack.c.bf16 %v4856_v62, %v4856_v62  ;;  %v4857_v52 = vld [vmem:[#allocation3 + $0xa8] sm:$0xff]  ;;  %v4858_v43 = vld [vmem:[#allocation3 + $0xb0] sm:$0xff] }
 0x63e   :  { %4825 = vst [vmem:[#allocation3 + $0x2c1] sm:$0xff] %v3692_v27  ;;  %4826 = vst [vmem:[#allocation3 + $0x2d1] sm:$0xff] %v3693_v20  ;;  %v5034_v60 = vor.u32 %v5033_v28, %v5029_v39  ;;  %v5045_v58 = vrot.slane %v5043_v31, 1  ;;  %v4859_v47 = vld [vmem:[#allocation3 + $0xb8] sm:$0x3]  ;;  %v5511_v33 = vrot.slane %v13373_v3, 1  ;;  %v13396_v30 = vpack.c.bf16 %v4858_v43, %v4857_v52 }
 0x63f   :  { %4827 = vst [vmem:[#allocation3 + $0x2d9] sm:$0xff] %v3694_v11  ;;  %4828 = vst [vmem:[#allocation3 + $0x2e9] sm:$0xff] %v3695_v13  ;;  %v5050_v61 = vrot.slane %v5048_v18, 1  ;;  %v5512_v27 = vrot.slane %v13375_v51, 1  ;;  %v5514_v20 = vrot.slane %v13377_v48, 1  ;;  %v5053_v11 = vshrl.u32 %v13340_v35, 16 }
 0x640   :  { %4829 = vst [vmem:[#allocation3 + $0x2f1] sm:$0xff] %v3696_v37  ;;  %4830 = vst [vmem:[#allocation3 + $0x301] sm:$0xff] %v3697_v0  ;;  %v4860_v19 = vld [vmem:[#allocation3 + $0xc0] sm:$0xff]  ;;  %v4861_v13 = vld [vmem:[#allocation3 + $0xc8] sm:$0xff]  ;;  %v13387_v37 = vsel %vm517_vm0, %v5034_v60, %v5038_v53  ;;  %v5046_v56 = vor.u32 %v5045_v58, %v5041_v22  ;;  %v5515_v0 = vrot.slane %v13380_v6, 1  ;;  %v5055_v29 = vshll.u32 %v13340_v35, 16 }
 0x641   :  { %4831 = vst [vmem:[#allocation3 + $0x309] sm:$0xff] %v3698_v26  ;;  %17792 = vst [vmem:[#allocation4_spill] sm:$0xff] %v13338_v24  ;;  %v4862_v26 = vld [vmem:[#allocation3 + $0xd0] sm:$0x3]  ;;  %6316 = vmatprep.mubr.bf16.mxu1 %v13387_v37  ;;  %v13393_v2 = vsel %vm998_vm1, %v5511_v33, %v5512_v27  ;;  %v5060_v23 = vshll.u32 %v13342_v38, 16  ;;  %v4864_v14 = vld [vmem:[#allocation3 + $0xe0] sm:$0xff] }
 0x642   :  { %17793 = vst [vmem:[#allocation5_spill] sm:$0xff] %v13340_v35  ;;  %4832 = vst [vmem:[#allocation3 + $0x319] sm:$0xff] %v3699_v7  ;;  %v13398_v7 = vpack.c.bf16 %v4859_v47, %v4859_v47  ;;  %6317 = vmatmul.mubr.bf16.gmra.mrb[108].mxu1 %v13348_v34  ;;  %v13402_v46 = vsel %vm517_vm0, %v5046_v56, %v5050_v61  ;;  %v5057_v4 = vrot.slane %v5055_v29, 1  ;;  %v4865_v54 = vld [vmem:[#allocation3 + $0xe8] sm:$0x3]  ;;  %v5517_v25 = vrot.slane %v13396_v30, 1 }
 0x643   :  { %4833 = vst [vmem:[#allocation3 + $0x321] sm:$0xff] %v3700_v45  ;;  %4834 = vst [vmem:[#allocation3 + $0x331] sm:$0xff] %v3701_v32  ;;  %v13405_v45 = vsel %vm998_vm1, %v5514_v20, %v5515_v0  ;;  %v13407_v32 = vpack.c.bf16 %v4861_v13, %v4860_v19  ;;  %6324 = vmatprep.mubr.bf16.mxu1 %v13402_v46  ;;  %v5062_v38 = vrot.slane %v5060_v23, 1  ;;  %v4866_v59 = vld [vmem:[#allocation3 + $0xf0] sm:$0xff]  ;;  %v4867_v12 = vld [vmem:[#allocation3 + $0xf8] sm:$0xff]  ;;  %v5065_v8 = vshrl.u32 %v13344_v17, 16 }
 0x644   :  { %4835 = vst [vmem:[#allocation3 + $0x339] sm:$0xff] %v3702_v55  ;;  %17794 = vst [vmem:[#allocation6_spill] sm:$0xff] %v13344_v17  ;;  %v4863_v55 = vld [vmem:[#allocation3 + $0xd8] sm:$0xff]  ;;  %v5518_v40 = vrot.slane %v13398_v7, 1  ;;  %v13412_v41 = vpack.c.bf16 %v4862_v26, %v4862_v26  ;;  %v5058_v63 = vor.u32 %v5057_v4, %v5053_v11  ;;  %v5067_v1 = vshll.u32 %v13344_v17, 16  ;;  %8820 = vmatmul.mubr.bf16.gmra.mrb[156].mxu0 %v13393_v2  ;;  %v4869_v31 = vld [vmem:[#allocation3 + $0x108] sm:$0xff] }
 0x645   :  { %17795 = vst [vmem:[#allocation7_spill] sm:$0xff] %v13348_v34  ;;  %17796 = vst [vmem:[#allocation8_spill] sm:$0xff] %v13350_v21  ;;  %v5520_v44 = vrot.slane %v13407_v32, 1  ;;  %v4868_v9 = vld [vmem:[#allocation3 + $0x100] sm:$0x3]  ;;  %v5072_v49 = vshll.u32 %v13346_v50, 16  ;;  %v13423_v10 = vpack.c.bf16 %v4864_v14, %v4863_v55  ;;  %8823 = vmatprep.mubr.bf16.mxu0 %v13405_v45  ;;  %v13429_v62 = vpack.c.bf16 %v4865_v54, %v4865_v54 }
 0x646   :  { %17797 = vst [vmem:[#allocation9_spill] sm:$0xff] %v13360_v5  ;;  %17798 = vst [vmem:[#allocation10_spill] sm:$0xff] %v13363_v16  ;;  %v13419_v39 = vsel %vm998_vm1, %v5517_v25, %v5518_v40  ;;  %v5521_v42 = vrot.slane %v13412_v41, 1  ;;  %v13427_v15 = vsel %vm517_vm0, %v5058_v63, %v5062_v38  ;;  %v5069_v22 = vrot.slane %v5067_v1, 1  ;;  %v4870_v18 = vld [vmem:[#allocation3 + $0x110] sm:$0xff]  ;;  %v4872_v52 = vld [vmem:[#allocation3 + $0x120] sm:$0xff] }
 0x647   :  { %17799 = vst [vmem:[#allocation11_spill] sm:$0xff] %v13369_v36  ;;  %17800 = vst [vmem:[#allocation12_spill] sm:$0xff] %v13373_v3  ;;  %v13431_v28 = vpack.c.bf16 %v4867_v12, %v4866_v59  ;;  %v5074_v60 = vrot.slane %v5072_v49, 1  ;;  %v5523_v50 = vrot.slane %v13423_v10, 1  ;;  %v13437_v58 = vpack.c.bf16 %v4868_v9, %v4868_v9  ;;  %v4871_v61 = vld [vmem:[#allocation3 + $0x118] sm:$0x3] }
 0x648   :  { %17801 = vst [vmem:[#allocation13_spill] sm:$0xff] %v13377_v48  ;;  %17802 = vst [vmem:[#allocation14_spill] sm:$0xff] %v13387_v37  ;;  %v13434_v53 = vsel %vm998_vm1, %v5520_v44, %v5521_v42  ;;  %v4873_v43 = vld [vmem:[#allocation3 + $0x128] sm:$0xff]  ;;  %v5070_v47 = vor.u32 %v5069_v22, %v5065_v8  ;;  %v5524_v33 = vrot.slane %v13429_v62, 1  ;;  %v5077_v20 = vshrl.u32 %v13373_v3, 16  ;;  %v4875_v55 = vld [vmem:[#allocation3 + $0x138] sm:$0xff] }
 0x649   :  { %17803 = vst [vmem:[#allocation18_spill] sm:$0xff] %v13393_v2  ;;  %17804 = vst [vmem:[#allocation19_spill] sm:$0xff] %v13396_v30  ;;  %v5526_v27 = vrot.slane %v13431_v28, 1  ;;  %v5527_v11 = vrot.slane %v13437_v58, 1  ;;  %v5079_v19 = vshll.u32 %v13373_v3, 16  ;;  %v5084_v13 = vshll.u32 %v13375_v51, 16 }
 0x64a   :  { %17805 = vst [vmem:[#allocation22_spill] sm:$0xff] %v13402_v46  ;;  %17806 = vst [vmem:[#allocation33_spill] sm:$0xff] %v13405_v45  ;;  %v13445_v56 = vpack.c.bf16 %v4870_v18, %v4869_v31  ;;  %v4874_v0 = vld [vmem:[#allocation3 + $0x130] sm:$0x3]  ;;  %6325 = vmatmul.mubr.bf16.gmra.mrb[112].mxu1 %v13338_v24  ;;  %v13449_v29 = vsel %vm517_vm0, %v5070_v47, %v5074_v60  ;;  %v13452_v26 = vsel %vm998_vm1, %v5523_v50, %v5524_v33  ;;  %v4876_v14 = vld [vmem:[#allocation3 + $0x140] sm:$0xff] }
 0x64b   :  { %17807 = vst [vmem:[#allocation17_spill] sm:$0xff] %v13407_v32  ;;  %17808 = vst [vmem:[#allocation25_spill] sm:$0xff] %v13419_v39  ;;  %v13454_v23 = vpack.c.bf16 %v4871_v61, %v4871_v61  ;;  %v13456_v4 = vpack.c.bf16 %v4873_v43, %v4872_v52  ;;  %6332 = vmatprep.mubr.bf16.mxu1 %v13427_v15  ;;  %v13460_v51 = vsel %vm998_vm1, %v5526_v27, %v5527_v11  ;;  %v4877_v40 = vld [vmem:[#allocation3 + $0x148] sm:$0x3]  ;;  %v17825_v60 = vld [vmem:[#allocation108_spill] sm:$0xff] }
 0x64c   :  { %17809 = vst [vmem:[#allocation24_spill] sm:$0xff] %v13423_v10  ;;  %17810 = vst [vmem:[#allocation23_spill] sm:$0xff] %v13427_v15  ;;  %v5081_v54 = vrot.slane %v5079_v19, 1  ;;  %v5086_v38 = vrot.slane %v5084_v13, 1  ;;  %v5529_v25 = vrot.slane %v13445_v56, 1  ;;  %v13464_v12 = vpack.c.bf16 %v4874_v0, %v4874_v0  ;;  %8824 = vmatmul.mubr.bf16.gmra.mrb[160].mxu0 %v13419_v39  ;;  %v17824_v18 = vld [vmem:[#allocation21_spill] sm:$0xff] }
 0x64d   :  { %17811 = vst [vmem:[#allocation28_spill] sm:$0xff] %v13431_v28  ;;  %17812 = vst [vmem:[#allocation27_spill] sm:$0xff] %v13434_v53  ;;  %v5530_v59 = vrot.slane %v13454_v23, 1  ;;  %v5532_v63 = vrot.slane %v13456_v4, 1  ;;  %v5089_v44 = vshrl.u32 %v13377_v48, 16  ;;  %v5091_v1 = vshll.u32 %v13377_v48, 16  ;;  %8827 = vmatprep.mubr.bf16.mxu0 %v13434_v53 }
 0x64e   :  { %17813 = vst [vmem:[#allocation29_spill] sm:$0xff] %v13437_v58  ;;  %17814 = vst [vmem:[#allocation32_spill] sm:$0xff] %v13445_v56  ;;  %v5082_v8 = vor.u32 %v5081_v54, %v5077_v20  ;;  %v5096_v9 = vshll.u32 %v13380_v6, 16  ;;  %v13471_v42 = vpack.c.bf16 %v4876_v14, %v4875_v55  ;;  %v5533_v22 = vrot.slane %v13464_v12, 1  ;;  %v4878_v61 = vld [vmem:[#allocation3 + $0x150] sm:$0xff]  ;;  %v4879_v52 = vld [vmem:[#allocation3 + $0x158] sm:$0xff] }
 0x64f   :  { %17815 = vst [vmem:[#allocation43_spill] sm:$0xff] %v13449_v29  ;;  %17816 = vst [vmem:[#allocation46_spill] sm:$0xff] %v13452_v26  ;;  %v13475_v49 = vsel %vm998_vm1, %v5529_v25, %v5530_v59  ;;  %v13478_v31 = vpack.c.bf16 %v4877_v40, %v4877_v40  ;;  %v4312_v50 = vadd.f32 %v17825_v60, %v17824_v18  ;;  %v4880_v43 = vld [vmem:[#allocation3 + $0x160] sm:$0x3]  ;;  %v5093_v6 = vrot.slane %v5091_v1, 1  ;;  %v17828_v13 = vld [vmem:[#allocation111_spill] sm:$0xff] }
 0x650   :  { %17817 = vst [vmem:[#allocation35_spill] sm:$0xff] %v13454_v23  ;;  %17818 = vst [vmem:[#allocation47_spill] sm:$0xff] %v13456_v4  ;;  %v13483_v47 = vsel %vm517_vm0, %v5082_v8, %v5086_v38  ;;  %v5098_v33 = vrot.slane %v5096_v9, 1  ;;  %v5535_v27 = vrot.slane %v13471_v42, 1  ;;  %v13487_v20 = vsel %vm998_vm1, %v5532_v63, %v5533_v22  ;;  %v17829_v0 = vld [vmem:[#allocation26_spill] sm:$0xff]  ;;  %v4881_v40 = vld [vmem:[#allocation3 + $0x168] sm:$0xff] }
 0x651   :  { %17819 = vst [vmem:[#allocation56_spill] sm:$0xff] %v13460_v51  ;;  %17820 = vst [vmem:[#allocation52_spill] sm:$0xff] %v13464_v12  ;;  %v5536_v11 = vrot.slane %v13478_v31, 1  ;;  %v4313_v19 = vrot.slane %v4312_v50, 4  ;;  %v4444_v55 = vadd.f32 %v17829_v0, %v17828_v13  ;;  %v5094_v14 = vor.u32 %v5093_v6, %v5089_v44  ;;  %v4882_v59 = vld [vmem:[#allocation3 + $0x170] sm:$0xff]  ;;  %v17833_v1 = vld [vmem:[#allocation112_spill] sm:$0xff] }
 0x652   :  { %17821 = vst [vmem:[#allocation54_spill] sm:$0xff] %v13471_v42  ;;  %17822 = vst [vmem:[#allocation59_spill] sm:$0xff] %v13475_v49  ;;  %v13492_v54 = vpack.c.bf16 %v4879_v52, %v4878_v61  ;;  %v13494_v25 = vpack.c.bf16 %v4880_v43, %v4880_v43  ;;  %v5101_v38 = vshrl.u32 %v13396_v30, 16  ;;  %6333 = vmatmul.mubr.bf16.gmra.mrb[116].mxu1 %v13340_v35  ;;  %v5103_v22 = vshll.u32 %v13396_v30, 16  ;;  %v4883_v18 = vld [vmem:[#allocation3 + $0x178] sm:$0x3] }
 0x653   :  { %17823 = vst [vmem:[#allocation58_spill] sm:$0xff] %v13478_v31  ;;  %17826 = vst [vmem:[#allocation15_spill] sm:$0xff] %v13483_v47  ;;  %v13499_v63 = vsel %vm998_vm1, %v5535_v27, %v5536_v11  ;;  %v4314_v8 = vadd.f32 %v4313_v19, %v4312_v50  ;;  %v4445_v9 = vadd.f32 %v4444_v55, %v17833_v1  ;;  %v4884_v44 = vld [vmem:[#allocation3 + $0x180] sm:$0xff]  ;;  %v4885_v61 = vld [vmem:[#allocation3 + $0x188] sm:$0xff]  ;;  %6340 = vmatprep.mubr.bf16.mxu1 %v13449_v29 }
 0x654   :  { %17827 = vst [vmem:[#allocation16_spill] sm:$0xff] %v13487_v20  ;;  %17830 = vst [vmem:[#allocation20_spill] sm:$0xff] %v13492_v54  ;;  %v13505_v52 = vsel %vm517_vm0, %v5094_v14, %v5098_v33  ;;  %v5538_v43 = vrot.slane %v13492_v54, 1  ;;  %v5539_v6 = vrot.slane %v13494_v25, 1  ;;  %v5108_v27 = vshll.u32 %v13398_v7, 16  ;;  %v9808_v50 = vld [vmem:[%s16857_s4 + $0xb8] sm:$0xff]   ;;  %8828 = vmatmul.mubr.bf16.gmra.mrb[164].mxu0 %v13452_v26 }
 0x655   :  { %17831 = vst [vmem:[#allocation30_spill] sm:$0xff] %v13494_v25  ;;  %17832 = vst [vmem:[#allocation69_spill] sm:$0xff] %v13499_v63  ;;  %v4315_v11 = vrot.slane %v4314_v8, 2  ;;  %v4446_v19 = vrot.slane %v4445_v9, 4  ;;  %v5105_v13 = vrot.slane %v5103_v22, 1  ;;  %v13513_v0 = vpack.c.bf16 %v4882_v59, %v4881_v40  ;;  %6580 = vmatpush1.bf16.msra.mxu1 %v9808_v50  ;;  %8831 = vmatprep.mubr.bf16.mxu0 %v13460_v51  ;;  %v4897_v46 = vld [vmem:[#allocation3 + $0x1e8] sm:$0xff] }
 0x656   :  { %17834 = vst [vmem:[#allocation60_spill] sm:$0xff] %v13505_v52  ;;  %v4886_v55 = vld [vmem:[#allocation3 + $0x190] sm:$0x3]  ;;  %v13517_v33 = vsel %vm998_vm1, %v5538_v43, %v5539_v6  ;;  %v13519_v14 = vpack.c.bf16 %v4883_v18, %v4883_v18  ;;  %v13521_v1 = vpack.c.bf16 %v4885_v61, %v4884_v44  ;;  %6581 = vmatprep.subr.bf16.mxu1 %v17759_v57  ;;  %v4889_v18 = vld [vmem:[#allocation3 + $0x1a8] sm:$0x3]  ;;  %v9809_v44 = vld [vmem:[%s16857_s4 + $0xc0] sm:$0xff]  }
 0x657   :  { %17835 = vst [vmem:[#allocation21_spill] sm:$0xff] %v13513_v0  ;;  %17836 = vst [vmem:[#allocation111_spill] sm:$0xff] %v13517_v33  ;;  %v4316_v7 = vadd.f32 %v4315_v11, %v4314_v8  ;;  %v4447_v29 = vadd.f32 %v4446_v19, %v4445_v9  ;;  %v5106_v15 = vor.u32 %v5105_v13, %v5101_v38  ;;  %v5541_v40 = vrot.slane %v13513_v0, 1  ;;  %v9922_v19 = vld [vmem:[#allocation2] sm:$0xff]  ;;  %v4898_v26 = vld [vmem:[#allocation3 + $0x1f0] sm:$0x3] }
 0x658   :  { %17837 = vst [vmem:[#allocation26_spill] sm:$0xff] %v13519_v14  ;;  %17838 = vst [vmem:[#allocation112_spill] sm:$0xff] %v13521_v1  ;;  %v5542_v59 = vrot.slane %v13519_v14, 1  ;;  %v13527_v22 = vpack.c.bf16 %v4886_v55, %v4886_v55  ;;  %v5654_v43 = vrot.slane %v13521_v1, 1  ;;  %v5110_v8 = vrot.slane %v5108_v27, 1  ;;  %v4896_v55 = vld [vmem:[#allocation3 + $0x1e0] sm:$0xff] }
 0x659   :  { %v4317_v61 = vrot.slane %v4316_v7, 1  ;;  %v4448_v6 = vrot.slane %v4447_v29, 2  ;;  %v5115_v38 = vshll.u32 %v13407_v32, 16  ;;  %v5113_v50 = vshrl.u32 %v13407_v32, 16  ;;  %6582 = vmatpush1.bf16.msra.mxu1 %v9809_v44  ;;  %v17861_v53 = vld [vmem:[#allocation66_spill] sm:$0xff]  ;;  %v17865_v36 = vld [vmem:[#allocation36_spill] sm:$0xff] }
 0x65a   :  { %17839 = vst [vmem:[#allocation113_spill] sm:$0xff] %v13527_v22  ;;  %v5655_v9 = vrot.slane %v13527_v22, 1  ;;  %v5120_v11 = vshll.u32 %v13412_v41, 16  ;;  %v13537_v13 = vpack.c.bf16 %v9922_v19, %v9922_v19  ;;  %6341 = vmatmul.mubr.bf16.gmra.mrb[120].mxu1 %v13344_v17  ;;  %v13540_v27 = vpack.c.bf16 %v4889_v18, %v4889_v18  ;;  %6583 = vmatprep.subr.bf16.mxu1 %v17759_v57  ;;  %v17862_v17 = vld [vmem:[#allocation68_spill] sm:$0xff]  ;;  %v17866_v16 = vld [vmem:[#allocation42_spill] sm:$0xff]  ;;  %v17870_v2 = vld [vmem:[#allocation71_spill] sm:$0xff] }
 0x65b   :  { %v4318_v37 = vadd.f32 %v4317_v61, %v4316_v7  ;;  %v4449_v1 = vadd.f32 %v4448_v6, %v4447_v29  ;;  %v5117_v51 = vrot.slane %v5115_v38, 1  ;;  %6348 = vmatprep.mubr.bf16.mxu1 %v13483_v47  ;;  %v13545_v41 = vsel %vm517_vm0, %v5106_v15, %v5110_v8  ;;  %v9810_v29 = vld [vmem:[%s16857_s4 + $0xc8] sm:$0xff]   ;;  %v17851_v38 = vld [vmem:[#allocation38_spill] sm:$0xff]  ;;  %v17858_v47 = vld [vmem:[#allocation64_spill] sm:$0xff] }
 0x65c   :  { %17840 = vst [vmem:[#allocation114_spill] sm:$0xff] %v13540_v27  ;;  %17841 = vst [vmem:[#allocation115_spill] sm:$0xff] %v13545_v41  ;;  %v13548_v19 = vsel %vm998_vm1, %v5541_v40, %v5542_v59  ;;  %v13551_v44 = vsel %vm998_vm1, %v5654_v43, %v5655_v9  ;;  %v13553_v22 = vrot.slane %v5120_v11, 1  ;;  %v13561_v6 = vpack.c.bf16 %v4897_v46, %v4896_v55  ;;  %v17845_v46 = vld [vmem:[#allocation37_spill] sm:$0xff]  ;;  %v17868_v45 = vld [vmem:[#allocation48_spill] sm:$0xff] }
 0x65d   :  { %17842 = vst [vmem:[#allocation116_spill] sm:$0xff] %v13548_v19  ;;  %17843 = vst [vmem:[#allocation117_spill] sm:$0xff] %v13551_v44  ;;  %v4450_v7 = vrot.slane %v4449_v1, 1  ;;  %v13558_v18 = vmul.f32 0.001953125, %v4318_v37  ;;  %8832 = vmatmul.mubr.bf16.gmra.mrb[168].mxu0 %v13475_v49  ;;  %v13564_v15 = vor.u32 %v5117_v51, %v5113_v50  ;;  %v13567_v59 = vpack.c.bf16 %v4898_v26, %v4898_v26  ;;  %v17846_v9 = vld [vmem:[#allocation41_spill] sm:$0xff]  ;;  %v17847_v50 = vld [vmem:[#allocation34_spill] sm:$0xff] }
 0x65e   :  { %6584 = vmatpush1.bf16.msra.mxu1 %v9810_v29  ;;  %8835 = vmatprep.mubr.bf16.mxu0 %v13487_v20  ;;  %v17848_v26 = vld [vmem:[#allocation31_spill] sm:$0xff]  ;;  %v17849_v29 = vld [vmem:[#allocation40_spill] sm:$0xff]  ;;  %v17852_v51 = vld [vmem:[#allocation50_spill] sm:$0xff]  ;;  %v5550_v42 = vrot.slane %v13561_v6, 1  ;;  %v5132_v23 = vshll.u32 %v13429_v62, 16 }
 0x65f   :  { %17844 = vst [vmem:[#allocation118_spill] sm:$0xff] %v13567_v59  ;;  %v4451_v8 = vadd.f32 %v4450_v7, %v4449_v1  ;;  %v4454_v37 = vmul.f32 %v13558_v18, %v13558_v18  ;;  %v17850_v1 = vld [vmem:[#allocation44_spill] sm:$0xff]  ;;  %6585 = vmatprep.subr.bf16.mxu1 %v17759_v57  ;;  %v17853_v11 = vld [vmem:[#allocation53_spill] sm:$0xff]  ;;  %v17856_v7 = vld [vmem:[#allocation55_spill] sm:$0xff] }
 0x660   :  { %v17854_v55 = vld [vmem:[#allocation57_spill] sm:$0xff]  ;;  %v17860_v49 = vld [vmem:[#allocation63_spill] sm:$0xff]  ;;  %v17872_v21 = vld [vmem:[#allocation70_spill] sm:$0xff] }
 0x661   :  { %v4453_v40 = vmul.f32 0.001953125, %v4451_v8  ;;  %v17855_v61 = vld [vmem:[#allocation49_spill] sm:$0xff]  ;;  %v17857_v8 = vld [vmem:[#allocation62_spill] sm:$0xff]  ;;  %v17871_v60 = vld [vmem:[#allocation51_spill] sm:$0xff] }
 0x662   :  { %6349 = vmatmul.mubr.bf16.gmra.mrb[124].mxu1 %v13373_v3  ;;  %v17859_v20 = vld [vmem:[#allocation61_spill] sm:$0xff]  ;;  %v17875_v34 = vld [vmem:[#allocation72_spill] sm:$0xff]  ;;  %v17878_v31 = vld [vmem:[#allocation79_spill] sm:$0xff] }
 0x663   :  { %v4455_v43 = vsub.f32 %v4453_v40, %v4454_v37  ;;  %6356 = vmatprep.mubr.bf16.mxu1 %v13505_v52  ;;  %v17863_v3 = vld [vmem:[#allocation65_spill] sm:$0xff]  ;;  %v17864_v37 = vld [vmem:[#allocation67_spill] sm:$0xff]  ;;  %v9811_v54 = vld [vmem:[%s16857_s4 + $0xd0] sm:$0xff]  }
 0x664   :  { %v17867_v52 = vld [vmem:[#allocation39_spill] sm:$0xff]  ;;  %v17869_v40 = vld [vmem:[#allocation45_spill] sm:$0xff]  ;;  %v4900_v28 = vld [vmem:[#allocation3 + $0x200] sm:$0xff]  ;;  %6586 = vmatpush1.bf16.msra.mxu1 %v9811_v54  ;;  %v17910_v54 = vrot.slane %v13540_v27, 1 }
 0x665   :  { %v4456_v5 = vadd.f32 1e-05, %v4455_v43  ;;  %8836 = vmatmul.mubr.bf16.gmra.mrb[172].mxu0 %v13499_v63  ;;  %v17873_v24 = vld [vmem:[#allocation73_spill] sm:$0xff]  ;;  %v17874_v63 = vld [vmem:[#allocation75_spill] sm:$0xff]  ;;  %v17876_v43 = vld [vmem:[#allocation74_spill] sm:$0xff]  ;;  %6587 = vmatprep.subr.bf16.mxu1 %v17759_v57 }
 0x666   :  { %8839 = vmatprep.mubr.bf16.mxu0 %v13517_v33  ;;  %v17877_v35 = vld [vmem:[#allocation77_spill] sm:$0xff]  ;;  %v4899_v58 = vld [vmem:[#allocation3 + $0x1f8] sm:$0xff]  ;;  %v4248_v0 = vld [vmem:[%s16860_s8] sm:$0x1]  ;;  %v5125_v33 = vshrl.u32 %v13423_v10, 16 }
 0x667   :  { %9883 = vrsqrt.f32 %v4456_v5  ;;  %v4901_v14 = vld [vmem:[#allocation3 + $0x208] sm:$0x3]  ;;  %v5551_v5 = vrot.slane %v13567_v59, 1  ;;  %v13720_v4 = vpack.c.bf16 %v4900_v28, %v4899_v58  ;;  %v17911_v59 = vrot.slane %v13537_v13, 1  ;;  %v4934_v27 = vld [vmem:[#allocation3 + $0x310] sm:$0x3] }
 0x668   :  { %v17906_v39 = vld [vmem:[#allocation109_spill] sm:$0xff]  ;;  %v5134_v28 = vrot.slane %v5132_v23, 1 }
 0x669   :  { %v5553_v58 = vrot.slane %v13720_v4, 1 }
 0x66a   :  { %6357 = vmatmul.mubr.bf16.gmra.mrb[128].mxu1 %v13377_v48  ;;  %v13722_v48 = vpack.c.bf16 %v4901_v14, %v4901_v14 }
 0x66b   :  { %6364 = vmatprep.mubr.bf16.mxu1 %v13545_v41  ;;  %v17908_v41 = vshll.u32 %v13423_v10, 16 }
 0x66c   :  { %v5554_v14 = vrot.slane %v13722_v48, 1 }
 0x66d   :  { %8840 = vmatmul.mubr.bf16.gmra.mrb[176].mxu0 %v13548_v19  ;;  %v17907_v19 = vld [vmem:[#allocation106_spill] sm:$0xff]  ;;  %v5129_v56 = vrot.slane %v17908_v41, 1  ;;  %v5694_v41 = vsel %vm998_vm1, %v17911_v59, %v17910_v54  ;;  %v17921_v54 = vsub.f32 %v17848_v26, %v13558_v18 }
 0x66e   :  { %8843 = vmatprep.mubr.bf16.mxu0 %v13551_v44  ;;  %v13728_v44 = vsel %vm517_vm0, %v13564_v15, %v13553_v22  ;;  %v13743_v22 = vsel %vm998_vm1, %v5550_v42, %v5551_v5  ;;  %v13749_v59 = vsel %vm998_vm1, %v5553_v58, %v5554_v14  ;;  %v17919_v42 = vsub.f32 %v17847_v50, %v13558_v18 }
 0x66f   :  { %17909 = vst [vmem:[#allocation37_spill] sm:$0xff] %v13728_v44  ;;  %v5130_v62 = vor.u32 %v5129_v56, %v5125_v33  ;;  %17914 = vst [vmem:[#allocation34_spill] sm:$0xff] %v13749_v59  ;;  %v17915_v56 = vsub.f32 %v17845_v46, %v13558_v18  ;;  %v17927_v58 = vsub.f32 %v17851_v38, %v13558_v18 }
 0x670   :  { %v17933_v38 = vsub.f32 %v17854_v55, %v13558_v18 }
 0x671   :  { %v9884_v25 = vpop.eup %9883  ;;  %v13746_v15 = vsel %vm517_vm0, %v5130_v62, %v5134_v28  ;;  %v17923_v62 = vsub.f32 %v17849_v29, %v13558_v18  ;;  %v17925_v28 = vsub.f32 %v17850_v1, %v13558_v18  ;;  %v17931_v1 = vsub.f32 %v17853_v11, %v13558_v18 }
 0x672   :  { %v4522_v12 = vmul.f32 %v9884_v25, %v4248_v0  ;;  %6365 = vmatmul.mubr.bf16.gmra.mrb[132].mxu1 %v13396_v30  ;;  %v17912_v25 = vld [vmem:[#allocation110_spill] sm:$0xff]  ;;  %17913 = vst [vmem:[#allocation41_spill] sm:$0xff] %v13746_v15 }
 0x673   :  { %6372 = vmatprep.mubr.bf16.mxu1 %v13728_v44  ;;  %v14276_v44 = vpack.c.bf16 %v4934_v27, %v4934_v27 }
 0x674   :  { %v13739_v0 = vrot.slane %v4522_v12, %v17912_v25  ;;  %v17917_v12 = vsub.f32 %v17846_v9, %v13558_v18  ;;  %v17998_v25 = vld [vmem:[#allocation83_spill] sm:$0xff] }
 0x675   :  { %8844 = vmatmul.mubr.bf16.gmra.mrb[180].mxu0 %v5694_v41  ;;  %v17929_v41 = vsub.f32 %v17852_v51, %v13558_v18  ;;  %v17935_v51 = vsub.f32 %v17855_v61, %v13558_v18 }
 0x676   :  { %v13755_v23 = vmul.f32 %v13739_v0, %v17915_v56  ;;  %v13761_v33 = vmul.f32 %v13739_v0, %v17917_v12  ;;  %v13767_v5 = vmul.f32 %v13739_v0, %v17919_v42  ;;  %v13773_v46 = vmul.f32 %v13739_v0, %v17921_v54  ;;  %8847 = vmatprep.mubr.bf16.mxu0 %v13743_v22 }
 0x677   :  { %v13779_v9 = vmul.f32 %v13739_v0, %v17923_v62  ;;  %v13785_v50 = vmul.f32 %v13739_v0, %v17925_v28  ;;  %v13791_v26 = vmul.f32 %v13739_v0, %v17927_v58  ;;  %v13797_v29 = vmul.f32 %v13739_v0, %v17929_v41 }
 0x678   :  { %17916 = vst [vmem:[#allocation31_spill] sm:$0xff] %v13755_v23  ;;  %17918 = vst [vmem:[#allocation40_spill] sm:$0xff] %v13761_v33  ;;  %v13804_v14 = vmul.f32 %v13739_v0, %v17931_v1  ;;  %v13810_v56 = vmul.f32 %v13739_v0, %v17933_v38  ;;  %v13816_v12 = vmul.f32 %v13739_v0, %v17935_v51  ;;  %v4933_v23 = vld [vmem:[#allocation3 + $0x308] sm:$0xff] }
 0x679   :  { %17920 = vst [vmem:[#allocation44_spill] sm:$0xff] %v13767_v5  ;;  %17922 = vst [vmem:[#allocation38_spill] sm:$0xff] %v13773_v46  ;;  %v17937_v42 = vsub.f32 %v17856_v7, %v13558_v18  ;;  %v17939_v54 = vsub.f32 %v17857_v8, %v13558_v18  ;;  %v17941_v62 = vsub.f32 %v17858_v47, %v13558_v18 }
 0x67a   :  { %17924 = vst [vmem:[#allocation50_spill] sm:$0xff] %v13779_v9  ;;  %17926 = vst [vmem:[#allocation53_spill] sm:$0xff] %v13785_v50  ;;  %v17943_v28 = vsub.f32 %v17859_v20, %v13558_v18  ;;  %v17945_v58 = vsub.f32 %v17860_v49, %v13558_v18  ;;  %v17947_v41 = vsub.f32 %v17861_v53, %v13558_v18  ;;  %6373 = vmatmul.mubr.bf16.gmra.mrb[136].mxu1 %v13407_v32 }
 0x67b   :  { %17928 = vst [vmem:[#allocation57_spill] sm:$0xff] %v13791_v26  ;;  %17930 = vst [vmem:[#allocation49_spill] sm:$0xff] %v13797_v29  ;;  %v13822_v11 = vmul.f32 %v13739_v0, %v17937_v42  ;;  %v13828_v55 = vmul.f32 %v13739_v0, %v17939_v54  ;;  %v13834_v61 = vmul.f32 %v13739_v0, %v17941_v62  ;;  %6380 = vmatprep.mubr.bf16.mxu1 %v13746_v15  ;;  %v4928_v26 = vld [vmem:[#allocation3 + $0x2e0] sm:$0x3] }
 0x67c   :  { %17932 = vst [vmem:[#allocation55_spill] sm:$0xff] %v13804_v14  ;;  %17934 = vst [vmem:[#allocation62_spill] sm:$0xff] %v13810_v56  ;;  %v13840_v7 = vmul.f32 %v13739_v0, %v17943_v28  ;;  %v13846_v8 = vmul.f32 %v13739_v0, %v17945_v58  ;;  %v13852_v47 = vmul.f32 %v13739_v0, %v17947_v41  ;;  %v18088_v14 = vld [vmem:[#allocation20_spill] sm:$0xff] }
 0x67d   :  { %17936 = vst [vmem:[#allocation64_spill] sm:$0xff] %v13816_v12  ;;  %17938 = vst [vmem:[#allocation61_spill] sm:$0xff] %v13822_v11  ;;  %v17949_v1 = vsub.f32 %v17862_v17, %v13558_v18  ;;  %v17951_v38 = vsub.f32 %v17863_v3, %v13558_v18  ;;  %v17953_v51 = vsub.f32 %v17864_v37, %v13558_v18  ;;  %8848 = vmatmul.mubr.bf16.gmra.mrb[184].mxu0 %v13749_v59 }
 0x67e   :  { %17940 = vst [vmem:[#allocation63_spill] sm:$0xff] %v13828_v55  ;;  %17942 = vst [vmem:[#allocation66_spill] sm:$0xff] %v13834_v61  ;;  %v17955_v42 = vsub.f32 %v17865_v36, %v13558_v18  ;;  %v17957_v54 = vsub.f32 %v17866_v16, %v13558_v18  ;;  %v17959_v62 = vsub.f32 %v17867_v52, %v13558_v18  ;;  %v18081_v61 = vld [vmem:[#allocation54_spill] sm:$0xff]  ;;  %v5187_v29 = vshll.u32 %v18088_v14, 16 }
 0x67f   :  { %17944 = vst [vmem:[#allocation68_spill] sm:$0xff] %v13840_v7  ;;  %17946 = vst [vmem:[#allocation65_spill] sm:$0xff] %v13846_v8  ;;  %v13858_v20 = vmul.f32 %v13739_v0, %v17949_v1  ;;  %v13864_v49 = vmul.f32 %v13739_v0, %v17951_v38  ;;  %v13870_v53 = vmul.f32 %v13739_v0, %v17953_v51  ;;  %v4922_v8 = vld [vmem:[#allocation3 + $0x2b0] sm:$0x3]  ;;  %v5175_v55 = vshll.u32 %v18081_v61, 16 }
 0x680   :  { %17948 = vst [vmem:[#allocation67_spill] sm:$0xff] %v13852_v47  ;;  %v13876_v17 = vmul.f32 %v13739_v0, %v17955_v42  ;;  %v13882_v3 = vmul.f32 %v13739_v0, %v17957_v54  ;;  %v13888_v37 = vmul.f32 %v13739_v0, %v17959_v62  ;;  %v17961_v28 = vsub.f32 %v17868_v45, %v13558_v18  ;;  %v4921_v47 = vld [vmem:[#allocation3 + $0x2a8] sm:$0xff] }
 0x681   :  { %17950 = vst [vmem:[#allocation36_spill] sm:$0xff] %v13858_v20  ;;  %17952 = vst [vmem:[#allocation42_spill] sm:$0xff] %v13864_v49  ;;  %v17963_v16 = vsub.f32 %v17869_v40, %v13558_v18  ;;  %v17965_v52 = vsub.f32 %v17870_v2, %v13558_v18  ;;  %v17967_v45 = vsub.f32 %v17871_v60, %v13558_v18  ;;  %v9812_v2 = vld [vmem:[%s16857_s4 + $0xd8] sm:$0xff]  }
 0x682   :  { %17954 = vst [vmem:[#allocation39_spill] sm:$0xff] %v13870_v53  ;;  %17956 = vst [vmem:[#allocation48_spill] sm:$0xff] %v13876_v17  ;;  %v13894_v36 = vmul.f32 %v13739_v0, %v17961_v28  ;;  %v17969_v38 = vsub.f32 %v17872_v21, %v13558_v18  ;;  %v17971_v51 = vsub.f32 %v17873_v24, %v13558_v18  ;;  %6588 = vmatpush1.bf16.msra.mxu1 %v9812_v2 }
 0x683   :  { %17958 = vst [vmem:[#allocation45_spill] sm:$0xff] %v13882_v3  ;;  %17960 = vst [vmem:[#allocation71_spill] sm:$0xff] %v13888_v37  ;;  %v13901_v58 = vmul.f32 %v13739_v0, %v17963_v16  ;;  %v13907_v41 = vmul.f32 %v13739_v0, %v17965_v52  ;;  %v13913_v1 = vmul.f32 %v13739_v0, %v17967_v45  ;;  %v17983_v45 = vld [vmem:[#allocation76_spill] sm:$0xff]  ;;  %6589 = vmatprep.subr.bf16.mxu1 %v17759_v57  ;;  %v4915_v37 = vld [vmem:[#allocation3 + $0x278] sm:$0xff] }
 0x684   :  { %17962 = vst [vmem:[#allocation51_spill] sm:$0xff] %v13894_v36  ;;  %v13919_v40 = vmul.f32 %v13739_v0, %v17969_v38  ;;  %v13929_v60 = vmul.f32 %v13739_v0, %v17971_v51  ;;  %v17973_v42 = vsub.f32 %v17874_v63, %v13558_v18  ;;  %v17975_v54 = vsub.f32 %v17875_v34, %v13558_v18  ;;  %v17986_v51 = vld [vmem:[#allocation78_spill] sm:$0xff] }
 0x685   :  { %17964 = vst [vmem:[#allocation70_spill] sm:$0xff] %v13901_v58  ;;  %17966 = vst [vmem:[#allocation73_spill] sm:$0xff] %v13907_v41  ;;  %v17977_v28 = vsub.f32 %v17876_v43, %v13558_v18  ;;  %v17979_v16 = vsub.f32 %v17877_v35, %v13558_v18  ;;  %v17981_v52 = vsub.f32 %v17878_v31, %v13558_v18  ;;  %6381 = vmatmul.mubr.bf16.gmra.mrb[140].mxu1 %v13423_v10  ;;  %v18071_v58 = vld [vmem:[#allocation32_spill] sm:$0xff]  ;;  %v4914_v36 = vld [vmem:[#allocation3 + $0x270] sm:$0xff] }
 0x686   :  { %17968 = vst [vmem:[#allocation75_spill] sm:$0xff] %v13913_v1  ;;  %17970 = vst [vmem:[#allocation72_spill] sm:$0xff] %v13919_v40  ;;  %v13935_v21 = vmul.f32 %v13739_v0, %v17973_v42  ;;  %v13941_v62 = vmul.f32 %v13739_v0, %v17975_v54  ;;  %v17984_v38 = vsub.f32 %v17983_v45, %v13558_v18  ;;  %v17989_v54 = vld [vmem:[#allocation81_spill] sm:$0xff] }
 0x687   :  { %17972 = vst [vmem:[#allocation74_spill] sm:$0xff] %v13929_v60  ;;  %v13947_v24 = vmul.f32 %v13739_v0, %v17977_v28  ;;  %v13953_v63 = vmul.f32 %v13739_v0, %v17979_v16  ;;  %v13959_v34 = vmul.f32 %v13739_v0, %v17981_v52  ;;  %v17987_v42 = vsub.f32 %v17986_v51, %v13558_v18  ;;  %v17992_v16 = vld [vmem:[#allocation85_spill] sm:$0xff]  ;;  %v4911_v60 = vld [vmem:[#allocation3 + $0x258] sm:$0xff] }
 0x688   :  { %17974 = vst [vmem:[#allocation77_spill] sm:$0xff] %v13935_v21  ;;  %17976 = vst [vmem:[#allocation79_spill] sm:$0xff] %v13941_v62  ;;  %v13965_v43 = vmul.f32 %v13739_v0, %v17984_v38  ;;  %v17990_v31 = vsub.f32 %v17989_v54, %v13558_v18  ;;  %v17993_v52 = vsub.f32 %v17992_v16, %v13558_v18  ;;  %v17995_v38 = vld [vmem:[#allocation80_spill] sm:$0xff] }
 0x689   :  { %17978 = vst [vmem:[#allocation109_spill] sm:$0xff] %v13947_v24  ;;  %17980 = vst [vmem:[#allocation106_spill] sm:$0xff] %v13953_v63  ;;  %v13971_v35 = vmul.f32 %v13739_v0, %v17987_v42  ;;  %v17996_v51 = vsub.f32 %v17995_v38, %v13558_v18  ;;  %v4909_v63 = vld [vmem:[#allocation3 + $0x248] sm:$0xff]  ;;  %v14181_v49 = vpack.c.bf16 %v4915_v37, %v4914_v36 }
 0x68a   :  { %17982 = vst [vmem:[#allocation119_spill] sm:$0xff] %v13959_v34  ;;  %17985 = vst [vmem:[#allocation76_spill] sm:$0xff] %v13965_v43  ;;  %v13978_v28 = vmul.f32 %v13739_v0, %v17990_v31  ;;  %v13984_v45 = vmul.f32 %v13739_v0, %v17993_v52  ;;  %v18001_v31 = vld [vmem:[#allocation87_spill] sm:$0xff]  ;;  %v18004_v52 = vld [vmem:[#allocation89_spill] sm:$0xff] }
 0x68b   :  { %17988 = vst [vmem:[#allocation78_spill] sm:$0xff] %v13971_v35  ;;  %v13990_v42 = vmul.f32 %v13739_v0, %v17996_v51  ;;  %v17999_v35 = vsub.f32 %v17998_v25, %v13558_v18  ;;  %v18007_v51 = vld [vmem:[#allocation86_spill] sm:$0xff]  ;;  %v4907_v43 = vld [vmem:[#allocation3 + $0x238] sm:$0x3]  ;;  %v4908_v34 = vld [vmem:[#allocation3 + $0x240] sm:$0xff] }
 0x68c   :  { %17991 = vst [vmem:[#allocation81_spill] sm:$0xff] %v13978_v28  ;;  %17994 = vst [vmem:[#allocation85_spill] sm:$0xff] %v13984_v45  ;;  %v18002_v28 = vsub.f32 %v18001_v31, %v13558_v18  ;;  %v18005_v45 = vsub.f32 %v18004_v52, %v13558_v18  ;;  %v14157_v62 = vpack.c.bf16 %v4907_v43, %v4907_v43  ;;  %v9814_v37 = vld [vmem:[%s16857_s4 + $0xe8] sm:$0xff]  }
 0x68d   :  { %17997 = vst [vmem:[#allocation80_spill] sm:$0xff] %v13990_v42  ;;  %v13996_v54 = vmul.f32 %v13739_v0, %v17999_v35  ;;  %v18008_v42 = vsub.f32 %v18007_v51, %v13558_v18  ;;  %v18010_v35 = vld [vmem:[#allocation88_spill] sm:$0xff]  ;;  %v14159_v21 = vpack.c.bf16 %v4909_v63, %v4908_v34  ;;  %18076 = vst [vmem:[#allocation124_spill] sm:$0xff] %v14181_v49 }
 0x68e   :  { %v14002_v16 = vmul.f32 %v13739_v0, %v18002_v28  ;;  %v14008_v38 = vmul.f32 %v13739_v0, %v18005_v45  ;;  %v18011_v2 = vsub.f32 %v18010_v35, %v13558_v18  ;;  %v18013_v28 = vld [vmem:[#allocation91_spill] sm:$0xff]  ;;  %v4916_v34 = vld [vmem:[#allocation3 + $0x280] sm:$0x3] }
 0x68f   :  { %18000 = vst [vmem:[#allocation83_spill] sm:$0xff] %v13996_v54  ;;  %v14014_v25 = vmul.f32 %v13739_v0, %v18008_v42  ;;  %v18014_v52 = vsub.f32 %v18013_v28, %v13558_v18  ;;  %v5562_v43 = vrot.slane %v14159_v21, 1 }
 0x690   :  { %18003 = vst [vmem:[#allocation87_spill] sm:$0xff] %v14002_v16  ;;  %18006 = vst [vmem:[#allocation89_spill] sm:$0xff] %v14008_v38  ;;  %v14020_v31 = vmul.f32 %v13739_v0, %v18011_v2  ;;  %v18016_v38 = vld [vmem:[#allocation93_spill] sm:$0xff] }
 0x691   :  { %18009 = vst [vmem:[#allocation86_spill] sm:$0xff] %v14014_v25  ;;  %v14027_v45 = vmul.f32 %v13739_v0, %v18014_v52  ;;  %v18017_v51 = vsub.f32 %v18016_v38, %v13558_v18  ;;  %v18019_v25 = vld [vmem:[#allocation90_spill] sm:$0xff]  ;;  %v18025_v52 = vld [vmem:[#allocation95_spill] sm:$0xff] }
 0x692   :  { %18012 = vst [vmem:[#allocation88_spill] sm:$0xff] %v14020_v31  ;;  %v18020_v35 = vsub.f32 %v18019_v25, %v13558_v18  ;;  %v18022_v31 = vld [vmem:[#allocation92_spill] sm:$0xff] }
 0x693   :  { %18015 = vst [vmem:[#allocation91_spill] sm:$0xff] %v14027_v45  ;;  %v14033_v42 = vmul.f32 %v13739_v0, %v18017_v51  ;;  %v18023_v16 = vsub.f32 %v18022_v31, %v13558_v18  ;;  %v18026_v45 = vsub.f32 %v18025_v52, %v13558_v18  ;;  %v18028_v51 = vld [vmem:[#allocation97_spill] sm:$0xff] }
 0x694   :  { %v14039_v2 = vmul.f32 %v13739_v0, %v18020_v35  ;;  %v18031_v35 = vld [vmem:[#allocation94_spill] sm:$0xff] }
 0x695   :  { %18018 = vst [vmem:[#allocation93_spill] sm:$0xff] %v14033_v42  ;;  %v14045_v28 = vmul.f32 %v13739_v0, %v18023_v16  ;;  %v14051_v38 = vmul.f32 %v13739_v0, %v18026_v45  ;;  %v18029_v42 = vsub.f32 %v18028_v51, %v13558_v18  ;;  %v18034_v16 = vld [vmem:[#allocation96_spill] sm:$0xff]  ;;  %v18037_v45 = vld [vmem:[#allocation99_spill] sm:$0xff] }
 0x696   :  { %18021 = vst [vmem:[#allocation90_spill] sm:$0xff] %v14039_v2  ;;  %v18032_v2 = vsub.f32 %v18031_v35, %v13558_v18 }
 0x697   :  { %18024 = vst [vmem:[#allocation92_spill] sm:$0xff] %v14045_v28  ;;  %18027 = vst [vmem:[#allocation95_spill] sm:$0xff] %v14051_v38  ;;  %v14057_v25 = vmul.f32 %v13739_v0, %v18029_v42  ;;  %v18035_v28 = vsub.f32 %v18034_v16, %v13558_v18  ;;  %v18038_v38 = vsub.f32 %v18037_v45, %v13558_v18  ;;  %v18040_v42 = vld [vmem:[#allocation101_spill] sm:$0xff] }
 0x698   :  { %v14063_v31 = vmul.f32 %v13739_v0, %v18032_v2  ;;  %v18043_v2 = vld [vmem:[#allocation98_spill] sm:$0xff] }
 0x699   :  { %18030 = vst [vmem:[#allocation97_spill] sm:$0xff] %v14057_v25  ;;  %v14069_v52 = vmul.f32 %v13739_v0, %v18035_v28  ;;  %v14075_v51 = vmul.f32 %v13739_v0, %v18038_v38  ;;  %v18041_v25 = vsub.f32 %v18040_v42, %v13558_v18  ;;  %v18046_v28 = vld [vmem:[#allocation100_spill] sm:$0xff]  ;;  %v18049_v38 = vld [vmem:[#allocation103_spill] sm:$0xff] }
 0x69a   :  { %18033 = vst [vmem:[#allocation94_spill] sm:$0xff] %v14063_v31  ;;  %v18044_v31 = vsub.f32 %v18043_v2, %v13558_v18  ;;  %v18050_v42 = vsub.f32 %v18049_v38, %v13558_v18 }
 0x69b   :  { %18036 = vst [vmem:[#allocation96_spill] sm:$0xff] %v14069_v52  ;;  %18039 = vst [vmem:[#allocation99_spill] sm:$0xff] %v14075_v51  ;;  %v14081_v35 = vmul.f32 %v13739_v0, %v18041_v25  ;;  %v18047_v52 = vsub.f32 %v18046_v28, %v13558_v18 }
 0x69c   :  { %v14087_v16 = vmul.f32 %v13739_v0, %v18044_v31  ;;  %v14100_v25 = vmul.f32 %v13739_v0, %v18050_v42  ;;  %v18061_v42 = vld [vmem:[#allocation107_spill] sm:$0xff] }
 0x69d   :  { %18042 = vst [vmem:[#allocation101_spill] sm:$0xff] %v14081_v35  ;;  %v14093_v45 = vmul.f32 %v13739_v0, %v18047_v52  ;;  %v18052_v35 = vld [vmem:[#allocation105_spill] sm:$0xff] }
 0x69e   :  { %18045 = vst [vmem:[#allocation98_spill] sm:$0xff] %v14087_v16  ;;  %18051 = vst [vmem:[#allocation103_spill] sm:$0xff] %v14100_v25  ;;  %v18053_v2 = vsub.f32 %v18052_v35, %v13558_v18  ;;  %v18055_v16 = vld [vmem:[#allocation102_spill] sm:$0xff]  ;;  %v18062_v25 = vsub.f32 %v18061_v42, %v13558_v18 }
 0x69f   :  { %18048 = vst [vmem:[#allocation100_spill] sm:$0xff] %v14093_v45  ;;  %v18056_v28 = vsub.f32 %v18055_v16, %v13558_v18  ;;  %v18058_v45 = vld [vmem:[#allocation104_spill] sm:$0xff] }
 0x6a0   :  { %v14106_v31 = vmul.f32 %v13739_v0, %v18053_v2  ;;  %v18059_v51 = vsub.f32 %v18058_v45, %v13558_v18  ;;  %v14124_v35 = vmul.f32 %v13739_v0, %v18062_v25  ;;  %v18064_v2 = vsub.f32 %v17906_v39, %v13558_v18  ;;  %v9813_v25 = vld [vmem:[%s16857_s4 + $0xe0] sm:$0xff]  }
 0x6a1   :  { %v14112_v52 = vmul.f32 %v13739_v0, %v18056_v28  ;;  %v18066_v28 = vsub.f32 %v17907_v19, %v13558_v18  ;;  %6590 = vmatpush1.bf16.msra.mxu1 %v9813_v25 }
 0x6a2   :  { %18054 = vst [vmem:[#allocation105_spill] sm:$0xff] %v14106_v31  ;;  %v14118_v38 = vmul.f32 %v13739_v0, %v18059_v51  ;;  %18063 = vst [vmem:[#allocation107_spill] sm:$0xff] %v14124_v35  ;;  %v14130_v16 = vmul.f32 %v13739_v0, %v18064_v2  ;;  %v4902_v51 = vld [vmem:[#allocation3 + $0x210] sm:$0xff]  ;;  %6591 = vmatprep.subr.bf16.mxu1 %v17759_v57  ;;  %v18068_v2 = vld [vmem:[#allocation28_spill] sm:$0xff] }
 0x6a3   :  { %18057 = vst [vmem:[#allocation102_spill] sm:$0xff] %v14112_v52  ;;  %v14136_v45 = vmul.f32 %v13739_v0, %v18066_v28  ;;  %v4904_v52 = vld [vmem:[#allocation3 + $0x220] sm:$0x3]  ;;  %v5139_v28 = vshll.u32 %v18068_v2, 16  ;;  %v18069_v31 = vld [vmem:[#allocation29_spill] sm:$0xff] }
 0x6a4   :  { %18060 = vst [vmem:[#allocation104_spill] sm:$0xff] %v14118_v38  ;;  %18065 = vst [vmem:[#allocation120_spill] sm:$0xff] %v14130_v16  ;;  %v4903_v38 = vld [vmem:[#allocation3 + $0x218] sm:$0xff]  ;;  %v14143_v35 = vpack.c.bf16 %v4904_v52, %v4904_v52  ;;  %v4906_v16 = vld [vmem:[#allocation3 + $0x230] sm:$0xff]  ;;  %v5144_v54 = vshll.u32 %v18069_v31, 16 }
 0x6a5   :  { %18067 = vst [vmem:[#allocation121_spill] sm:$0xff] %v14136_v45  ;;  %v14141_v42 = vpack.c.bf16 %v4903_v38, %v4902_v51  ;;  %v4905_v45 = vld [vmem:[#allocation3 + $0x228] sm:$0xff]  ;;  %v4910_v38 = vld [vmem:[#allocation3 + $0x250] sm:$0x3]  ;;  %v5137_v51 = vshrl.u32 %v18068_v2, 16  ;;  %v5141_v25 = vrot.slane %v5139_v28, 1  ;;  %6592 = vmatpush1.bf16.msra.mxu1 %v9814_v37 }
 0x6a6   :  { %v5557_v19 = vrot.slane %v14143_v35, 1  ;;  %v14155_v24 = vpack.c.bf16 %v4906_v16, %v4905_v45  ;;  %v4912_v31 = vld [vmem:[#allocation3 + $0x260] sm:$0xff]  ;;  %v5146_v1 = vrot.slane %v5144_v54, 1  ;;  %v14161_v41 = vpack.c.bf16 %v4910_v38, %v4910_v38  ;;  %v18072_v45 = vld [vmem:[#allocation35_spill] sm:$0xff]  ;;  %6593 = vmatprep.subr.bf16.mxu1 %v17759_v57 }
 0x6a7   :  { %v5556_v39 = vrot.slane %v14141_v42, 1  ;;  %v5142_v40 = vor.u32 %v5141_v25, %v5137_v51  ;;  %v5560_v16 = vrot.slane %v14157_v62, 1  ;;  %v5156_v63 = vshll.u32 %v18072_v45, 16 }
 0x6a8   :  { %v5559_v28 = vrot.slane %v14155_v24, 1  ;;  %v5563_v54 = vrot.slane %v14161_v41, 1  ;;  %v5149_v38 = vshrl.u32 %v18071_v58, 16  ;;  %v14177_v17 = vpack.c.bf16 %v4912_v31, %v4911_v60  ;;  %v18080_v31 = vld [vmem:[#allocation52_spill] sm:$0xff] }
 0x6a9   :  { %v14151_v52 = vsel %vm998_vm1, %v5556_v39, %v5557_v19  ;;  %v5151_v39 = vshll.u32 %v18071_v58, 16  ;;  %v4913_v19 = vld [vmem:[#allocation3 + $0x268] sm:$0x3]  ;;  %v14169_v3 = vsel %vm517_vm0, %v5142_v40, %v5146_v1  ;;  %v14188_v45 = vpack.c.bf16 %v4916_v34, %v4916_v34 }
 0x6aa   :  { %18070 = vst [vmem:[#allocation29_spill] sm:$0xff] %v14151_v52  ;;  %8851 = vmatprep.mubr.bf16.mxu0 %v14151_v52  ;;  %18073 = vst [vmem:[#allocation35_spill] sm:$0xff] %v14169_v3  ;;  %6388 = vmatprep.mubr.bf16.mxu1 %v14169_v3  ;;  %v14175_v25 = vsel %vm998_vm1, %v5559_v28, %v5560_v16  ;;  %v14179_v53 = vpack.c.bf16 %v4913_v19, %v4913_v19  ;;  %v18078_v28 = vld [vmem:[#allocation47_spill] sm:$0xff]  ;;  %v5168_v19 = vshll.u32 %v18080_v31, 16 }
 0x6ab   :  { %v5153_v51 = vrot.slane %v5151_v39, 1  ;;  %18074 = vst [vmem:[#allocation122_spill] sm:$0xff] %v14175_v25  ;;  %18075 = vst [vmem:[#allocation123_spill] sm:$0xff] %v14177_v17  ;;  %8852 = vmatmul.mubr.bf16.gmra.mrb[188].mxu0 %v14175_v25  ;;  %v14185_v1 = vsel %vm998_vm1, %v5562_v43, %v5563_v54  ;;  %6389 = vmatmul.mubr.bf16.gmra.mrb[144].mxu1 %v18068_v2  ;;  %v5158_v39 = vrot.slane %v5156_v63, 1  ;;  %v5163_v60 = vshll.u32 %v18078_v28, 16  ;;  %v4917_v54 = vld [vmem:[#allocation3 + $0x288] sm:$0xff] }
 0x6ac   :  { %18077 = vst [vmem:[#allocation125_spill] sm:$0xff] %v14185_v1  ;;  %8855 = vmatprep.mubr.bf16.mxu0 %v14185_v1  ;;  %v5565_v16 = vrot.slane %v14177_v17, 1  ;;  %v5566_v43 = vrot.slane %v14179_v53, 1  ;;  %v5161_v63 = vshrl.u32 %v18078_v28, 16  ;;  %v5569_v20 = vrot.slane %v14188_v45, 1 }
 0x6ad   :  { %v5154_v40 = vor.u32 %v5153_v51, %v5149_v38  ;;  %v5165_v34 = vrot.slane %v5163_v60, 1  ;;  %v4918_v38 = vld [vmem:[#allocation3 + $0x290] sm:$0xff]  ;;  %v5568_v51 = vrot.slane %v14181_v49, 1  ;;  %v5170_v7 = vrot.slane %v5168_v19, 1 }
 0x6ae   :  { %v14208_v11 = vsel %vm998_vm1, %v5565_v16, %v5566_v43  ;;  %v14210_v60 = vpack.c.bf16 %v4918_v38, %v4917_v54  ;;  %v5177_v16 = vrot.slane %v5175_v55, 1  ;;  %v18087_v43 = vld [vmem:[#allocation58_spill] sm:$0xff]  ;;  %v4923_v38 = vld [vmem:[#allocation3 + $0x2b8] sm:$0xff] }
 0x6af   :  { %v14196_v36 = vsel %vm517_vm0, %v5154_v40, %v5158_v39  ;;  %v4919_v40 = vld [vmem:[#allocation3 + $0x298] sm:$0x3]  ;;  %v4920_v39 = vld [vmem:[#allocation3 + $0x2a0] sm:$0xff]  ;;  %v5166_v31 = vor.u32 %v5165_v34, %v5161_v63  ;;  %18082 = vst [vmem:[#allocation52_spill] sm:$0xff] %v14208_v11  ;;  %v14218_v56 = vsel %vm998_vm1, %v5568_v51, %v5569_v20  ;;  %v14224_v63 = vpack.c.bf16 %v4922_v8, %v4922_v8 }
 0x6b0   :  { %18079 = vst [vmem:[#allocation126_spill] sm:$0xff] %v14196_v36  ;;  %6396 = vmatprep.mubr.bf16.mxu1 %v14196_v36  ;;  %18083 = vst [vmem:[#allocation127_spill] sm:$0xff] %v14210_v60  ;;  %v14212_v37 = vpack.c.bf16 %v4919_v40, %v4919_v40  ;;  %v14214_v12 = vpack.c.bf16 %v4921_v47, %v4920_v39  ;;  %v5173_v47 = vshrl.u32 %v18081_v61, 16  ;;  %v5180_v34 = vshll.u32 %v18087_v43, 16  ;;  %v4924_v51 = vld [vmem:[#allocation3 + $0x2c0] sm:$0xff]  ;;  %v4926_v40 = vld [vmem:[#allocation3 + $0x2d0] sm:$0xff] }
 0x6b1   :  { %18085 = vst [vmem:[#allocation129_spill] sm:$0xff] %v14218_v56  ;;  %v14222_v19 = vsel %vm517_vm0, %v5166_v31, %v5170_v7  ;;  %v5571_v54 = vrot.slane %v14210_v60, 1  ;;  %v5575_v8 = vrot.slane %v14224_v63, 1  ;;  %v4925_v39 = vld [vmem:[#allocation3 + $0x2c8] sm:$0x3]  ;;  %v4927_v31 = vld [vmem:[#allocation3 + $0x2d8] sm:$0xff]  ;;  %v14238_v9 = vpack.c.bf16 %v4924_v51, %v4923_v38 }
 0x6b2   :  { %18084 = vst [vmem:[#allocation128_spill] sm:$0xff] %v14214_v12  ;;  %18086 = vst [vmem:[#allocation130_spill] sm:$0xff] %v14222_v19  ;;  %v5572_v20 = vrot.slane %v14212_v37, 1  ;;  %v5574_v7 = vrot.slane %v14214_v12, 1  ;;  %v5178_v55 = vor.u32 %v5177_v16, %v5173_v47  ;;  %v5182_v50 = vrot.slane %v5180_v34, 1  ;;  %v18094_v38 = vld [vmem:[#allocation30_spill] sm:$0xff] }
 0x6b3   :  { %8856 = vmatmul.mubr.bf16.gmra.mrb[192].mxu0 %v14208_v11  ;;  %6397 = vmatmul.mubr.bf16.gmra.mrb[148].mxu1 %v18071_v58  ;;  %18090 = vst [vmem:[#allocation131_spill] sm:$0xff] %v14238_v9  ;;  %v14240_v46 = vpack.c.bf16 %v4925_v39, %v4925_v39  ;;  %v14242_v5 = vpack.c.bf16 %v4927_v31, %v4926_v40  ;;  %v5189_v34 = vrot.slane %v5187_v29, 1  ;;  %v5192_v51 = vshll.u32 %v18094_v38, 16  ;;  %v4929_v40 = vld [vmem:[#allocation3 + $0x2e8] sm:$0xff]  ;;  %v4932_v29 = vld [vmem:[#allocation3 + $0x300] sm:$0xff] }
 0x6b4   :  { %8859 = vmatprep.mubr.bf16.mxu0 %v14218_v56  ;;  %6404 = vmatprep.mubr.bf16.mxu1 %v14222_v19  ;;  %v14236_v43 = vsel %vm998_vm1, %v5571_v54, %v5572_v20  ;;  %v14246_v33 = vsel %vm998_vm1, %v5574_v7, %v5575_v8  ;;  %v14250_v16 = vsel %vm517_vm0, %v5178_v55, %v5182_v50  ;;  %v9815_v54 = vld [vmem:[%s16857_s4 + $0xf0] sm:$0xff]   ;;  %v5185_v20 = vshrl.u32 %v18088_v14, 16  ;;  %v4931_v8 = vld [vmem:[#allocation3 + $0x2f8] sm:$0x3]  ;;  %v4893_v56 = vld [vmem:[#allocation3 + $0x1c8] sm:$0xff] }
 0x6b5   :  { %18089 = vst [vmem:[#allocation58_spill] sm:$0xff] %v14236_v43  ;;  %18091 = vst [vmem:[#allocation132_spill] sm:$0xff] %v14242_v5  ;;  %v14252_v47 = vpack.c.bf16 %v4928_v26, %v4928_v26  ;;  %v4930_v7 = vld [vmem:[#allocation3 + $0x2f0] sm:$0xff]  ;;  %v5577_v50 = vrot.slane %v14238_v9, 1  ;;  %v5578_v26 = vrot.slane %v14240_v46, 1  ;;  %6594 = vmatpush1.bf16.msra.mxu1 %v9815_v54  ;;  %v5580_v55 = vrot.slane %v14242_v5, 1 }
 0x6b6   :  { %18092 = vst [vmem:[#allocation133_spill] sm:$0xff] %v14246_v33  ;;  %18093 = vst [vmem:[#allocation134_spill] sm:$0xff] %v14250_v16  ;;  %v5190_v31 = vor.u32 %v5189_v34, %v5185_v20  ;;  %6595 = vmatprep.subr.bf16.mxu1 %v17759_v57  ;;  %v14267_v38 = vpack.c.bf16 %v4930_v7, %v4929_v40  ;;  %v14269_v36 = vpack.c.bf16 %v4931_v8, %v4931_v8  ;;  %v18101_v7 = vld [vmem:[#allocation26_spill] sm:$0xff] }
 0x6b7   :  { %v5581_v39 = vrot.slane %v14252_v47, 1  ;;  %v5194_v3 = vrot.slane %v5192_v51, 1  ;;  %v14272_v15 = vsel %vm998_vm1, %v5577_v50, %v5578_v26  ;;  %v14274_v54 = vpack.c.bf16 %v4933_v23, %v4932_v29  ;;  %v4935_v29 = vld [vmem:[#allocation3 + $0x318] sm:$0xff] }
 0x6b8   :  { %18096 = vst [vmem:[#allocation30_spill] sm:$0xff] %v14267_v38  ;;  %18097 = vst [vmem:[#allocation135_spill] sm:$0xff] %v14272_v15  ;;  %v5583_v23 = vrot.slane %v14267_v38, 1  ;;  %v5584_v27 = vrot.slane %v14269_v36, 1  ;;  %v5204_v8 = vshll.u32 %v18101_v7, 16  ;;  %v5211_v26 = vshll.u32 %v13537_v13, 16 }
 0x6b9   :  { %18098 = vst [vmem:[#allocation136_spill] sm:$0xff] %v14274_v54  ;;  %v14280_v34 = vsel %vm998_vm1, %v5580_v55, %v5581_v39  ;;  %v14284_v20 = vsel %vm517_vm0, %v5190_v31, %v5194_v3  ;;  %v5586_v3 = vrot.slane %v14274_v54, 1  ;;  %v4936_v55 = vld [vmem:[#allocation3 + $0x320] sm:$0xff]  ;;  %v4937_v31 = vld [vmem:[#allocation3 + $0x328] sm:$0x3]  ;;  %v4894_v7 = vld [vmem:[#allocation3 + $0x1d0] sm:$0xff] }
 0x6ba   :  { %18099 = vst [vmem:[#allocation137_spill] sm:$0xff] %v14280_v34  ;;  %18100 = vst [vmem:[#allocation138_spill] sm:$0xff] %v14284_v20  ;;  %v5209_v11 = vshrl.u32 %v13537_v13, 16  ;;  %v5213_v1 = vrot.slane %v5211_v26, 1  ;;  %v14305_v59 = vpack.c.bf16 %v4936_v55, %v4935_v29  ;;  %v4895_v29 = vld [vmem:[#allocation3 + $0x1d8] sm:$0x3] }
 0x6bb   :  { %8860 = vmatmul.mubr.bf16.gmra.mrb[196].mxu0 %v14236_v43  ;;  %6405 = vmatmul.mubr.bf16.gmra.mrb[152].mxu1 %v18078_v28  ;;  %v4940_v43 = vld [vmem:[#allocation3 + $0x340] sm:$0x3] }
 0x6bc   :  { %8863 = vmatprep.mubr.bf16.mxu0 %v14246_v33  ;;  %6412 = vmatprep.mubr.bf16.mxu1 %v14250_v16  ;;  %v18095_v16 = vld [vmem:[#allocation21_spill] sm:$0xff]  ;;  %v4892_v33 = vld [vmem:[#allocation3 + $0x1c0] sm:$0x3]  ;;  %18102 = vst [vmem:[#allocation26_spill] sm:$0xff] %v14305_v59 }
 0x6bd   :  { %v5199_v19 = vshll.u32 %v18095_v16, 16  ;;  %v5197_v51 = vshrl.u32 %v18095_v16, 16  ;;  %v14292_v50 = vpack.c.bf16 %v4892_v33, %v4892_v33  ;;  %v5206_v33 = vrot.slane %v5204_v8, 1 }
 0x6be   :  { %v14318_v8 = vpack.c.bf16 %v4894_v7, %v4893_v56 }
 0x6bf   :  { %v5201_v40 = vrot.slane %v5199_v19, 1  ;;  %v5587_v19 = vrot.slane %v14276_v44, 1  ;;  %v5216_v25 = vshll.u32 %v14292_v50, 16 }
 0x6c0   :  { %v5223_v55 = vshll.u32 %v14318_v8, 16  ;;  %v5221_v7 = vshrl.u32 %v14318_v8, 16 }
 0x6c1   :  { %v5202_v39 = vor.u32 %v5201_v40, %v5197_v51  ;;  %v14303_v52 = vsel %vm998_vm1, %v5586_v3, %v5587_v19  ;;  %v14307_v40 = vpack.c.bf16 %v4937_v31, %v4937_v31  ;;  %v5218_v26 = vrot.slane %v5216_v25, 1 }
 0x6c2   :  { %v5589_v3 = vrot.slane %v14305_v59, 1  ;;  %v5225_v31 = vrot.slane %v5223_v55, 1 }
 0x6c3   :  { %8864 = vmatmul.mubr.bf16.gmra.mrb[200].mxu0 %v14272_v15  ;;  %6413 = vmatmul.mubr.bf16.gmra.mrb[156].mxu1 %v18081_v61  ;;  %v14298_v15 = vsel %vm998_vm1, %v5583_v23, %v5584_v27  ;;  %v14314_v23 = vsel %vm517_vm0, %v5202_v39, %v5206_v33  ;;  %v14316_v27 = vpack.c.bf16 %v4940_v43, %v4940_v43  ;;  %v5590_v19 = vrot.slane %v14307_v40, 1 }
 0x6c4   :  { %8867 = vmatprep.mubr.bf16.mxu0 %v14280_v34  ;;  %6420 = vmatprep.mubr.bf16.mxu1 %v14284_v20  ;;  %v4938_v20 = vld [vmem:[#allocation3 + $0x330] sm:$0xff]  ;;  %v4939_v34 = vld [vmem:[#allocation3 + $0x338] sm:$0xff] }
 0x6c5   :  { %v14309_v51 = vpack.c.bf16 %v4939_v34, %v4938_v20  ;;  %18103 = vst [vmem:[#allocation139_spill] sm:$0xff] %v14316_v27  ;;  %v9816_v34 = vld [vmem:[%s16857_s4 + $0xf8] sm:$0xff]   ;;  %v14325_v20 = vor.u32 %v5213_v1, %v5209_v11  ;;  %v5658_v43 = vrot.slane %v14316_v27, 1  ;;  %v14335_v11 = vpack.c.bf16 %v4895_v29, %v4895_v29 }
 0x6c6   :  { %6596 = vmatpush1.bf16.msra.mxu1 %v9816_v34  ;;  %v14338_v25 = vsel %vm998_vm1, %v5589_v3, %v5590_v19  ;;  %v5226_v34 = vor.u32 %v5225_v31, %v5221_v7 }
 0x6c7   :  { %18104 = vst [vmem:[#allocation140_spill] sm:$0xff] %v14325_v20  ;;  %v5657_v56 = vrot.slane %v14309_v51, 1  ;;  %6854 = vmatprep.subr.bf16.mxu1 %v17759_v57  ;;  %v5219_v39 = vsel %vm517_vm0, %v14325_v20, %v5218_v26  ;;  %v5228_v33 = vshll.u32 %v14335_v11, 16  ;;  %v5235_v26 = vshll.u32 %v13561_v6, 16 }
 0x6c8   :  { %v5247_v20 = vshll.u32 %v13720_v4, 16 }
 0x6c9   :  { %v14342_v1 = vsel %vm998_vm1, %v5657_v56, %v5658_v43  ;;  %v5230_v3 = vrot.slane %v5228_v33, 1  ;;  %v5237_v29 = vrot.slane %v5235_v26, 1  ;;  %v5233_v56 = vshrl.u32 %v13561_v6, 16  ;;  %v18106_v43 = vld [vmem:[#allocation118_spill] sm:$0xff] }
 0x6ca   :  { %18105 = vst [vmem:[#allocation141_spill] sm:$0xff] %v14342_v1  ;;  %v5240_v55 = vshll.u32 %v18106_v43, 16  ;;  %v5249_v7 = vrot.slane %v5247_v20, 1  ;;  %v5245_v33 = vshrl.u32 %v13720_v4, 16  ;;  %v5264_v20 = vshll.u32 %v14143_v35, 16 }
 0x6cb   :  { %8868 = vmatmul.mubr.bf16.gmra.mrb[204].mxu0 %v14298_v15  ;;  %6421 = vmatmul.mubr.bf16.gmra.mrb[160].mxu1 %v18088_v14  ;;  %v14351_v19 = vsel %vm517_vm0, %v5226_v34, %v5230_v3  ;;  %v5252_v34 = vshll.u32 %v13722_v48, 16  ;;  %v5259_v3 = vshll.u32 %v14141_v42, 16 }
 0x6cc   :  { %8871 = vmatprep.mubr.bf16.mxu0 %v14303_v52  ;;  %6428 = vmatprep.mubr.bf16.mxu1 %v14314_v23  ;;  %v5242_v27 = vrot.slane %v5240_v55, 1  ;;  %v5250_v26 = vor.u32 %v5249_v7, %v5245_v33  ;;  %v5266_v48 = vrot.slane %v5264_v20, 1  ;;  %v5281_v20 = vshrl.u32 %v14159_v21, 16 }
 0x6cd   :  { %v5254_v43 = vrot.slane %v5252_v34, 1  ;;  %v5269_v34 = vshrl.u32 %v14155_v24, 16 }
 0x6d3   :  { %8872 = vmatmul.mubr.bf16.gmra.mrb[208].mxu0 %v14338_v25  ;;  %6429 = vmatmul.mubr.bf16.gmra.mrb[164].mxu1 %v18095_v16 }
 0x6d4   :  { %8875 = vmatprep.mubr.bf16.mxu0 %v14342_v1  ;;  %6436 = vmatprep.mubr.bf16.mxu1 %v5219_v39  ;;  %v5238_v39 = vor.u32 %v5237_v29, %v5233_v56  ;;  %v14367_v29 = vsel %vm517_vm0, %v5250_v26, %v5254_v43  ;;  %v5261_v56 = vrot.slane %v5259_v3, 1  ;;  %v5276_v26 = vshll.u32 %v14157_v62, 16 }
 0x6d5   :  { %v5283_v43 = vshll.u32 %v14159_v21, 16 }
 0x6d6   :  { %v14359_v31 = vsel %vm517_vm0, %v5238_v39, %v5242_v27  ;;  %v5257_v27 = vshrl.u32 %v14141_v42, 16  ;;  %v5271_v39 = vshll.u32 %v14155_v24, 16  ;;  %v5278_v35 = vrot.slane %v5276_v26, 1 }
 0x6d7   :  { %v5293_v26 = vshrl.u32 %v14177_v17, 16 }
 0x6d8   :  { %v5262_v55 = vor.u32 %v5261_v56, %v5257_v27  ;;  %v5273_v33 = vrot.slane %v5271_v39, 1  ;;  %v5285_v27 = vrot.slane %v5283_v43, 1 }
 0x6da   :  { %v14375_v7 = vsel %vm517_vm0, %v5262_v55, %v5266_v48  ;;  %v5274_v3 = vor.u32 %v5273_v33, %v5269_v34  ;;  %v5288_v55 = vshll.u32 %v14161_v41, 16  ;;  %v5286_v39 = vor.u32 %v5285_v27, %v5281_v20 }
 0x6db   :  { %6437 = vmatmul.mubr.bf16.gmra.mrb[168].mxu1 %v13537_v13  ;;  %v5295_v48 = vshll.u32 %v14177_v17, 16 }
 0x6dc   :  { %6444 = vmatprep.mubr.bf16.mxu1 %v14351_v19  ;;  %v14383_v56 = vsel %vm517_vm0, %v5274_v3, %v5278_v35  ;;  %v5290_v62 = vrot.slane %v5288_v55, 1  ;;  %v5300_v3 = vshll.u32 %v14179_v53, 16  ;;  %v5307_v35 = vshll.u32 %v14181_v49, 16 }
 0x6dd   :  { %v5297_v34 = vrot.slane %v5295_v48, 1  ;;  %v5305_v55 = vshrl.u32 %v14181_v49, 16 }
 0x6de   :  { %v14391_v33 = vsel %vm517_vm0, %v5286_v39, %v5290_v62  ;;  %v5302_v41 = vrot.slane %v5300_v3, 1  ;;  %v5309_v20 = vrot.slane %v5307_v35, 1  ;;  %v5312_v39 = vshll.u32 %v14188_v45, 16 }
 0x6df   :  { %v5298_v43 = vor.u32 %v5297_v34, %v5293_v26  ;;  %v5319_v62 = vshll.u32 %v14210_v60, 16  ;;  %v5317_v3 = vshrl.u32 %v14210_v60, 16 }
 0x6e0   :  { %v5310_v48 = vor.u32 %v5309_v20, %v5305_v55  ;;  %v5314_v53 = vrot.slane %v5312_v39, 1  ;;  %v5329_v39 = vshrl.u32 %v14214_v12, 16 }
 0x6e1   :  { %v14399_v27 = vsel %vm517_vm0, %v5298_v43, %v5302_v41  ;;  %v5321_v26 = vrot.slane %v5319_v62, 1  ;;  %v5324_v43 = vshll.u32 %v14212_v37, 16  ;;  %v5331_v41 = vshll.u32 %v14214_v12, 16 }
 0x6e2   :  { %v14407_v34 = vsel %vm517_vm0, %v5310_v48, %v5314_v53  ;;  %v5336_v48 = vshll.u32 %v14224_v63, 16  ;;  %v5343_v53 = vshll.u32 %v14238_v9, 16  ;;  %v5341_v63 = vshrl.u32 %v14238_v9, 16 }
 0x6e3   :  { %6445 = vmatmul.mubr.bf16.gmra.mrb[172].mxu1 %v14318_v8  ;;  %v5322_v35 = vor.u32 %v5321_v26, %v5317_v3  ;;  %v5326_v45 = vrot.slane %v5324_v43, 1  ;;  %v5333_v55 = vrot.slane %v5331_v41, 1 }
 0x6e4   :  { %6452 = vmatprep.mubr.bf16.mxu1 %v14359_v31  ;;  %v5338_v37 = vrot.slane %v5336_v48, 1  ;;  %v5355_v48 = vshll.u32 %v14242_v5, 16 }
 0x6e5   :  { %v14415_v20 = vsel %vm517_vm0, %v5322_v35, %v5326_v45  ;;  %v5334_v62 = vor.u32 %v5333_v55, %v5329_v39  ;;  %v5345_v35 = vrot.slane %v5343_v53, 1  ;;  %v5348_v55 = vshll.u32 %v14240_v46, 16 }
 0x6e7   :  { %v14427_v43 = vsel %vm517_vm0, %v5334_v62, %v5338_v37  ;;  %v5346_v39 = vor.u32 %v5345_v35, %v5341_v63  ;;  %v18113_v62 = vld [vmem:[#allocation108_spill] sm:$0xff]  ;;  %v5353_v63 = vshrl.u32 %v14242_v5, 16 }
 0x6e8   :  { %v4521_v53 = vsub.f32 %v18113_v62, %v13558_v18  ;;  %v5367_v62 = vshll.u32 %v14267_v38, 16 }
 0x6ea   :  { %v14453_v35 = vmul.f32 %v13739_v0, %v4521_v53 }
 0x6eb   :  { %6453 = vmatmul.mubr.bf16.gmra.mrb[176].mxu1 %v13561_v6 }
 0x6ec   :  { %6460 = vmatprep.mubr.bf16.mxu1 %v14367_v29  ;;  %18116 = vst [vmem:[#allocation148_spill] sm:$0xff] %v14453_v35 }
 0x6f3   :  { %6461 = vmatmul.mubr.bf16.gmra.mrb[180].mxu1 %v13720_v4 }
 0x6f4   :  { %6468 = vmatprep.mubr.bf16.mxu1 %v14375_v7 }
 0x6fb   :  { %6469 = vmatmul.mubr.bf16.gmra.mrb[184].mxu1 %v14141_v42 }
 0x6fc   :  { %6476 = vmatprep.mubr.bf16.mxu1 %v14383_v56 }
 0x703   :  { %6477 = vmatmul.mubr.bf16.gmra.mrb[188].mxu1 %v14155_v24 }
 0x704   :  { %6484 = vmatprep.mubr.bf16.mxu1 %v14391_v33 }
 0x70b   :  { %6485 = vmatmul.mubr.bf16.gmra.mrb[192].mxu1 %v14159_v21 }
 0x70c   :  { %6492 = vmatprep.mubr.bf16.mxu1 %v14399_v27 }
 0x70f   :  { %v14421_v26 = vpop.f32.mrb[152].mxu0 }
 0x710   :  { %18107 = vst [vmem:[#allocation118_spill] sm:$0xff] %v14421_v26  ;;  %v14423_v3 = vpop.f32.mrb[153].mxu0  ;;  %v5350_v26 = vrot.slane %v5348_v55, 1  ;;  %v5360_v55 = vshll.u32 %v14252_v47, 16  ;;  %v5365_v47 = vshrl.u32 %v14267_v38, 16 }
 0x711   :  { %18108 = vst [vmem:[#allocation142_spill] sm:$0xff] %v14423_v3  ;;  %v14429_v41 = vpop.f32.mrb[154].mxu0 }
 0x712   :  { %18109 = vst [vmem:[#allocation143_spill] sm:$0xff] %v14429_v41  ;;  %v14432_v45 = vpop.f32.mrb[155].mxu0  ;;  %v14445_v37 = vsel %vm517_vm0, %v5346_v39, %v5350_v26  ;;  %v5357_v41 = vrot.slane %v5355_v48, 1 }
 0x713   :  { %6493 = vmatmul.mubr.bf16.gmra.mrb[196].mxu1 %v14177_v17  ;;  %18110 = vst [vmem:[#allocation144_spill] sm:$0xff] %v14432_v45 }
 0x714   :  { %6500 = vmatprep.mubr.bf16.mxu1 %v14407_v34  ;;  %v5358_v18 = vor.u32 %v5357_v41, %v5353_v63  ;;  %v5372_v41 = vshll.u32 %v14269_v36, 16  ;;  %v5377_v36 = vshrl.u32 %v14274_v54, 16 }
 0x716   :  { %v5374_v35 = vrot.slane %v5372_v41, 1  ;;  %v5391_v41 = vshll.u32 %v14305_v59, 16 }
 0x717   :  { %v14437_v3 = vpop.f32.mrb[156].mxu0 }
 0x718   :  { %18111 = vst [vmem:[#allocation145_spill] sm:$0xff] %v14437_v3  ;;  %v14439_v1 = vpop.f32.mrb[157].mxu0  ;;  %v5362_v3 = vrot.slane %v5360_v55, 1  ;;  %v5379_v55 = vshll.u32 %v14274_v54, 16 }
 0x719   :  { %18112 = vst [vmem:[#allocation146_spill] sm:$0xff] %v14439_v1  ;;  %v14447_v45 = vpop.f32.mrb[158].mxu0  ;;  %v9827_v1 = vld [vmem:[%s16857_s4 + $0x150] sm:$0xff]  }
 0x71a   :  { %18114 = vst [vmem:[#allocation108_spill] sm:$0xff] %v14447_v45  ;;  %v14450_v46 = vpop.f32.mrb[159].mxu0  ;;  %v14464_v48 = vsel %vm517_vm0, %v5358_v18, %v5362_v3  ;;  %v5369_v45 = vrot.slane %v5367_v62, 1  ;;  %v5381_v18 = vrot.slane %v5379_v55, 1 }
 0x71b   :  { %6501 = vmatmul.mubr.bf16.gmra.mrb[200].mxu1 %v14181_v49  ;;  %18115 = vst [vmem:[#allocation147_spill] sm:$0xff] %v14450_v46 }
 0x71c   :  { %6508 = vmatprep.mubr.bf16.mxu1 %v14415_v20  ;;  %v5370_v63 = vor.u32 %v5369_v45, %v5365_v47  ;;  %v5384_v45 = vshll.u32 %v14276_v44, 16  ;;  %v5382_v47 = vor.u32 %v5381_v18, %v5377_v36  ;;  %v5389_v44 = vshrl.u32 %v14305_v59, 16 }
 0x71d   :  { %v5396_v18 = vshll.u32 %v14307_v40, 16 }
 0x71e   :  { %v14480_v3 = vsel %vm517_vm0, %v5370_v63, %v5374_v35  ;;  %v5393_v63 = vrot.slane %v5391_v41, 1 }
 0x71f   :  { %v14458_v26 = vpop.f32.mrb[160].mxu0 }
 0x720   :  { %18117 = vst [vmem:[#allocation149_spill] sm:$0xff] %v14458_v26  ;;  %v14460_v39 = vpop.f32.mrb[161].mxu0  ;;  %v5394_v36 = vor.u32 %v5393_v63, %v5389_v44  ;;  %v18136_v44 = vld [vmem:[#allocation7_spill] sm:$0xff] }
 0x721   :  { %18118 = vst [vmem:[#allocation150_spill] sm:$0xff] %v14460_v39  ;;  %v14466_v0 = vpop.f32.mrb[162].mxu0 }
 0x722   :  { %18119 = vst [vmem:[#allocation151_spill] sm:$0xff] %v14466_v0  ;;  %v14469_v53 = vpop.f32.mrb[163].mxu0 }
 0x723   :  { %6509 = vmatmul.mubr.bf16.gmra.mrb[204].mxu1 %v14210_v60  ;;  %18120 = vst [vmem:[#allocation152_spill] sm:$0xff] %v14469_v53 }
 0x724   :  { %6516 = vmatprep.mubr.bf16.mxu1 %v14427_v43 }
 0x727   :  { %v14474_v26 = vpop.f32.mrb[164].mxu0 }
 0x728   :  { %18121 = vst [vmem:[#allocation153_spill] sm:$0xff] %v14474_v26  ;;  %v14476_v39 = vpop.f32.mrb[165].mxu0  ;;  %v5386_v26 = vrot.slane %v5384_v45, 1  ;;  %v5398_v45 = vrot.slane %v5396_v18, 1  ;;  %v18137_v18 = vld [vmem:[#allocation82_spill] sm:$0xff] }
 0x729   :  { %18122 = vst [vmem:[#allocation154_spill] sm:$0xff] %v14476_v39  ;;  %v14482_v62 = vpop.f32.mrb[166].mxu0 }
 0x72a   :  { %18123 = vst [vmem:[#allocation155_spill] sm:$0xff] %v14482_v62  ;;  %v14485_v0 = vpop.f32.mrb[167].mxu0  ;;  %v14496_v35 = vsel %vm517_vm0, %v5382_v47, %v5386_v26  ;;  %v14511_v26 = vsel %vm517_vm0, %v5394_v36, %v5398_v45  ;;  %v18138_v36 = vld [vmem:[#allocation84_spill] sm:$0xff] }
 0x72b   :  { %6517 = vmatmul.mubr.bf16.gmra.mrb[208].mxu1 %v14214_v12  ;;  %18124 = vst [vmem:[#allocation156_spill] sm:$0xff] %v14485_v0  ;;  %v5497_v45 = vrot.slane %v18138_v36, 1 }
 0x72c   :  { %6524 = vmatprep.mubr.bf16.mxu1 %v14445_v37 }
 0x730   :  { %v14490_v39 = vpop.f32.mrb[168].mxu0 }
 0x731   :  { %18125 = vst [vmem:[#allocation157_spill] sm:$0xff] %v14490_v39  ;;  %v14492_v53 = vpop.f32.mrb[169].mxu0 }
 0x732   :  { %18126 = vst [vmem:[#allocation158_spill] sm:$0xff] %v14492_v53  ;;  %v14498_v55 = vpop.f32.mrb[170].mxu0 }
 0x733   :  { %6525 = vmatmul.mubr.bf16.gmra.mrb[212].mxu1 %v14238_v9  ;;  %18127 = vst [vmem:[#allocation159_spill] sm:$0xff] %v14498_v55  ;;  %v14501_v62 = vpop.f32.mrb[171].mxu0 }
 0x734   :  { %6532 = vmatprep.mubr.bf16.mxu1 %v14464_v48  ;;  %18128 = vst [vmem:[#allocation160_spill] sm:$0xff] %v14501_v62  ;;  %v18143_v62 = vld [vmem:[#allocation4_spill] sm:$0xff] }
 0x738   :  { %v14505_v39 = vpop.f32.mrb[172].mxu0 }
 0x739   :  { %18129 = vst [vmem:[#allocation161_spill] sm:$0xff] %v14505_v39  ;;  %v14507_v53 = vpop.f32.mrb[173].mxu0  ;;  %v5496_v39 = vrot.slane %v18137_v18, 1  ;;  %v9818_v18 = vld [vmem:[%s16857_s4 + $0x108] sm:$0xff]  }
 0x73a   :  { %18130 = vst [vmem:[#allocation162_spill] sm:$0xff] %v14507_v53  ;;  %v14513_v47 = vpop.f32.mrb[174].mxu0 }
 0x73b   :  { %6533 = vmatmul.mubr.bf16.gmra.mrb[216].mxu1 %v14242_v5  ;;  %18131 = vst [vmem:[#allocation163_spill] sm:$0xff] %v14513_v47  ;;  %v14516_v41 = vpop.f32.mrb[175].mxu0  ;;  %v5498_v47 = vsel %vm998_vm1, %v5496_v39, %v5497_v45  ;;  %v5499_v39 = vrot.slane %v18136_v44, 1  ;;  %v18145_v45 = vld [vmem:[#allocation8_spill] sm:$0xff] }
 0x73c   :  { %6540 = vmatprep.mubr.bf16.mxu1 %v14480_v3  ;;  %18132 = vst [vmem:[#allocation164_spill] sm:$0xff] %v14516_v41 }
 0x740   :  { %v14518_v55 = vpop.f32.mrb[176].mxu0 }
 0x741   :  { %18133 = vst [vmem:[#allocation165_spill] sm:$0xff] %v14518_v55  ;;  %v14520_v40 = vpop.f32.mrb[177].mxu0  ;;  %v9817_v55 = vld [vmem:[%s16857_s4 + $0x100] sm:$0xff]  }
 0x742   :  { %18134 = vst [vmem:[#allocation166_spill] sm:$0xff] %v14520_v40  ;;  %v14523_v63 = vpop.f32.mrb[178].mxu0 }
 0x743   :  { %6541 = vmatmul.mubr.bf16.gmra.mrb[220].mxu1 %v14267_v38  ;;  %18135 = vst [vmem:[#allocation167_spill] sm:$0xff] %v14523_v63  ;;  %v14528_v53 = vpop.f32.mrb[179].mxu0 }
 0x744   :  { %6548 = vmatprep.mubr.bf16.mxu1 %v14496_v35  ;;  %18139 = vst [vmem:[#allocation7_spill] sm:$0xff] %v14528_v53  ;;  %v18156_v53 = vld [vmem:[#allocation13_spill] sm:$0xff] }
 0x748   :  { %v14534_v41 = vpop.f32.mrb[180].mxu0 }
 0x749   :  { %18140 = vst [vmem:[#allocation82_spill] sm:$0xff] %v14534_v41  ;;  %v14536_v40 = vpop.f32.mrb[181].mxu0  ;;  %v5500_v41 = vrot.slane %v18145_v45, 1  ;;  %v9820_v45 = vld [vmem:[%s16857_s4 + $0x118] sm:$0xff]  }
 0x74a   :  { %18141 = vst [vmem:[#allocation84_spill] sm:$0xff] %v14536_v40  ;;  %v14538_v63 = vpop.f32.mrb[182].mxu0 }
 0x74b   :  { %6549 = vmatmul.mubr.bf16.gmra.mrb[224].mxu1 %v14274_v54  ;;  %18142 = vst [vmem:[#allocation168_spill] sm:$0xff] %v14538_v63  ;;  %v14544_v36 = vpop.f32.mrb[183].mxu0 }
 0x74c   :  { %6556 = vmatprep.mubr.bf16.mxu1 %v14511_v26  ;;  %18144 = vst [vmem:[#allocation4_spill] sm:$0xff] %v14544_v36 }
 0x750   :  { %v14552_v63 = vpop.f32.mrb[184].mxu0 }
 0x751   :  { %18146 = vst [vmem:[#allocation8_spill] sm:$0xff] %v14552_v63  ;;  %v14558_v40 = vpop.f32.mrb[185].mxu0  ;;  %v18153_v63 = vld [vmem:[#allocation10_spill] sm:$0xff] }
 0x752   :  { %18147 = vst [vmem:[#allocation169_spill] sm:$0xff] %v14558_v40  ;;  %v14561_v36 = vpop.f32.mrb[186].mxu0  ;;  %v18155_v40 = vld [vmem:[#allocation11_spill] sm:$0xff] }
 0x753   :  { %6557 = vmatmul.mubr.bf16.gmra.mrb[228].mxu1 %v14305_v59  ;;  %18148 = vst [vmem:[#allocation170_spill] sm:$0xff] %v14561_v36  ;;  %v18152_v36 = vld [vmem:[#allocation6_spill] sm:$0xff] }
 0x754   :  { %6597 = vmatprep.mubr.bf16.mxu1 %v18136_v44  ;;  %v18149_v44 = vld [vmem:[#allocation5_spill] sm:$0xff] }
 0x75b   :  { %6598 = vmatmul.mubr.bf16.vlgmr.msra.gmra.mrb[104].mxu1 %v5498_v47  ;;  %v9819_v47 = vld [vmem:[%s16857_s4 + $0x110] sm:$0xff]  }
 0x75c   :  { %6605 = vmatprep.mubr.bf16.mxu1 %v18143_v62  ;;  %6855 = vmatpush1.bf16.msra.mxu1 %v9817_v55  ;;  %v14556_v55 = vsel %vm998_vm1, %v5499_v39, %v5500_v41  ;;  %v9821_v41 = vld [vmem:[%s16857_s4 + $0x120] sm:$0xff]   ;;  %v18151_v39 = vld [vmem:[#allocation9_spill] sm:$0xff] }
 0x75d   :  { %6856 = vmatprep.subr.bf16.mxu1 %v17759_v57 }
 0x760   :  { %6857 = vmatpush1.bf16.msra.mxu1 %v9818_v18  ;;  %v14564_v18 = vpop.f32.mrb[187].mxu0 }
 0x761   :  { %6858 = vmatprep.subr.bf16.mxu1 %v17759_v57  ;;  %18150 = vst [vmem:[#allocation5_spill] sm:$0xff] %v14564_v18  ;;  %v18154_v18 = vld [vmem:[#allocation12_spill] sm:$0xff] }
 0x763   :  { %6606 = vmatmul.mubr.bf16.gmra.mrb[108].mxu1 %v14556_v55 }
 0x764   :  { %6613 = vmatprep.mubr.bf16.mxu1 %v18149_v44  ;;  %6859 = vmatpush1.bf16.msra.mxu1 %v9819_v47  ;;  %v9822_v47 = vld [vmem:[%s16857_s4 + $0x128] sm:$0xff]  }
 0x765   :  { %6860 = vmatprep.subr.bf16.mxu1 %v17759_v57 }
 0x768   :  { %6861 = vmatpush1.bf16.msra.mxu1 %v9820_v45  ;;  %v9823_v45 = vld [vmem:[%s16857_s4 + $0x130] sm:$0xff]  }
 0x769   :  { %6862 = vmatprep.subr.bf16.mxu1 %v17759_v57 }
 0x76b   :  { %6614 = vmatmul.mubr.bf16.gmra.mrb[112].mxu1 %v18151_v39 }
 0x76c   :  { %6621 = vmatprep.mubr.bf16.mxu1 %v18152_v36  ;;  %6863 = vmatpush1.bf16.msra.mxu1 %v9821_v41  ;;  %v9824_v41 = vld [vmem:[%s16857_s4 + $0x138] sm:$0xff]  }
 0x76d   :  { %6864 = vmatprep.subr.bf16.mxu1 %v17759_v57 }
 0x770   :  { %6865 = vmatpush1.bf16.msra.mxu1 %v9822_v47  ;;  %v9825_v47 = vld [vmem:[%s16857_s4 + $0x140] sm:$0xff]  }
 0x771   :  { %6866 = vmatprep.subr.bf16.mxu1 %v17759_v57 }
 0x773   :  { %6622 = vmatmul.mubr.bf16.gmra.mrb[116].mxu1 %v18153_v63 }
 0x774   :  { %6629 = vmatprep.mubr.bf16.mxu1 %v18154_v18  ;;  %6867 = vmatpush1.bf16.msra.mxu1 %v9823_v45  ;;  %v9826_v45 = vld [vmem:[%s16857_s4 + $0x148] sm:$0xff]  }
 0x775   :  { %6868 = vmatprep.subr.bf16.mxu1 %v17759_v57 }
 0x778   :  { %6869 = vmatpush1.bf16.msra.mxu1 %v9824_v41 }
 0x779   :  { %6870 = vmatprep.subr.bf16.mxu1 %v17759_v57 }
 0x77b   :  { %6630 = vmatmul.mubr.bf16.gmra.mrb[120].mxu1 %v18155_v40 }
 0x77c   :  { %6637 = vmatprep.mubr.bf16.mxu1 %v18156_v53  ;;  %6871 = vmatpush1.bf16.msra.mxu1 %v9825_v47  ;;  %v18161_v47 = vld [vmem:[#allocation18_spill] sm:$0xff]  ;;  %v18166_v53 = vld [vmem:[#allocation33_spill] sm:$0xff] }
 0x77d   :  { %6872 = vmatprep.subr.bf16.mxu1 %v17759_v57 }
 0x77e   :  { %v14600_v0 = vpop.f32.mrb[188].mxu0 }
 0x77f   :  { %18157 = vst [vmem:[#allocation9_spill] sm:$0xff] %v14600_v0  ;;  %v14602_v41 = vpop.f32.mrb[189].mxu0 }
 0x780   :  { %18158 = vst [vmem:[#allocation10_spill] sm:$0xff] %v14602_v41  ;;  %v14604_v46 = vpop.f32.mrb[190].mxu0  ;;  %6873 = vmatpush1.bf16.msra.mxu1 %v9826_v45 }
 0x781   :  { %18159 = vst [vmem:[#allocation11_spill] sm:$0xff] %v14604_v46  ;;  %v14609_v18 = vpop.f32.mrb[191].mxu0  ;;  %6874 = vmatprep.subr.bf16.mxu1 %v17759_v57 }
 0x782   :  { %18160 = vst [vmem:[#allocation171_spill] sm:$0xff] %v14609_v18  ;;  %v9828_v18 = vld [vmem:[%s16857_s4 + $0x158] sm:$0xff]  }
 0x783   :  { %6638 = vmatmul.mubr.bf16.gmra.mrb[124].mxu1 %v18161_v47 }
 0x784   :  { %6645 = vmatprep.mubr.bf16.mxu1 %v13396_v30  ;;  %6875 = vmatpush1.bf16.msra.mxu1 %v9827_v1 }
 0x785   :  { %6876 = vmatprep.subr.bf16.mxu1 %v17759_v57 }
 0x786   :  { %v14615_v0 = vpop.f32.mrb[192].mxu0 }
 0x787   :  { %18162 = vst [vmem:[#allocation18_spill] sm:$0xff] %v14615_v0  ;;  %v14617_v41 = vpop.f32.mrb[193].mxu0 }
 0x788   :  { %18163 = vst [vmem:[#allocation172_spill] sm:$0xff] %v14617_v41  ;;  %v14619_v45 = vpop.f32.mrb[194].mxu0  ;;  %6877 = vmatpush1.bf16.msra.mxu1 %v9828_v18  ;;  %v18176_v18 = vld [vmem:[#allocation27_spill] sm:$0xff] }
 0x789   :  { %18164 = vst [vmem:[#allocation173_spill] sm:$0xff] %v14619_v45  ;;  %v14621_v46 = vpop.f32.mrb[195].mxu0  ;;  %6878 = vmatprep.subr.bf16.mxu1 %v17759_v57 }
 0x78a   :  { %18165 = vst [vmem:[#allocation174_spill] sm:$0xff] %v14621_v46  ;;  %v18171_v46 = vld [vmem:[#allocation25_spill] sm:$0xff] }
 0x78b   :  { %6646 = vmatmul.mubr.bf16.gmra.mrb[128].mxu1 %v18166_v53 }
 0x78c   :  { %6653 = vmatprep.mubr.bf16.mxu1 %v13407_v32 }
 0x78e   :  { %v14628_v30 = vpop.f32.mrb[196].mxu0 }
 0x78f   :  { %18167 = vst [vmem:[#allocation33_spill] sm:$0xff] %v14628_v30  ;;  %v14630_v1 = vpop.f32.mrb[197].mxu0 }
 0x790   :  { %18168 = vst [vmem:[#allocation175_spill] sm:$0xff] %v14630_v1  ;;  %v14633_v0 = vpop.f32.mrb[198].mxu0 }
 0x791   :  { %18169 = vst [vmem:[#allocation176_spill] sm:$0xff] %v14633_v0  ;;  %v14635_v45 = vpop.f32.mrb[199].mxu0  ;;  %v9829_v0 = vld [vmem:[%s16857_s4 + $0x160] sm:$0xff]  }
 0x792   :  { %18170 = vst [vmem:[#allocation177_spill] sm:$0xff] %v14635_v45  ;;  %6879 = vmatpush1.bf16.msra.mxu1 %v9829_v0  ;;  %v18186_v0 = vld [vmem:[#allocation56_spill] sm:$0xff] }
 0x793   :  { %6654 = vmatmul.mubr.bf16.gmra.mrb[132].mxu1 %v18171_v46  ;;  %6880 = vmatprep.subr.bf16.mxu1 %v17759_v57 }
 0x794   :  { %6661 = vmatprep.mubr.bf16.mxu1 %v13423_v10 }
 0x796   :  { %v14639_v41 = vpop.f32.mrb[200].mxu0 }
 0x797   :  { %18172 = vst [vmem:[#allocation25_spill] sm:$0xff] %v14639_v41  ;;  %v14641_v32 = vpop.f32.mrb[201].mxu0 }
 0x798   :  { %18173 = vst [vmem:[#allocation178_spill] sm:$0xff] %v14641_v32  ;;  %v14643_v36 = vpop.f32.mrb[202].mxu0 }
 0x799   :  { %18174 = vst [vmem:[#allocation179_spill] sm:$0xff] %v14643_v36  ;;  %v14645_v30 = vpop.f32.mrb[203].mxu0 }
 0x79a   :  { %18175 = vst [vmem:[#allocation180_spill] sm:$0xff] %v14645_v30  ;;  %v18181_v30 = vld [vmem:[#allocation46_spill] sm:$0xff] }
 0x79b   :  { %6662 = vmatmul.mubr.bf16.gmra.mrb[136].mxu1 %v18176_v18 }
 0x79c   :  { %6669 = vmatprep.mubr.bf16.mxu1 %v18068_v2 }
 0x79e   :  { %v14652_v45 = vpop.f32.mrb[204].mxu0 }
 0x79f   :  { %18177 = vst [vmem:[#allocation27_spill] sm:$0xff] %v14652_v45  ;;  %v14654_v1 = vpop.f32.mrb[205].mxu0 }
 0x7a0   :  { %18178 = vst [vmem:[#allocation181_spill] sm:$0xff] %v14654_v1  ;;  %v14657_v41 = vpop.f32.mrb[206].mxu0  ;;  %v9832_v1 = vld [vmem:[%s16857_s4 + $0x178] sm:$0xff]  }
 0x7a1   :  { %18179 = vst [vmem:[#allocation182_spill] sm:$0xff] %v14657_v41  ;;  %v14659_v36 = vpop.f32.mrb[207].mxu0  ;;  %v9830_v41 = vld [vmem:[%s16857_s4 + $0x168] sm:$0xff]  }
 0x7a2   :  { %18180 = vst [vmem:[#allocation183_spill] sm:$0xff] %v14659_v36  ;;  %6881 = vmatpush1.bf16.msra.mxu1 %v9830_v41  ;;  %v18187_v36 = vld [vmem:[#allocation59_spill] sm:$0xff] }
 0x7a3   :  { %6670 = vmatmul.mubr.bf16.gmra.mrb[140].mxu1 %v18181_v30  ;;  %6882 = vmatprep.subr.bf16.mxu1 %v17759_v57  ;;  %v18190_v41 = vld [vmem:[#allocation111_spill] sm:$0xff] }
 0x7a4   :  { %6677 = vmatprep.mubr.bf16.mxu1 %v18071_v58  ;;  %v5548_v58 = vrot.slane %v14335_v11, 1  ;;  %v18200_v11 = vld [vmem:[#allocation58_spill] sm:$0xff] }
 0x7a6   :  { %v14663_v32 = vpop.f32.mrb[208].mxu0 }
 0x7a7   :  { %18182 = vst [vmem:[#allocation46_spill] sm:$0xff] %v14663_v32  ;;  %v14665_v2 = vpop.f32.mrb[209].mxu0  ;;  %v18188_v32 = vld [vmem:[#allocation16_spill] sm:$0xff] }
 0x7a8   :  { %18183 = vst [vmem:[#allocation184_spill] sm:$0xff] %v14665_v2  ;;  %v14667_v10 = vpop.f32.mrb[210].mxu0  ;;  %v18191_v2 = vld [vmem:[#allocation112_spill] sm:$0xff] }
 0x7a9   :  { %18184 = vst [vmem:[#allocation185_spill] sm:$0xff] %v14667_v10  ;;  %v14669_v45 = vpop.f32.mrb[211].mxu0  ;;  %v9831_v10 = vld [vmem:[%s16857_s4 + $0x170] sm:$0xff]  }
 0x7aa   :  { %18185 = vst [vmem:[#allocation186_spill] sm:$0xff] %v14669_v45  ;;  %6883 = vmatpush1.bf16.msra.mxu1 %v9831_v10  ;;  %v18189_v45 = vld [vmem:[#allocation69_spill] sm:$0xff]  ;;  %v5545_v10 = vrot.slane %v14292_v50, 1  ;;  %v18194_v50 = vld [vmem:[#allocation34_spill] sm:$0xff] }
 0x7ab   :  { %6678 = vmatmul.mubr.bf16.gmra.mrb[144].mxu1 %v18186_v0  ;;  %6884 = vmatprep.subr.bf16.mxu1 %v17759_v57 }
 0x7ac   :  { %6685 = vmatprep.mubr.bf16.mxu1 %v18078_v28  ;;  %v5547_v28 = vrot.slane %v14318_v8, 1 }
 0x7ae   :  { %6885 = vmatpush1.bf16.msra.mxu1 %v9832_v1  ;;  %v14703_v1 = vsel %vm998_vm1, %v5547_v28, %v5548_v58  ;;  %v18197_v58 = vld [vmem:[#allocation125_spill] sm:$0xff]  ;;  %v18198_v28 = vld [vmem:[#allocation52_spill] sm:$0xff] }
 0x7af   :  { %7143 = vmatprep.subr.bf16.mxu1 %v17759_v57 }
 0x7b3   :  { %6686 = vmatmul.mubr.bf16.gmra.mrb[148].mxu1 %v18187_v36 }
 0x7b4   :  { %6693 = vmatprep.mubr.bf16.mxu1 %v18081_v61  ;;  %v18193_v61 = vrot.slane %v13537_v13, 1 }
 0x7bb   :  { %6694 = vmatmul.mubr.bf16.gmra.mrb[152].mxu1 %v18188_v32 }
 0x7bc   :  { %6701 = vmatprep.mubr.bf16.mxu1 %v18088_v14  ;;  %v18192_v14 = vld [vmem:[#allocation116_spill] sm:$0xff] }
 0x7c3   :  { %6702 = vmatmul.mubr.bf16.gmra.mrb[156].mxu1 %v18189_v45 }
 0x7c4   :  { %6709 = vmatprep.mubr.bf16.mxu1 %v18095_v16  ;;  %v5546_v16 = vsel %vm998_vm1, %v18193_v61, %v5545_v10  ;;  %v18195_v61 = vld [vmem:[#allocation29_spill] sm:$0xff] }
 0x7c5   :  { %v18201_v10 = vld [vmem:[#allocation133_spill] sm:$0xff] }
 0x7cb   :  { %6710 = vmatmul.mubr.bf16.gmra.mrb[160].mxu1 %v18190_v41 }
 0x7cc   :  { %6717 = vmatprep.mubr.bf16.mxu1 %v18191_v2 }
 0x7d3   :  { %6718 = vmatmul.mubr.bf16.gmra.mrb[164].mxu1 %v18192_v14 }
 0x7d4   :  { %6725 = vmatprep.mubr.bf16.mxu1 %v14318_v8  ;;  %v18199_v8 = vld [vmem:[#allocation129_spill] sm:$0xff] }
 0x7db   :  { %6726 = vmatmul.mubr.bf16.gmra.mrb[168].mxu1 %v5546_v16  ;;  %v18196_v16 = vld [vmem:[#allocation122_spill] sm:$0xff] }
 0x7dc   :  { %6733 = vmatprep.mubr.bf16.mxu1 %v13561_v6 }
 0x7e3   :  { %6734 = vmatmul.mubr.bf16.gmra.mrb[172].mxu1 %v14703_v1 }
 0x7e4   :  { %6741 = vmatprep.mubr.bf16.mxu1 %v13720_v4 }
 0x7eb   :  { %6742 = vmatmul.mubr.bf16.gmra.mrb[176].mxu1 %v13743_v22 }
 0x7ec   :  { %6749 = vmatprep.mubr.bf16.mxu1 %v14141_v42 }
 0x7f3   :  { %6750 = vmatmul.mubr.bf16.gmra.mrb[180].mxu1 %v18194_v50 }
 0x7f4   :  { %6757 = vmatprep.mubr.bf16.mxu1 %v14155_v24 }
 0x7fb   :  { %6758 = vmatmul.mubr.bf16.gmra.mrb[184].mxu1 %v18195_v61 }
 0x7fc   :  { %6765 = vmatprep.mubr.bf16.mxu1 %v14159_v21 }
 0x803   :  { %6766 = vmatmul.mubr.bf16.gmra.mrb[188].mxu1 %v18196_v16 }
 0x804   :  { %6773 = vmatprep.mubr.bf16.mxu1 %v14177_v17  ;;  %v18202_v17 = vld [vmem:[#allocation135_spill] sm:$0xff] }
 0x80b   :  { %6774 = vmatmul.mubr.bf16.gmra.mrb[192].mxu1 %v18197_v58 }
 0x80c   :  { %6781 = vmatprep.mubr.bf16.mxu1 %v14181_v49  ;;  %v18203_v49 = vld [vmem:[#allocation137_spill] sm:$0xff] }
 0x813   :  { %6782 = vmatmul.mubr.bf16.gmra.mrb[196].mxu1 %v18198_v28 }
 0x814   :  { %6789 = vmatprep.mubr.bf16.mxu1 %v14210_v60 }
 0x81b   :  { %6790 = vmatmul.mubr.bf16.gmra.mrb[200].mxu1 %v18199_v8 }
 0x81c   :  { %6797 = vmatprep.mubr.bf16.mxu1 %v14214_v12 }
 0x823   :  { %6798 = vmatmul.mubr.bf16.gmra.mrb[204].mxu1 %v18200_v11 }
 0x824   :  { %6805 = vmatprep.mubr.bf16.mxu1 %v14238_v9  ;;  %v18219_v9 = vld [vmem:[#allocation113_spill] sm:$0xff] }
 0x825   :  { %v5632_v12 = vshll.u32 %v18219_v9, 16 }
 0x827   :  { %v5634_v60 = vrot.slane %v5632_v12, 1  ;;  %v18220_v12 = vld [vmem:[#allocation141_spill] sm:$0xff] }
 0x82b   :  { %6806 = vmatmul.mubr.bf16.gmra.mrb[208].mxu1 %v18201_v10 }
 0x82c   :  { %6813 = vmatprep.mubr.bf16.mxu1 %v14242_v5  ;;  %v18204_v5 = vld [vmem:[#allocation14_spill] sm:$0xff] }
 0x833   :  { %6814 = vmatmul.mubr.bf16.gmra.mrb[212].mxu1 %v18202_v17 }
 0x834   :  { %6821 = vmatprep.mubr.bf16.mxu1 %v14267_v38  ;;  %v9833_v38 = vld [vmem:[%s16857_s4 + $0x180] sm:$0xff]  }
 0x83b   :  { %6822 = vmatmul.mubr.bf16.gmra.mrb[216].mxu1 %v18203_v49 }
 0x83c   :  { %6829 = vmatprep.mubr.bf16.mxu1 %v14274_v54  ;;  %v18205_v54 = vld [vmem:[#allocation22_spill] sm:$0xff] }
 0x843   :  { %6830 = vmatmul.mubr.bf16.gmra.mrb[220].mxu1 %v14298_v15 }
 0x844   :  { %6837 = vmatprep.mubr.bf16.mxu1 %v14305_v59  ;;  %v9834_v59 = vld [vmem:[%s16857_s4 + $0x188] sm:$0xff]  }
 0x84b   :  { %6838 = vmatmul.mubr.bf16.gmra.mrb[224].mxu1 %v14303_v52 }
 0x84c   :  { %6845 = vmatprep.mubr.bf16.mxu1 %v14309_v51 }
 0x853   :  { %6846 = vmatmul.mubr.bf16.gmra.mrb[228].mxu1 %v14338_v25 }
 0x854   :  { %6886 = vmatprep.mubr.bf16.mxu1 %v14556_v55  ;;  %v9835_v55 = vld [vmem:[%s16857_s4 + $0x190] sm:$0xff]  }
 0x85b   :  { %6887 = vmatmul.mubr.bf16.vlgmr.msra.gmra.mrb[104].mxu1 %v18204_v5  ;;  %v9836_v5 = vld [vmem:[%s16857_s4 + $0x198] sm:$0xff]  }
 0x85c   :  { %6894 = vmatprep.mubr.bf16.mxu1 %v18151_v39  ;;  %7144 = vmatpush1.bf16.msra.mxu1 %v9833_v38  ;;  %v18206_v38 = vld [vmem:[#allocation23_spill] sm:$0xff]  ;;  %v9839_v39 = vld [vmem:[%s16857_s4 + $0x1b0] sm:$0xff]  }
 0x85d   :  { %7145 = vmatprep.subr.bf16.mxu1 %v17759_v57 }
 0x860   :  { %7146 = vmatpush1.bf16.msra.mxu1 %v9834_v59  ;;  %v9837_v59 = vld [vmem:[%s16857_s4 + $0x1a0] sm:$0xff]  }
 0x861   :  { %7147 = vmatprep.subr.bf16.mxu1 %v17759_v57 }
 0x863   :  { %6895 = vmatmul.mubr.bf16.gmra.mrb[108].mxu1 %v18205_v54 }
 0x864   :  { %6902 = vmatprep.mubr.bf16.mxu1 %v18153_v63  ;;  %7148 = vmatpush1.bf16.msra.mxu1 %v9835_v55  ;;  %v9838_v63 = vld [vmem:[%s16857_s4 + $0x1a8] sm:$0xff]   ;;  %v18207_v55 = vld [vmem:[#allocation43_spill] sm:$0xff] }
 0x865   :  { %7149 = vmatprep.subr.bf16.mxu1 %v17759_v57 }
 0x868   :  { %7150 = vmatpush1.bf16.msra.mxu1 %v9836_v5  ;;  %v9841_v5 = vld [vmem:[%s16857_s4 + $0x1c0] sm:$0xff]  }
 0x869   :  { %7151 = vmatprep.subr.bf16.mxu1 %v17759_v57 }
 0x86b   :  { %6903 = vmatmul.mubr.bf16.gmra.mrb[112].mxu1 %v18206_v38 }
 0x86c   :  { %6910 = vmatprep.mubr.bf16.mxu1 %v18155_v40  ;;  %7152 = vmatpush1.bf16.msra.mxu1 %v9837_v59  ;;  %v9840_v40 = vld [vmem:[%s16857_s4 + $0x1b8] sm:$0xff]  }
 0x86d   :  { %7153 = vmatprep.subr.bf16.mxu1 %v17759_v57  ;;  %v18208_v59 = vld [vmem:[#allocation15_spill] sm:$0xff] }
 0x870   :  { %7154 = vmatpush1.bf16.msra.mxu1 %v9838_v63  ;;  %v9843_v63 = vld [vmem:[%s16857_s4 + $0x1d0] sm:$0xff]  }
 0x871   :  { %7155 = vmatprep.subr.bf16.mxu1 %v17759_v57 }
 0x873   :  { %6911 = vmatmul.mubr.bf16.gmra.mrb[116].mxu1 %v18207_v55 }
 0x874   :  { %6918 = vmatprep.mubr.bf16.mxu1 %v18161_v47  ;;  %7156 = vmatpush1.bf16.msra.mxu1 %v9839_v39  ;;  %v9842_v47 = vld [vmem:[%s16857_s4 + $0x1c8] sm:$0xff]   ;;  %v18209_v39 = vld [vmem:[#allocation60_spill] sm:$0xff] }
 0x875   :  { %7157 = vmatprep.subr.bf16.mxu1 %v17759_v57 }
 0x878   :  { %7158 = vmatpush1.bf16.msra.mxu1 %v9840_v40  ;;  %v9844_v40 = vld [vmem:[%s16857_s4 + $0x1d8] sm:$0xff]  }
 0x879   :  { %7159 = vmatprep.subr.bf16.mxu1 %v17759_v57 }
 0x87b   :  { %6919 = vmatmul.mubr.bf16.gmra.mrb[120].mxu1 %v18208_v59 }
 0x87c   :  { %6926 = vmatprep.mubr.bf16.mxu1 %v18166_v53  ;;  %7160 = vmatpush1.bf16.msra.mxu1 %v9841_v5  ;;  %v18210_v53 = vld [vmem:[#allocation115_spill] sm:$0xff]  ;;  %v18211_v5 = vld [vmem:[#allocation37_spill] sm:$0xff] }
 0x87d   :  { %7161 = vmatprep.subr.bf16.mxu1 %v17759_v57 }
 0x880   :  { %7162 = vmatpush1.bf16.msra.mxu1 %v9842_v47  ;;  %v18212_v47 = vld [vmem:[#allocation41_spill] sm:$0xff] }
 0x881   :  { %7163 = vmatprep.subr.bf16.mxu1 %v17759_v57 }
 0x883   :  { %6927 = vmatmul.mubr.bf16.gmra.mrb[124].mxu1 %v18209_v39 }
 0x884   :  { %6934 = vmatprep.mubr.bf16.mxu1 %v18171_v46  ;;  %7164 = vmatpush1.bf16.msra.mxu1 %v9843_v63  ;;  %v9845_v46 = vld [vmem:[%s16857_s4 + $0x1e0] sm:$0xff]   ;;  %v18214_v63 = vld [vmem:[#allocation126_spill] sm:$0xff] }
 0x885   :  { %7165 = vmatprep.subr.bf16.mxu1 %v17759_v57 }
 0x888   :  { %7166 = vmatpush1.bf16.msra.mxu1 %v9844_v40  ;;  %v18216_v40 = vld [vmem:[#allocation134_spill] sm:$0xff] }
 0x889   :  { %7167 = vmatprep.subr.bf16.mxu1 %v17759_v57 }
 0x88b   :  { %6935 = vmatmul.mubr.bf16.gmra.mrb[128].mxu1 %v18210_v53 }
 0x88c   :  { %6942 = vmatprep.mubr.bf16.mxu1 %v18176_v18  ;;  %7168 = vmatpush1.bf16.msra.mxu1 %v9845_v46  ;;  %v18213_v18 = vld [vmem:[#allocation35_spill] sm:$0xff]  ;;  %v5627_v46 = vshll.u32 %v18191_v2, 16 }
 0x88d   :  { %7169 = vmatprep.subr.bf16.mxu1 %v17759_v57 }
 0x893   :  { %6943 = vmatmul.mubr.bf16.gmra.mrb[132].mxu1 %v18211_v5 }
 0x894   :  { %6950 = vmatprep.mubr.bf16.mxu1 %v18181_v30  ;;  %v9846_v30 = vld [vmem:[%s16857_s4 + $0x1e8] sm:$0xff]  }
 0x895   :  { %7170 = vmatpush1.bf16.msra.mxu1 %v9846_v30  ;;  %v5629_v30 = vrot.slane %v5627_v46, 1 }
 0x896   :  { %7171 = vmatprep.subr.bf16.mxu1 %v17759_v57 }
 0x89b   :  { %6951 = vmatmul.mubr.bf16.gmra.mrb[136].mxu1 %v18212_v47 }
 0x89c   :  { %6958 = vmatprep.mubr.bf16.mxu1 %v18186_v0  ;;  %v18215_v0 = vld [vmem:[#allocation130_spill] sm:$0xff] }
 0x8a3   :  { %6959 = vmatmul.mubr.bf16.gmra.mrb[140].mxu1 %v18213_v18 }
 0x8a4   :  { %6966 = vmatprep.mubr.bf16.mxu1 %v18187_v36  ;;  %v9847_v36 = vld [vmem:[%s16857_s4 + $0x1f0] sm:$0xff]  }
 0x8a5   :  { %7172 = vmatpush1.bf16.msra.mxu1 %v9847_v36  ;;  %v9848_v36 = vld [vmem:[%s16857_s4 + $0x1f8] sm:$0xff]  }
 0x8a6   :  { %7173 = vmatprep.subr.bf16.mxu1 %v17759_v57 }
 0x8a9   :  { %7174 = vmatpush1.bf16.msra.mxu1 %v9848_v36 }
 0x8ab   :  { %6967 = vmatmul.mubr.bf16.gmra.mrb[144].mxu1 %v18214_v63 }
 0x8ac   :  { %6974 = vmatprep.mubr.bf16.mxu1 %v18188_v32  ;;  %v18217_v32 = vld [vmem:[#allocation138_spill] sm:$0xff] }
 0x8b3   :  { %6975 = vmatmul.mubr.bf16.gmra.mrb[148].mxu1 %v18215_v0 }
 0x8b4   :  { %6982 = vmatprep.mubr.bf16.mxu1 %v18189_v45  ;;  %v18218_v45 = vld [vmem:[#allocation117_spill] sm:$0xff] }
 0x8bb   :  { %6983 = vmatmul.mubr.bf16.gmra.mrb[152].mxu1 %v18216_v40 }
 0x8bc   :  { %6990 = vmatprep.mubr.bf16.mxu1 %v18190_v41  ;;  %v5625_v41 = vshrl.u32 %v18191_v2, 16 }
 0x8be   :  { %v5630_v57 = vor.u32 %v5629_v30, %v5625_v41 }
 0x8c3   :  { %6991 = vmatmul.mubr.bf16.gmra.mrb[156].mxu1 %v18217_v32 }
 0x8c4   :  { %6998 = vmatprep.mubr.bf16.mxu1 %v18192_v14  ;;  %v14832_v14 = vsel %vm517_vm0, %v5630_v57, %v5634_v60  ;;  %v18248_v57 = vld [vmem:[#allocation146_spill] sm:$0xff] }
 0x8cb   :  { %6999 = vmatmul.mubr.bf16.gmra.mrb[160].mxu1 %v14314_v23 }
 0x8cc   :  { %7006 = vmatprep.mubr.bf16.mxu1 %v18218_v45  ;;  %v18247_v45 = vld [vmem:[#allocation136_spill] sm:$0xff] }
 0x8d3   :  { %7007 = vmatmul.mubr.bf16.gmra.mrb[164].mxu1 %v14832_v14 }
 0x8d4   :  { %7014 = vmatprep.mubr.bf16.mxu1 %v14703_v1 }
 0x8db   :  { %7015 = vmatmul.mubr.bf16.gmra.mrb[168].mxu1 %v14351_v19 }
 0x8dc   :  { %7022 = vmatprep.mubr.bf16.mxu1 %v13743_v22  ;;  %v5639_v22 = vshll.u32 %v14309_v51, 16 }
 0x8de   :  { %v5641_v9 = vrot.slane %v5639_v22, 1 }
 0x8e3   :  { %7023 = vmatmul.mubr.bf16.gmra.mrb[172].mxu1 %v14359_v31 }
 0x8e4   :  { %7030 = vmatprep.mubr.bf16.mxu1 %v18194_v50  ;;  %v18224_v50 = vld [vmem:[#allocation13_spill] sm:$0xff] }
 0x8eb   :  { %7031 = vmatmul.mubr.bf16.gmra.mrb[176].mxu1 %v14367_v29 }
 0x8ec   :  { %7038 = vmatprep.mubr.bf16.mxu1 %v18195_v61  ;;  %v18228_v61 = vld [vmem:[#allocation28_spill] sm:$0xff] }
 0x8f3   :  { %7039 = vmatmul.mubr.bf16.gmra.mrb[180].mxu1 %v14375_v7 }
 0x8f4   :  { %7046 = vmatprep.mubr.bf16.mxu1 %v18196_v16  ;;  %v18229_v16 = vld [vmem:[#allocation32_spill] sm:$0xff] }
 0x8fb   :  { %7047 = vmatmul.mubr.bf16.gmra.mrb[184].mxu1 %v14383_v56 }
 0x8fc   :  { %7054 = vmatprep.mubr.bf16.mxu1 %v18197_v58  ;;  %v18230_v58 = vld [vmem:[#allocation47_spill] sm:$0xff] }
 0x903   :  { %7055 = vmatmul.mubr.bf16.gmra.mrb[188].mxu1 %v14391_v33 }
 0x904   :  { %7062 = vmatprep.mubr.bf16.mxu1 %v18198_v28  ;;  %v18231_v28 = vld [vmem:[#allocation54_spill] sm:$0xff] }
 0x90b   :  { %7063 = vmatmul.mubr.bf16.gmra.mrb[192].mxu1 %v14399_v27 }
 0x90c   :  { %7070 = vmatprep.mubr.bf16.mxu1 %v18199_v8  ;;  %v18232_v8 = vld [vmem:[#allocation20_spill] sm:$0xff] }
 0x913   :  { %7071 = vmatmul.mubr.bf16.gmra.mrb[196].mxu1 %v14407_v34 }
 0x914   :  { %7078 = vmatprep.mubr.bf16.mxu1 %v18200_v11  ;;  %v18233_v11 = vld [vmem:[#allocation114_spill] sm:$0xff] }
 0x91b   :  { %7079 = vmatmul.mubr.bf16.gmra.mrb[200].mxu1 %v14415_v20 }
 0x91c   :  { %7086 = vmatprep.mubr.bf16.mxu1 %v18201_v10  ;;  %v5670_v10 = vshll.u32 %v18233_v11, 16  ;;  %v18253_v11 = vld [vmem:[#allocation150_spill] sm:$0xff] }
 0x923   :  { %7087 = vmatmul.mubr.bf16.gmra.mrb[204].mxu1 %v14427_v43 }
 0x924   :  { %7094 = vmatprep.mubr.bf16.mxu1 %v18202_v17  ;;  %v18221_v17 = vld [vmem:[#allocation139_spill] sm:$0xff] }
 0x925   :  { %v5644_v60 = vshll.u32 %v18221_v17, 16 }
 0x927   :  { %v5646_v19 = vrot.slane %v5644_v60, 1 }
 0x92b   :  { %7095 = vmatmul.mubr.bf16.gmra.mrb[208].mxu1 %v14445_v37 }
 0x92c   :  { %7102 = vmatprep.mubr.bf16.mxu1 %v18203_v49  ;;  %v5637_v49 = vshrl.u32 %v14309_v51, 16 }
 0x933   :  { %7103 = vmatmul.mubr.bf16.gmra.mrb[212].mxu1 %v14464_v48 }
 0x934   :  { %7110 = vmatprep.mubr.bf16.mxu1 %v14298_v15  ;;  %v5642_v15 = vor.u32 %v5641_v9, %v5637_v49  ;;  %v18249_v9 = vld [vmem:[#allocation147_spill] sm:$0xff] }
 0x936   :  { %v14870_v1 = vsel %vm517_vm0, %v5642_v15, %v5646_v19  ;;  %v18250_v19 = vld [vmem:[#allocation26_spill] sm:$0xff] }
 0x93b   :  { %7111 = vmatmul.mubr.bf16.gmra.mrb[216].mxu1 %v14480_v3 }
 0x93c   :  { %7118 = vmatprep.mubr.bf16.mxu1 %v14303_v52  ;;  %v18222_v52 = vld [vmem:[#allocation6_spill] sm:$0xff] }
 0x943   :  { %7119 = vmatmul.mubr.bf16.gmra.mrb[220].mxu1 %v14496_v35 }
 0x944   :  { %7126 = vmatprep.mubr.bf16.mxu1 %v14338_v25  ;;  %v18223_v25 = vld [vmem:[#allocation12_spill] sm:$0xff] }
 0x94b   :  { %7127 = vmatmul.mubr.bf16.gmra.mrb[224].mxu1 %v14511_v26 }
 0x94c   :  { %7134 = vmatprep.mubr.bf16.mxu1 %v18220_v12 }
 0x953   :  { %7135 = vmatmul.mubr.bf16.gmra.mrb[228].mxu1 %v14870_v1 }
 0x954   :  { %7175 = vmatprep.mubr.bf16.mxu1 %v18205_v54  ;;  %v18225_v54 = vld [vmem:[#allocation19_spill] sm:$0xff] }
 0x95b   :  { %7176 = vmatmul.mubr.bf16.vlgmr.msra.gmra.mrb[104].mxu1 %v18143_v62  ;;  %v18226_v62 = vld [vmem:[#allocation17_spill] sm:$0xff] }
 0x95c   :  { %7183 = vmatprep.mubr.bf16.mxu1 %v18206_v38  ;;  %v18234_v38 = vld [vmem:[#allocation21_spill] sm:$0xff] }
 0x963   :  { %7184 = vmatmul.mubr.bf16.gmra.mrb[108].mxu1 %v18149_v44  ;;  %v18227_v44 = vld [vmem:[#allocation24_spill] sm:$0xff] }
 0x964   :  { %7191 = vmatprep.mubr.bf16.mxu1 %v18207_v55  ;;  %v5672_v55 = vrot.slane %v5670_v10, 1 }
 0x96b   :  { %7192 = vmatmul.mubr.bf16.gmra.mrb[112].mxu1 %v18222_v52 }
 0x96c   :  { %7199 = vmatprep.mubr.bf16.mxu1 %v18208_v59  ;;  %v18235_v59 = vld [vmem:[#allocation140_spill] sm:$0xff] }
 0x973   :  { %7200 = vmatmul.mubr.bf16.gmra.mrb[116].mxu1 %v18223_v25 }
 0x974   :  { %7207 = vmatprep.mubr.bf16.mxu1 %v18209_v39  ;;  %v5673_v39 = vsel %vm517_vm0, %v18235_v59, %v5672_v55  ;;  %v18254_v55 = vld [vmem:[#allocation152_spill] sm:$0xff] }
 0x97b   :  { %7208 = vmatmul.mubr.bf16.gmra.mrb[120].mxu1 %v18224_v50  ;;  %v18251_v50 = vld [vmem:[#allocation145_spill] sm:$0xff] }
 0x97c   :  { %7215 = vmatprep.mubr.bf16.mxu1 %v18210_v53  ;;  %v4943_v53 = vld [vmem:[#allocation3 + $0x358] sm:$0x3] }
 0x983   :  { %7216 = vmatmul.mubr.bf16.gmra.mrb[124].mxu1 %v18225_v54 }
 0x984   :  { %7223 = vmatprep.mubr.bf16.mxu1 %v18211_v5  ;;  %v9923_v5 = vld [vmem:[#allocation2] sm:$0xff] }
 0x98b   :  { %7224 = vmatmul.mubr.bf16.gmra.mrb[128].mxu1 %v18226_v62 }
 0x98c   :  { %7231 = vmatprep.mubr.bf16.mxu1 %v18212_v47  ;;  %v14906_v47 = vpack.c.bf16 %v9923_v5, %v9923_v5  ;;  %v18255_v5 = vld [vmem:[#allocation149_spill] sm:$0xff] }
 0x98e   :  { %v5677_v41 = vshll.u32 %v14906_v47, 16  ;;  %v5675_v17 = vshrl.u32 %v14906_v47, 16 }
 0x990   :  { %v5679_v60 = vrot.slane %v5677_v41, 1 }
 0x993   :  { %7232 = vmatmul.mubr.bf16.gmra.mrb[132].mxu1 %v18227_v44 }
 0x994   :  { %7239 = vmatprep.mubr.bf16.mxu1 %v18213_v18  ;;  %v5015_v18 = vpack.c.bf16 %v4943_v53, %v4943_v53 }
 0x996   :  { %v5682_v15 = vshll.u32 %v5015_v18, 16 }
 0x998   :  { %v5684_v52 = vrot.slane %v5682_v15, 1 }
 0x99b   :  { %7240 = vmatmul.mubr.bf16.gmra.mrb[136].mxu1 %v18228_v61  ;;  %v18252_v61 = vld [vmem:[#allocation108_spill] sm:$0xff] }
 0x99c   :  { %7247 = vmatprep.mubr.bf16.mxu1 %v18214_v63  ;;  %v5696_v63 = vrot.slane %v5015_v18, 1 }
 0x9a3   :  { %7248 = vmatmul.mubr.bf16.gmra.mrb[140].mxu1 %v18229_v16 }
 0x9a4   :  { %7255 = vmatprep.mubr.bf16.mxu1 %v18215_v0 }
 0x9ab   :  { %7256 = vmatmul.mubr.bf16.gmra.mrb[144].mxu1 %v18230_v58 }
 0x9ac   :  { %7263 = vmatprep.mubr.bf16.mxu1 %v18216_v40 }
 0x9b3   :  { %7264 = vmatmul.mubr.bf16.gmra.mrb[148].mxu1 %v18231_v28 }
 0x9b4   :  { %7271 = vmatprep.mubr.bf16.mxu1 %v18217_v32  ;;  %v18246_v32 = vld [vmem:[#allocation143_spill] sm:$0xff] }
 0x9bb   :  { %7272 = vmatmul.mubr.bf16.gmra.mrb[152].mxu1 %v18232_v8 }
 0x9bc   :  { %7279 = vmatprep.mubr.bf16.mxu1 %v14314_v23  ;;  %v5695_v23 = vrot.slane %v14906_v47, 1 }
 0x9be   :  { %v5697_v0 = vsel %vm998_vm1, %v5695_v23, %v5696_v63 }
 0x9bf   :  { %8876 = vmatmul.mubr.bf16.gmra.mrb[212].mxu0 %v5697_v0 }
 0x9c3   :  { %7280 = vmatmul.mubr.bf16.gmra.mrb[156].mxu1 %v18234_v38 }
 0x9c4   :  { %7287 = vmatprep.mubr.bf16.mxu1 %v14832_v14 }
 0x9cb   :  { %7288 = vmatmul.mubr.bf16.gmra.mrb[160].mxu1 %v18191_v2 }
 0x9cc   :  { %7295 = vmatprep.mubr.bf16.mxu1 %v5673_v39 }
 0x9d3   :  { %7296 = vmatmul.mubr.bf16.gmra.mrb[164].mxu1 %v13537_v13  ;;  %v18236_v13 = vld [vmem:[#allocation123_spill] sm:$0xff] }
 0x9d4   :  { %7303 = vmatprep.mubr.bf16.mxu1 %v14359_v31  ;;  %v18242_v31 = vld [vmem:[#allocation142_spill] sm:$0xff] }
 0x9db   :  { %7304 = vmatmul.mubr.bf16.gmra.mrb[168].mxu1 %v13561_v6  ;;  %v18237_v6 = vld [vmem:[#allocation124_spill] sm:$0xff] }
 0x9dc   :  { %7311 = vmatprep.mubr.bf16.mxu1 %v14367_v29 }
 0x9e3   :  { %7312 = vmatmul.mubr.bf16.gmra.mrb[172].mxu1 %v13720_v4  ;;  %v18238_v4 = vld [vmem:[#allocation127_spill] sm:$0xff] }
 0x9e4   :  { %7319 = vmatprep.mubr.bf16.mxu1 %v14375_v7 }
 0x9eb   :  { %7320 = vmatmul.mubr.bf16.gmra.mrb[176].mxu1 %v14141_v42  ;;  %v18239_v42 = vld [vmem:[#allocation128_spill] sm:$0xff] }
 0x9ec   :  { %7327 = vmatprep.mubr.bf16.mxu1 %v14383_v56 }
 0x9f3   :  { %7328 = vmatmul.mubr.bf16.gmra.mrb[180].mxu1 %v14155_v24  ;;  %v18240_v24 = vld [vmem:[#allocation131_spill] sm:$0xff] }
 0x9f4   :  { %7335 = vmatprep.mubr.bf16.mxu1 %v14391_v33  ;;  %v18243_v33 = vld [vmem:[#allocation144_spill] sm:$0xff] }
 0x9fb   :  { %7336 = vmatmul.mubr.bf16.gmra.mrb[184].mxu1 %v14159_v21  ;;  %v18241_v21 = vld [vmem:[#allocation132_spill] sm:$0xff] }
 0x9fc   :  { %7343 = vmatprep.mubr.bf16.mxu1 %v14399_v27 }
 0xa03   :  { %7344 = vmatmul.mubr.bf16.gmra.mrb[188].mxu1 %v18236_v13 }
 0xa04   :  { %7351 = vmatprep.mubr.bf16.mxu1 %v14407_v34 }
 0xa0b   :  { %7352 = vmatmul.mubr.bf16.gmra.mrb[192].mxu1 %v18237_v6 }
 0xa0c   :  { %7359 = vmatprep.mubr.bf16.mxu1 %v14415_v20  ;;  %v18244_v20 = vld [vmem:[#allocation30_spill] sm:$0xff] }
 0xa13   :  { %7360 = vmatmul.mubr.bf16.gmra.mrb[196].mxu1 %v18238_v4  ;;  %v18257_v4 = vld [vmem:[#allocation154_spill] sm:$0xff] }
 0xa14   :  { %7367 = vmatprep.mubr.bf16.mxu1 %v14427_v43 }
 0xa1b   :  { %7368 = vmatmul.mubr.bf16.gmra.mrb[200].mxu1 %v18239_v42 }
 0xa1c   :  { %7375 = vmatprep.mubr.bf16.mxu1 %v14445_v37  ;;  %v18245_v37 = vld [vmem:[#allocation118_spill] sm:$0xff] }
 0xa23   :  { %7376 = vmatmul.mubr.bf16.gmra.mrb[204].mxu1 %v18240_v24 }
 0xa24   :  { %7383 = vmatprep.mubr.bf16.mxu1 %v14464_v48 }
 0xa2b   :  { %7384 = vmatmul.mubr.bf16.gmra.mrb[208].mxu1 %v18241_v21 }
 0xa2c   :  { %7391 = vmatprep.mubr.bf16.mxu1 %v14480_v3 }
 0xa2e   :  { %v7177_v2 = vpop.f32.mrb[104].mxu1 }
 0xa2f   :  { %v14935_v29 = vadd.f32 %v18242_v31, %v7177_v2  ;;  %v7179_v7 = vpop.f32.mrb[105].mxu1  ;;  %v18258_v2 = vld [vmem:[#allocation156_spill] sm:$0xff] }
 0xa30   :  { %v7180_v56 = vpop.f32.mrb[106].mxu1 }
 0xa31   :  { %v14938_v27 = vadd.f32 %v18243_v33, %v7180_v56  ;;  %v7182_v34 = vpop.f32.mrb[107].mxu1  ;;  %v18259_v56 = vld [vmem:[#allocation153_spill] sm:$0xff] }
 0xa33   :  { %7392 = vmatmul.mubr.bf16.gmra.mrb[212].mxu1 %v18244_v20 }
 0xa34   :  { %7399 = vmatprep.mubr.bf16.mxu1 %v14496_v35 }
 0xa36   :  { %v7185_v43 = vpop.f32.mrb[108].mxu1 }
 0xa37   :  { %v14943_v48 = vadd.f32 %v18245_v37, %v7185_v43  ;;  %v7187_v40 = vpop.f32.mrb[109].mxu1  ;;  %v7793_v43 = vmul.f32 %v14938_v27, %v14938_v27  ;;  %v18260_v37 = vld [vmem:[#allocation155_spill] sm:$0xff] }
 0xa38   :  { %v7188_v3 = vpop.f32.mrb[110].mxu1 }
 0xa39   :  { %v14946_v46 = vadd.f32 %v18246_v32, %v7188_v3  ;;  %v7190_v30 = vpop.f32.mrb[111].mxu1  ;;  %v7792_v32 = vmul.f32 %v14935_v29, %v14935_v29 }
 0xa3a   :  { %v7723_v30 = vadd.f32 %v14938_v27, %v14935_v29 }
 0xa3b   :  { %7400 = vmatmul.mubr.bf16.gmra.mrb[216].mxu1 %v18247_v45  ;;  %v7794_v45 = vmul.f32 %v14943_v48, %v14943_v48  ;;  %v7856_v41 = vadd.f32 %v7793_v43, %v7792_v32 }
 0xa3c   :  { %7407 = vmatprep.mubr.bf16.mxu1 %v14511_v26  ;;  %v5680_v26 = vor.u32 %v5679_v60, %v5675_v17 }
 0xa3e   :  { %v7193_v36 = vpop.f32.mrb[112].mxu1  ;;  %v5685_v28 = vsel %vm517_vm0, %v5680_v26, %v5684_v52  ;;  %v18262_v26 = vld [vmem:[#allocation160_spill] sm:$0xff] }
 0xa3f   :  { %v14952_v14 = vadd.f32 %v18248_v57, %v7193_v36  ;;  %v7195_v35 = vpop.f32.mrb[113].mxu1  ;;  %v7724_v36 = vadd.f32 %v7723_v30, %v14943_v48 }
 0xa40   :  { %v7196_v22 = vpop.f32.mrb[114].mxu1  ;;  %v7857_v35 = vadd.f32 %v7856_v41, %v7794_v45 }
 0xa41   :  { %v14955_v12 = vadd.f32 %v18249_v9, %v7196_v22  ;;  %v7198_v49 = vpop.f32.mrb[115].mxu1  ;;  %v7795_v22 = vmul.f32 %v14946_v46, %v14946_v46  ;;  %v18261_v9 = vld [vmem:[#allocation158_spill] sm:$0xff]  ;;  %v7725_v15 = vadd.f32 %v7724_v36, %v14946_v46 }
 0xa43   :  { %7408 = vmatmul.mubr.bf16.gmra.mrb[220].mxu1 %v18250_v19  ;;  %v7796_v19 = vmul.f32 %v14952_v14, %v14952_v14 }
 0xa44   :  { %7415 = vmatprep.mubr.bf16.mxu1 %v14870_v1 }
 0xa46   :  { %v7201_v25 = vpop.f32.mrb[116].mxu1 }
 0xa47   :  { %v14961_v54 = vadd.f32 %v18251_v50, %v7201_v25  ;;  %v7203_v62 = vpop.f32.mrb[117].mxu1  ;;  %v7858_v50 = vadd.f32 %v7857_v35, %v7795_v22 }
 0xa48   :  { %v7204_v44 = vpop.f32.mrb[118].mxu1  ;;  %v7726_v62 = vadd.f32 %v7725_v15, %v14952_v14 }
 0xa49   :  { %v14964_v16 = vadd.f32 %v18252_v61, %v7204_v44  ;;  %v7206_v58 = vpop.f32.mrb[119].mxu1  ;;  %v7859_v44 = vadd.f32 %v7858_v50, %v7796_v19  ;;  %v7797_v61 = vmul.f32 %v14955_v12, %v14955_v12 }
 0xa4b   :  { %7416 = vmatmul.mubr.bf16.gmra.mrb[224].mxu1 %v14309_v51  ;;  %v18256_v51 = vld [vmem:[#allocation151_spill] sm:$0xff] }
 0xa4c   :  { %7423 = vmatprep.mubr.bf16.mxu1 %v5685_v28  ;;  %v7727_v28 = vadd.f32 %v7726_v62, %v14955_v12 }
 0xa4e   :  { %v7209_v8 = vpop.f32.mrb[120].mxu1 }
 0xa4f   :  { %v14969_v1 = vadd.f32 %v18253_v11, %v7209_v8  ;;  %v7211_v10 = vpop.f32.mrb[121].mxu1  ;;  %v7798_v8 = vmul.f32 %v14961_v54, %v14961_v54  ;;  %v18263_v11 = vld [vmem:[#allocation157_spill] sm:$0xff] }
 0xa50   :  { %v7212_v38 = vpop.f32.mrb[122].mxu1 }
 0xa51   :  { %v14972_v59 = vadd.f32 %v18254_v55, %v7212_v38  ;;  %v7214_v39 = vpop.f32.mrb[123].mxu1 }
 0xa52   :  { %v7860_v39 = vadd.f32 %v7859_v44, %v7797_v61 }
 0xa53   :  { %7424 = vmatmul.mubr.bf16.gmra.mrb[228].mxu1 %v14906_v47  ;;  %v7801_v43 = vmul.f32 %v14972_v59, %v14972_v59 }
 0xa56   :  { %v7217_v53 = vpop.f32.mrb[124].mxu1 }
 0xa57   :  { %v14976_v18 = vadd.f32 %v18255_v5, %v7217_v53  ;;  %v7219_v23 = vpop.f32.mrb[125].mxu1  ;;  %v7728_v53 = vadd.f32 %v7727_v28, %v14961_v54  ;;  %v18264_v5 = vld [vmem:[#allocation159_spill] sm:$0xff] }
 0xa58   :  { %v7220_v63 = vpop.f32.mrb[126].mxu1 }
 0xa59   :  { %v14979_v0 = vadd.f32 %v18256_v51, %v7220_v63  ;;  %v7222_v13 = vpop.f32.mrb[127].mxu1  ;;  %v7861_v51 = vadd.f32 %v7860_v39, %v7798_v8  ;;  %v7802_v45 = vmul.f32 %v14976_v18, %v14976_v18 }
 0xa5a   :  { %v7799_v13 = vmul.f32 %v14964_v16, %v14964_v16 }
 0xa5b   :  { %v7803_v22 = vmul.f32 %v14979_v0, %v14979_v0 }
 0xa5e   :  { %v7225_v6 = vpop.f32.mrb[128].mxu1 }
 0xa5f   :  { %v14982_v42 = vadd.f32 %v18257_v4, %v7225_v6  ;;  %v7227_v24 = vpop.f32.mrb[129].mxu1  ;;  %v7729_v6 = vadd.f32 %v7728_v53, %v14964_v16  ;;  %v7800_v4 = vmul.f32 %v14969_v1, %v14969_v1 }
 0xa60   :  { %v7228_v21 = vpop.f32.mrb[130].mxu1 }
 0xa61   :  { %v14985_v31 = vadd.f32 %v18258_v2, %v7228_v21  ;;  %v7230_v47 = vpop.f32.mrb[131].mxu1  ;;  %v7862_v21 = vadd.f32 %v7861_v51, %v7799_v13  ;;  %v7730_v2 = vadd.f32 %v7729_v6, %v14969_v1  ;;  %v18270_v13 = vld [vmem:[#allocation7_spill] sm:$0xff] }
 0xa62   :  { %v18265_v47 = vld [vmem:[#allocation162_spill] sm:$0xff] }
 0xa63   :  { %v7731_v30 = vadd.f32 %v7730_v2, %v14972_v59  ;;  %v7805_v28 = vmul.f32 %v14985_v31, %v14985_v31 }
 0xa65   :  { %v7732_v36 = vadd.f32 %v7731_v30, %v14976_v18 }
 0xa66   :  { %v7233_v7 = vpop.f32.mrb[132].mxu1 }
 0xa67   :  { %v14988_v33 = vadd.f32 %v18259_v56, %v7233_v7  ;;  %v7235_v34 = vpop.f32.mrb[133].mxu1  ;;  %v7733_v19 = vadd.f32 %v7732_v36, %v14979_v0  ;;  %v18272_v36 = vld [vmem:[#allocation167_spill] sm:$0xff] }
 0xa68   :  { %v7236_v20 = vpop.f32.mrb[134].mxu1 }
 0xa69   :  { %v14993_v40 = vadd.f32 %v18260_v37, %v7236_v20  ;;  %v7238_v3 = vpop.f32.mrb[135].mxu1  ;;  %v7863_v20 = vadd.f32 %v7862_v21, %v7800_v4  ;;  %v18266_v37 = vld [vmem:[#allocation164_spill] sm:$0xff]  ;;  %v7734_v61 = vadd.f32 %v7733_v19, %v14982_v42 }
 0xa6b   :  { %v7864_v41 = vadd.f32 %v7863_v20, %v7801_v43  ;;  %v7807_v21 = vmul.f32 %v14993_v40, %v14993_v40  ;;  %v18271_v43 = vld [vmem:[#allocation165_spill] sm:$0xff] }
 0xa6d   :  { %v7865_v35 = vadd.f32 %v7864_v41, %v7802_v45 }
 0xa6e   :  { %v7241_v57 = vpop.f32.mrb[136].mxu1 }
 0xa6f   :  { %v15005_v49 = vadd.f32 %v18261_v9, %v7241_v57  ;;  %v7243_v17 = vpop.f32.mrb[137].mxu1  ;;  %v18267_v9 = vld [vmem:[#allocation161_spill] sm:$0xff]  ;;  %v7866_v44 = vadd.f32 %v7865_v35, %v7803_v22 }
 0xa70   :  { %v7244_v60 = vpop.f32.mrb[138].mxu1 }
 0xa71   :  { %v15011_v52 = vadd.f32 %v18262_v26, %v7244_v60  ;;  %v7246_v25 = vpop.f32.mrb[139].mxu1  ;;  %v7804_v26 = vmul.f32 %v14982_v42, %v14982_v42 }
 0xa72   :  { %v18268_v25 = vld [vmem:[#allocation163_spill] sm:$0xff] }
 0xa73   :  { %v7809_v41 = vmul.f32 %v15011_v52, %v15011_v52 }
 0xa76   :  { %v7249_v58 = vpop.f32.mrb[140].mxu1 }
 0xa77   :  { %v15020_v10 = vadd.f32 %v18263_v11, %v7249_v58  ;;  %v7251_v38 = vpop.f32.mrb[141].mxu1  ;;  %v7867_v58 = vadd.f32 %v7866_v44, %v7804_v26  ;;  %v7735_v11 = vadd.f32 %v7734_v61, %v14985_v31 }
 0xa78   :  { %v7252_v55 = vpop.f32.mrb[142].mxu1  ;;  %v7806_v38 = vmul.f32 %v14988_v33, %v14988_v33 }
 0xa79   :  { %v15024_v23 = vadd.f32 %v18264_v5, %v7252_v55  ;;  %v7254_v63 = vpop.f32.mrb[143].mxu1  ;;  %v18269_v55 = vld [vmem:[#allocation166_spill] sm:$0xff]  ;;  %v7736_v51 = vadd.f32 %v7735_v11, %v14988_v33  ;;  %v18274_v11 = vld [vmem:[#allocation4_spill] sm:$0xff] }
 0xa7a   :  { %v7868_v63 = vadd.f32 %v7867_v58, %v7805_v28 }
 0xa7b   :  { %v7737_v2 = vadd.f32 %v7736_v51, %v14993_v40 }
 0xa7d   :  { %v7738_v20 = vadd.f32 %v7737_v2, %v15005_v49  ;;  %v18275_v2 = vld [vmem:[#allocation82_spill] sm:$0xff] }
 0xa7e   :  { %v7257_v24 = vpop.f32.mrb[144].mxu1 }
 0xa7f   :  { %v15033_v7 = vadd.f32 %v18265_v47, %v7257_v24  ;;  %v7259_v56 = vpop.f32.mrb[145].mxu1  ;;  %v7869_v24 = vadd.f32 %v7868_v63, %v7806_v38  ;;  %v7808_v47 = vmul.f32 %v15005_v49, %v15005_v49  ;;  %v7739_v22 = vadd.f32 %v7738_v20, %v15011_v52 }
 0xa80   :  { %v7260_v34 = vpop.f32.mrb[146].mxu1 }
 0xa81   :  { %v15038_v3 = vadd.f32 %v18266_v37, %v7260_v34  ;;  %v7262_v32 = vpop.f32.mrb[147].mxu1  ;;  %v7870_v34 = vadd.f32 %v7869_v24, %v7807_v21 }
 0xa83   :  { %v7871_v45 = vadd.f32 %v7870_v34, %v7808_v47  ;;  %v7813_v51 = vmul.f32 %v15038_v3, %v15038_v3 }
 0xa86   :  { %v7265_v57 = vpop.f32.mrb[148].mxu1 }
 0xa87   :  { %v15047_v17 = vadd.f32 %v18267_v9, %v7265_v57  ;;  %v7267_v60 = vpop.f32.mrb[149].mxu1  ;;  %v7810_v9 = vmul.f32 %v15020_v10, %v15020_v10 }
 0xa88   :  { %v7268_v15 = vpop.f32.mrb[150].mxu1  ;;  %v7872_v60 = vadd.f32 %v7871_v45, %v7809_v41  ;;  %v18276_v45 = vld [vmem:[#allocation168_spill] sm:$0xff] }
 0xa89   :  { %v15053_v50 = vadd.f32 %v18268_v25, %v7268_v15  ;;  %v7270_v62 = vpop.f32.mrb[151].mxu1  ;;  %v7740_v15 = vadd.f32 %v7739_v22, %v15020_v10  ;;  %v7811_v25 = vmul.f32 %v15024_v23, %v15024_v23  ;;  %v7814_v21 = vmul.f32 %v15047_v17, %v15047_v17 }
 0xa8a   :  { %v7873_v26 = vadd.f32 %v7872_v60, %v7810_v9  ;;  %v18273_v62 = vld [vmem:[#allocation84_spill] sm:$0xff] }
 0xa8b   :  { %v7741_v28 = vadd.f32 %v7740_v15, %v15024_v23  ;;  %v7815_v9 = vmul.f32 %v15053_v50, %v15053_v50 }
 0xa8e   :  { %v7273_v8 = vpop.f32.mrb[152].mxu1 }
 0xa8f   :  { %v15062_v39 = vadd.f32 %v18269_v55, %v7273_v8  ;;  %v7275_v53 = vpop.f32.mrb[153].mxu1  ;;  %v7812_v8 = vmul.f32 %v15033_v7, %v15033_v7 }
 0xa90   :  { %v7276_v5 = vpop.f32.mrb[154].mxu1  ;;  %v7874_v53 = vadd.f32 %v7873_v26, %v7811_v25 }
 0xa91   :  { %v15066_v6 = vadd.f32 %v18270_v13, %v7276_v5  ;;  %v7278_v4 = vpop.f32.mrb[155].mxu1  ;;  %v7742_v5 = vadd.f32 %v7741_v28, %v15033_v7  ;;  %v7816_v15 = vmul.f32 %v15062_v39, %v15062_v39 }
 0xa92   :  { %v7875_v63 = vadd.f32 %v7874_v53, %v7812_v8  ;;  %v15100_v4 = vpop.f32.mrb[212].mxu0 }
 0xa93   :  { %v7743_v24 = vadd.f32 %v7742_v5, %v15038_v3  ;;  %v15108_v34 = vpop.f32.mrb[213].mxu0 }
 0xa96   :  { %v7281_v56 = vpop.f32.mrb[156].mxu1 }
 0xa97   :  { %v15075_v37 = vadd.f32 %v18271_v43, %v7281_v56  ;;  %v7283_v32 = vpop.f32.mrb[157].mxu1  ;;  %v15110_v43 = vpop.f32.mrb[214].mxu0 }
 0xa98   :  { %v7284_v30 = vpop.f32.mrb[158].mxu1  ;;  %v7876_v32 = vadd.f32 %v7875_v63, %v7813_v51 }
 0xa99   :  { %v15080_v57 = vadd.f32 %v18272_v36, %v7284_v30  ;;  %v7286_v35 = vpop.f32.mrb[159].mxu1  ;;  %v7744_v30 = vadd.f32 %v7743_v24, %v15047_v17  ;;  %v7818_v51 = vmul.f32 %v15075_v37, %v15075_v37 }
 0xa9a   :  { %v15116_v35 = vpop.f32.mrb[215].mxu0  ;;  %v7877_v22 = vadd.f32 %v7876_v32, %v7814_v21 }
 0xa9b   :  { %v7745_v60 = vadd.f32 %v7744_v30, %v15053_v50 }
 0xa9c   :  { %v7878_v26 = vadd.f32 %v7877_v22, %v7815_v9  ;;  %v18280_v9 = vld [vmem:[#allocation170_spill] sm:$0xff] }
 0xa9d   :  { %v7746_v25 = vadd.f32 %v7745_v60, %v15062_v39 }
 0xa9e   :  { %v7289_v19 = vpop.f32.mrb[160].mxu1  ;;  %v7879_v8 = vadd.f32 %v7878_v26, %v7816_v15 }
 0xa9f   :  { %v15089_v44 = vadd.f32 %v18273_v62, %v7289_v19  ;;  %v7291_v61 = vpop.f32.mrb[161].mxu1  ;;  %v18277_v62 = vld [vmem:[#allocation169_spill] sm:$0xff]  ;;  %v7747_v63 = vadd.f32 %v7746_v25, %v15066_v6 }
 0xaa0   :  { %v7292_v58 = vpop.f32.mrb[162].mxu1 }
 0xaa1   :  { %v15095_v38 = vadd.f32 %v18274_v11, %v7292_v58  ;;  %v7294_v55 = vpop.f32.mrb[163].mxu1  ;;  %v7817_v11 = vmul.f32 %v15066_v6, %v15066_v6  ;;  %v7748_v24 = vadd.f32 %v7747_v63, %v15075_v37  ;;  %v7820_v22 = vmul.f32 %v15089_v44, %v15089_v44 }
 0xaa2   :  { %v18278_v55 = vld [vmem:[#allocation5_spill] sm:$0xff] }
 0xaa6   :  { %v7297_v13 = vpop.f32.mrb[164].mxu1 }
 0xaa7   :  { %v15106_v47 = vadd.f32 %v18275_v2, %v7297_v13  ;;  %v7299_v56 = vpop.f32.mrb[165].mxu1  ;;  %v7880_v13 = vadd.f32 %v7879_v8, %v7817_v11  ;;  %v18281_v11 = vld [vmem:[#allocation10_spill] sm:$0xff] }
 0xaa8   :  { %v7300_v20 = vpop.f32.mrb[166].mxu1  ;;  %v7819_v56 = vmul.f32 %v15080_v57, %v15080_v57 }
 0xaa9   :  { %v15114_v41 = vadd.f32 %v18276_v45, %v7300_v20  ;;  %v7302_v36 = vpop.f32.mrb[167].mxu1  ;;  %v7881_v2 = vadd.f32 %v7880_v13, %v7818_v51  ;;  %v18279_v20 = vld [vmem:[#allocation8_spill] sm:$0xff]  ;;  %v7822_v8 = vmul.f32 %v15106_v47, %v15106_v47 }
 0xaaa   :  { %v7749_v36 = vadd.f32 %v7748_v24, %v15080_v57  ;;  %v18282_v24 = vld [vmem:[#allocation171_spill] sm:$0xff] }
 0xaac   :  { %v7750_v26 = vadd.f32 %v7749_v36, %v15089_v44 }
 0xaae   :  { %v7305_v19 = vpop.f32.mrb[168].mxu1 }
 0xaaf   :  { %v15125_v61 = vadd.f32 %v18277_v62, %v7305_v19  ;;  %v7307_v58 = vpop.f32.mrb[169].mxu1  ;;  %v7882_v19 = vadd.f32 %v7881_v2, %v7819_v56  ;;  %v7821_v62 = vmul.f32 %v15095_v38, %v15095_v38 }
 0xab0   :  { %v7308_v28 = vpop.f32.mrb[170].mxu1 }
 0xab1   :  { %v15130_v53 = vadd.f32 %v18278_v55, %v7308_v28  ;;  %v7310_v5 = vpop.f32.mrb[171].mxu1  ;;  %v7883_v25 = vadd.f32 %v7882_v19, %v7820_v22  ;;  %v7751_v28 = vadd.f32 %v7750_v26, %v15095_v38 }
 0xab3   :  { %v7884_v51 = vadd.f32 %v7883_v25, %v7821_v62  ;;  %v7752_v13 = vadd.f32 %v7751_v28, %v15106_v47  ;;  %v18284_v28 = vld [vmem:[#allocation11_spill] sm:$0xff] }
 0xab5   :  { %v7885_v56 = vadd.f32 %v7884_v51, %v7822_v8 }
 0xab6   :  { %v7313_v21 = vpop.f32.mrb[172].mxu1 }
 0xab7   :  { %v15139_v32 = vadd.f32 %v18279_v20, %v7313_v21  ;;  %v7315_v30 = vpop.f32.mrb[173].mxu1  ;;  %v7823_v20 = vmul.f32 %v15114_v41, %v15114_v41 }
 0xab8   :  { %v7316_v45 = vpop.f32.mrb[174].mxu1  ;;  %v7753_v30 = vadd.f32 %v7752_v13, %v15114_v41 }
 0xab9   :  { %v15145_v60 = vadd.f32 %v18280_v9, %v7316_v45  ;;  %v7318_v15 = vpop.f32.mrb[175].mxu1  ;;  %v7824_v45 = vmul.f32 %v15125_v61, %v15125_v61  ;;  %v7886_v22 = vadd.f32 %v7885_v56, %v7823_v20  ;;  %v18286_v20 = vld [vmem:[#allocation172_spill] sm:$0xff] }
 0xaba   :  { %v7754_v9 = vadd.f32 %v7753_v30, %v15125_v61  ;;  %v18283_v15 = vld [vmem:[#allocation9_spill] sm:$0xff] }
 0xabb   :  { %v7887_v62 = vadd.f32 %v7886_v22, %v7824_v45  ;;  %v7827_v56 = vmul.f32 %v15145_v60, %v15145_v60 }
 0xabe   :  { %v7321_v58 = vpop.f32.mrb[176].mxu1 }
 0xabf   :  { %v15154_v55 = vadd.f32 %v18281_v11, %v7321_v58  ;;  %v7323_v5 = vpop.f32.mrb[177].mxu1  ;;  %v7825_v58 = vmul.f32 %v15130_v53, %v15130_v53 }
 0xac0   :  { %v7324_v63 = vpop.f32.mrb[178].mxu1  ;;  %v7755_v5 = vadd.f32 %v7754_v9, %v15130_v53 }
 0xac1   :  { %v15158_v21 = vadd.f32 %v18282_v24, %v7324_v63  ;;  %v7326_v2 = vpop.f32.mrb[179].mxu1  ;;  %v7826_v63 = vmul.f32 %v15139_v32, %v15139_v32  ;;  %v7888_v51 = vadd.f32 %v7887_v62, %v7825_v58  ;;  %v7828_v9 = vmul.f32 %v15154_v55, %v15154_v55 }
 0xac2   :  { %v7756_v13 = vadd.f32 %v7755_v5, %v15139_v32 }
 0xac3   :  { %v7889_v2 = vadd.f32 %v7888_v51, %v7826_v63 }
 0xac4   :  { %v7757_v22 = vadd.f32 %v7756_v13, %v15145_v60  ;;  %v18290_v13 = vld [vmem:[#allocation18_spill] sm:$0xff] }
 0xac5   :  { %v7890_v62 = vadd.f32 %v7889_v2, %v7827_v56  ;;  %v18292_v56 = vld [vmem:[#allocation173_spill] sm:$0xff] }
 0xac6   :  { %v7329_v36 = vpop.f32.mrb[180].mxu1  ;;  %v7758_v58 = vadd.f32 %v7757_v22, %v15154_v55 }
 0xac7   :  { %v15167_v19 = vadd.f32 %v18283_v15, %v7329_v36  ;;  %v7331_v26 = vpop.f32.mrb[181].mxu1  ;;  %v18288_v15 = vld [vmem:[#allocation174_spill] sm:$0xff] }
 0xac8   :  { %v7332_v25 = vpop.f32.mrb[182].mxu1  ;;  %v7759_v63 = vadd.f32 %v7758_v58, %v15158_v21 }
 0xac9   :  { %v15172_v8 = vadd.f32 %v18284_v28, %v7332_v25  ;;  %v7334_v11 = vpop.f32.mrb[183].mxu1  ;;  %v7891_v28 = vadd.f32 %v7890_v62, %v7828_v9  ;;  %v7830_v51 = vmul.f32 %v15167_v19, %v15167_v19 }
 0xaca   :  { %v7829_v11 = vmul.f32 %v15158_v21, %v15158_v21  ;;  %v7760_v2 = vadd.f32 %v7759_v63, %v15167_v19 }
 0xacb   :  { %18285 = vst [vmem:[#allocation56_spill] sm:$0xff] %v15172_v8 }
 0xacc   :  { %v7761_v62 = vadd.f32 %v7760_v2, %v15172_v8 }
 0xace   :  { %v7337_v24 = vpop.f32.mrb[184].mxu1 }
 0xacf   :  { %v15181_v30 = vadd.f32 %v18286_v20, %v7337_v24  ;;  %v7339_v45 = vpop.f32.mrb[185].mxu1 }
 0xad0   :  { %v7340_v36 = vpop.f32.mrb[186].mxu1 }
 0xad1   :  { %18287 = vst [vmem:[#allocation59_spill] sm:$0xff] %v15181_v30  ;;  %v15187_v26 = vadd.f32 %v18288_v15, %v7340_v36  ;;  %v7342_v25 = vpop.f32.mrb[187].mxu1  ;;  %v7892_v36 = vadd.f32 %v7891_v28, %v7829_v11  ;;  %v7832_v58 = vmul.f32 %v15181_v30, %v15181_v30  ;;  %v18294_v28 = vld [vmem:[#allocation175_spill] sm:$0xff] }
 0xad2   :  { %v7831_v25 = vmul.f32 %v15172_v8, %v15172_v8 }
 0xad3   :  { %18289 = vst [vmem:[#allocation16_spill] sm:$0xff] %v15187_v26  ;;  %v7893_v15 = vadd.f32 %v7892_v36, %v7830_v51  ;;  %v7833_v51 = vmul.f32 %v15187_v26, %v15187_v26  ;;  %v18296_v36 = vld [vmem:[#allocation177_spill] sm:$0xff] }
 0xad6   :  { %v7345_v5 = vpop.f32.mrb[188].mxu1 }
 0xad7   :  { %v15196_v24 = vadd.f32 %v18290_v13, %v7345_v5  ;;  %v7347_v20 = vpop.f32.mrb[189].mxu1  ;;  %v7894_v13 = vadd.f32 %v7893_v15, %v7831_v25 }
 0xad8   :  { %v7348_v45 = vpop.f32.mrb[190].mxu1  ;;  %v7762_v20 = vadd.f32 %v7761_v62, %v15181_v30 }
 0xad9   :  { %18291 = vst [vmem:[#allocation69_spill] sm:$0xff] %v15196_v24  ;;  %v15200_v22 = vadd.f32 %v18292_v56, %v7348_v45  ;;  %v7350_v9 = vpop.f32.mrb[191].mxu1  ;;  %v7895_v56 = vadd.f32 %v7894_v13, %v7832_v58  ;;  %v7834_v15 = vmul.f32 %v15196_v24, %v15196_v24  ;;  %v18298_v13 = vld [vmem:[#allocation33_spill] sm:$0xff] }
 0xada   :  { %v7763_v8 = vadd.f32 %v7762_v20, %v15187_v26 }
 0xadb   :  { %18293 = vst [vmem:[#allocation111_spill] sm:$0xff] %v15200_v22  ;;  %v7896_v25 = vadd.f32 %v7895_v56, %v7833_v51  ;;  %v7835_v58 = vmul.f32 %v15200_v22, %v15200_v22 }
 0xadc   :  { %v7764_v62 = vadd.f32 %v7763_v8, %v15196_v24 }
 0xade   :  { %v7353_v5 = vpop.f32.mrb[192].mxu1 }
 0xadf   :  { %v15209_v11 = vadd.f32 %v18294_v28, %v7353_v5  ;;  %v7355_v63 = vpop.f32.mrb[193].mxu1  ;;  %v7897_v28 = vadd.f32 %v7896_v25, %v7834_v15 }
 0xae0   :  { %v7356_v45 = vpop.f32.mrb[194].mxu1 }
 0xae1   :  { %18295 = vst [vmem:[#allocation112_spill] sm:$0xff] %v15209_v11  ;;  %v15214_v9 = vadd.f32 %v18296_v36, %v7356_v45  ;;  %v7358_v2 = vpop.f32.mrb[195].mxu1  ;;  %v7765_v36 = vadd.f32 %v7764_v62, %v15200_v22  ;;  %v7836_v20 = vmul.f32 %v15209_v11, %v15209_v11  ;;  %v7898_v8 = vadd.f32 %v7897_v28, %v7835_v58  ;;  %v18304_v58 = vld [vmem:[#allocation180_spill] sm:$0xff] }
 0xae2   :  { %v18300_v2 = vld [vmem:[#allocation176_spill] sm:$0xff] }
 0xae3   :  { %18297 = vst [vmem:[#allocation116_spill] sm:$0xff] %v15214_v9  ;;  %v7766_v51 = vadd.f32 %v7765_v36, %v15209_v11  ;;  %v7899_v15 = vadd.f32 %v7898_v8, %v7836_v20  ;;  %v7837_v25 = vmul.f32 %v15214_v9, %v15214_v9 }
 0xae6   :  { %v7361_v5 = vpop.f32.mrb[196].mxu1 }
 0xae7   :  { %v15223_v63 = vadd.f32 %v18298_v13, %v7361_v5  ;;  %v7363_v30 = vpop.f32.mrb[197].mxu1  ;;  %v18302_v13 = vld [vmem:[#allocation178_spill] sm:$0xff] }
 0xae8   :  { %v7364_v45 = vpop.f32.mrb[198].mxu1  ;;  %v7767_v30 = vadd.f32 %v7766_v51, %v15214_v9 }
 0xae9   :  { %18299 = vst [vmem:[#allocation34_spill] sm:$0xff] %v15223_v63  ;;  %v15229_v26 = vadd.f32 %v18300_v2, %v7364_v45  ;;  %v7366_v56 = vpop.f32.mrb[199].mxu1  ;;  %v7838_v62 = vmul.f32 %v15223_v63, %v15223_v63  ;;  %v7900_v2 = vadd.f32 %v7899_v15, %v7837_v25  ;;  %v18306_v15 = vld [vmem:[#allocation25_spill] sm:$0xff] }
 0xaea   :  { %v7768_v28 = vadd.f32 %v7767_v30, %v15223_v63 }
 0xaeb   :  { %18301 = vst [vmem:[#allocation29_spill] sm:$0xff] %v15229_v26  ;;  %v7901_v56 = vadd.f32 %v7900_v2, %v7838_v62  ;;  %v7839_v8 = vmul.f32 %v15229_v26, %v15229_v26  ;;  %v18308_v2 = vld [vmem:[#allocation179_spill] sm:$0xff] }
 0xaec   :  { %v7769_v51 = vadd.f32 %v7768_v28, %v15229_v26 }
 0xaee   :  { %v7369_v5 = vpop.f32.mrb[200].mxu1 }
 0xaef   :  { %v15238_v22 = vadd.f32 %v18302_v13, %v7369_v5  ;;  %v7371_v24 = vpop.f32.mrb[201].mxu1  ;;  %v7902_v13 = vadd.f32 %v7901_v56, %v7839_v8 }
 0xaf0   :  { %v7372_v45 = vpop.f32.mrb[202].mxu1 }
 0xaf1   :  { %18303 = vst [vmem:[#allocation122_spill] sm:$0xff] %v15238_v22  ;;  %v15242_v36 = vadd.f32 %v18304_v58, %v7372_v45  ;;  %v7374_v20 = vpop.f32.mrb[203].mxu1  ;;  %v7840_v9 = vmul.f32 %v15238_v22, %v15238_v22  ;;  %v7770_v24 = vadd.f32 %v7769_v51, %v15238_v22 }
 0xaf3   :  { %18305 = vst [vmem:[#allocation125_spill] sm:$0xff] %v15242_v36  ;;  %v7903_v58 = vadd.f32 %v7902_v13, %v7840_v9  ;;  %v7841_v62 = vmul.f32 %v15242_v36, %v15242_v36  ;;  %v7771_v26 = vadd.f32 %v7770_v24, %v15242_v36  ;;  %v18310_v13 = vld [vmem:[#allocation181_spill] sm:$0xff] }
 0xaf5   :  { %v7904_v8 = vadd.f32 %v7903_v58, %v7841_v62 }
 0xaf6   :  { %v7377_v5 = vpop.f32.mrb[204].mxu1 }
 0xaf7   :  { %v15251_v25 = vadd.f32 %v18306_v15, %v7377_v5  ;;  %v7379_v30 = vpop.f32.mrb[205].mxu1 }
 0xaf8   :  { %v7380_v45 = vpop.f32.mrb[206].mxu1 }
 0xaf9   :  { %18307 = vst [vmem:[#allocation52_spill] sm:$0xff] %v15251_v25  ;;  %v15256_v20 = vadd.f32 %v18308_v2, %v7380_v45  ;;  %v7382_v28 = vpop.f32.mrb[207].mxu1  ;;  %v7842_v56 = vmul.f32 %v15251_v25, %v15251_v25  ;;  %v7772_v51 = vadd.f32 %v7771_v26, %v15251_v25 }
 0xafa   :  { %v18312_v28 = vld [vmem:[#allocation183_spill] sm:$0xff] }
 0xafb   :  { %18309 = vst [vmem:[#allocation129_spill] sm:$0xff] %v15256_v20  ;;  %v7905_v15 = vadd.f32 %v7904_v8, %v7842_v56  ;;  %v7843_v9 = vmul.f32 %v15256_v20, %v15256_v20  ;;  %v7773_v2 = vadd.f32 %v7772_v51, %v15256_v20 }
 0xafd   :  { %v7906_v26 = vadd.f32 %v7905_v15, %v7843_v9  ;;  %v18316_v9 = vld [vmem:[#allocation182_spill] sm:$0xff] }
 0xafe   :  { %v7385_v5 = vpop.f32.mrb[208].mxu1 }
 0xaff   :  { %v15265_v30 = vadd.f32 %v18310_v13, %v7385_v5  ;;  %v7387_v22 = vpop.f32.mrb[209].mxu1  ;;  %v18314_v13 = vld [vmem:[#allocation27_spill] sm:$0xff] }
 0xb00   :  { %v7388_v45 = vpop.f32.mrb[210].mxu1 }
 0xb01   :  { %18311 = vst [vmem:[#allocation58_spill] sm:$0xff] %v15265_v30  ;;  %v7844_v24 = vmul.f32 %v15265_v30, %v15265_v30  ;;  %v15271_v36 = vadd.f32 %v18312_v28, %v7388_v45  ;;  %v7390_v58 = vpop.f32.mrb[211].mxu1  ;;  %v7774_v62 = vadd.f32 %v7773_v2, %v15265_v30 }
 0xb03   :  { %18313 = vst [vmem:[#allocation133_spill] sm:$0xff] %v15271_v36  ;;  %v7907_v56 = vadd.f32 %v7906_v26, %v7844_v24  ;;  %v7845_v8 = vmul.f32 %v15271_v36, %v15271_v36  ;;  %v7775_v22 = vadd.f32 %v7774_v62, %v15271_v36 }
 0xb05   :  { %v7908_v63 = vadd.f32 %v7907_v56, %v7845_v8 }
 0xb06   :  { %v7393_v5 = vpop.f32.mrb[212].mxu1 }
 0xb07   :  { %v15278_v25 = vadd.f32 %v18314_v13, %v7393_v5  ;;  %v7395_v51 = vpop.f32.mrb[213].mxu1  ;;  %v18318_v13 = vld [vmem:[#allocation184_spill] sm:$0xff] }
 0xb08   :  { %v7396_v20 = vpop.f32.mrb[214].mxu1 }
 0xb09   :  { %18315 = vst [vmem:[#allocation135_spill] sm:$0xff] %v15278_v25  ;;  %v7776_v45 = vadd.f32 %v7775_v22, %v15278_v25  ;;  %v7846_v15 = vmul.f32 %v15278_v25, %v15278_v25  ;;  %v15284_v2 = vadd.f32 %v18316_v9, %v7396_v20  ;;  %v7398_v24 = vpop.f32.mrb[215].mxu1  ;;  %v18320_v9 = vld [vmem:[#allocation186_spill] sm:$0xff] }
 0xb0b   :  { %18317 = vst [vmem:[#allocation137_spill] sm:$0xff] %v15284_v2  ;;  %v7909_v28 = vadd.f32 %v7908_v63, %v7846_v15  ;;  %v7777_v58 = vadd.f32 %v7776_v45, %v15284_v2  ;;  %v7847_v26 = vmul.f32 %v15284_v2, %v15284_v2 }
 0xb0d   :  { %v7910_v62 = vadd.f32 %v7909_v28, %v7847_v26 }
 0xb0e   :  { %v7401_v5 = vpop.f32.mrb[216].mxu1 }
 0xb0f   :  { %v15290_v51 = vadd.f32 %v18318_v13, %v7401_v5  ;;  %v7403_v56 = vpop.f32.mrb[217].mxu1  ;;  %v18322_v13 = vld [vmem:[#allocation46_spill] sm:$0xff] }
 0xb10   :  { %v7404_v8 = vpop.f32.mrb[218].mxu1 }
 0xb11   :  { %18319 = vst [vmem:[#allocation14_spill] sm:$0xff] %v15290_v51  ;;  %v7778_v22 = vadd.f32 %v7777_v58, %v15290_v51  ;;  %v7848_v20 = vmul.f32 %v15290_v51, %v15290_v51  ;;  %v15296_v24 = vadd.f32 %v18320_v9, %v7404_v8  ;;  %v7406_v63 = vpop.f32.mrb[219].mxu1  ;;  %v18324_v9 = vld [vmem:[#allocation185_spill] sm:$0xff] }
 0xb13   :  { %18321 = vst [vmem:[#allocation22_spill] sm:$0xff] %v15296_v24  ;;  %v7911_v45 = vadd.f32 %v7910_v62, %v7848_v20  ;;  %v7779_v15 = vadd.f32 %v7778_v22, %v15296_v24  ;;  %v7849_v28 = vmul.f32 %v15296_v24, %v15296_v24 }
 0xb15   :  { %v7912_v26 = vadd.f32 %v7911_v45, %v7849_v28 }
 0xb16   :  { %v7409_v5 = vpop.f32.mrb[220].mxu1 }
 0xb17   :  { %v15302_v56 = vadd.f32 %v18322_v13, %v7409_v5  ;;  %v7411_v36 = vpop.f32.mrb[221].mxu1 }
 0xb18   :  { %v7412_v58 = vpop.f32.mrb[222].mxu1 }
 0xb19   :  { %18323 = vst [vmem:[#allocation23_spill] sm:$0xff] %v15302_v56  ;;  %v7780_v30 = vadd.f32 %v7779_v15, %v15302_v56  ;;  %v7850_v8 = vmul.f32 %v15302_v56, %v15302_v56  ;;  %v15308_v63 = vadd.f32 %v18324_v9, %v7412_v58  ;;  %v7414_v62 = vpop.f32.mrb[223].mxu1 }
 0xb1b   :  { %18325 = vst [vmem:[#allocation43_spill] sm:$0xff] %v15308_v63  ;;  %v7913_v22 = vadd.f32 %v7912_v26, %v7850_v8  ;;  %v7781_v20 = vadd.f32 %v7780_v30, %v15308_v63  ;;  %v7851_v45 = vmul.f32 %v15308_v63, %v15308_v63 }
 0xb1d   :  { %v7914_v28 = vadd.f32 %v7913_v22, %v7851_v45  ;;  %v15328_v45 = vld [vmem:[%s16861_s9] ss:$0 sm:$0xff] }
 0xb1e   :  { %v7417_v5 = vpop.f32.mrb[224].mxu1 }
 0xb1f   :  { %v15314_v36 = vadd.f32 %v15108_v34, %v7417_v5  ;;  %v7419_v13 = vpop.f32.mrb[225].mxu1 }
 0xb20   :  { %v7420_v15 = vpop.f32.mrb[226].mxu1 }
 0xb21   :  { %18326 = vst [vmem:[#allocation15_spill] sm:$0xff] %v15314_v36  ;;  %v7782_v11 = vadd.f32 %v7781_v20, %v15314_v36  ;;  %v7852_v58 = vmul.f32 %v15314_v36, %v15314_v36  ;;  %v15320_v9 = vadd.f32 %v15116_v35, %v7420_v15  ;;  %v7422_v26 = vpop.f32.mrb[227].mxu1 }
 0xb23   :  { %18327 = vst [vmem:[#allocation60_spill] sm:$0xff] %v15320_v9  ;;  %v7915_v30 = vadd.f32 %v7914_v28, %v7852_v58  ;;  %v7783_v8 = vadd.f32 %v7782_v11, %v15320_v9  ;;  %v7853_v62 = vmul.f32 %v15320_v9, %v15320_v9  ;;  %v18330_v58 = vld [vmem:[#allocation31_spill] sm:$0xff] }
 0xb24   :  { %v15341_v26 = vadd.f32 %v15328_v45, %v18330_v58 }
 0xb25   :  { %v7916_v22 = vadd.f32 %v7915_v30, %v7853_v62  ;;  %v18332_v30 = vld [vmem:[#allocation40_spill] sm:$0xff] }
 0xb26   :  { %v7425_v34 = vpop.f32.mrb[228].mxu1  ;;  %18331 = vst [vmem:[#allocation41_spill] sm:$0xff] %v15341_v26  ;;  %v15345_v62 = vadd.f32 %v15328_v45, %v18332_v30  ;;  %v18340_v30 = vld [vmem:[#allocation53_spill] sm:$0xff] }
 0xb27   :  { %v15331_v20 = vadd.f32 %v15100_v4, %v7425_v34  ;;  %v7427_v5 = vpop.f32.mrb[229].mxu1  ;;  %v18334_v4 = vld [vmem:[#allocation44_spill] sm:$0xff] }
 0xb28   :  { %v7428_v35 = vpop.f32.mrb[230].mxu1  ;;  %18333 = vst [vmem:[#allocation35_spill] sm:$0xff] %v15345_v62  ;;  %v15349_v34 = vadd.f32 %v15328_v45, %v18334_v4  ;;  %v15364_v62 = vadd.f32 %v15328_v45, %v18340_v30  ;;  %v18342_v4 = vld [vmem:[#allocation57_spill] sm:$0xff] }
 0xb29   :  { %18328 = vst [vmem:[#allocation115_spill] sm:$0xff] %v15331_v20  ;;  %v7784_v13 = vadd.f32 %v7783_v8, %v15331_v20  ;;  %v7854_v11 = vmul.f32 %v15331_v20, %v15331_v20  ;;  %v15337_v28 = vadd.f32 %v15110_v43, %v7428_v35  ;;  %v7430_v15 = vpop.f32.mrb[231].mxu1  ;;  %v18336_v8 = vld [vmem:[#allocation38_spill] sm:$0xff] }
 0xb2a   :  { %18335 = vst [vmem:[#allocation126_spill] sm:$0xff] %v15349_v34  ;;  %v15353_v5 = vadd.f32 %v15328_v45, %v18336_v8  ;;  %v18338_v20 = vld [vmem:[#allocation50_spill] sm:$0xff]  ;;  %18341 = vst [vmem:[#allocation138_spill] sm:$0xff] %v15364_v62  ;;  %v15368_v34 = vadd.f32 %v15328_v45, %v18342_v4  ;;  %v18344_v8 = vld [vmem:[#allocation49_spill] sm:$0xff] }
 0xb2b   :  { %18329 = vst [vmem:[#allocation37_spill] sm:$0xff] %v15337_v28  ;;  %v15357_v43 = vadd.f32 %v15328_v45, %v18338_v20  ;;  %v7917_v35 = vadd.f32 %v7916_v22, %v7854_v11  ;;  %v7785_v15 = vadd.f32 %v7784_v13, %v15337_v28  ;;  %v7855_v58 = vmul.f32 %v15337_v28, %v15337_v28  ;;  %v18346_v20 = vld [vmem:[#allocation55_spill] sm:$0xff]  ;;  %v18348_v13 = vld [vmem:[#allocation62_spill] sm:$0xff]  ;;  %v18352_v4 = vld [vmem:[#allocation61_spill] sm:$0xff] }
 0xb2c   :  { %18337 = vst [vmem:[#allocation130_spill] sm:$0xff] %v15353_v5  ;;  %18343 = vst [vmem:[#allocation117_spill] sm:$0xff] %v15368_v34  ;;  %v15372_v5 = vadd.f32 %v15328_v45, %v18344_v8  ;;  %v15376_v22 = vadd.f32 %v15328_v45, %v18346_v20  ;;  %v15380_v11 = vadd.f32 %v15328_v45, %v18348_v13  ;;  %v18354_v8 = vld [vmem:[#allocation63_spill] sm:$0xff]  ;;  %v18356_v20 = vld [vmem:[#allocation66_spill] sm:$0xff] }
 0xb2d   :  { %18339 = vst [vmem:[#allocation134_spill] sm:$0xff] %v15357_v43  ;;  %v18350_v43 = vld [vmem:[#allocation64_spill] sm:$0xff]  ;;  %v7786_v62 = vrot.slane %v7785_v15, 4  ;;  %v7918_v26 = vadd.f32 %v7917_v35, %v7855_v58  ;;  %v15388_v34 = vadd.f32 %v15328_v45, %v18352_v4  ;;  %v18362_v35 = vld [vmem:[#allocation67_spill] sm:$0xff] }
 0xb2e   :  { %18345 = vst [vmem:[#allocation113_spill] sm:$0xff] %v15372_v5  ;;  %18347 = vst [vmem:[#allocation141_spill] sm:$0xff] %v15376_v22  ;;  %v15384_v30 = vadd.f32 %v15328_v45, %v18350_v43  ;;  %v15392_v5 = vadd.f32 %v15328_v45, %v18354_v8  ;;  %v15396_v22 = vadd.f32 %v15328_v45, %v18356_v20  ;;  %v18358_v13 = vld [vmem:[#allocation68_spill] sm:$0xff]  ;;  %v18360_v43 = vld [vmem:[#allocation65_spill] sm:$0xff] }
 0xb2f   :  { %18349 = vst [vmem:[#allocation139_spill] sm:$0xff] %v15380_v11  ;;  %18353 = vst [vmem:[#allocation12_spill] sm:$0xff] %v15388_v34  ;;  %v15400_v11 = vadd.f32 %v15328_v45, %v18358_v13  ;;  %v15408_v58 = vadd.f32 %v15328_v45, %v18362_v35  ;;  %v7787_v4 = vadd.f32 %v7786_v62, %v7785_v15  ;;  %v7919_v34 = vrot.slane %v7918_v26, 4  ;;  %v18364_v8 = vld [vmem:[#allocation36_spill] sm:$0xff]  ;;  %v18366_v20 = vld [vmem:[#allocation42_spill] sm:$0xff] }
 0xb30   :  { %18351 = vst [vmem:[#allocation6_spill] sm:$0xff] %v15384_v30  ;;  %18355 = vst [vmem:[#allocation13_spill] sm:$0xff] %v15392_v5  ;;  %v15404_v30 = vadd.f32 %v15328_v45, %v18360_v43  ;;  %v15412_v5 = vadd.f32 %v15328_v45, %v18364_v8  ;;  %v18368_v13 = vld [vmem:[#allocation39_spill] sm:$0xff]  ;;  %v18370_v43 = vld [vmem:[#allocation48_spill] sm:$0xff] }
 0xb31   :  { %18357 = vst [vmem:[#allocation19_spill] sm:$0xff] %v15396_v22  ;;  %18359 = vst [vmem:[#allocation17_spill] sm:$0xff] %v15400_v11  ;;  %v15416_v22 = vadd.f32 %v15328_v45, %v18366_v20  ;;  %v15420_v11 = vadd.f32 %v15328_v45, %v18368_v13  ;;  %v18372_v35 = vld [vmem:[#allocation45_spill] sm:$0xff]  ;;  %v18374_v15 = vld [vmem:[#allocation71_spill] sm:$0xff] }
 0xb32   :  { %18361 = vst [vmem:[#allocation24_spill] sm:$0xff] %v15404_v30  ;;  %18363 = vst [vmem:[#allocation28_spill] sm:$0xff] %v15408_v58  ;;  %v15424_v30 = vadd.f32 %v15328_v45, %v18370_v43  ;;  %v15428_v62 = vadd.f32 %v15328_v45, %v18372_v35  ;;  %v15432_v8 = vadd.f32 %v15328_v45, %v18374_v15  ;;  %v18376_v20 = vld [vmem:[#allocation51_spill] sm:$0xff]  ;;  %v18378_v13 = vld [vmem:[#allocation70_spill] sm:$0xff] }
 0xb33   :  { %18365 = vst [vmem:[#allocation32_spill] sm:$0xff] %v15412_v5  ;;  %18367 = vst [vmem:[#allocation47_spill] sm:$0xff] %v15416_v22  ;;  %v7788_v5 = vrot.slane %v7787_v4, 2  ;;  %v7920_v58 = vadd.f32 %v7919_v34, %v7918_v26  ;;  %v15436_v22 = vadd.f32 %v15328_v45, %v18376_v20  ;;  %v18380_v43 = vld [vmem:[#allocation73_spill] sm:$0xff]  ;;  %v18382_v35 = vld [vmem:[#allocation75_spill] sm:$0xff] }
 0xb34   :  { %18369 = vst [vmem:[#allocation54_spill] sm:$0xff] %v15420_v11  ;;  %18371 = vst [vmem:[#allocation20_spill] sm:$0xff] %v15424_v30  ;;  %v15440_v11 = vadd.f32 %v15328_v45, %v18378_v13  ;;  %v15444_v30 = vadd.f32 %v15328_v45, %v18380_v43  ;;  %v18384_v15 = vld [vmem:[#allocation72_spill] sm:$0xff]  ;;  %v18386_v26 = vld [vmem:[#allocation74_spill] sm:$0xff] }
 0xb35   :  { %18373 = vst [vmem:[#allocation114_spill] sm:$0xff] %v15428_v62  ;;  %18375 = vst [vmem:[#allocation21_spill] sm:$0xff] %v15432_v8  ;;  %v15448_v62 = vadd.f32 %v15328_v45, %v18382_v35  ;;  %v15452_v8 = vadd.f32 %v15328_v45, %v18384_v15  ;;  %v15456_v34 = vadd.f32 %v15328_v45, %v18386_v26  ;;  %v18388_v13 = vld [vmem:[#allocation77_spill] sm:$0xff]  ;;  %v18390_v43 = vld [vmem:[#allocation79_spill] sm:$0xff] }
 0xb36   :  { %18377 = vst [vmem:[#allocation140_spill] sm:$0xff] %v15436_v22  ;;  %18379 = vst [vmem:[#allocation123_spill] sm:$0xff] %v15440_v11  ;;  %v7789_v20 = vadd.f32 %v7788_v5, %v7787_v4  ;;  %v7921_v22 = vrot.slane %v7920_v58, 2  ;;  %v15460_v11 = vadd.f32 %v15328_v45, %v18388_v13  ;;  %v18392_v35 = vld [vmem:[#allocation109_spill] sm:$0xff]  ;;  %v18394_v15 = vld [vmem:[#allocation106_spill] sm:$0xff] }
 0xb37   :  { %18381 = vst [vmem:[#allocation124_spill] sm:$0xff] %v15444_v30  ;;  %18383 = vst [vmem:[#allocation127_spill] sm:$0xff] %v15448_v62  ;;  %v15464_v30 = vadd.f32 %v15328_v45, %v18390_v43  ;;  %v15468_v62 = vadd.f32 %v15328_v45, %v18392_v35  ;;  %v18396_v26 = vld [vmem:[#allocation119_spill] sm:$0xff]  ;;  %v18398_v4 = vld [vmem:[#allocation76_spill] sm:$0xff] }
 0xb38   :  { %18385 = vst [vmem:[#allocation128_spill] sm:$0xff] %v15452_v8  ;;  %18387 = vst [vmem:[#allocation131_spill] sm:$0xff] %v15456_v34  ;;  %v15472_v8 = vadd.f32 %v15328_v45, %v18394_v15  ;;  %v15476_v5 = vadd.f32 %v15328_v45, %v18396_v26  ;;  %v15480_v13 = vadd.f32 %v15328_v45, %v18398_v4  ;;  %v18400_v43 = vld [vmem:[#allocation78_spill] sm:$0xff]  ;;  %v18402_v35 = vld [vmem:[#allocation81_spill] sm:$0xff] }
 0xb39   :  { %18389 = vst [vmem:[#allocation132_spill] sm:$0xff] %v15460_v11  ;;  %18391 = vst [vmem:[#allocation142_spill] sm:$0xff] %v15464_v30  ;;  %v7790_v11 = vrot.slane %v7789_v20, 1  ;;  %v7922_v34 = vadd.f32 %v7921_v22, %v7920_v58  ;;  %v15484_v30 = vadd.f32 %v15328_v45, %v18400_v43  ;;  %v18404_v15 = vld [vmem:[#allocation85_spill] sm:$0xff]  ;;  %v18406_v26 = vld [vmem:[#allocation80_spill] sm:$0xff] }
 0xb3a   :  { %18393 = vst [vmem:[#allocation144_spill] sm:$0xff] %v15468_v62  ;;  %18395 = vst [vmem:[#allocation30_spill] sm:$0xff] %v15472_v8  ;;  %v15488_v62 = vadd.f32 %v15328_v45, %v18402_v35  ;;  %v15492_v8 = vadd.f32 %v15328_v45, %v18404_v15  ;;  %v18408_v4 = vld [vmem:[#allocation83_spill] sm:$0xff]  ;;  %v18412_v35 = vld [vmem:[#allocation89_spill] sm:$0xff] }
 0xb3b   :  { %18397 = vst [vmem:[#allocation118_spill] sm:$0xff] %v15476_v5  ;;  %18399 = vst [vmem:[#allocation143_spill] sm:$0xff] %v15480_v13  ;;  %v15496_v5 = vadd.f32 %v15328_v45, %v18406_v26  ;;  %v15500_v13 = vadd.f32 %v15328_v45, %v18408_v4  ;;  %v18410_v22 = vld [vmem:[#allocation87_spill] sm:$0xff]  ;;  %v7791_v43 = vadd.f32 %v7790_v11, %v7789_v20  ;;  %v18414_v15 = vld [vmem:[#allocation86_spill] sm:$0xff] }
 0xb3c   :  { %18401 = vst [vmem:[#allocation136_spill] sm:$0xff] %v15484_v30  ;;  %18403 = vst [vmem:[#allocation146_spill] sm:$0xff] %v15488_v62  ;;  %v15504_v58 = vadd.f32 %v15328_v45, %v18410_v22  ;;  %v7923_v30 = vrot.slane %v7922_v34, 1  ;;  %v15508_v62 = vadd.f32 %v15328_v45, %v18412_v35  ;;  %v18416_v26 = vld [vmem:[#allocation88_spill] sm:$0xff]  ;;  %v18418_v4 = vld [vmem:[#allocation91_spill] sm:$0xff] }
 0xb3d   :  { %18405 = vst [vmem:[#allocation147_spill] sm:$0xff] %v15492_v8  ;;  %18407 = vst [vmem:[#allocation26_spill] sm:$0xff] %v15496_v5  ;;  %v15512_v8 = vadd.f32 %v15328_v45, %v18414_v15  ;;  %v15516_v5 = vadd.f32 %v15328_v45, %v18416_v26  ;;  %v18420_v22 = vld [vmem:[#allocation93_spill] sm:$0xff]  ;;  %v18422_v20 = vld [vmem:[#allocation90_spill] sm:$0xff] }
 0xb3e   :  { %18409 = vst [vmem:[#allocation145_spill] sm:$0xff] %v15500_v13  ;;  %18411 = vst [vmem:[#allocation108_spill] sm:$0xff] %v15504_v58  ;;  %v15520_v13 = vadd.f32 %v15328_v45, %v18418_v4  ;;  %v15524_v11 = vadd.f32 %v15328_v45, %v18420_v22  ;;  %v15528_v35 = vadd.f32 %v15328_v45, %v18422_v20  ;;  %v15530_v58 = vmul.f32 0.001953125, %v7791_v43  ;;  %v18424_v15 = vld [vmem:[#allocation92_spill] sm:$0xff]  ;;  %v18426_v26 = vld [vmem:[#allocation95_spill] sm:$0xff] }
 0xb3f   :  { %18413 = vst [vmem:[#allocation150_spill] sm:$0xff] %v15508_v62  ;;  %18415 = vst [vmem:[#allocation152_spill] sm:$0xff] %v15512_v8  ;;  %v7924_v62 = vadd.f32 %v7923_v30, %v7922_v34  ;;  %v15534_v8 = vadd.f32 %v15328_v45, %v18424_v15  ;;  %v18428_v4 = vld [vmem:[#allocation97_spill] sm:$0xff]  ;;  %v18430_v22 = vld [vmem:[#allocation94_spill] sm:$0xff] }
 0xb40   :  { %18417 = vst [vmem:[#allocation149_spill] sm:$0xff] %v15516_v5  ;;  %18419 = vst [vmem:[#allocation151_spill] sm:$0xff] %v15520_v13  ;;  %v15538_v5 = vadd.f32 %v15328_v45, %v18426_v26  ;;  %v15542_v13 = vadd.f32 %v15328_v45, %v18428_v4  ;;  %v18432_v20 = vld [vmem:[#allocation96_spill] sm:$0xff]  ;;  %v18434_v34 = vld [vmem:[#allocation99_spill] sm:$0xff]  ;;  %v7927_v26 = vmul.f32 %v15530_v58, %v15530_v58 }
 0xb41   :  { %18421 = vst [vmem:[#allocation154_spill] sm:$0xff] %v15524_v11  ;;  %18423 = vst [vmem:[#allocation156_spill] sm:$0xff] %v15528_v35  ;;  %v15546_v11 = vadd.f32 %v15328_v45, %v18430_v22  ;;  %v15550_v30 = vadd.f32 %v15328_v45, %v18432_v20  ;;  %v15554_v43 = vadd.f32 %v15328_v45, %v18434_v34  ;;  %v7926_v15 = vmul.f32 0.001953125, %v7924_v62  ;;  %v18444_v62 = vld [vmem:[#allocation105_spill] sm:$0xff]  ;;  %v18450_v35 = vld [vmem:[#allocation107_spill] sm:$0xff] }
 0xb42   :  { %18425 = vst [vmem:[#allocation153_spill] sm:$0xff] %v15534_v8  ;;  %18427 = vst [vmem:[#allocation155_spill] sm:$0xff] %v15538_v5  ;;  %v18436_v5 = vld [vmem:[#allocation101_spill] sm:$0xff]  ;;  %v18446_v8 = vld [vmem:[#allocation102_spill] sm:$0xff] }
 0xb43   :  { %18429 = vst [vmem:[#allocation158_spill] sm:$0xff] %v15542_v13  ;;  %18431 = vst [vmem:[#allocation160_spill] sm:$0xff] %v15546_v11  ;;  %v15560_v4 = vadd.f32 %v15328_v45, %v18436_v5  ;;  %v18438_v13 = vld [vmem:[#allocation98_spill] sm:$0xff]  ;;  %v18440_v11 = vld [vmem:[#allocation100_spill] sm:$0xff]  ;;  %v15580_v5 = vadd.f32 %v15328_v45, %v18446_v8 }
 0xb44   :  { %18433 = vst [vmem:[#allocation157_spill] sm:$0xff] %v15550_v30  ;;  %18435 = vst [vmem:[#allocation159_spill] sm:$0xff] %v15554_v43  ;;  %v15564_v22 = vadd.f32 %v15328_v45, %v18438_v13  ;;  %v15568_v20 = vadd.f32 %v15328_v45, %v18440_v11  ;;  %v18442_v30 = vld [vmem:[#allocation103_spill] sm:$0xff]  ;;  %v15576_v43 = vadd.f32 %v15328_v45, %v18444_v62 }
 0xb45   :  { %18437 = vst [vmem:[#allocation162_spill] sm:$0xff] %v15560_v4  ;;  %v15572_v34 = vadd.f32 %v15328_v45, %v18442_v30  ;;  %18447 = vst [vmem:[#allocation7_spill] sm:$0xff] %v15580_v5  ;;  %v18448_v4 = vld [vmem:[#allocation104_spill] sm:$0xff]  ;;  %v15588_v11 = vadd.f32 %v15328_v45, %v18450_v35 }
 0xb46   :  { %18439 = vst [vmem:[#allocation164_spill] sm:$0xff] %v15564_v22  ;;  %18441 = vst [vmem:[#allocation161_spill] sm:$0xff] %v15568_v20  ;;  %v15584_v13 = vadd.f32 %v15328_v45, %v18448_v4  ;;  %v7928_v22 = vsub.f32 %v7926_v15, %v7927_v26  ;;  %v18452_v20 = vld [vmem:[#allocation120_spill] sm:$0xff]  ;;  %v18462_v15 = vld [vmem:[#allocation69_spill] sm:$0xff] }
 0xb47   :  { %18443 = vst [vmem:[#allocation163_spill] sm:$0xff] %v15572_v34  ;;  %18445 = vst [vmem:[#allocation166_spill] sm:$0xff] %v15576_v43  ;;  %v15592_v30 = vadd.f32 %v15328_v45, %v18452_v20  ;;  %v18454_v34 = vld [vmem:[#allocation121_spill] sm:$0xff]  ;;  %v18456_v43 = vld [vmem:[#allocation148_spill] sm:$0xff] }
 0xb48   :  { %18449 = vst [vmem:[#allocation165_spill] sm:$0xff] %v15584_v13  ;;  %18451 = vst [vmem:[#allocation167_spill] sm:$0xff] %v15588_v11  ;;  %v15596_v62 = vadd.f32 %v15328_v45, %v18454_v34  ;;  %v15600_v8 = vadd.f32 %v15328_v45, %v18456_v43  ;;  %v7929_v5 = vadd.f32 1e-05, %v7928_v22  ;;  %v7721_v4 = vld [vmem:[%s16862_s5] sm:$0x1]  ;;  %v7973_v11 = vsub.f32 %v18462_v15, %v15530_v58 }
 0xb49   :  { %18453 = vst [vmem:[#allocation84_spill] sm:$0xff] %v15592_v30  ;;  %v18458_v45 = vld [vmem:[#allocation56_spill] sm:$0xff]  ;;  %v18463_v43 = vld [vmem:[#allocation111_spill] sm:$0xff]  ;;  %v18468_v15 = vld [vmem:[#allocation122_spill] sm:$0xff] }
 0xb4a   :  { %18455 = vst [vmem:[#allocation4_spill] sm:$0xff] %v15596_v62  ;;  %18457 = vst [vmem:[#allocation82_spill] sm:$0xff] %v15600_v8  ;;  %9885 = vrsqrt.f32 %v7929_v5  ;;  %v18459_v5 = vld [vmem:[#allocation59_spill] sm:$0xff]  ;;  %v18461_v26 = vld [vmem:[#allocation16_spill] sm:$0xff]  ;;  %v7974_v63 = vsub.f32 %v18463_v43, %v15530_v58  ;;  %v7979_v24 = vsub.f32 %v18468_v15, %v15530_v58  ;;  %v18475_v15 = vsub.f32 %v14935_v29, %v15530_v58 }
 0xb4b   :  { %v7972_v30 = vsub.f32 %v18461_v26, %v15530_v58  ;;  %v18464_v35 = vld [vmem:[#allocation112_spill] sm:$0xff]  ;;  %v18466_v62 = vld [vmem:[#allocation34_spill] sm:$0xff]  ;;  %v18467_v26 = vld [vmem:[#allocation29_spill] sm:$0xff] }
 0xb4c   :  { %v7975_v36 = vsub.f32 %v18464_v35, %v15530_v58  ;;  %v18465_v22 = vld [vmem:[#allocation116_spill] sm:$0xff]  ;;  %v7977_v34 = vsub.f32 %v18466_v62, %v15530_v58  ;;  %v7978_v56 = vsub.f32 %v18467_v26, %v15530_v58  ;;  %v18470_v20 = vld [vmem:[#allocation110_spill] sm:$0xff]  ;;  %v18474_v26 = vld [vmem:[#allocation133_spill] sm:$0xff] }
 0xb4d   :  { %v7976_v9 = vsub.f32 %v18465_v22, %v15530_v58  ;;  %v18471_v35 = vld [vmem:[#allocation52_spill] sm:$0xff]  ;;  %v18472_v22 = vld [vmem:[#allocation129_spill] sm:$0xff]  ;;  %v18473_v62 = vld [vmem:[#allocation58_spill] sm:$0xff]  ;;  %v7984_v25 = vsub.f32 %v18474_v26, %v15530_v58  ;;  %v18479_v26 = vsub.f32 %v14952_v14, %v15530_v58 }
 0xb4e   :  { %v7981_v28 = vsub.f32 %v18471_v35, %v15530_v58  ;;  %v7982_v51 = vsub.f32 %v18472_v22, %v15530_v58  ;;  %v7983_v2 = vsub.f32 %v18473_v62, %v15530_v58  ;;  %v18477_v35 = vsub.f32 %v14943_v48, %v15530_v58 }
 0xb4f   :  { %v18478_v62 = vsub.f32 %v14946_v46, %v15530_v58 }
 0xb54   :  { %v9886_v8 = vpop.eup %9885 }
 0xb55   :  { %v7995_v13 = vmul.f32 %v9886_v8, %v7721_v4  ;;  %v18469_v8 = vld [vmem:[#allocation125_spill] sm:$0xff] }
 0xb56   :  { %v7980_v4 = vsub.f32 %v18469_v8, %v15530_v58 }
 0xb57   :  { %v15726_v43 = vrot.slane %v7995_v13, %v18470_v20  ;;  %v18476_v13 = vsub.f32 %v14938_v27, %v15530_v58 }
 0xb59   :  { %v15740_v8 = vmul.f32 %v15726_v43, %v18475_v15  ;;  %v15746_v20 = vmul.f32 %v15726_v43, %v18476_v13  ;;  %v15752_v22 = vmul.f32 %v15726_v43, %v18477_v35  ;;  %v15758_v29 = vmul.f32 %v15726_v43, %v18478_v62 }
 0xb5a   :  { %v15764_v27 = vmul.f32 %v15726_v43, %v18479_v26  ;;  %v18480_v15 = vsub.f32 %v14955_v12, %v15530_v58  ;;  %v18481_v13 = vsub.f32 %v14961_v54, %v15530_v58  ;;  %v18482_v35 = vsub.f32 %v14964_v16, %v15530_v58 }
 0xb5b   :  { %v18483_v62 = vsub.f32 %v14969_v1, %v15530_v58  ;;  %v18484_v26 = vsub.f32 %v14972_v59, %v15530_v58 }
 0xb5c   :  { %v15770_v48 = vmul.f32 %v15726_v43, %v18480_v15  ;;  %v15776_v46 = vmul.f32 %v15726_v43, %v18481_v13  ;;  %v15782_v14 = vmul.f32 %v15726_v43, %v18482_v35  ;;  %v18485_v15 = vsub.f32 %v14976_v18, %v15530_v58 }
 0xb5d   :  { %v15788_v12 = vmul.f32 %v15726_v43, %v18483_v62  ;;  %v15794_v54 = vmul.f32 %v15726_v43, %v18484_v26  ;;  %v18486_v13 = vsub.f32 %v14979_v0, %v15530_v58  ;;  %v18487_v35 = vsub.f32 %v14982_v42, %v15530_v58 }
 0xb5e   :  { %v15800_v16 = vmul.f32 %v15726_v43, %v18485_v15  ;;  %v18488_v62 = vsub.f32 %v14985_v31, %v15530_v58  ;;  %v18489_v26 = vsub.f32 %v14988_v33, %v15530_v58  ;;  %v18490_v15 = vsub.f32 %v14993_v40, %v15530_v58 }
 0xb5f   :  { %v15806_v1 = vmul.f32 %v15726_v43, %v18486_v13  ;;  %v15812_v59 = vmul.f32 %v15726_v43, %v18487_v35  ;;  %v18491_v13 = vsub.f32 %v15005_v49, %v15530_v58  ;;  %v18492_v35 = vsub.f32 %v15011_v52, %v15530_v58 }
 0xb60   :  { %v15818_v18 = vmul.f32 %v15726_v43, %v18488_v62  ;;  %v15824_v0 = vmul.f32 %v15726_v43, %v18489_v26  ;;  %v15830_v42 = vmul.f32 %v15726_v43, %v18490_v15  ;;  %v18493_v62 = vsub.f32 %v15020_v10, %v15530_v58 }
 0xb61   :  { %v15836_v31 = vmul.f32 %v15726_v43, %v18491_v13  ;;  %v15842_v33 = vmul.f32 %v15726_v43, %v18492_v35  ;;  %v18494_v26 = vsub.f32 %v15024_v23, %v15530_v58  ;;  %v18495_v15 = vsub.f32 %v15033_v7, %v15530_v58 }
 0xb62   :  { %v15848_v40 = vmul.f32 %v15726_v43, %v18493_v62  ;;  %v18496_v13 = vsub.f32 %v15038_v3, %v15530_v58  ;;  %v18497_v35 = vsub.f32 %v15047_v17, %v15530_v58  ;;  %v18498_v62 = vsub.f32 %v15053_v50, %v15530_v58 }
 0xb63   :  { %v15854_v49 = vmul.f32 %v15726_v43, %v18494_v26  ;;  %v15860_v52 = vmul.f32 %v15726_v43, %v18495_v15  ;;  %v18499_v26 = vsub.f32 %v15062_v39, %v15530_v58  ;;  %v18500_v15 = vsub.f32 %v15066_v6, %v15530_v58 }
 0xb64   :  { %v15866_v10 = vmul.f32 %v15726_v43, %v18496_v13  ;;  %v15872_v23 = vmul.f32 %v15726_v43, %v18497_v35  ;;  %v15878_v7 = vmul.f32 %v15726_v43, %v18498_v62  ;;  %v18501_v13 = vsub.f32 %v15075_v37, %v15530_v58 }
 0xb65   :  { %v15884_v3 = vmul.f32 %v15726_v43, %v18499_v26  ;;  %v15890_v17 = vmul.f32 %v15726_v43, %v18500_v15  ;;  %v18502_v35 = vsub.f32 %v15080_v57, %v15530_v58  ;;  %v18503_v62 = vsub.f32 %v15089_v44, %v15530_v58 }
 0xb66   :  { %v15896_v50 = vmul.f32 %v15726_v43, %v18501_v13  ;;  %v18504_v26 = vsub.f32 %v15095_v38, %v15530_v58  ;;  %v18505_v15 = vsub.f32 %v15106_v47, %v15530_v58  ;;  %v18506_v13 = vsub.f32 %v15114_v41, %v15530_v58 }
 0xb67   :  { %v15902_v39 = vmul.f32 %v15726_v43, %v18502_v35  ;;  %v15908_v6 = vmul.f32 %v15726_v43, %v18503_v62  ;;  %v18507_v35 = vsub.f32 %v15125_v61, %v15530_v58  ;;  %v18508_v62 = vsub.f32 %v15130_v53, %v15530_v58 }
 0xb68   :  { %v15914_v37 = vmul.f32 %v15726_v43, %v18504_v26  ;;  %v15920_v57 = vmul.f32 %v15726_v43, %v18505_v15  ;;  %v15926_v44 = vmul.f32 %v15726_v43, %v18506_v13  ;;  %v18509_v26 = vsub.f32 %v15139_v32, %v15530_v58 }
 0xb69   :  { %v15932_v38 = vmul.f32 %v15726_v43, %v18507_v35  ;;  %v15938_v47 = vmul.f32 %v15726_v43, %v18508_v62  ;;  %v18510_v15 = vsub.f32 %v15145_v60, %v15530_v58  ;;  %v18511_v13 = vsub.f32 %v15154_v55, %v15530_v58 }
 0xb6a   :  { %v15944_v41 = vmul.f32 %v15726_v43, %v18509_v26  ;;  %v18512_v35 = vsub.f32 %v15158_v21, %v15530_v58  ;;  %v18513_v62 = vsub.f32 %v15167_v19, %v15530_v58  ;;  %v18514_v26 = vsub.f32 %v18458_v45, %v15530_v58 }
 0xb6b   :  { %v15950_v61 = vmul.f32 %v15726_v43, %v18510_v15  ;;  %v15956_v53 = vmul.f32 %v15726_v43, %v18511_v13  ;;  %v18515_v15 = vsub.f32 %v18459_v5, %v15530_v58  ;;  %v15983_v13 = vmul.f32 %v15726_v43, %v7972_v30 }
 0xb6c   :  { %v15962_v32 = vmul.f32 %v15726_v43, %v18512_v35  ;;  %v15968_v60 = vmul.f32 %v15726_v43, %v18513_v62  ;;  %v15974_v55 = vmul.f32 %v15726_v43, %v18514_v26  ;;  %v15986_v19 = vmul.f32 %v15726_v43, %v7973_v11 }
 0xb6d   :  { %v15980_v21 = vmul.f32 %v15726_v43, %v18515_v15  ;;  %v15989_v35 = vmul.f32 %v15726_v43, %v7974_v63  ;;  %v15992_v45 = vmul.f32 %v15726_v43, %v7975_v36  ;;  %v15995_v62 = vmul.f32 %v15726_v43, %v7976_v9  ;;  %v16018_v9 = vld [vmem:[%s16863_s6] ss:$0 sm:$0xff]  ;;  %v18523_v15 = vld [vmem:[#allocation137_spill] sm:$0xff] }
 0xb6e   :  { %v15998_v5 = vmul.f32 %v15726_v43, %v7977_v34  ;;  %v16001_v26 = vmul.f32 %v15726_v43, %v7978_v56  ;;  %v16004_v30 = vmul.f32 %v15726_v43, %v7979_v24  ;;  %v16007_v11 = vmul.f32 %v15726_v43, %v7980_v4  ;;  %v18520_v34 = vld [vmem:[#allocation135_spill] sm:$0xff] }
 0xb6f   :  { %v16010_v63 = vmul.f32 %v15726_v43, %v7981_v28  ;;  %v16013_v36 = vmul.f32 %v15726_v43, %v7982_v51  ;;  %v16021_v56 = vmul.f32 %v15726_v43, %v7983_v2  ;;  %v16024_v24 = vmul.f32 %v15726_v43, %v7984_v25  ;;  %v18529_v25 = vld [vmem:[#allocation22_spill] sm:$0xff] }
 0xb70   :  { %18516 = vst [vmem:[#allocation168_spill] sm:$0xff] %v16007_v11  ;;  %v18521_v4 = vsub.f32 %v18520_v34, %v15530_v58  ;;  %v18524_v51 = vsub.f32 %v18523_v15, %v15530_v58 }
 0xb71   :  { %18517 = vst [vmem:[#allocation169_spill] sm:$0xff] %v16010_v63  ;;  %18518 = vst [vmem:[#allocation5_spill] sm:$0xff] %v16013_v36  ;;  %v18526_v63 = vld [vmem:[#allocation14_spill] sm:$0xff] }
 0xb72   :  { %18519 = vst [vmem:[#allocation8_spill] sm:$0xff] %v16024_v24  ;;  %v16030_v28 = vmul.f32 %v15726_v43, %v18521_v4  ;;  %v16036_v36 = vmul.f32 %v15726_v43, %v18524_v51  ;;  %v18527_v11 = vsub.f32 %v18526_v63, %v15530_v58  ;;  %v18530_v24 = vsub.f32 %v18529_v25, %v15530_v58  ;;  %v18532_v4 = vld [vmem:[#allocation23_spill] sm:$0xff] }
 0xb73   :  { %v18535_v51 = vld [vmem:[#allocation43_spill] sm:$0xff] }
 0xb74   :  { %18522 = vst [vmem:[#allocation170_spill] sm:$0xff] %v16030_v28  ;;  %18525 = vst [vmem:[#allocation10_spill] sm:$0xff] %v16036_v36  ;;  %v16042_v2 = vmul.f32 %v15726_v43, %v18527_v11  ;;  %v16048_v34 = vmul.f32 %v15726_v43, %v18530_v24  ;;  %v18533_v28 = vsub.f32 %v18532_v4, %v15530_v58  ;;  %v18538_v11 = vld [vmem:[#allocation15_spill] sm:$0xff]  ;;  %v18540_v24 = vld [vmem:[#allocation60_spill] sm:$0xff] }
 0xb75   :  { %v18536_v36 = vsub.f32 %v18535_v51, %v15530_v58 }
 0xb76   :  { %18528 = vst [vmem:[#allocation171_spill] sm:$0xff] %v16042_v2  ;;  %18531 = vst [vmem:[#allocation9_spill] sm:$0xff] %v16048_v34  ;;  %v16054_v15 = vmul.f32 %v15726_v43, %v18533_v28  ;;  %v18539_v2 = vsub.f32 %v18538_v11, %v15530_v58  ;;  %v18541_v34 = vsub.f32 %v18540_v24, %v15530_v58  ;;  %v18542_v28 = vld [vmem:[#allocation115_spill] sm:$0xff] }
 0xb77   :  { %v16060_v63 = vmul.f32 %v15726_v43, %v18536_v36  ;;  %v18544_v36 = vld [vmem:[#allocation37_spill] sm:$0xff]  ;;  %v16096_v24 = vadd.f32 %v16018_v9, %v15752_v22  ;;  %v16120_v22 = vadd.f32 %v16018_v9, %v15788_v12  ;;  %v16144_v12 = vadd.f32 %v16018_v9, %v15824_v0 }
 0xb78   :  { %18534 = vst [vmem:[#allocation11_spill] sm:$0xff] %v16054_v15  ;;  %v16066_v25 = vmul.f32 %v15726_v43, %v18539_v2  ;;  %v16072_v4 = vmul.f32 %v15726_v43, %v18541_v34  ;;  %v18543_v15 = vsub.f32 %v18542_v28, %v15530_v58  ;;  %v16088_v2 = vadd.f32 %v16018_v9, %v15740_v8  ;;  %v18551_v28 = vld [vmem:[#allocation5_spill] sm:$0xff] }
 0xb79   :  { %18537 = vst [vmem:[#allocation172_spill] sm:$0xff] %v16060_v63  ;;  %v18545_v63 = vsub.f32 %v18544_v36, %v15530_v58  ;;  %v16092_v34 = vadd.f32 %v16018_v9, %v15746_v20  ;;  %v16104_v58 = vadd.f32 %v16018_v9, %v15764_v27  ;;  %v16112_v8 = vadd.f32 %v16018_v9, %v15776_v46  ;;  %v18554_v36 = vld [vmem:[#allocation8_spill] sm:$0xff] }
 0xb7a   :  { %v16078_v51 = vmul.f32 %v15726_v43, %v18543_v15  ;;  %v16100_v15 = vadd.f32 %v16018_v9, %v15758_v29  ;;  %v16116_v20 = vadd.f32 %v16018_v9, %v15782_v14  ;;  %v16124_v29 = vadd.f32 %v16018_v9, %v15794_v54 }
 0xb7b   :  { %v16084_v11 = vmul.f32 %v15726_v43, %v18545_v63  ;;  %v16108_v43 = vadd.f32 %v16018_v9, %v15770_v48  ;;  %v16128_v27 = vadd.f32 %v16018_v9, %v15800_v16  ;;  %v16132_v48 = vadd.f32 %v16018_v9, %v15806_v1  ;;  %v18549_v63 = vld [vmem:[#allocation169_spill] sm:$0xff] }
 0xb7c   :  { %v16136_v46 = vadd.f32 %v16018_v9, %v15812_v59  ;;  %v16140_v14 = vadd.f32 %v16018_v9, %v15818_v18  ;;  %v16148_v54 = vadd.f32 %v16018_v9, %v15830_v42  ;;  %v16152_v16 = vadd.f32 %v16018_v9, %v15836_v31 }
 0xb7d   :  { %v16156_v1 = vadd.f32 %v16018_v9, %v15842_v33  ;;  %v16160_v59 = vadd.f32 %v16018_v9, %v15848_v40  ;;  %v16164_v18 = vadd.f32 %v16018_v9, %v15854_v49  ;;  %v16168_v0 = vadd.f32 %v16018_v9, %v15860_v52 }
 0xb7e   :  { %v16172_v42 = vadd.f32 %v16018_v9, %v15866_v10  ;;  %v16176_v31 = vadd.f32 %v16018_v9, %v15872_v23  ;;  %v16180_v33 = vadd.f32 %v16018_v9, %v15878_v7  ;;  %v16184_v40 = vadd.f32 %v16018_v9, %v15884_v3 }
 0xb7f   :  { %v16188_v49 = vadd.f32 %v16018_v9, %v15890_v17  ;;  %v16192_v52 = vadd.f32 %v16018_v9, %v15896_v50  ;;  %v16196_v10 = vadd.f32 %v16018_v9, %v15902_v39  ;;  %v16200_v23 = vadd.f32 %v16018_v9, %v15908_v6 }
 0xb80   :  { %v16204_v7 = vadd.f32 %v16018_v9, %v15914_v37  ;;  %v16208_v3 = vadd.f32 %v16018_v9, %v15920_v57  ;;  %v16212_v17 = vadd.f32 %v16018_v9, %v15926_v44  ;;  %v16216_v50 = vadd.f32 %v16018_v9, %v15932_v38 }
 0xb81   :  { %v16220_v39 = vadd.f32 %v16018_v9, %v15938_v47  ;;  %v16224_v6 = vadd.f32 %v16018_v9, %v15944_v41  ;;  %v16228_v37 = vadd.f32 %v16018_v9, %v15950_v61  ;;  %v16232_v57 = vadd.f32 %v16018_v9, %v15956_v53 }
 0xb82   :  { %v16236_v44 = vadd.f32 %v16018_v9, %v15962_v32  ;;  %v16240_v38 = vadd.f32 %v16018_v9, %v15968_v60  ;;  %v16244_v47 = vadd.f32 %v16018_v9, %v15974_v55  ;;  %v16248_v41 = vadd.f32 %v16018_v9, %v15980_v21 }
 0xb83   :  { %v16252_v61 = vadd.f32 %v16018_v9, %v15983_v13  ;;  %v16256_v53 = vadd.f32 %v16018_v9, %v15986_v19  ;;  %v16260_v32 = vadd.f32 %v16018_v9, %v15989_v35  ;;  %v16264_v60 = vadd.f32 %v16018_v9, %v15992_v45  ;;  %v18547_v35 = vld [vmem:[#allocation168_spill] sm:$0xff] }
 0xb84   :  { %v16268_v55 = vadd.f32 %v16018_v9, %v15995_v62  ;;  %v16272_v21 = vadd.f32 %v16018_v9, %v15998_v5  ;;  %v16276_v13 = vadd.f32 %v16018_v9, %v16001_v26  ;;  %v16280_v19 = vadd.f32 %v16018_v9, %v16004_v30 }
 0xb85   :  { %v16284_v45 = vadd.f32 %v16018_v9, %v18547_v35  ;;  %v16288_v62 = vadd.f32 %v16018_v9, %v18549_v63  ;;  %v16292_v5 = vadd.f32 %v16018_v9, %v18551_v28  ;;  %v16296_v26 = vadd.f32 %v16018_v9, %v16021_v56 }
 0xb86   :  { %18546 = vst [vmem:[#allocation174_spill] sm:$0xff] %v16280_v19  ;;  %v16300_v30 = vadd.f32 %v16018_v9, %v18554_v36  ;;  %v18556_v19 = vld [vmem:[#allocation170_spill] sm:$0xff] }
 0xb87   :  { %18548 = vst [vmem:[#allocation18_spill] sm:$0xff] %v16284_v45  ;;  %18550 = vst [vmem:[#allocation173_spill] sm:$0xff] %v16288_v62  ;;  %v16304_v35 = vadd.f32 %v16018_v9, %v18556_v19  ;;  %v18557_v45 = vld [vmem:[#allocation10_spill] sm:$0xff]  ;;  %v18558_v62 = vld [vmem:[#allocation171_spill] sm:$0xff] }
 0xb88   :  { %18552 = vst [vmem:[#allocation175_spill] sm:$0xff] %v16292_v5  ;;  %18553 = vst [vmem:[#allocation177_spill] sm:$0xff] %v16296_v26  ;;  %v16308_v63 = vadd.f32 %v16018_v9, %v18557_v45  ;;  %v16312_v28 = vadd.f32 %v16018_v9, %v18558_v62  ;;  %v18559_v5 = vld [vmem:[#allocation9_spill] sm:$0xff]  ;;  %v18560_v26 = vld [vmem:[#allocation11_spill] sm:$0xff]  ;;  %v16328_v45 = vadd.f32 %v16018_v9, %v16066_v25 }
 0xb89   :  { %18555 = vst [vmem:[#allocation33_spill] sm:$0xff] %v16300_v30  ;;  %v16316_v56 = vadd.f32 %v16018_v9, %v18559_v5  ;;  %v16320_v36 = vadd.f32 %v16018_v9, %v18560_v26  ;;  %v18562_v30 = vld [vmem:[#allocation172_spill] sm:$0xff]  ;;  %v16332_v62 = vadd.f32 %v16018_v9, %v16072_v4  ;;  %v16336_v5 = vadd.f32 %v16018_v9, %v16078_v51 }
 0xb8a   :  { %v16324_v19 = vadd.f32 %v16018_v9, %v18562_v30  ;;  %18564 = vst [vmem:[#allocation180_spill] sm:$0xff] %v16328_v45  ;;  %v16340_v26 = vadd.f32 %v16018_v9, %v16084_v11  ;;  %v18569_v45 = vld [vmem:[#allocation126_spill] sm:$0xff] }
 0xb8b   :  { %18561 = vst [vmem:[#allocation176_spill] sm:$0xff] %v16320_v36  ;;  %18565 = vst [vmem:[#allocation25_spill] sm:$0xff] %v16332_v62  ;;  %v18567_v36 = vld [vmem:[#allocation41_spill] sm:$0xff]  ;;  %v16352_v4 = vadd.f32 %v16096_v24, %v18569_v45  ;;  %v18570_v62 = vld [vmem:[#allocation130_spill] sm:$0xff] }
 0xb8c   :  { %18563 = vst [vmem:[#allocation178_spill] sm:$0xff] %v16324_v19  ;;  %18566 = vst [vmem:[#allocation179_spill] sm:$0xff] %v16336_v5  ;;  %v16344_v30 = vadd.f32 %v16088_v2, %v18567_v36  ;;  %v18568_v19 = vld [vmem:[#allocation35_spill] sm:$0xff]  ;;  %v16356_v51 = vadd.f32 %v16100_v15, %v18570_v62  ;;  %v18571_v5 = vld [vmem:[#allocation134_spill] sm:$0xff] }
 0xb8d   :  { %v16348_v25 = vadd.f32 %v16092_v34, %v18568_v19  ;;  %v16360_v9 = vadd.f32 %v16104_v58, %v18571_v5  ;;  %v18572_v11 = vld [vmem:[#allocation138_spill] sm:$0xff]  ;;  %v18573_v36 = vld [vmem:[#allocation117_spill] sm:$0xff]  ;;  %v18576_v62 = vld [vmem:[#allocation139_spill] sm:$0xff] }
 0xb8e   :  { %v16364_v2 = vadd.f32 %v16108_v43, %v18572_v11  ;;  %v16368_v34 = vadd.f32 %v16112_v8, %v18573_v36  ;;  %v18574_v19 = vld [vmem:[#allocation113_spill] sm:$0xff]  ;;  %v16380_v58 = vadd.f32 %v16124_v29, %v18576_v62  ;;  %v18577_v5 = vld [vmem:[#allocation6_spill] sm:$0xff]  ;;  %v18578_v11 = vld [vmem:[#allocation12_spill] sm:$0xff] }
 0xb8f   :  { %v16372_v24 = vadd.f32 %v16116_v20, %v18574_v19  ;;  %v18575_v45 = vld [vmem:[#allocation141_spill] sm:$0xff]  ;;  %v16384_v43 = vadd.f32 %v16128_v27, %v18577_v5  ;;  %v16388_v8 = vadd.f32 %v16132_v48, %v18578_v11  ;;  %v18580_v19 = vld [vmem:[#allocation19_spill] sm:$0xff]  ;;  %v18582_v62 = vld [vmem:[#allocation24_spill] sm:$0xff] }
 0xb90   :  { %v16376_v15 = vadd.f32 %v16120_v22, %v18575_v45  ;;  %v18579_v36 = vld [vmem:[#allocation13_spill] sm:$0xff]  ;;  %v16396_v22 = vadd.f32 %v16140_v14, %v18580_v19  ;;  %v16404_v27 = vadd.f32 %v16148_v54, %v18582_v62  ;;  %v18583_v5 = vld [vmem:[#allocation28_spill] sm:$0xff]  ;;  %v18586_v19 = vld [vmem:[#allocation54_spill] sm:$0xff] }
 0xb91   :  { %v16392_v20 = vadd.f32 %v16136_v46, %v18579_v36  ;;  %v18581_v45 = vld [vmem:[#allocation17_spill] sm:$0xff]  ;;  %v16408_v48 = vadd.f32 %v16152_v16, %v18583_v5  ;;  %v18584_v11 = vld [vmem:[#allocation32_spill] sm:$0xff]  ;;  %v18585_v36 = vld [vmem:[#allocation47_spill] sm:$0xff] }
 0xb92   :  { %v16400_v29 = vadd.f32 %v16144_v12, %v18581_v45  ;;  %v16412_v46 = vadd.f32 %v16156_v1, %v18584_v11  ;;  %v16416_v14 = vadd.f32 %v16160_v59, %v18585_v36  ;;  %v16420_v12 = vadd.f32 %v16164_v18, %v18586_v19  ;;  %v18587_v45 = vld [vmem:[#allocation20_spill] sm:$0xff]  ;;  %v18588_v62 = vld [vmem:[#allocation114_spill] sm:$0xff]  ;;  %v18589_v5 = vld [vmem:[#allocation21_spill] sm:$0xff] }
 0xb93   :  { %v16424_v54 = vadd.f32 %v16168_v0, %v18587_v45  ;;  %v16428_v16 = vadd.f32 %v16172_v42, %v18588_v62  ;;  %v16432_v1 = vadd.f32 %v16176_v31, %v18589_v5  ;;  %v18590_v11 = vld [vmem:[#allocation140_spill] sm:$0xff]  ;;  %v18591_v36 = vld [vmem:[#allocation123_spill] sm:$0xff] }
 0xb94   :  { %v16436_v59 = vadd.f32 %v16180_v33, %v18590_v11  ;;  %v16440_v18 = vadd.f32 %v16184_v40, %v18591_v36  ;;  %v18592_v19 = vld [vmem:[#allocation124_spill] sm:$0xff]  ;;  %v18593_v45 = vld [vmem:[#allocation127_spill] sm:$0xff]  ;;  %v18597_v36 = vld [vmem:[#allocation142_spill] sm:$0xff] }
 0xb95   :  { %v16444_v0 = vadd.f32 %v16188_v49, %v18592_v19  ;;  %v16448_v42 = vadd.f32 %v16192_v52, %v18593_v45  ;;  %v18594_v62 = vld [vmem:[#allocation128_spill] sm:$0xff]  ;;  %v18595_v5 = vld [vmem:[#allocation131_spill] sm:$0xff]  ;;  %v16464_v49 = vadd.f32 %v16208_v3, %v18597_v36  ;;  %v18599_v45 = vld [vmem:[#allocation30_spill] sm:$0xff] }
 0xb96   :  { %v16452_v31 = vadd.f32 %v16196_v10, %v18594_v62  ;;  %v16456_v33 = vadd.f32 %v16200_v23, %v18595_v5  ;;  %v18596_v11 = vld [vmem:[#allocation132_spill] sm:$0xff]  ;;  %v16472_v10 = vadd.f32 %v16216_v50, %v18599_v45  ;;  %v18600_v62 = vld [vmem:[#allocation118_spill] sm:$0xff]  ;;  %v18601_v5 = vld [vmem:[#allocation143_spill] sm:$0xff] }
 0xb97   :  { %v16460_v40 = vadd.f32 %v16204_v7, %v18596_v11  ;;  %v18598_v19 = vld [vmem:[#allocation144_spill] sm:$0xff]  ;;  %v16476_v23 = vadd.f32 %v16220_v39, %v18600_v62  ;;  %v16480_v7 = vadd.f32 %v16224_v6, %v18601_v5  ;;  %v18603_v36 = vld [vmem:[#allocation146_spill] sm:$0xff]  ;;  %v18606_v62 = vld [vmem:[#allocation145_spill] sm:$0xff] }
 0xb98   :  { %v16468_v52 = vadd.f32 %v16212_v17, %v18598_v19  ;;  %v18602_v11 = vld [vmem:[#allocation136_spill] sm:$0xff]  ;;  %v16488_v17 = vadd.f32 %v16232_v57, %v18603_v36  ;;  %v18604_v19 = vld [vmem:[#allocation147_spill] sm:$0xff]  ;;  %v18605_v45 = vld [vmem:[#allocation26_spill] sm:$0xff]  ;;  %v16500_v6 = vadd.f32 %v16244_v47, %v18606_v62 }
 0xb99   :  { %v16484_v3 = vadd.f32 %v16228_v37, %v18602_v11  ;;  %v16492_v50 = vadd.f32 %v16236_v44, %v18604_v19  ;;  %v16496_v39 = vadd.f32 %v16240_v38, %v18605_v45  ;;  %v18607_v5 = vld [vmem:[#allocation108_spill] sm:$0xff]  ;;  %v18608_v11 = vld [vmem:[#allocation150_spill] sm:$0xff]  ;;  %v18611_v19 = vld [vmem:[#allocation149_spill] sm:$0xff] }
 0xb9a   :  { %v16504_v37 = vadd.f32 %v16248_v41, %v18607_v5  ;;  %v16508_v57 = vadd.f32 %v16252_v61, %v18608_v11  ;;  %v18609_v36 = vld [vmem:[#allocation152_spill] sm:$0xff]  ;;  %v16516_v38 = vadd.f32 %v16260_v32, %v18611_v19  ;;  %v18613_v45 = vld [vmem:[#allocation151_spill] sm:$0xff]  ;;  %v18615_v62 = vld [vmem:[#allocation154_spill] sm:$0xff] }
 0xb9b   :  { %v16512_v44 = vadd.f32 %v16256_v53, %v18609_v36  ;;  %v16520_v47 = vadd.f32 %v16264_v60, %v18613_v45  ;;  %v16524_v41 = vadd.f32 %v16268_v55, %v18615_v62  ;;  %v18617_v5 = vld [vmem:[#allocation156_spill] sm:$0xff]  ;;  %v18619_v11 = vld [vmem:[#allocation153_spill] sm:$0xff]  ;;  %v18621_v36 = vld [vmem:[#allocation155_spill] sm:$0xff] }
 0xb9c   :  { %18612 = vst [vmem:[#allocation183_spill] sm:$0xff] %v16516_v38  ;;  %v16528_v61 = vadd.f32 %v16272_v21, %v18617_v5  ;;  %v16532_v53 = vadd.f32 %v16276_v13, %v18619_v11  ;;  %v18623_v19 = vld [vmem:[#allocation158_spill] sm:$0xff]  ;;  %v18625_v45 = vld [vmem:[#allocation160_spill] sm:$0xff]  ;;  %v18627_v62 = vld [vmem:[#allocation157_spill] sm:$0xff] }
 0xb9d   :  { %18610 = vst [vmem:[#allocation181_spill] sm:$0xff] %v16512_v44  ;;  %18614 = vst [vmem:[#allocation27_spill] sm:$0xff] %v16520_v47  ;;  %v18622_v44 = vld [vmem:[#allocation174_spill] sm:$0xff]  ;;  %v18626_v47 = vld [vmem:[#allocation173_spill] sm:$0xff] }
 0xb9e   :  { %18616 = vst [vmem:[#allocation182_spill] sm:$0xff] %v16524_v41  ;;  %18618 = vst [vmem:[#allocation184_spill] sm:$0xff] %v16528_v61  ;;  %v16536_v32 = vadd.f32 %v18622_v44, %v18621_v36  ;;  %v18624_v38 = vld [vmem:[#allocation18_spill] sm:$0xff]  ;;  %v16544_v55 = vadd.f32 %v18626_v47, %v18625_v45  ;;  %v18628_v41 = vld [vmem:[#allocation175_spill] sm:$0xff] }
 0xb9f   :  { %18620 = vst [vmem:[#allocation186_spill] sm:$0xff] %v16532_v53  ;;  %v16540_v60 = vadd.f32 %v18624_v38, %v18623_v19  ;;  %v16548_v21 = vadd.f32 %v18628_v41, %v18627_v62  ;;  %v18629_v5 = vld [vmem:[#allocation159_spill] sm:$0xff]  ;;  %v18630_v61 = vld [vmem:[#allocation177_spill] sm:$0xff]  ;;  %v18632_v11 = vld [vmem:[#allocation162_spill] sm:$0xff] }
 0xba0   :  { %v16552_v13 = vadd.f32 %v18630_v61, %v18629_v5  ;;  %v18633_v53 = vld [vmem:[#allocation33_spill] sm:$0xff]  ;;  %v18635_v36 = vld [vmem:[#allocation164_spill] sm:$0xff]  ;;  %v18639_v45 = vld [vmem:[#allocation163_spill] sm:$0xff] }
 0xba1   :  { %v16556_v44 = vadd.f32 %v18633_v53, %v18632_v11  ;;  %v16560_v38 = vadd.f32 %v16304_v35, %v18635_v36  ;;  %v18637_v19 = vld [vmem:[#allocation161_spill] sm:$0xff]  ;;  %v16568_v41 = vadd.f32 %v16312_v28, %v18639_v45  ;;  %v18641_v62 = vld [vmem:[#allocation166_spill] sm:$0xff]  ;;  %v18642_v5 = vld [vmem:[#allocation7_spill] sm:$0xff] }
 0xba2   :  { %18631 = vst [vmem:[#allocation46_spill] sm:$0xff] %v16552_v13  ;;  %v16564_v47 = vadd.f32 %v16308_v63, %v18637_v19  ;;  %v16572_v61 = vadd.f32 %v16316_v56, %v18641_v62  ;;  %v18643_v13 = vld [vmem:[#allocation176_spill] sm:$0xff]  ;;  %v18644_v11 = vld [vmem:[#allocation165_spill] sm:$0xff]  ;;  %v18646_v36 = vld [vmem:[#allocation167_spill] sm:$0xff] }
 0xba3   :  { %18634 = vst [vmem:[#allocation185_spill] sm:$0xff] %v16556_v44  ;;  %18636 = vst [vmem:[#allocation31_spill] sm:$0xff] %v16560_v38  ;;  %v16576_v53 = vadd.f32 %v18643_v13, %v18642_v5  ;;  %v18645_v44 = vld [vmem:[#allocation178_spill] sm:$0xff]  ;;  %v18647_v38 = vld [vmem:[#allocation180_spill] sm:$0xff]  ;;  %v8200_v5 = vmax.f32 %v16344_v30, 0.0  ;;  %v8210_v30 = vmax.f32 %v16384_v43, 0.0 }
 0xba4   :  { %18638 = vst [vmem:[#allocation40_spill] sm:$0xff] %v16564_v47  ;;  %18640 = vst [vmem:[#allocation44_spill] sm:$0xff] %v16568_v41  ;;  %v16580_v35 = vadd.f32 %v18645_v44, %v18644_v11  ;;  %v16584_v63 = vadd.f32 %v18647_v38, %v18646_v36  ;;  %v18648_v19 = vld [vmem:[#allocation84_spill] sm:$0xff]  ;;  %v18649_v47 = vld [vmem:[#allocation25_spill] sm:$0xff]  ;;  %v8201_v44 = vmax.f32 %v16348_v25, 0.0  ;;  %v8202_v11 = vmax.f32 %v16352_v4, 0.0 }
 0xba5   :  { %v16588_v28 = vadd.f32 %v18649_v47, %v18648_v19  ;;  %v18650_v45 = vld [vmem:[#allocation4_spill] sm:$0xff]  ;;  %v18651_v41 = vld [vmem:[#allocation179_spill] sm:$0xff]  ;;  %v18652_v62 = vld [vmem:[#allocation82_spill] sm:$0xff]  ;;  %v8203_v38 = vmax.f32 %v16356_v51, 0.0  ;;  %v8204_v36 = vmax.f32 %v16360_v9, 0.0  ;;  %v8205_v47 = vmax.f32 %v16364_v2, 0.0  ;;  %8264 = vst [vmem:[%s16864_s10] sm:$0xff] %v8200_v5 }
 0xba6   :  { %v16592_v56 = vadd.f32 %v18651_v41, %v18650_v45  ;;  %v16596_v13 = vadd.f32 %v16340_v26, %v18652_v62  ;;  %v8206_v19 = vmax.f32 %v16368_v34, 0.0  ;;  %v8207_v41 = vmax.f32 %v16372_v24, 0.0  ;;  %8265 = vst [vmem:[%s16864_s10 + $0x8] sm:$0xff] %v8201_v44  ;;  %8266 = vst [vmem:[%s16864_s10 + $0x10] sm:$0xff] %v8202_v11  ;;  %v18658_v62 = vld [vmem:[#allocation186_spill] sm:$0xff] }
 0xba7   :  { %v8208_v45 = vmax.f32 %v16376_v15, 0.0  ;;  %v8209_v26 = vmax.f32 %v16380_v58, 0.0  ;;  %v8211_v25 = vmax.f32 %v16388_v8, 0.0  ;;  %8267 = vst [vmem:[%s16864_s10 + $0x18] sm:$0xff] %v8203_v38  ;;  %v8212_v4 = vmax.f32 %v16392_v20, 0.0  ;;  %8268 = vst [vmem:[%s16864_s10 + $0x20] sm:$0xff] %v8204_v36 }
 0xba8   :  { %v8213_v51 = vmax.f32 %v16396_v22, 0.0  ;;  %v8214_v9 = vmax.f32 %v16400_v29, 0.0  ;;  %v8215_v2 = vmax.f32 %v16404_v27, 0.0  ;;  %8269 = vst [vmem:[%s16864_s10 + $0x28] sm:$0xff] %v8205_v47  ;;  %8270 = vst [vmem:[%s16864_s10 + $0x30] sm:$0xff] %v8206_v19  ;;  %v8216_v34 = vmax.f32 %v16408_v48, 0.0 }
 0xba9   :  { %8271 = vst [vmem:[%s16864_s10 + $0x38] sm:$0xff] %v8207_v41  ;;  %v8217_v24 = vmax.f32 %v16412_v46, 0.0  ;;  %v8218_v15 = vmax.f32 %v16416_v14, 0.0  ;;  %v8219_v58 = vmax.f32 %v16420_v12, 0.0  ;;  %8272 = vst [vmem:[%s16864_s10 + $0x40] sm:$0xff] %v8208_v45  ;;  %v8220_v43 = vmax.f32 %v16424_v54, 0.0 }
 0xbaa   :  { %8273 = vst [vmem:[%s16864_s10 + $0x48] sm:$0xff] %v8209_v26  ;;  %8274 = vst [vmem:[%s16864_s10 + $0x50] sm:$0xff] %v8210_v30  ;;  %v8221_v8 = vmax.f32 %v16428_v16, 0.0  ;;  %v8222_v20 = vmax.f32 %v16432_v1, 0.0  ;;  %v8223_v22 = vmax.f32 %v16436_v59, 0.0  ;;  %v8224_v29 = vmax.f32 %v16440_v18, 0.0 }
 0xbab   :  { %8275 = vst [vmem:[%s16864_s10 + $0x58] sm:$0xff] %v8211_v25  ;;  %8276 = vst [vmem:[%s16864_s10 + $0x60] sm:$0xff] %v8212_v4  ;;  %v8225_v27 = vmax.f32 %v16444_v0, 0.0  ;;  %v8226_v48 = vmax.f32 %v16448_v42, 0.0  ;;  %v8227_v46 = vmax.f32 %v16452_v31, 0.0  ;;  %v8228_v14 = vmax.f32 %v16456_v33, 0.0 }
 0xbac   :  { %8277 = vst [vmem:[%s16864_s10 + $0x68] sm:$0xff] %v8213_v51  ;;  %8278 = vst [vmem:[%s16864_s10 + $0x70] sm:$0xff] %v8214_v9  ;;  %v8229_v12 = vmax.f32 %v16460_v40, 0.0  ;;  %v8230_v54 = vmax.f32 %v16464_v49, 0.0  ;;  %v8231_v16 = vmax.f32 %v16468_v52, 0.0  ;;  %v8232_v1 = vmax.f32 %v16472_v10, 0.0 }
 0xbad   :  { %8279 = vst [vmem:[%s16864_s10 + $0x78] sm:$0xff] %v8215_v2  ;;  %8280 = vst [vmem:[%s16864_s10 + $0x80] sm:$0xff] %v8216_v34  ;;  %v8233_v59 = vmax.f32 %v16476_v23, 0.0  ;;  %v8234_v18 = vmax.f32 %v16480_v7, 0.0  ;;  %v8235_v0 = vmax.f32 %v16484_v3, 0.0  ;;  %v8236_v42 = vmax.f32 %v16488_v17, 0.0 }
 0xbae   :  { %8281 = vst [vmem:[%s16864_s10 + $0x88] sm:$0xff] %v8217_v24  ;;  %8282 = vst [vmem:[%s16864_s10 + $0x90] sm:$0xff] %v8218_v15  ;;  %v8237_v31 = vmax.f32 %v16492_v50, 0.0  ;;  %v8238_v33 = vmax.f32 %v16496_v39, 0.0  ;;  %v8239_v40 = vmax.f32 %v16500_v6, 0.0  ;;  %v8240_v49 = vmax.f32 %v16504_v37, 0.0 }
 0xbaf   :  { %8283 = vst [vmem:[%s16864_s10 + $0x98] sm:$0xff] %v8219_v58  ;;  %8284 = vst [vmem:[%s16864_s10 + $0xa0] sm:$0xff] %v8220_v43  ;;  %v8241_v52 = vmax.f32 %v16508_v57, 0.0  ;;  %v18653_v10 = vld [vmem:[#allocation181_spill] sm:$0xff]  ;;  %v18654_v7 = vld [vmem:[#allocation183_spill] sm:$0xff]  ;;  %v8247_v5 = vmax.f32 %v18658_v62, 0.0 }
 0xbb0   :  { %8285 = vst [vmem:[%s16864_s10 + $0xa8] sm:$0xff] %v8221_v8  ;;  %8286 = vst [vmem:[%s16864_s10 + $0xb0] sm:$0xff] %v8222_v20  ;;  %v8242_v23 = vmax.f32 %v18653_v10, 0.0  ;;  %v8243_v3 = vmax.f32 %v18654_v7, 0.0  ;;  %v18655_v17 = vld [vmem:[#allocation27_spill] sm:$0xff]  ;;  %v18656_v39 = vld [vmem:[#allocation182_spill] sm:$0xff] }
 0xbb1   :  { %8287 = vst [vmem:[%s16864_s10 + $0xb8] sm:$0xff] %v8223_v22  ;;  %8288 = vst [vmem:[%s16864_s10 + $0xc0] sm:$0xff] %v8224_v29  ;;  %v8244_v50 = vmax.f32 %v18655_v17, 0.0  ;;  %v8245_v6 = vmax.f32 %v18656_v39, 0.0  ;;  %v18657_v37 = vld [vmem:[#allocation184_spill] sm:$0xff]  ;;  %v8248_v44 = vmax.f32 %v16536_v32, 0.0 }
 0xbb2   :  { %8289 = vst [vmem:[%s16864_s10 + $0xc8] sm:$0xff] %v8225_v27  ;;  %8290 = vst [vmem:[%s16864_s10 + $0xd0] sm:$0xff] %v8226_v48  ;;  %v8246_v57 = vmax.f32 %v18657_v37, 0.0  ;;  %v8249_v11 = vmax.f32 %v16540_v60, 0.0  ;;  %v8250_v38 = vmax.f32 %v16544_v55, 0.0  ;;  %v8251_v36 = vmax.f32 %v16548_v21, 0.0 }
 0xbb3   :  { %8291 = vst [vmem:[%s16864_s10 + $0xd8] sm:$0xff] %v8227_v46  ;;  %8292 = vst [vmem:[%s16864_s10 + $0xe0] sm:$0xff] %v8228_v14  ;;  %v18659_v32 = vld [vmem:[#allocation46_spill] sm:$0xff]  ;;  %v18660_v55 = vld [vmem:[#allocation185_spill] sm:$0xff]  ;;  %v8257_v25 = vmax.f32 %v16572_v61, 0.0  ;;  %v8258_v4 = vmax.f32 %v16576_v53, 0.0 }
 0xbb4   :  { %8293 = vst [vmem:[%s16864_s10 + $0xe8] sm:$0xff] %v8229_v12  ;;  %8294 = vst [vmem:[%s16864_s10 + $0xf0] sm:$0xff] %v8230_v54  ;;  %v8252_v60 = vmax.f32 %v18659_v32, 0.0  ;;  %v8253_v21 = vmax.f32 %v18660_v55, 0.0  ;;  %v18661_v47 = vld [vmem:[#allocation31_spill] sm:$0xff]  ;;  %v18662_v41 = vld [vmem:[#allocation40_spill] sm:$0xff] }
 0xbb5   :  { %8295 = vst [vmem:[%s16864_s10 + $0xf8] sm:$0xff] %v8231_v16  ;;  %8296 = vst [vmem:[%s16864_s10 + $0x100] sm:$0xff] %v8232_v1  ;;  %v8254_v19 = vmax.f32 %v18661_v47, 0.0  ;;  %v8255_v45 = vmax.f32 %v18662_v41, 0.0  ;;  %v18663_v26 = vld [vmem:[#allocation44_spill] sm:$0xff]  ;;  %v8259_v51 = vmax.f32 %v16580_v35, 0.0 }
 0xbb6   :  { %8297 = vst [vmem:[%s16864_s10 + $0x108] sm:$0xff] %v8233_v59  ;;  %8298 = vst [vmem:[%s16864_s10 + $0x110] sm:$0xff] %v8234_v18  ;;  %v8256_v30 = vmax.f32 %v18663_v26, 0.0  ;;  %v8260_v61 = vmax.f32 %v16584_v63, 0.0  ;;  %v8261_v53 = vmax.f32 %v16588_v28, 0.0  ;;  %v8262_v35 = vmax.f32 %v16592_v56, 0.0 }
 0xbb7   :  { %8299 = vst [vmem:[%s16864_s10 + $0x118] sm:$0xff] %v8235_v0  ;;  %8300 = vst [vmem:[%s16864_s10 + $0x120] sm:$0xff] %v8236_v42  ;;  %v8263_v9 = vmax.f32 %v16596_v13, 0.0 }
 0xbb8   :  { %8301 = vst [vmem:[%s16864_s10 + $0x128] sm:$0xff] %v8237_v31  ;;  %8302 = vst [vmem:[%s16864_s10 + $0x130] sm:$0xff] %v8238_v33 }
 0xbb9   :  { %8303 = vst [vmem:[%s16864_s10 + $0x138] sm:$0xff] %v8239_v40  ;;  %8304 = vst [vmem:[%s16864_s10 + $0x140] sm:$0xff] %v8240_v49 }
 0xbba   :  { %8305 = vst [vmem:[%s16864_s10 + $0x148] sm:$0xff] %v8241_v52  ;;  %8306 = vst [vmem:[%s16864_s10 + $0x150] sm:$0xff] %v8242_v23 }
 0xbbb   :  { %8307 = vst [vmem:[%s16864_s10 + $0x158] sm:$0xff] %v8243_v3  ;;  %8308 = vst [vmem:[%s16864_s10 + $0x160] sm:$0xff] %v8244_v50 }
 0xbbc   :  { %8309 = vst [vmem:[%s16864_s10 + $0x168] sm:$0xff] %v8245_v6  ;;  %8310 = vst [vmem:[%s16864_s10 + $0x170] sm:$0xff] %v8246_v57 }
 0xbbd   :  { %8311 = vst [vmem:[%s16864_s10 + $0x178] sm:$0xff] %v8247_v5  ;;  %8312 = vst [vmem:[%s16864_s10 + $0x180] sm:$0xff] %v8248_v44 }
 0xbbe   :  { %8313 = vst [vmem:[%s16864_s10 + $0x188] sm:$0xff] %v8249_v11  ;;  %8314 = vst [vmem:[%s16864_s10 + $0x190] sm:$0xff] %v8250_v38 }
 0xbbf   :  { %8315 = vst [vmem:[%s16864_s10 + $0x198] sm:$0xff] %v8251_v36  ;;  %8316 = vst [vmem:[%s16864_s10 + $0x1a0] sm:$0xff] %v8252_v60 }
 0xbc0   :  { %8317 = vst [vmem:[%s16864_s10 + $0x1a8] sm:$0xff] %v8253_v21  ;;  %8318 = vst [vmem:[%s16864_s10 + $0x1b0] sm:$0xff] %v8254_v19 }
 0xbc1   :  { %8319 = vst [vmem:[%s16864_s10 + $0x1b8] sm:$0xff] %v8255_v45  ;;  %8320 = vst [vmem:[%s16864_s10 + $0x1c0] sm:$0xff] %v8256_v30 }
 0xbc2   :  { %8321 = vst [vmem:[%s16864_s10 + $0x1c8] sm:$0xff] %v8257_v25  ;;  %8322 = vst [vmem:[%s16864_s10 + $0x1d0] sm:$0xff] %v8258_v4 }
 0xbc3   :  { %8323 = vst [vmem:[%s16864_s10 + $0x1d8] sm:$0xff] %v8259_v51  ;;  %8324 = vst [vmem:[%s16864_s10 + $0x1e0] sm:$0xff] %v8260_v61 }
 0xbc4   :  { %8325 = vst [vmem:[%s16864_s10 + $0x1e8] sm:$0xff] %v8261_v53  ;;  %8326 = vst [vmem:[%s16864_s10 + $0x1f0] sm:$0xff] %v8262_v35 }
 0xbc5   :  { %8327 = vst [vmem:[%s16864_s10 + $0x1f8] sm:$0xff] %v8263_v9 }

</bundles_post_ra>
